<compile_context>
chip_gen: v5e
topology: v5e:2x2
jax: 0.10.0
libtpu: 0.0.40
codegen_flags: <defaults>
</compile_context>

<pallas_src>
import jax
import jax.numpy as jnp
from jax.experimental import pallas as pl
from jax.experimental.pallas import tpu as pltpu


# ------------------------------- kernel -------------------------------------


def seq2seq_kernel(src_emb_ref, x0_ref,
                   enc_w_ih_ref, enc_w_hh_ref, enc_b_ref,
                   dec_w_ih_hbm, dec_w_hh_hbm, dec_b_ref,
                   dec_emb_hbm, dec_w_out_hbm, dec_b_out_ref,
                   tokens_ref,
                   dec_w_ih_buf, dec_w_hh_buf, dec_emb_buf, dec_w_out_buf,
                   dma_sems):
    S = src_emb_ref.shape[0]
    H = enc_w_hh_ref.shape[0]
    V = dec_emb_hbm.shape[0]
    T = tokens_ref.shape[1]

    # -------- kick off decoder-weight DMAs; they run under the encoder ------
    copies = [
        pltpu.make_async_copy(dec_w_ih_hbm, dec_w_ih_buf, dma_sems.at[0]),
        pltpu.make_async_copy(dec_w_hh_hbm, dec_w_hh_buf, dma_sems.at[1]),
        pltpu.make_async_copy(dec_emb_hbm, dec_emb_buf, dma_sems.at[2]),
        pltpu.make_async_copy(dec_w_out_hbm, dec_w_out_buf, dma_sems.at[3]),
    ]
    for cp in copies:
        cp.start()

    # ---------------------------- encoder -----------------------------------
    # Hoisted input projection: one (S,E)@(E,4H) MXU pass instead of S
    # separate M=1 pushes inside the recurrence.  Bias folded in once.
    # Kept as a value; the fully-unrolled loop slices it with static indices.
    xproj = (jnp.dot(src_emb_ref[...].astype(jnp.bfloat16), enc_w_ih_ref[...],
                     preferred_element_type=jnp.float32)
             + enc_b_ref[...])                                   # (S, 4H) f32

    def lstm_gates(gates, c):
        i_g = jax.nn.sigmoid(gates[:, 0:H])
        f_g = jax.nn.sigmoid(gates[:, H:2 * H])
        g_g = jnp.tanh(gates[:, 2 * H:3 * H])
        o_g = jax.nn.sigmoid(gates[:, 3 * H:4 * H])
        c_new = f_g * c + i_g * g_g
        h_new = o_g * jnp.tanh(c_new)
        return h_new, c_new

    h = jnp.zeros((1, H), jnp.float32)
    c = jnp.zeros((1, H), jnp.float32)
    for t in range(S):                       # static unroll, static row slices
        gates = xproj[t:t + 1, :] + jnp.dot(
            h.astype(jnp.bfloat16), enc_w_hh_ref[...],
            preferred_element_type=jnp.float32)
        h, c = lstm_gates(gates, c)

    # decoder weights must be resident from here on
    for cp in copies:
        cp.wait()

    # ------------------------- greedy decoder -------------------------------
    # hoisted loop invariants (small (1,*) rows; big weights stay as ref reads
    # inside the loop so they are not pinned across iterations in vregs)
    dec_b = dec_b_ref[...]                                       # (1, 4H)
    dec_b_out = dec_b_out_ref[...]                               # (1, V)
    v_iota = jax.lax.broadcasted_iota(jnp.int32, (1, V), 1)
    t_iota = jax.lax.broadcasted_iota(jnp.int32, (1, T), 1)

    toks = jnp.zeros((1, T), jnp.float32)
    x = x0_ref[...]                                              # (1, E) f32
    for t in range(T):
        # split partials (no concat): h@W_hh of the next step only depends on
        # h_new and pipelines with the logits/argmax/embed chain
        gates = (jnp.dot(x.astype(jnp.bfloat16), dec_w_ih_buf[...],
                         preferred_element_type=jnp.float32)
                 + jnp.dot(h.astype(jnp.bfloat16), dec_w_hh_buf[...],
                           preferred_element_type=jnp.float32)
                 + dec_b)
        h, c = lstm_gates(gates, c)
        logits = (jnp.dot(h.astype(jnp.bfloat16), dec_w_out_buf[...],
                          preferred_element_type=jnp.float32)
                  + dec_b_out)                                   # (1, V) f32
        # first-occurrence argmax (matches torch.argmax tie-breaking)
        maxv = jnp.max(logits, axis=1, keepdims=True)
        idx = jnp.min(jnp.where(logits == maxv, v_iota, V), axis=1,
                      keepdims=True)                             # (1, 1) int32
        # scalar index -> single dynamic row load of the f32 embedding table
        idx_s = idx[0, 0]
        x = dec_emb_buf[pl.ds(idx_s, 1), :]                      # (1, E) f32
        toks = jnp.where(t_iota == t, idx.astype(jnp.float32), toks)

    tokens_ref[...] = toks        # single lane-dense store after the loop


# ------------------------------ wrappers -------------------------------------


def run_seq2seq(src_emb, x0_emb, enc_w_ih, enc_w_hh, enc_b,
                dec_w_ih, dec_w_hh, dec_b, dec_emb, dec_w_out, dec_b_out, T):
    E = src_emb.shape[1]
    H = enc_w_hh.shape[0]
    V = dec_emb.shape[0]
    vmem = pltpu.MemorySpace.VMEM
    return pl.pallas_call(
        seq2seq_kernel,
        out_shape=jax.ShapeDtypeStruct((1, T), jnp.float32),
        in_specs=[
            pl.BlockSpec(memory_space=vmem),    # src_emb
            pl.BlockSpec(memory_space=vmem),    # x0_emb
            pl.BlockSpec(memory_space=vmem),    # enc_w_ih
            pl.BlockSpec(memory_space=vmem),    # enc_w_hh
            pl.BlockSpec(memory_space=vmem),    # enc_b
            pl.BlockSpec(memory_space=pl.ANY),  # dec_w_ih  (HBM, manual DMA)
            pl.BlockSpec(memory_space=pl.ANY),  # dec_w_hh  (HBM, manual DMA)
            pl.BlockSpec(memory_space=vmem),    # dec_b
            pl.BlockSpec(memory_space=pl.ANY),  # dec_emb   (HBM, manual DMA)
            pl.BlockSpec(memory_space=pl.ANY),  # dec_w_out (HBM, manual DMA)
            pl.BlockSpec(memory_space=vmem),    # dec_b_out
        ],
        out_specs=pl.BlockSpec(memory_space=vmem),
        scratch_shapes=[
            pltpu.VMEM((E, 4 * H), jnp.bfloat16),   # dec_w_ih buffer
            pltpu.VMEM((H, 4 * H), jnp.bfloat16),   # dec_w_hh buffer
            pltpu.VMEM((V, E), jnp.float32),        # dec_emb buffer
            pltpu.VMEM((H, V), jnp.bfloat16),       # dec_w_out buffer
            pltpu.SemaphoreType.DMA((4,)),
        ],
    )(src_emb, x0_emb, enc_w_ih, enc_w_hh, enc_b,
      dec_w_ih, dec_w_hh, dec_b, dec_emb, dec_w_out, dec_b_out)


def init_params(key, vocab_src, vocab_trg, emb_dim, hidden):
    ks = jax.random.split(key, 10)
    s = 0.1
    p = {
        "enc_emb":  jax.random.normal(ks[0], (vocab_src, emb_dim)) * s,
        "enc_w_ih": jax.random.normal(ks[1], (emb_dim, 4 * hidden)) * s,
        "enc_w_hh": jax.random.normal(ks[2], (hidden, 4 * hidden)) * s,
        "enc_b":    jax.random.normal(ks[3], (1, 4 * hidden)) * s,
        "dec_emb":  jax.random.normal(ks[4], (vocab_trg, emb_dim)) * s,
        "dec_w_ih": jax.random.normal(ks[5], (emb_dim, 4 * hidden)) * s,
        "dec_w_hh": jax.random.normal(ks[6], (hidden, 4 * hidden)) * s,
        "dec_b":    jax.random.normal(ks[7], (1, 4 * hidden)) * s,
        "dec_w_out": jax.random.normal(ks[8], (hidden, vocab_trg)) * s,
        "dec_b_out": jax.random.normal(ks[9], (1, vocab_trg)) * s,
    }
    return jax.tree_util.tree_map(lambda a: a.astype(jnp.float32), p)


def seq2seq_forward(params, src, trg):
    """Mirrors Seq2Seq.forward: encoder(src) -> greedy decode len(trg) steps."""
    # glue: embedding lookups for encoder inputs and the start token
    src_emb = params["enc_emb"][src]                       # [S, E] f32
    x0_emb = params["dec_emb"][trg[0]][None, :]            # (1, E), x = trg[0]
    T = int(trg.shape[0])

    bf16 = jnp.bfloat16
    tokens = run_seq2seq(
        src_emb, x0_emb,
        params["enc_w_ih"].astype(bf16),
        params["enc_w_hh"].astype(bf16),
        params["enc_b"],
        params["dec_w_ih"].astype(bf16),
        params["dec_w_hh"].astype(bf16),
        params["dec_b"],
        params["dec_emb"],                                 # f32 (row gather)
        params["dec_w_out"].astype(bf16),
        params["dec_b_out"],
        T,
    )                                                      # (1, T) f32
    outputs = tokens.reshape(T, 1)                         # like torch (T, 1)
    sent = " " + "".join("argmax " for _ in range(T))
    return outputs, sent


if __name__ == "__main__":
    VOCAB = 128      # src & trg vocab
    EMB = 128
    HIDDEN = 128
    S_SRC = 8
    T_TRG = 8

    key = jax.random.PRNGKey(0)
    kp, ks, kt = jax.random.split(key, 3)
    params = init_params(kp, VOCAB, VOCAB, EMB, HIDDEN)
    src = jax.random.randint(ks, (S_SRC,), 0, VOCAB, dtype=jnp.int32)
    trg = jax.random.randint(kt, (T_TRG,), 0, VOCAB, dtype=jnp.int32)

    outputs, sent = seq2seq_forward(params, src, trg)
    outputs = jax.block_until_ready(outputs)
    assert outputs.shape == (T_TRG, 1) and outputs.dtype == jnp.float32
    print("KERNEL_OK")
</pallas_src>

<mosaic_0001>
module attributes {stable_mosaic.version = 11 : i64} {
  func.func @seq2seq_kernel(%arg0: memref<8x128xf32, #tpu.memory_space<vmem>>, %arg1: memref<1x128xf32, #tpu.memory_space<vmem>>, %arg2: memref<128x512xbf16, #tpu.memory_space<vmem>>, %arg3: memref<128x512xbf16, #tpu.memory_space<vmem>>, %arg4: memref<1x512xf32, #tpu.memory_space<vmem>>, %arg5: memref<128x512xbf16, #tpu.memory_space<any>>, %arg6: memref<128x512xbf16, #tpu.memory_space<any>>, %arg7: memref<1x512xf32, #tpu.memory_space<vmem>>, %arg8: memref<128x128xf32, #tpu.memory_space<any>>, %arg9: memref<128x128xbf16, #tpu.memory_space<any>>, %arg10: memref<1x128xf32, #tpu.memory_space<vmem>>, %arg11: memref<1x8xf32, #tpu.memory_space<vmem>>, %arg12: memref<128x512xbf16, #tpu.memory_space<vmem>>, %arg13: memref<128x512xbf16, #tpu.memory_space<vmem>>, %arg14: memref<128x128xf32, #tpu.memory_space<vmem>>, %arg15: memref<128x128xbf16, #tpu.memory_space<vmem>>, %arg16: memref<4x!tpu.dma_semaphore, #tpu.memory_space<semaphore_mem>>) attributes {dimension_semantics = [], scalar_prefetch = 0 : i64, scratch_operands = 5 : i64, tpu.core_type = #tpu.core_type<tc>} {
    %c0_i32 = arith.constant 0 : i32
    %0 = tpu.memref_slice %arg16[%c0_i32] : memref<4x!tpu.dma_semaphore, #tpu.memory_space<semaphore_mem>> -> memref<1x!tpu.dma_semaphore, #tpu.memory_space<semaphore_mem>>
    %1 = tpu.memref_squeeze %0 : memref<1x!tpu.dma_semaphore, #tpu.memory_space<semaphore_mem>> -> memref<!tpu.dma_semaphore, #tpu.memory_space<semaphore_mem>>
    tpu.enqueue_dma source(%arg5 : memref<128x512xbf16, #tpu.memory_space<any>>) target(%arg12 : memref<128x512xbf16, #tpu.memory_space<vmem>>) target_semaphore(%1 : memref<!tpu.dma_semaphore, #tpu.memory_space<semaphore_mem>>)
    %c1_i32 = arith.constant 1 : i32
    %2 = tpu.memref_slice %arg16[%c1_i32] : memref<4x!tpu.dma_semaphore, #tpu.memory_space<semaphore_mem>> -> memref<1x!tpu.dma_semaphore, #tpu.memory_space<semaphore_mem>>
    %3 = tpu.memref_squeeze %2 : memref<1x!tpu.dma_semaphore, #tpu.memory_space<semaphore_mem>> -> memref<!tpu.dma_semaphore, #tpu.memory_space<semaphore_mem>>
    tpu.enqueue_dma source(%arg6 : memref<128x512xbf16, #tpu.memory_space<any>>) target(%arg13 : memref<128x512xbf16, #tpu.memory_space<vmem>>) target_semaphore(%3 : memref<!tpu.dma_semaphore, #tpu.memory_space<semaphore_mem>>)
    %c2_i32 = arith.constant 2 : i32
    %4 = tpu.memref_slice %arg16[%c2_i32] : memref<4x!tpu.dma_semaphore, #tpu.memory_space<semaphore_mem>> -> memref<1x!tpu.dma_semaphore, #tpu.memory_space<semaphore_mem>>
    %5 = tpu.memref_squeeze %4 : memref<1x!tpu.dma_semaphore, #tpu.memory_space<semaphore_mem>> -> memref<!tpu.dma_semaphore, #tpu.memory_space<semaphore_mem>>
    tpu.enqueue_dma source(%arg8 : memref<128x128xf32, #tpu.memory_space<any>>) target(%arg14 : memref<128x128xf32, #tpu.memory_space<vmem>>) target_semaphore(%5 : memref<!tpu.dma_semaphore, #tpu.memory_space<semaphore_mem>>)
    %c3_i32 = arith.constant 3 : i32
    %6 = tpu.memref_slice %arg16[%c3_i32] : memref<4x!tpu.dma_semaphore, #tpu.memory_space<semaphore_mem>> -> memref<1x!tpu.dma_semaphore, #tpu.memory_space<semaphore_mem>>
    %7 = tpu.memref_squeeze %6 : memref<1x!tpu.dma_semaphore, #tpu.memory_space<semaphore_mem>> -> memref<!tpu.dma_semaphore, #tpu.memory_space<semaphore_mem>>
    tpu.enqueue_dma source(%arg9 : memref<128x128xbf16, #tpu.memory_space<any>>) target(%arg15 : memref<128x128xbf16, #tpu.memory_space<vmem>>) target_semaphore(%7 : memref<!tpu.dma_semaphore, #tpu.memory_space<semaphore_mem>>)
    %c0 = arith.constant 0 : index
    %c0_0 = arith.constant 0 : index
    %8 = vector.load %arg0[%c0, %c0_0] : memref<8x128xf32, #tpu.memory_space<vmem>>, vector<8x128xf32>
    %9 = arith.truncf %8 : vector<8x128xf32> to vector<8x128xbf16>
    %c0_1 = arith.constant 0 : index
    %c0_2 = arith.constant 0 : index
    %10 = vector.load %arg2[%c0_1, %c0_2] : memref<128x512xbf16, #tpu.memory_space<vmem>>, vector<128x512xbf16>
    %cst = arith.constant dense<0.000000e+00> : vector<8x512xf32>
    %11 = tpu.matmul %9, %10, %cst {dimension_numbers = #tpu.dot_dimension_numbers<[1], [0], [0], [1], [0, 0, 1, 1], [], []>} : vector<8x128xbf16>, vector<128x512xbf16>, vector<8x512xf32> -> vector<8x512xf32>
    %c0_3 = arith.constant 0 : index
    %c0_4 = arith.constant 0 : index
    %12 = vector.load %arg4[%c0_3, %c0_4] : memref<1x512xf32, #tpu.memory_space<vmem>>, vector<1x512xf32>
    %13 = vector.broadcast %12 : vector<1x512xf32> to vector<8x512xf32>
    %14 = arith.addf %11, %13 : vector<8x512xf32>
    %cst_5 = arith.constant 0.000000e+00 : f32
    %15 = vector.broadcast %cst_5 : f32 to vector<1x128xf32>
    %cst_6 = arith.constant 0.000000e+00 : f32
    %16 = vector.broadcast %cst_6 : f32 to vector<1x128xf32>
    %17 = vector.extract_strided_slice %14 {offsets = [0, 0], sizes = [1, 512], strides = [1, 1]} : vector<8x512xf32> to vector<1x512xf32>
    %18 = arith.truncf %15 : vector<1x128xf32> to vector<1x128xbf16>
    %c0_7 = arith.constant 0 : index
    %c0_8 = arith.constant 0 : index
    %19 = vector.load %arg3[%c0_7, %c0_8] : memref<128x512xbf16, #tpu.memory_space<vmem>>, vector<128x512xbf16>
    %cst_9 = arith.constant dense<0.000000e+00> : vector<1x512xf32>
    %20 = tpu.matmul %18, %19, %cst_9 {dimension_numbers = #tpu.dot_dimension_numbers<[1], [0], [0], [1], [0, 0, 1, 1], [], []>} : vector<1x128xbf16>, vector<128x512xbf16>, vector<1x512xf32> -> vector<1x512xf32>
    %21 = arith.addf %17, %20 : vector<1x512xf32>
    %22 = vector.extract_strided_slice %21 {offsets = [0, 0], sizes = [1, 128], strides = [1, 1]} : vector<1x512xf32> to vector<1x128xf32>
    %23 = arith.negf %22 : vector<1x128xf32>
    %24 = math.exp %23 : vector<1x128xf32>
    %cst_10 = arith.constant 1.000000e+00 : f32
    %25 = vector.broadcast %cst_10 : f32 to vector<1x128xf32>
    %26 = arith.addf %25, %24 : vector<1x128xf32>
    %27 = arith.divf %25, %26 : vector<1x128xf32>
    %28 = vector.extract_strided_slice %21 {offsets = [0, 128], sizes = [1, 128], strides = [1, 1]} : vector<1x512xf32> to vector<1x128xf32>
    %29 = arith.negf %28 : vector<1x128xf32>
    %30 = math.exp %29 : vector<1x128xf32>
    %cst_11 = arith.constant 1.000000e+00 : f32
    %31 = vector.broadcast %cst_11 : f32 to vector<1x128xf32>
    %32 = arith.addf %31, %30 : vector<1x128xf32>
    %33 = arith.divf %31, %32 : vector<1x128xf32>
    %34 = vector.extract_strided_slice %21 {offsets = [0, 256], sizes = [1, 128], strides = [1, 1]} : vector<1x512xf32> to vector<1x128xf32>
    %35 = math.tanh %34 : vector<1x128xf32>
    %36 = vector.extract_strided_slice %21 {offsets = [0, 384], sizes = [1, 128], strides = [1, 1]} : vector<1x512xf32> to vector<1x128xf32>
    %37 = arith.negf %36 : vector<1x128xf32>
    %38 = math.exp %37 : vector<1x128xf32>
    %cst_12 = arith.constant 1.000000e+00 : f32
    %39 = vector.broadcast %cst_12 : f32 to vector<1x128xf32>
    %40 = arith.addf %39, %38 : vector<1x128xf32>
    %41 = arith.divf %39, %40 : vector<1x128xf32>
    %42 = arith.mulf %33, %16 : vector<1x128xf32>
    %43 = arith.mulf %27, %35 : vector<1x128xf32>
    %44 = arith.addf %42, %43 : vector<1x128xf32>
    %45 = math.tanh %44 : vector<1x128xf32>
    %46 = arith.mulf %41, %45 : vector<1x128xf32>
    %47 = vector.extract_strided_slice %14 {offsets = [1, 0], sizes = [1, 512], strides = [1, 1]} : vector<8x512xf32> to vector<1x512xf32>
    %48 = arith.truncf %46 : vector<1x128xf32> to vector<1x128xbf16>
    %c0_13 = arith.constant 0 : index
    %c0_14 = arith.constant 0 : index
    %49 = vector.load %arg3[%c0_13, %c0_14] : memref<128x512xbf16, #tpu.memory_space<vmem>>, vector<128x512xbf16>
    %cst_15 = arith.constant dense<0.000000e+00> : vector<1x512xf32>
    %50 = tpu.matmul %48, %49, %cst_15 {dimension_numbers = #tpu.dot_dimension_numbers<[1], [0], [0], [1], [0, 0, 1, 1], [], []>} : vector<1x128xbf16>, vector<128x512xbf16>, vector<1x512xf32> -> vector<1x512xf32>
    %51 = arith.addf %47, %50 : vector<1x512xf32>
    %52 = vector.extract_strided_slice %51 {offsets = [0, 0], sizes = [1, 128], strides = [1, 1]} : vector<1x512xf32> to vector<1x128xf32>
    %53 = arith.negf %52 : vector<1x128xf32>
    %54 = math.exp %53 : vector<1x128xf32>
    %cst_16 = arith.constant 1.000000e+00 : f32
    %55 = vector.broadcast %cst_16 : f32 to vector<1x128xf32>
    %56 = arith.addf %55, %54 : vector<1x128xf32>
    %57 = arith.divf %55, %56 : vector<1x128xf32>
    %58 = vector.extract_strided_slice %51 {offsets = [0, 128], sizes = [1, 128], strides = [1, 1]} : vector<1x512xf32> to vector<1x128xf32>
    %59 = arith.negf %58 : vector<1x128xf32>
    %60 = math.exp %59 : vector<1x128xf32>
    %cst_17 = arith.constant 1.000000e+00 : f32
    %61 = vector.broadcast %cst_17 : f32 to vector<1x128xf32>
    %62 = arith.addf %61, %60 : vector<1x128xf32>
    %63 = arith.divf %61, %62 : vector<1x128xf32>
    %64 = vector.extract_strided_slice %51 {offsets = [0, 256], sizes = [1, 128], strides = [1, 1]} : vector<1x512xf32> to vector<1x128xf32>
    %65 = math.tanh %64 : vector<1x128xf32>
    %66 = vector.extract_strided_slice %51 {offsets = [0, 384], sizes = [1, 128], strides = [1, 1]} : vector<1x512xf32> to vector<1x128xf32>
    %67 = arith.negf %66 : vector<1x128xf32>
    %68 = math.exp %67 : vector<1x128xf32>
    %cst_18 = arith.constant 1.000000e+00 : f32
    %69 = vector.broadcast %cst_18 : f32 to vector<1x128xf32>
    %70 = arith.addf %69, %68 : vector<1x128xf32>
    %71 = arith.divf %69, %70 : vector<1x128xf32>
    %72 = arith.mulf %63, %44 : vector<1x128xf32>
    %73 = arith.mulf %57, %65 : vector<1x128xf32>
    %74 = arith.addf %72, %73 : vector<1x128xf32>
    %75 = math.tanh %74 : vector<1x128xf32>
    %76 = arith.mulf %71, %75 : vector<1x128xf32>
    %77 = vector.extract_strided_slice %14 {offsets = [2, 0], sizes = [1, 512], strides = [1, 1]} : vector<8x512xf32> to vector<1x512xf32>
    %78 = arith.truncf %76 : vector<1x128xf32> to vector<1x128xbf16>
    %c0_19 = arith.constant 0 : index
    %c0_20 = arith.constant 0 : index
    %79 = vector.load %arg3[%c0_19, %c0_20] : memref<128x512xbf16, #tpu.memory_space<vmem>>, vector<128x512xbf16>
    %cst_21 = arith.constant dense<0.000000e+00> : vector<1x512xf32>
    %80 = tpu.matmul %78, %79, %cst_21 {dimension_numbers = #tpu.dot_dimension_numbers<[1], [0], [0], [1], [0, 0, 1, 1], [], []>} : vector<1x128xbf16>, vector<128x512xbf16>, vector<1x512xf32> -> vector<1x512xf32>
    %81 = arith.addf %77, %80 : vector<1x512xf32>
    %82 = vector.extract_strided_slice %81 {offsets = [0, 0], sizes = [1, 128], strides = [1, 1]} : vector<1x512xf32> to vector<1x128xf32>
    %83 = arith.negf %82 : vector<1x128xf32>
    %84 = math.exp %83 : vector<1x128xf32>
    %cst_22 = arith.constant 1.000000e+00 : f32
    %85 = vector.broadcast %cst_22 : f32 to vector<1x128xf32>
    %86 = arith.addf %85, %84 : vector<1x128xf32>
    %87 = arith.divf %85, %86 : vector<1x128xf32>
    %88 = vector.extract_strided_slice %81 {offsets = [0, 128], sizes = [1, 128], strides = [1, 1]} : vector<1x512xf32> to vector<1x128xf32>
    %89 = arith.negf %88 : vector<1x128xf32>
    %90 = math.exp %89 : vector<1x128xf32>
    %cst_23 = arith.constant 1.000000e+00 : f32
    %91 = vector.broadcast %cst_23 : f32 to vector<1x128xf32>
    %92 = arith.addf %91, %90 : vector<1x128xf32>
    %93 = arith.divf %91, %92 : vector<1x128xf32>
    %94 = vector.extract_strided_slice %81 {offsets = [0, 256], sizes = [1, 128], strides = [1, 1]} : vector<1x512xf32> to vector<1x128xf32>
    %95 = math.tanh %94 : vector<1x128xf32>
    %96 = vector.extract_strided_slice %81 {offsets = [0, 384], sizes = [1, 128], strides = [1, 1]} : vector<1x512xf32> to vector<1x128xf32>
    %97 = arith.negf %96 : vector<1x128xf32>
    %98 = math.exp %97 : vector<1x128xf32>
    %cst_24 = arith.constant 1.000000e+00 : f32
    %99 = vector.broadcast %cst_24 : f32 to vector<1x128xf32>
    %100 = arith.addf %99, %98 : vector<1x128xf32>
    %101 = arith.divf %99, %100 : vector<1x128xf32>
    %102 = arith.mulf %93, %74 : vector<1x128xf32>
    %103 = arith.mulf %87, %95 : vector<1x128xf32>
    %104 = arith.addf %102, %103 : vector<1x128xf32>
    %105 = math.tanh %104 : vector<1x128xf32>
    %106 = arith.mulf %101, %105 : vector<1x128xf32>
    %107 = vector.extract_strided_slice %14 {offsets = [3, 0], sizes = [1, 512], strides = [1, 1]} : vector<8x512xf32> to vector<1x512xf32>
    %108 = arith.truncf %106 : vector<1x128xf32> to vector<1x128xbf16>
    %c0_25 = arith.constant 0 : index
    %c0_26 = arith.constant 0 : index
    %109 = vector.load %arg3[%c0_25, %c0_26] : memref<128x512xbf16, #tpu.memory_space<vmem>>, vector<128x512xbf16>
    %cst_27 = arith.constant dense<0.000000e+00> : vector<1x512xf32>
    %110 = tpu.matmul %108, %109, %cst_27 {dimension_numbers = #tpu.dot_dimension_numbers<[1], [0], [0], [1], [0, 0, 1, 1], [], []>} : vector<1x128xbf16>, vector<128x512xbf16>, vector<1x512xf32> -> vector<1x512xf32>
    %111 = arith.addf %107, %110 : vector<1x512xf32>
    %112 = vector.extract_strided_slice %111 {offsets = [0, 0], sizes = [1, 128], strides = [1, 1]} : vector<1x512xf32> to vector<1x128xf32>
    %113 = arith.negf %112 : vector<1x128xf32>
    %114 = math.exp %113 : vector<1x128xf32>
    %cst_28 = arith.constant 1.000000e+00 : f32
    %115 = vector.broadcast %cst_28 : f32 to vector<1x128xf32>
    %116 = arith.addf %115, %114 : vector<1x128xf32>
    %117 = arith.divf %115, %116 : vector<1x128xf32>
    %118 = vector.extract_strided_slice %111 {offsets = [0, 128], sizes = [1, 128], strides = [1, 1]} : vector<1x512xf32> to vector<1x128xf32>
    %119 = arith.negf %118 : vector<1x128xf32>
    %120 = math.exp %119 : vector<1x128xf32>
    %cst_29 = arith.constant 1.000000e+00 : f32
    %121 = vector.broadcast %cst_29 : f32 to vector<1x128xf32>
    %122 = arith.addf %121, %120 : vector<1x128xf32>
    %123 = arith.divf %121, %122 : vector<1x128xf32>
    %124 = vector.extract_strided_slice %111 {offsets = [0, 256], sizes = [1, 128], strides = [1, 1]} : vector<1x512xf32> to vector<1x128xf32>
    %125 = math.tanh %124 : vector<1x128xf32>
    %126 = vector.extract_strided_slice %111 {offsets = [0, 384], sizes = [1, 128], strides = [1, 1]} : vector<1x512xf32> to vector<1x128xf32>
    %127 = arith.negf %126 : vector<1x128xf32>
    %128 = math.exp %127 : vector<1x128xf32>
    %cst_30 = arith.constant 1.000000e+00 : f32
    %129 = vector.broadcast %cst_30 : f32 to vector<1x128xf32>
    %130 = arith.addf %129, %128 : vector<1x128xf32>
    %131 = arith.divf %129, %130 : vector<1x128xf32>
    %132 = arith.mulf %123, %104 : vector<1x128xf32>
    %133 = arith.mulf %117, %125 : vector<1x128xf32>
    %134 = arith.addf %132, %133 : vector<1x128xf32>
    %135 = math.tanh %134 : vector<1x128xf32>
    %136 = arith.mulf %131, %135 : vector<1x128xf32>
    %137 = vector.extract_strided_slice %14 {offsets = [4, 0], sizes = [1, 512], strides = [1, 1]} : vector<8x512xf32> to vector<1x512xf32>
    %138 = arith.truncf %136 : vector<1x128xf32> to vector<1x128xbf16>
    %c0_31 = arith.constant 0 : index
    %c0_32 = arith.constant 0 : index
    %139 = vector.load %arg3[%c0_31, %c0_32] : memref<128x512xbf16, #tpu.memory_space<vmem>>, vector<128x512xbf16>
    %cst_33 = arith.constant dense<0.000000e+00> : vector<1x512xf32>
    %140 = tpu.matmul %138, %139, %cst_33 {dimension_numbers = #tpu.dot_dimension_numbers<[1], [0], [0], [1], [0, 0, 1, 1], [], []>} : vector<1x128xbf16>, vector<128x512xbf16>, vector<1x512xf32> -> vector<1x512xf32>
    %141 = arith.addf %137, %140 : vector<1x512xf32>
    %142 = vector.extract_strided_slice %141 {offsets = [0, 0], sizes = [1, 128], strides = [1, 1]} : vector<1x512xf32> to vector<1x128xf32>
    %143 = arith.negf %142 : vector<1x128xf32>
    %144 = math.exp %143 : vector<1x128xf32>
    %cst_34 = arith.constant 1.000000e+00 : f32
    %145 = vector.broadcast %cst_34 : f32 to vector<1x128xf32>
    %146 = arith.addf %145, %144 : vector<1x128xf32>
    %147 = arith.divf %145, %146 : vector<1x128xf32>
    %148 = vector.extract_strided_slice %141 {offsets = [0, 128], sizes = [1, 128], strides = [1, 1]} : vector<1x512xf32> to vector<1x128xf32>
    %149 = arith.negf %148 : vector<1x128xf32>
    %150 = math.exp %149 : vector<1x128xf32>
    %cst_35 = arith.constant 1.000000e+00 : f32
    %151 = vector.broadcast %cst_35 : f32 to vector<1x128xf32>
    %152 = arith.addf %151, %150 : vector<1x128xf32>
    %153 = arith.divf %151, %152 : vector<1x128xf32>
    %154 = vector.extract_strided_slice %141 {offsets = [0, 256], sizes = [1, 128], strides = [1, 1]} : vector<1x512xf32> to vector<1x128xf32>
    %155 = math.tanh %154 : vector<1x128xf32>
    %156 = vector.extract_strided_slice %141 {offsets = [0, 384], sizes = [1, 128], strides = [1, 1]} : vector<1x512xf32> to vector<1x128xf32>
    %157 = arith.negf %156 : vector<1x128xf32>
    %158 = math.exp %157 : vector<1x128xf32>
    %cst_36 = arith.constant 1.000000e+00 : f32
    %159 = vector.broadcast %cst_36 : f32 to vector<1x128xf32>
    %160 = arith.addf %159, %158 : vector<1x128xf32>
    %161 = arith.divf %159, %160 : vector<1x128xf32>
    %162 = arith.mulf %153, %134 : vector<1x128xf32>
    %163 = arith.mulf %147, %155 : vector<1x128xf32>
    %164 = arith.addf %162, %163 : vector<1x128xf32>
    %165 = math.tanh %164 : vector<1x128xf32>
    %166 = arith.mulf %161, %165 : vector<1x128xf32>
    %167 = vector.extract_strided_slice %14 {offsets = [5, 0], sizes = [1, 512], strides = [1, 1]} : vector<8x512xf32> to vector<1x512xf32>
    %168 = arith.truncf %166 : vector<1x128xf32> to vector<1x128xbf16>
    %c0_37 = arith.constant 0 : index
    %c0_38 = arith.constant 0 : index
    %169 = vector.load %arg3[%c0_37, %c0_38] : memref<128x512xbf16, #tpu.memory_space<vmem>>, vector<128x512xbf16>
    %cst_39 = arith.constant dense<0.000000e+00> : vector<1x512xf32>
    %170 = tpu.matmul %168, %169, %cst_39 {dimension_numbers = #tpu.dot_dimension_numbers<[1], [0], [0], [1], [0, 0, 1, 1], [], []>} : vector<1x128xbf16>, vector<128x512xbf16>, vector<1x512xf32> -> vector<1x512xf32>
    %171 = arith.addf %167, %170 : vector<1x512xf32>
    %172 = vector.extract_strided_slice %171 {offsets = [0, 0], sizes = [1, 128], strides = [1, 1]} : vector<1x512xf32> to vector<1x128xf32>
    %173 = arith.negf %172 : vector<1x128xf32>
    %174 = math.exp %173 : vector<1x128xf32>
    %cst_40 = arith.constant 1.000000e+00 : f32
    %175 = vector.broadcast %cst_40 : f32 to vector<1x128xf32>
    %176 = arith.addf %175, %174 : vector<1x128xf32>
    %177 = arith.divf %175, %176 : vector<1x128xf32>
    %178 = vector.extract_strided_slice %171 {offsets = [0, 128], sizes = [1, 128], strides = [1, 1]} : vector<1x512xf32> to vector<1x128xf32>
    %179 = arith.negf %178 : vector<1x128xf32>
    %180 = math.exp %179 : vector<1x128xf32>
    %cst_41 = arith.constant 1.000000e+00 : f32
    %181 = vector.broadcast %cst_41 : f32 to vector<1x128xf32>
    %182 = arith.addf %181, %180 : vector<1x128xf32>
    %183 = arith.divf %181, %182 : vector<1x128xf32>
    %184 = vector.extract_strided_slice %171 {offsets = [0, 256], sizes = [1, 128], strides = [1, 1]} : vector<1x512xf32> to vector<1x128xf32>
    %185 = math.tanh %184 : vector<1x128xf32>
    %186 = vector.extract_strided_slice %171 {offsets = [0, 384], sizes = [1, 128], strides = [1, 1]} : vector<1x512xf32> to vector<1x128xf32>
    %187 = arith.negf %186 : vector<1x128xf32>
    %188 = math.exp %187 : vector<1x128xf32>
    %cst_42 = arith.constant 1.000000e+00 : f32
    %189 = vector.broadcast %cst_42 : f32 to vector<1x128xf32>
    %190 = arith.addf %189, %188 : vector<1x128xf32>
    %191 = arith.divf %189, %190 : vector<1x128xf32>
    %192 = arith.mulf %183, %164 : vector<1x128xf32>
    %193 = arith.mulf %177, %185 : vector<1x128xf32>
    %194 = arith.addf %192, %193 : vector<1x128xf32>
    %195 = math.tanh %194 : vector<1x128xf32>
    %196 = arith.mulf %191, %195 : vector<1x128xf32>
    %197 = vector.extract_strided_slice %14 {offsets = [6, 0], sizes = [1, 512], strides = [1, 1]} : vector<8x512xf32> to vector<1x512xf32>
    %198 = arith.truncf %196 : vector<1x128xf32> to vector<1x128xbf16>
    %c0_43 = arith.constant 0 : index
    %c0_44 = arith.constant 0 : index
    %199 = vector.load %arg3[%c0_43, %c0_44] : memref<128x512xbf16, #tpu.memory_space<vmem>>, vector<128x512xbf16>
    %cst_45 = arith.constant dense<0.000000e+00> : vector<1x512xf32>
    %200 = tpu.matmul %198, %199, %cst_45 {dimension_numbers = #tpu.dot_dimension_numbers<[1], [0], [0], [1], [0, 0, 1, 1], [], []>} : vector<1x128xbf16>, vector<128x512xbf16>, vector<1x512xf32> -> vector<1x512xf32>
    %201 = arith.addf %197, %200 : vector<1x512xf32>
    %202 = vector.extract_strided_slice %201 {offsets = [0, 0], sizes = [1, 128], strides = [1, 1]} : vector<1x512xf32> to vector<1x128xf32>
    %203 = arith.negf %202 : vector<1x128xf32>
    %204 = math.exp %203 : vector<1x128xf32>
    %cst_46 = arith.constant 1.000000e+00 : f32
    %205 = vector.broadcast %cst_46 : f32 to vector<1x128xf32>
    %206 = arith.addf %205, %204 : vector<1x128xf32>
    %207 = arith.divf %205, %206 : vector<1x128xf32>
    %208 = vector.extract_strided_slice %201 {offsets = [0, 128], sizes = [1, 128], strides = [1, 1]} : vector<1x512xf32> to vector<1x128xf32>
    %209 = arith.negf %208 : vector<1x128xf32>
    %210 = math.exp %209 : vector<1x128xf32>
    %cst_47 = arith.constant 1.000000e+00 : f32
    %211 = vector.broadcast %cst_47 : f32 to vector<1x128xf32>
    %212 = arith.addf %211, %210 : vector<1x128xf32>
    %213 = arith.divf %211, %212 : vector<1x128xf32>
    %214 = vector.extract_strided_slice %201 {offsets = [0, 256], sizes = [1, 128], strides = [1, 1]} : vector<1x512xf32> to vector<1x128xf32>
    %215 = math.tanh %214 : vector<1x128xf32>
    %216 = vector.extract_strided_slice %201 {offsets = [0, 384], sizes = [1, 128], strides = [1, 1]} : vector<1x512xf32> to vector<1x128xf32>
    %217 = arith.negf %216 : vector<1x128xf32>
    %218 = math.exp %217 : vector<1x128xf32>
    %cst_48 = arith.constant 1.000000e+00 : f32
    %219 = vector.broadcast %cst_48 : f32 to vector<1x128xf32>
    %220 = arith.addf %219, %218 : vector<1x128xf32>
    %221 = arith.divf %219, %220 : vector<1x128xf32>
    %222 = arith.mulf %213, %194 : vector<1x128xf32>
    %223 = arith.mulf %207, %215 : vector<1x128xf32>
    %224 = arith.addf %222, %223 : vector<1x128xf32>
    %225 = math.tanh %224 : vector<1x128xf32>
    %226 = arith.mulf %221, %225 : vector<1x128xf32>
    %227 = vector.extract_strided_slice %14 {offsets = [7, 0], sizes = [1, 512], strides = [1, 1]} : vector<8x512xf32> to vector<1x512xf32>
    %228 = arith.truncf %226 : vector<1x128xf32> to vector<1x128xbf16>
    %c0_49 = arith.constant 0 : index
    %c0_50 = arith.constant 0 : index
    %229 = vector.load %arg3[%c0_49, %c0_50] : memref<128x512xbf16, #tpu.memory_space<vmem>>, vector<128x512xbf16>
    %cst_51 = arith.constant dense<0.000000e+00> : vector<1x512xf32>
    %230 = tpu.matmul %228, %229, %cst_51 {dimension_numbers = #tpu.dot_dimension_numbers<[1], [0], [0], [1], [0, 0, 1, 1], [], []>} : vector<1x128xbf16>, vector<128x512xbf16>, vector<1x512xf32> -> vector<1x512xf32>
    %231 = arith.addf %227, %230 : vector<1x512xf32>
    %232 = vector.extract_strided_slice %231 {offsets = [0, 0], sizes = [1, 128], strides = [1, 1]} : vector<1x512xf32> to vector<1x128xf32>
    %233 = arith.negf %232 : vector<1x128xf32>
    %234 = math.exp %233 : vector<1x128xf32>
    %cst_52 = arith.constant 1.000000e+00 : f32
    %235 = vector.broadcast %cst_52 : f32 to vector<1x128xf32>
    %236 = arith.addf %235, %234 : vector<1x128xf32>
    %237 = arith.divf %235, %236 : vector<1x128xf32>
    %238 = vector.extract_strided_slice %231 {offsets = [0, 128], sizes = [1, 128], strides = [1, 1]} : vector<1x512xf32> to vector<1x128xf32>
    %239 = arith.negf %238 : vector<1x128xf32>
    %240 = math.exp %239 : vector<1x128xf32>
    %cst_53 = arith.constant 1.000000e+00 : f32
    %241 = vector.broadcast %cst_53 : f32 to vector<1x128xf32>
    %242 = arith.addf %241, %240 : vector<1x128xf32>
    %243 = arith.divf %241, %242 : vector<1x128xf32>
    %244 = vector.extract_strided_slice %231 {offsets = [0, 256], sizes = [1, 128], strides = [1, 1]} : vector<1x512xf32> to vector<1x128xf32>
    %245 = math.tanh %244 : vector<1x128xf32>
    %246 = vector.extract_strided_slice %231 {offsets = [0, 384], sizes = [1, 128], strides = [1, 1]} : vector<1x512xf32> to vector<1x128xf32>
    %247 = arith.negf %246 : vector<1x128xf32>
    %248 = math.exp %247 : vector<1x128xf32>
    %cst_54 = arith.constant 1.000000e+00 : f32
    %249 = vector.broadcast %cst_54 : f32 to vector<1x128xf32>
    %250 = arith.addf %249, %248 : vector<1x128xf32>
    %251 = arith.divf %249, %250 : vector<1x128xf32>
    %252 = arith.mulf %243, %224 : vector<1x128xf32>
    %253 = arith.mulf %237, %245 : vector<1x128xf32>
    %254 = arith.addf %252, %253 : vector<1x128xf32>
    %255 = math.tanh %254 : vector<1x128xf32>
    %256 = arith.mulf %251, %255 : vector<1x128xf32>
    %c0_i32_55 = arith.constant 0 : i32
    %257 = tpu.memref_slice %arg16[%c0_i32_55] : memref<4x!tpu.dma_semaphore, #tpu.memory_space<semaphore_mem>> -> memref<1x!tpu.dma_semaphore, #tpu.memory_space<semaphore_mem>>
    %258 = tpu.memref_squeeze %257 : memref<1x!tpu.dma_semaphore, #tpu.memory_space<semaphore_mem>> -> memref<!tpu.dma_semaphore, #tpu.memory_space<semaphore_mem>>
    tpu.wait_dma2 semaphore(%258 : memref<!tpu.dma_semaphore, #tpu.memory_space<semaphore_mem>>) src(%arg5 : memref<128x512xbf16, #tpu.memory_space<any>>) dst(%arg12 : memref<128x512xbf16, #tpu.memory_space<vmem>>)
    %c1_i32_56 = arith.constant 1 : i32
    %259 = tpu.memref_slice %arg16[%c1_i32_56] : memref<4x!tpu.dma_semaphore, #tpu.memory_space<semaphore_mem>> -> memref<1x!tpu.dma_semaphore, #tpu.memory_space<semaphore_mem>>
    %260 = tpu.memref_squeeze %259 : memref<1x!tpu.dma_semaphore, #tpu.memory_space<semaphore_mem>> -> memref<!tpu.dma_semaphore, #tpu.memory_space<semaphore_mem>>
    tpu.wait_dma2 semaphore(%260 : memref<!tpu.dma_semaphore, #tpu.memory_space<semaphore_mem>>) src(%arg6 : memref<128x512xbf16, #tpu.memory_space<any>>) dst(%arg13 : memref<128x512xbf16, #tpu.memory_space<vmem>>)
    %c2_i32_57 = arith.constant 2 : i32
    %261 = tpu.memref_slice %arg16[%c2_i32_57] : memref<4x!tpu.dma_semaphore, #tpu.memory_space<semaphore_mem>> -> memref<1x!tpu.dma_semaphore, #tpu.memory_space<semaphore_mem>>
    %262 = tpu.memref_squeeze %261 : memref<1x!tpu.dma_semaphore, #tpu.memory_space<semaphore_mem>> -> memref<!tpu.dma_semaphore, #tpu.memory_space<semaphore_mem>>
    tpu.wait_dma2 semaphore(%262 : memref<!tpu.dma_semaphore, #tpu.memory_space<semaphore_mem>>) src(%arg8 : memref<128x128xf32, #tpu.memory_space<any>>) dst(%arg14 : memref<128x128xf32, #tpu.memory_space<vmem>>)
    %c3_i32_58 = arith.constant 3 : i32
    %263 = tpu.memref_slice %arg16[%c3_i32_58] : memref<4x!tpu.dma_semaphore, #tpu.memory_space<semaphore_mem>> -> memref<1x!tpu.dma_semaphore, #tpu.memory_space<semaphore_mem>>
    %264 = tpu.memref_squeeze %263 : memref<1x!tpu.dma_semaphore, #tpu.memory_space<semaphore_mem>> -> memref<!tpu.dma_semaphore, #tpu.memory_space<semaphore_mem>>
    tpu.wait_dma2 semaphore(%264 : memref<!tpu.dma_semaphore, #tpu.memory_space<semaphore_mem>>) src(%arg9 : memref<128x128xbf16, #tpu.memory_space<any>>) dst(%arg15 : memref<128x128xbf16, #tpu.memory_space<vmem>>)
    %c0_59 = arith.constant 0 : index
    %c0_60 = arith.constant 0 : index
    %265 = vector.load %arg7[%c0_59, %c0_60] : memref<1x512xf32, #tpu.memory_space<vmem>>, vector<1x512xf32>
    %c0_61 = arith.constant 0 : index
    %c0_62 = arith.constant 0 : index
    %266 = vector.load %arg10[%c0_61, %c0_62] : memref<1x128xf32, #tpu.memory_space<vmem>>, vector<1x128xf32>
    %267 = tpu.iota {dimensions = array<i32: 1>} : vector<1x128xi32>
    %268 = tpu.iota {dimensions = array<i32: 1>} : vector<1x8xi32>
    %cst_63 = arith.constant 0.000000e+00 : f32
    %269 = vector.broadcast %cst_63 : f32 to vector<1x8xf32>
    %c0_64 = arith.constant 0 : index
    %c0_65 = arith.constant 0 : index
    %270 = vector.load %arg1[%c0_64, %c0_65] : memref<1x128xf32, #tpu.memory_space<vmem>>, vector<1x128xf32>
    %271 = arith.truncf %270 : vector<1x128xf32> to vector<1x128xbf16>
    %c0_66 = arith.constant 0 : index
    %c0_67 = arith.constant 0 : index
    %272 = vector.load %arg12[%c0_66, %c0_67] : memref<128x512xbf16, #tpu.memory_space<vmem>>, vector<128x512xbf16>
    %cst_68 = arith.constant dense<0.000000e+00> : vector<1x512xf32>
    %273 = tpu.matmul %271, %272, %cst_68 {dimension_numbers = #tpu.dot_dimension_numbers<[1], [0], [0], [1], [0, 0, 1, 1], [], []>} : vector<1x128xbf16>, vector<128x512xbf16>, vector<1x512xf32> -> vector<1x512xf32>
    %274 = arith.truncf %256 : vector<1x128xf32> to vector<1x128xbf16>
    %c0_69 = arith.constant 0 : index
    %c0_70 = arith.constant 0 : index
    %275 = vector.load %arg13[%c0_69, %c0_70] : memref<128x512xbf16, #tpu.memory_space<vmem>>, vector<128x512xbf16>
    %cst_71 = arith.constant dense<0.000000e+00> : vector<1x512xf32>
    %276 = tpu.matmul %274, %275, %cst_71 {dimension_numbers = #tpu.dot_dimension_numbers<[1], [0], [0], [1], [0, 0, 1, 1], [], []>} : vector<1x128xbf16>, vector<128x512xbf16>, vector<1x512xf32> -> vector<1x512xf32>
    %277 = arith.addf %273, %276 : vector<1x512xf32>
    %278 = arith.addf %277, %265 : vector<1x512xf32>
    %279 = vector.extract_strided_slice %278 {offsets = [0, 0], sizes = [1, 128], strides = [1, 1]} : vector<1x512xf32> to vector<1x128xf32>
    %280 = arith.negf %279 : vector<1x128xf32>
    %281 = math.exp %280 : vector<1x128xf32>
    %cst_72 = arith.constant 1.000000e+00 : f32
    %282 = vector.broadcast %cst_72 : f32 to vector<1x128xf32>
    %283 = arith.addf %282, %281 : vector<1x128xf32>
    %284 = arith.divf %282, %283 : vector<1x128xf32>
    %285 = vector.extract_strided_slice %278 {offsets = [0, 128], sizes = [1, 128], strides = [1, 1]} : vector<1x512xf32> to vector<1x128xf32>
    %286 = arith.negf %285 : vector<1x128xf32>
    %287 = math.exp %286 : vector<1x128xf32>
    %cst_73 = arith.constant 1.000000e+00 : f32
    %288 = vector.broadcast %cst_73 : f32 to vector<1x128xf32>
    %289 = arith.addf %288, %287 : vector<1x128xf32>
    %290 = arith.divf %288, %289 : vector<1x128xf32>
    %291 = vector.extract_strided_slice %278 {offsets = [0, 256], sizes = [1, 128], strides = [1, 1]} : vector<1x512xf32> to vector<1x128xf32>
    %292 = math.tanh %291 : vector<1x128xf32>
    %293 = vector.extract_strided_slice %278 {offsets = [0, 384], sizes = [1, 128], strides = [1, 1]} : vector<1x512xf32> to vector<1x128xf32>
    %294 = arith.negf %293 : vector<1x128xf32>
    %295 = math.exp %294 : vector<1x128xf32>
    %cst_74 = arith.constant 1.000000e+00 : f32
    %296 = vector.broadcast %cst_74 : f32 to vector<1x128xf32>
    %297 = arith.addf %296, %295 : vector<1x128xf32>
    %298 = arith.divf %296, %297 : vector<1x128xf32>
    %299 = arith.mulf %290, %254 : vector<1x128xf32>
    %300 = arith.mulf %284, %292 : vector<1x128xf32>
    %301 = arith.addf %299, %300 : vector<1x128xf32>
    %302 = math.tanh %301 : vector<1x128xf32>
    %303 = arith.mulf %298, %302 : vector<1x128xf32>
    %304 = arith.truncf %303 : vector<1x128xf32> to vector<1x128xbf16>
    %c0_75 = arith.constant 0 : index
    %c0_76 = arith.constant 0 : index
    %305 = vector.load %arg15[%c0_75, %c0_76] : memref<128x128xbf16, #tpu.memory_space<vmem>>, vector<128x128xbf16>
    %cst_77 = arith.constant dense<0.000000e+00> : vector<1x128xf32>
    %306 = tpu.matmul %304, %305, %cst_77 {dimension_numbers = #tpu.dot_dimension_numbers<[1], [0], [0], [1], [0, 0, 1, 1], [], []>} : vector<1x128xbf16>, vector<128x128xbf16>, vector<1x128xf32> -> vector<1x128xf32>
    %307 = arith.addf %306, %266 : vector<1x128xf32>
    %cst_78 = arith.constant dense<0xFF800000> : vector<1xf32>
    %308 = vector.multi_reduction <maximumf>, %307, %cst_78 [1] : vector<1x128xf32> to vector<1xf32>
    %309 = vector.shape_cast %308 : vector<1xf32> to vector<1x1xf32>
    %310 = vector.broadcast %309 : vector<1x1xf32> to vector<1x128xf32>
    %311 = arith.cmpf oeq, %307, %310 : vector<1x128xf32>
    %c128_i32 = arith.constant 128 : i32
    %312 = vector.broadcast %c128_i32 : i32 to vector<1x128xi32>
    %313 = arith.select %311, %267, %312 : vector<1x128xi1>, vector<1x128xi32>
    %cst_79 = arith.constant dense<2147483647> : vector<1xi32>
    %314 = vector.multi_reduction <minsi>, %313, %cst_79 [1] : vector<1x128xi32> to vector<1xi32>
    %315 = vector.shape_cast %314 : vector<1xi32> to vector<1x1xi32>
    %316 = vector.extract %315[0, 0] : i32 from vector<1x1xi32>
    %317 = arith.index_cast %316 : i32 to index
    %c0_80 = arith.constant 0 : index
    %318 = vector.load %arg14[%317, %c0_80] : memref<128x128xf32, #tpu.memory_space<vmem>>, vector<1x128xf32>
    %c0_i32_81 = arith.constant 0 : i32
    %319 = vector.broadcast %c0_i32_81 : i32 to vector<1x8xi32>
    %320 = arith.cmpi eq, %268, %319 : vector<1x8xi32>
    %321 = arith.sitofp %315 : vector<1x1xi32> to vector<1x1xf32>
    %322 = vector.shape_cast %321 : vector<1x1xf32> to vector<1x1xf32>
    %323 = vector.broadcast %322 : vector<1x1xf32> to vector<1x8xf32>
    %324 = arith.select %320, %323, %269 : vector<1x8xi1>, vector<1x8xf32>
    %325 = arith.truncf %318 : vector<1x128xf32> to vector<1x128xbf16>
    %c0_82 = arith.constant 0 : index
    %c0_83 = arith.constant 0 : index
    %326 = vector.load %arg12[%c0_82, %c0_83] : memref<128x512xbf16, #tpu.memory_space<vmem>>, vector<128x512xbf16>
    %cst_84 = arith.constant dense<0.000000e+00> : vector<1x512xf32>
    %327 = tpu.matmul %325, %326, %cst_84 {dimension_numbers = #tpu.dot_dimension_numbers<[1], [0], [0], [1], [0, 0, 1, 1], [], []>} : vector<1x128xbf16>, vector<128x512xbf16>, vector<1x512xf32> -> vector<1x512xf32>
    %328 = arith.truncf %303 : vector<1x128xf32> to vector<1x128xbf16>
    %c0_85 = arith.constant 0 : index
    %c0_86 = arith.constant 0 : index
    %329 = vector.load %arg13[%c0_85, %c0_86] : memref<128x512xbf16, #tpu.memory_space<vmem>>, vector<128x512xbf16>
    %cst_87 = arith.constant dense<0.000000e+00> : vector<1x512xf32>
    %330 = tpu.matmul %328, %329, %cst_87 {dimension_numbers = #tpu.dot_dimension_numbers<[1], [0], [0], [1], [0, 0, 1, 1], [], []>} : vector<1x128xbf16>, vector<128x512xbf16>, vector<1x512xf32> -> vector<1x512xf32>
    %331 = arith.addf %327, %330 : vector<1x512xf32>
    %332 = arith.addf %331, %265 : vector<1x512xf32>
    %333 = vector.extract_strided_slice %332 {offsets = [0, 0], sizes = [1, 128], strides = [1, 1]} : vector<1x512xf32> to vector<1x128xf32>
    %334 = arith.negf %333 : vector<1x128xf32>
    %335 = math.exp %334 : vector<1x128xf32>
    %cst_88 = arith.constant 1.000000e+00 : f32
    %336 = vector.broadcast %cst_88 : f32 to vector<1x128xf32>
    %337 = arith.addf %336, %335 : vector<1x128xf32>
    %338 = arith.divf %336, %337 : vector<1x128xf32>
    %339 = vector.extract_strided_slice %332 {offsets = [0, 128], sizes = [1, 128], strides = [1, 1]} : vector<1x512xf32> to vector<1x128xf32>
    %340 = arith.negf %339 : vector<1x128xf32>
    %341 = math.exp %340 : vector<1x128xf32>
    %cst_89 = arith.constant 1.000000e+00 : f32
    %342 = vector.broadcast %cst_89 : f32 to vector<1x128xf32>
    %343 = arith.addf %342, %341 : vector<1x128xf32>
    %344 = arith.divf %342, %343 : vector<1x128xf32>
    %345 = vector.extract_strided_slice %332 {offsets = [0, 256], sizes = [1, 128], strides = [1, 1]} : vector<1x512xf32> to vector<1x128xf32>
    %346 = math.tanh %345 : vector<1x128xf32>
    %347 = vector.extract_strided_slice %332 {offsets = [0, 384], sizes = [1, 128], strides = [1, 1]} : vector<1x512xf32> to vector<1x128xf32>
    %348 = arith.negf %347 : vector<1x128xf32>
    %349 = math.exp %348 : vector<1x128xf32>
    %cst_90 = arith.constant 1.000000e+00 : f32
    %350 = vector.broadcast %cst_90 : f32 to vector<1x128xf32>
    %351 = arith.addf %350, %349 : vector<1x128xf32>
    %352 = arith.divf %350, %351 : vector<1x128xf32>
    %353 = arith.mulf %344, %301 : vector<1x128xf32>
    %354 = arith.mulf %338, %346 : vector<1x128xf32>
    %355 = arith.addf %353, %354 : vector<1x128xf32>
    %356 = math.tanh %355 : vector<1x128xf32>
    %357 = arith.mulf %352, %356 : vector<1x128xf32>
    %358 = arith.truncf %357 : vector<1x128xf32> to vector<1x128xbf16>
    %c0_91 = arith.constant 0 : index
    %c0_92 = arith.constant 0 : index
    %359 = vector.load %arg15[%c0_91, %c0_92] : memref<128x128xbf16, #tpu.memory_space<vmem>>, vector<128x128xbf16>
    %cst_93 = arith.constant dense<0.000000e+00> : vector<1x128xf32>
    %360 = tpu.matmul %358, %359, %cst_93 {dimension_numbers = #tpu.dot_dimension_numbers<[1], [0], [0], [1], [0, 0, 1, 1], [], []>} : vector<1x128xbf16>, vector<128x128xbf16>, vector<1x128xf32> -> vector<1x128xf32>
    %361 = arith.addf %360, %266 : vector<1x128xf32>
    %cst_94 = arith.constant dense<0xFF800000> : vector<1xf32>
    %362 = vector.multi_reduction <maximumf>, %361, %cst_94 [1] : vector<1x128xf32> to vector<1xf32>
    %363 = vector.shape_cast %362 : vector<1xf32> to vector<1x1xf32>
    %364 = vector.broadcast %363 : vector<1x1xf32> to vector<1x128xf32>
    %365 = arith.cmpf oeq, %361, %364 : vector<1x128xf32>
    %c128_i32_95 = arith.constant 128 : i32
    %366 = vector.broadcast %c128_i32_95 : i32 to vector<1x128xi32>
    %367 = arith.select %365, %267, %366 : vector<1x128xi1>, vector<1x128xi32>
    %cst_96 = arith.constant dense<2147483647> : vector<1xi32>
    %368 = vector.multi_reduction <minsi>, %367, %cst_96 [1] : vector<1x128xi32> to vector<1xi32>
    %369 = vector.shape_cast %368 : vector<1xi32> to vector<1x1xi32>
    %370 = vector.extract %369[0, 0] : i32 from vector<1x1xi32>
    %371 = arith.index_cast %370 : i32 to index
    %c0_97 = arith.constant 0 : index
    %372 = vector.load %arg14[%371, %c0_97] : memref<128x128xf32, #tpu.memory_space<vmem>>, vector<1x128xf32>
    %c1_i32_98 = arith.constant 1 : i32
    %373 = vector.broadcast %c1_i32_98 : i32 to vector<1x8xi32>
    %374 = arith.cmpi eq, %268, %373 : vector<1x8xi32>
    %375 = arith.sitofp %369 : vector<1x1xi32> to vector<1x1xf32>
    %376 = vector.shape_cast %375 : vector<1x1xf32> to vector<1x1xf32>
    %377 = vector.broadcast %376 : vector<1x1xf32> to vector<1x8xf32>
    %378 = arith.select %374, %377, %324 : vector<1x8xi1>, vector<1x8xf32>
    %379 = arith.truncf %372 : vector<1x128xf32> to vector<1x128xbf16>
    %c0_99 = arith.constant 0 : index
    %c0_100 = arith.constant 0 : index
    %380 = vector.load %arg12[%c0_99, %c0_100] : memref<128x512xbf16, #tpu.memory_space<vmem>>, vector<128x512xbf16>
    %cst_101 = arith.constant dense<0.000000e+00> : vector<1x512xf32>
    %381 = tpu.matmul %379, %380, %cst_101 {dimension_numbers = #tpu.dot_dimension_numbers<[1], [0], [0], [1], [0, 0, 1, 1], [], []>} : vector<1x128xbf16>, vector<128x512xbf16>, vector<1x512xf32> -> vector<1x512xf32>
    %382 = arith.truncf %357 : vector<1x128xf32> to vector<1x128xbf16>
    %c0_102 = arith.constant 0 : index
    %c0_103 = arith.constant 0 : index
    %383 = vector.load %arg13[%c0_102, %c0_103] : memref<128x512xbf16, #tpu.memory_space<vmem>>, vector<128x512xbf16>
    %cst_104 = arith.constant dense<0.000000e+00> : vector<1x512xf32>
    %384 = tpu.matmul %382, %383, %cst_104 {dimension_numbers = #tpu.dot_dimension_numbers<[1], [0], [0], [1], [0, 0, 1, 1], [], []>} : vector<1x128xbf16>, vector<128x512xbf16>, vector<1x512xf32> -> vector<1x512xf32>
    %385 = arith.addf %381, %384 : vector<1x512xf32>
    %386 = arith.addf %385, %265 : vector<1x512xf32>
    %387 = vector.extract_strided_slice %386 {offsets = [0, 0], sizes = [1, 128], strides = [1, 1]} : vector<1x512xf32> to vector<1x128xf32>
    %388 = arith.negf %387 : vector<1x128xf32>
    %389 = math.exp %388 : vector<1x128xf32>
    %cst_105 = arith.constant 1.000000e+00 : f32
    %390 = vector.broadcast %cst_105 : f32 to vector<1x128xf32>
    %391 = arith.addf %390, %389 : vector<1x128xf32>
    %392 = arith.divf %390, %391 : vector<1x128xf32>
    %393 = vector.extract_strided_slice %386 {offsets = [0, 128], sizes = [1, 128], strides = [1, 1]} : vector<1x512xf32> to vector<1x128xf32>
    %394 = arith.negf %393 : vector<1x128xf32>
    %395 = math.exp %394 : vector<1x128xf32>
    %cst_106 = arith.constant 1.000000e+00 : f32
    %396 = vector.broadcast %cst_106 : f32 to vector<1x128xf32>
    %397 = arith.addf %396, %395 : vector<1x128xf32>
    %398 = arith.divf %396, %397 : vector<1x128xf32>
    %399 = vector.extract_strided_slice %386 {offsets = [0, 256], sizes = [1, 128], strides = [1, 1]} : vector<1x512xf32> to vector<1x128xf32>
    %400 = math.tanh %399 : vector<1x128xf32>
    %401 = vector.extract_strided_slice %386 {offsets = [0, 384], sizes = [1, 128], strides = [1, 1]} : vector<1x512xf32> to vector<1x128xf32>
    %402 = arith.negf %401 : vector<1x128xf32>
    %403 = math.exp %402 : vector<1x128xf32>
    %cst_107 = arith.constant 1.000000e+00 : f32
    %404 = vector.broadcast %cst_107 : f32 to vector<1x128xf32>
    %405 = arith.addf %404, %403 : vector<1x128xf32>
    %406 = arith.divf %404, %405 : vector<1x128xf32>
    %407 = arith.mulf %398, %355 : vector<1x128xf32>
    %408 = arith.mulf %392, %400 : vector<1x128xf32>
    %409 = arith.addf %407, %408 : vector<1x128xf32>
    %410 = math.tanh %409 : vector<1x128xf32>
    %411 = arith.mulf %406, %410 : vector<1x128xf32>
    %412 = arith.truncf %411 : vector<1x128xf32> to vector<1x128xbf16>
    %c0_108 = arith.constant 0 : index
    %c0_109 = arith.constant 0 : index
    %413 = vector.load %arg15[%c0_108, %c0_109] : memref<128x128xbf16, #tpu.memory_space<vmem>>, vector<128x128xbf16>
    %cst_110 = arith.constant dense<0.000000e+00> : vector<1x128xf32>
    %414 = tpu.matmul %412, %413, %cst_110 {dimension_numbers = #tpu.dot_dimension_numbers<[1], [0], [0], [1], [0, 0, 1, 1], [], []>} : vector<1x128xbf16>, vector<128x128xbf16>, vector<1x128xf32> -> vector<1x128xf32>
    %415 = arith.addf %414, %266 : vector<1x128xf32>
    %cst_111 = arith.constant dense<0xFF800000> : vector<1xf32>
    %416 = vector.multi_reduction <maximumf>, %415, %cst_111 [1] : vector<1x128xf32> to vector<1xf32>
    %417 = vector.shape_cast %416 : vector<1xf32> to vector<1x1xf32>
    %418 = vector.broadcast %417 : vector<1x1xf32> to vector<1x128xf32>
    %419 = arith.cmpf oeq, %415, %418 : vector<1x128xf32>
    %c128_i32_112 = arith.constant 128 : i32
    %420 = vector.broadcast %c128_i32_112 : i32 to vector<1x128xi32>
    %421 = arith.select %419, %267, %420 : vector<1x128xi1>, vector<1x128xi32>
    %cst_113 = arith.constant dense<2147483647> : vector<1xi32>
    %422 = vector.multi_reduction <minsi>, %421, %cst_113 [1] : vector<1x128xi32> to vector<1xi32>
    %423 = vector.shape_cast %422 : vector<1xi32> to vector<1x1xi32>
    %424 = vector.extract %423[0, 0] : i32 from vector<1x1xi32>
    %425 = arith.index_cast %424 : i32 to index
    %c0_114 = arith.constant 0 : index
    %426 = vector.load %arg14[%425, %c0_114] : memref<128x128xf32, #tpu.memory_space<vmem>>, vector<1x128xf32>
    %c2_i32_115 = arith.constant 2 : i32
    %427 = vector.broadcast %c2_i32_115 : i32 to vector<1x8xi32>
    %428 = arith.cmpi eq, %268, %427 : vector<1x8xi32>
    %429 = arith.sitofp %423 : vector<1x1xi32> to vector<1x1xf32>
    %430 = vector.shape_cast %429 : vector<1x1xf32> to vector<1x1xf32>
    %431 = vector.broadcast %430 : vector<1x1xf32> to vector<1x8xf32>
    %432 = arith.select %428, %431, %378 : vector<1x8xi1>, vector<1x8xf32>
    %433 = arith.truncf %426 : vector<1x128xf32> to vector<1x128xbf16>
    %c0_116 = arith.constant 0 : index
    %c0_117 = arith.constant 0 : index
    %434 = vector.load %arg12[%c0_116, %c0_117] : memref<128x512xbf16, #tpu.memory_space<vmem>>, vector<128x512xbf16>
    %cst_118 = arith.constant dense<0.000000e+00> : vector<1x512xf32>
    %435 = tpu.matmul %433, %434, %cst_118 {dimension_numbers = #tpu.dot_dimension_numbers<[1], [0], [0], [1], [0, 0, 1, 1], [], []>} : vector<1x128xbf16>, vector<128x512xbf16>, vector<1x512xf32> -> vector<1x512xf32>
    %436 = arith.truncf %411 : vector<1x128xf32> to vector<1x128xbf16>
    %c0_119 = arith.constant 0 : index
    %c0_120 = arith.constant 0 : index
    %437 = vector.load %arg13[%c0_119, %c0_120] : memref<128x512xbf16, #tpu.memory_space<vmem>>, vector<128x512xbf16>
    %cst_121 = arith.constant dense<0.000000e+00> : vector<1x512xf32>
    %438 = tpu.matmul %436, %437, %cst_121 {dimension_numbers = #tpu.dot_dimension_numbers<[1], [0], [0], [1], [0, 0, 1, 1], [], []>} : vector<1x128xbf16>, vector<128x512xbf16>, vector<1x512xf32> -> vector<1x512xf32>
    %439 = arith.addf %435, %438 : vector<1x512xf32>
    %440 = arith.addf %439, %265 : vector<1x512xf32>
    %441 = vector.extract_strided_slice %440 {offsets = [0, 0], sizes = [1, 128], strides = [1, 1]} : vector<1x512xf32> to vector<1x128xf32>
    %442 = arith.negf %441 : vector<1x128xf32>
    %443 = math.exp %442 : vector<1x128xf32>
    %cst_122 = arith.constant 1.000000e+00 : f32
    %444 = vector.broadcast %cst_122 : f32 to vector<1x128xf32>
    %445 = arith.addf %444, %443 : vector<1x128xf32>
    %446 = arith.divf %444, %445 : vector<1x128xf32>
    %447 = vector.extract_strided_slice %440 {offsets = [0, 128], sizes = [1, 128], strides = [1, 1]} : vector<1x512xf32> to vector<1x128xf32>
    %448 = arith.negf %447 : vector<1x128xf32>
    %449 = math.exp %448 : vector<1x128xf32>
    %cst_123 = arith.constant 1.000000e+00 : f32
    %450 = vector.broadcast %cst_123 : f32 to vector<1x128xf32>
    %451 = arith.addf %450, %449 : vector<1x128xf32>
    %452 = arith.divf %450, %451 : vector<1x128xf32>
    %453 = vector.extract_strided_slice %440 {offsets = [0, 256], sizes = [1, 128], strides = [1, 1]} : vector<1x512xf32> to vector<1x128xf32>
    %454 = math.tanh %453 : vector<1x128xf32>
    %455 = vector.extract_strided_slice %440 {offsets = [0, 384], sizes = [1, 128], strides = [1, 1]} : vector<1x512xf32> to vector<1x128xf32>
    %456 = arith.negf %455 : vector<1x128xf32>
    %457 = math.exp %456 : vector<1x128xf32>
    %cst_124 = arith.constant 1.000000e+00 : f32
    %458 = vector.broadcast %cst_124 : f32 to vector<1x128xf32>
    %459 = arith.addf %458, %457 : vector<1x128xf32>
    %460 = arith.divf %458, %459 : vector<1x128xf32>
    %461 = arith.mulf %452, %409 : vector<1x128xf32>
    %462 = arith.mulf %446, %454 : vector<1x128xf32>
    %463 = arith.addf %461, %462 : vector<1x128xf32>
    %464 = math.tanh %463 : vector<1x128xf32>
    %465 = arith.mulf %460, %464 : vector<1x128xf32>
    %466 = arith.truncf %465 : vector<1x128xf32> to vector<1x128xbf16>
    %c0_125 = arith.constant 0 : index
    %c0_126 = arith.constant 0 : index
    %467 = vector.load %arg15[%c0_125, %c0_126] : memref<128x128xbf16, #tpu.memory_space<vmem>>, vector<128x128xbf16>
    %cst_127 = arith.constant dense<0.000000e+00> : vector<1x128xf32>
    %468 = tpu.matmul %466, %467, %cst_127 {dimension_numbers = #tpu.dot_dimension_numbers<[1], [0], [0], [1], [0, 0, 1, 1], [], []>} : vector<1x128xbf16>, vector<128x128xbf16>, vector<1x128xf32> -> vector<1x128xf32>
    %469 = arith.addf %468, %266 : vector<1x128xf32>
    %cst_128 = arith.constant dense<0xFF800000> : vector<1xf32>
    %470 = vector.multi_reduction <maximumf>, %469, %cst_128 [1] : vector<1x128xf32> to vector<1xf32>
    %471 = vector.shape_cast %470 : vector<1xf32> to vector<1x1xf32>
    %472 = vector.broadcast %471 : vector<1x1xf32> to vector<1x128xf32>
    %473 = arith.cmpf oeq, %469, %472 : vector<1x128xf32>
    %c128_i32_129 = arith.constant 128 : i32
    %474 = vector.broadcast %c128_i32_129 : i32 to vector<1x128xi32>
    %475 = arith.select %473, %267, %474 : vector<1x128xi1>, vector<1x128xi32>
    %cst_130 = arith.constant dense<2147483647> : vector<1xi32>
    %476 = vector.multi_reduction <minsi>, %475, %cst_130 [1] : vector<1x128xi32> to vector<1xi32>
    %477 = vector.shape_cast %476 : vector<1xi32> to vector<1x1xi32>
    %478 = vector.extract %477[0, 0] : i32 from vector<1x1xi32>
    %479 = arith.index_cast %478 : i32 to index
    %c0_131 = arith.constant 0 : index
    %480 = vector.load %arg14[%479, %c0_131] : memref<128x128xf32, #tpu.memory_space<vmem>>, vector<1x128xf32>
    %c3_i32_132 = arith.constant 3 : i32
    %481 = vector.broadcast %c3_i32_132 : i32 to vector<1x8xi32>
    %482 = arith.cmpi eq, %268, %481 : vector<1x8xi32>
    %483 = arith.sitofp %477 : vector<1x1xi32> to vector<1x1xf32>
    %484 = vector.shape_cast %483 : vector<1x1xf32> to vector<1x1xf32>
    %485 = vector.broadcast %484 : vector<1x1xf32> to vector<1x8xf32>
    %486 = arith.select %482, %485, %432 : vector<1x8xi1>, vector<1x8xf32>
    %487 = arith.truncf %480 : vector<1x128xf32> to vector<1x128xbf16>
    %c0_133 = arith.constant 0 : index
    %c0_134 = arith.constant 0 : index
    %488 = vector.load %arg12[%c0_133, %c0_134] : memref<128x512xbf16, #tpu.memory_space<vmem>>, vector<128x512xbf16>
    %cst_135 = arith.constant dense<0.000000e+00> : vector<1x512xf32>
    %489 = tpu.matmul %487, %488, %cst_135 {dimension_numbers = #tpu.dot_dimension_numbers<[1], [0], [0], [1], [0, 0, 1, 1], [], []>} : vector<1x128xbf16>, vector<128x512xbf16>, vector<1x512xf32> -> vector<1x512xf32>
    %490 = arith.truncf %465 : vector<1x128xf32> to vector<1x128xbf16>
    %c0_136 = arith.constant 0 : index
    %c0_137 = arith.constant 0 : index
    %491 = vector.load %arg13[%c0_136, %c0_137] : memref<128x512xbf16, #tpu.memory_space<vmem>>, vector<128x512xbf16>
    %cst_138 = arith.constant dense<0.000000e+00> : vector<1x512xf32>
    %492 = tpu.matmul %490, %491, %cst_138 {dimension_numbers = #tpu.dot_dimension_numbers<[1], [0], [0], [1], [0, 0, 1, 1], [], []>} : vector<1x128xbf16>, vector<128x512xbf16>, vector<1x512xf32> -> vector<1x512xf32>
    %493 = arith.addf %489, %492 : vector<1x512xf32>
    %494 = arith.addf %493, %265 : vector<1x512xf32>
    %495 = vector.extract_strided_slice %494 {offsets = [0, 0], sizes = [1, 128], strides = [1, 1]} : vector<1x512xf32> to vector<1x128xf32>
    %496 = arith.negf %495 : vector<1x128xf32>
    %497 = math.exp %496 : vector<1x128xf32>
    %cst_139 = arith.constant 1.000000e+00 : f32
    %498 = vector.broadcast %cst_139 : f32 to vector<1x128xf32>
    %499 = arith.addf %498, %497 : vector<1x128xf32>
    %500 = arith.divf %498, %499 : vector<1x128xf32>
    %501 = vector.extract_strided_slice %494 {offsets = [0, 128], sizes = [1, 128], strides = [1, 1]} : vector<1x512xf32> to vector<1x128xf32>
    %502 = arith.negf %501 : vector<1x128xf32>
    %503 = math.exp %502 : vector<1x128xf32>
    %cst_140 = arith.constant 1.000000e+00 : f32
    %504 = vector.broadcast %cst_140 : f32 to vector<1x128xf32>
    %505 = arith.addf %504, %503 : vector<1x128xf32>
    %506 = arith.divf %504, %505 : vector<1x128xf32>
    %507 = vector.extract_strided_slice %494 {offsets = [0, 256], sizes = [1, 128], strides = [1, 1]} : vector<1x512xf32> to vector<1x128xf32>
    %508 = math.tanh %507 : vector<1x128xf32>
    %509 = vector.extract_strided_slice %494 {offsets = [0, 384], sizes = [1, 128], strides = [1, 1]} : vector<1x512xf32> to vector<1x128xf32>
    %510 = arith.negf %509 : vector<1x128xf32>
    %511 = math.exp %510 : vector<1x128xf32>
    %cst_141 = arith.constant 1.000000e+00 : f32
    %512 = vector.broadcast %cst_141 : f32 to vector<1x128xf32>
    %513 = arith.addf %512, %511 : vector<1x128xf32>
    %514 = arith.divf %512, %513 : vector<1x128xf32>
    %515 = arith.mulf %506, %463 : vector<1x128xf32>
    %516 = arith.mulf %500, %508 : vector<1x128xf32>
    %517 = arith.addf %515, %516 : vector<1x128xf32>
    %518 = math.tanh %517 : vector<1x128xf32>
    %519 = arith.mulf %514, %518 : vector<1x128xf32>
    %520 = arith.truncf %519 : vector<1x128xf32> to vector<1x128xbf16>
    %c0_142 = arith.constant 0 : index
    %c0_143 = arith.constant 0 : index
    %521 = vector.load %arg15[%c0_142, %c0_143] : memref<128x128xbf16, #tpu.memory_space<vmem>>, vector<128x128xbf16>
    %cst_144 = arith.constant dense<0.000000e+00> : vector<1x128xf32>
    %522 = tpu.matmul %520, %521, %cst_144 {dimension_numbers = #tpu.dot_dimension_numbers<[1], [0], [0], [1], [0, 0, 1, 1], [], []>} : vector<1x128xbf16>, vector<128x128xbf16>, vector<1x128xf32> -> vector<1x128xf32>
    %523 = arith.addf %522, %266 : vector<1x128xf32>
    %cst_145 = arith.constant dense<0xFF800000> : vector<1xf32>
    %524 = vector.multi_reduction <maximumf>, %523, %cst_145 [1] : vector<1x128xf32> to vector<1xf32>
    %525 = vector.shape_cast %524 : vector<1xf32> to vector<1x1xf32>
    %526 = vector.broadcast %525 : vector<1x1xf32> to vector<1x128xf32>
    %527 = arith.cmpf oeq, %523, %526 : vector<1x128xf32>
    %c128_i32_146 = arith.constant 128 : i32
    %528 = vector.broadcast %c128_i32_146 : i32 to vector<1x128xi32>
    %529 = arith.select %527, %267, %528 : vector<1x128xi1>, vector<1x128xi32>
    %cst_147 = arith.constant dense<2147483647> : vector<1xi32>
    %530 = vector.multi_reduction <minsi>, %529, %cst_147 [1] : vector<1x128xi32> to vector<1xi32>
    %531 = vector.shape_cast %530 : vector<1xi32> to vector<1x1xi32>
    %532 = vector.extract %531[0, 0] : i32 from vector<1x1xi32>
    %533 = arith.index_cast %532 : i32 to index
    %c0_148 = arith.constant 0 : index
    %534 = vector.load %arg14[%533, %c0_148] : memref<128x128xf32, #tpu.memory_space<vmem>>, vector<1x128xf32>
    %c4_i32 = arith.constant 4 : i32
    %535 = vector.broadcast %c4_i32 : i32 to vector<1x8xi32>
    %536 = arith.cmpi eq, %268, %535 : vector<1x8xi32>
    %537 = arith.sitofp %531 : vector<1x1xi32> to vector<1x1xf32>
    %538 = vector.shape_cast %537 : vector<1x1xf32> to vector<1x1xf32>
    %539 = vector.broadcast %538 : vector<1x1xf32> to vector<1x8xf32>
    %540 = arith.select %536, %539, %486 : vector<1x8xi1>, vector<1x8xf32>
    %541 = arith.truncf %534 : vector<1x128xf32> to vector<1x128xbf16>
    %c0_149 = arith.constant 0 : index
    %c0_150 = arith.constant 0 : index
    %542 = vector.load %arg12[%c0_149, %c0_150] : memref<128x512xbf16, #tpu.memory_space<vmem>>, vector<128x512xbf16>
    %cst_151 = arith.constant dense<0.000000e+00> : vector<1x512xf32>
    %543 = tpu.matmul %541, %542, %cst_151 {dimension_numbers = #tpu.dot_dimension_numbers<[1], [0], [0], [1], [0, 0, 1, 1], [], []>} : vector<1x128xbf16>, vector<128x512xbf16>, vector<1x512xf32> -> vector<1x512xf32>
    %544 = arith.truncf %519 : vector<1x128xf32> to vector<1x128xbf16>
    %c0_152 = arith.constant 0 : index
    %c0_153 = arith.constant 0 : index
    %545 = vector.load %arg13[%c0_152, %c0_153] : memref<128x512xbf16, #tpu.memory_space<vmem>>, vector<128x512xbf16>
    %cst_154 = arith.constant dense<0.000000e+00> : vector<1x512xf32>
    %546 = tpu.matmul %544, %545, %cst_154 {dimension_numbers = #tpu.dot_dimension_numbers<[1], [0], [0], [1], [0, 0, 1, 1], [], []>} : vector<1x128xbf16>, vector<128x512xbf16>, vector<1x512xf32> -> vector<1x512xf32>
    %547 = arith.addf %543, %546 : vector<1x512xf32>
    %548 = arith.addf %547, %265 : vector<1x512xf32>
    %549 = vector.extract_strided_slice %548 {offsets = [0, 0], sizes = [1, 128], strides = [1, 1]} : vector<1x512xf32> to vector<1x128xf32>
    %550 = arith.negf %549 : vector<1x128xf32>
    %551 = math.exp %550 : vector<1x128xf32>
    %cst_155 = arith.constant 1.000000e+00 : f32
    %552 = vector.broadcast %cst_155 : f32 to vector<1x128xf32>
    %553 = arith.addf %552, %551 : vector<1x128xf32>
    %554 = arith.divf %552, %553 : vector<1x128xf32>
    %555 = vector.extract_strided_slice %548 {offsets = [0, 128], sizes = [1, 128], strides = [1, 1]} : vector<1x512xf32> to vector<1x128xf32>
    %556 = arith.negf %555 : vector<1x128xf32>
    %557 = math.exp %556 : vector<1x128xf32>
    %cst_156 = arith.constant 1.000000e+00 : f32
    %558 = vector.broadcast %cst_156 : f32 to vector<1x128xf32>
    %559 = arith.addf %558, %557 : vector<1x128xf32>
    %560 = arith.divf %558, %559 : vector<1x128xf32>
    %561 = vector.extract_strided_slice %548 {offsets = [0, 256], sizes = [1, 128], strides = [1, 1]} : vector<1x512xf32> to vector<1x128xf32>
    %562 = math.tanh %561 : vector<1x128xf32>
    %563 = vector.extract_strided_slice %548 {offsets = [0, 384], sizes = [1, 128], strides = [1, 1]} : vector<1x512xf32> to vector<1x128xf32>
    %564 = arith.negf %563 : vector<1x128xf32>
    %565 = math.exp %564 : vector<1x128xf32>
    %cst_157 = arith.constant 1.000000e+00 : f32
    %566 = vector.broadcast %cst_157 : f32 to vector<1x128xf32>
    %567 = arith.addf %566, %565 : vector<1x128xf32>
    %568 = arith.divf %566, %567 : vector<1x128xf32>
    %569 = arith.mulf %560, %517 : vector<1x128xf32>
    %570 = arith.mulf %554, %562 : vector<1x128xf32>
    %571 = arith.addf %569, %570 : vector<1x128xf32>
    %572 = math.tanh %571 : vector<1x128xf32>
    %573 = arith.mulf %568, %572 : vector<1x128xf32>
    %574 = arith.truncf %573 : vector<1x128xf32> to vector<1x128xbf16>
    %c0_158 = arith.constant 0 : index
    %c0_159 = arith.constant 0 : index
    %575 = vector.load %arg15[%c0_158, %c0_159] : memref<128x128xbf16, #tpu.memory_space<vmem>>, vector<128x128xbf16>
    %cst_160 = arith.constant dense<0.000000e+00> : vector<1x128xf32>
    %576 = tpu.matmul %574, %575, %cst_160 {dimension_numbers = #tpu.dot_dimension_numbers<[1], [0], [0], [1], [0, 0, 1, 1], [], []>} : vector<1x128xbf16>, vector<128x128xbf16>, vector<1x128xf32> -> vector<1x128xf32>
    %577 = arith.addf %576, %266 : vector<1x128xf32>
    %cst_161 = arith.constant dense<0xFF800000> : vector<1xf32>
    %578 = vector.multi_reduction <maximumf>, %577, %cst_161 [1] : vector<1x128xf32> to vector<1xf32>
    %579 = vector.shape_cast %578 : vector<1xf32> to vector<1x1xf32>
    %580 = vector.broadcast %579 : vector<1x1xf32> to vector<1x128xf32>
    %581 = arith.cmpf oeq, %577, %580 : vector<1x128xf32>
    %c128_i32_162 = arith.constant 128 : i32
    %582 = vector.broadcast %c128_i32_162 : i32 to vector<1x128xi32>
    %583 = arith.select %581, %267, %582 : vector<1x128xi1>, vector<1x128xi32>
    %cst_163 = arith.constant dense<2147483647> : vector<1xi32>
    %584 = vector.multi_reduction <minsi>, %583, %cst_163 [1] : vector<1x128xi32> to vector<1xi32>
    %585 = vector.shape_cast %584 : vector<1xi32> to vector<1x1xi32>
    %586 = vector.extract %585[0, 0] : i32 from vector<1x1xi32>
    %587 = arith.index_cast %586 : i32 to index
    %c0_164 = arith.constant 0 : index
    %588 = vector.load %arg14[%587, %c0_164] : memref<128x128xf32, #tpu.memory_space<vmem>>, vector<1x128xf32>
    %c5_i32 = arith.constant 5 : i32
    %589 = vector.broadcast %c5_i32 : i32 to vector<1x8xi32>
    %590 = arith.cmpi eq, %268, %589 : vector<1x8xi32>
    %591 = arith.sitofp %585 : vector<1x1xi32> to vector<1x1xf32>
    %592 = vector.shape_cast %591 : vector<1x1xf32> to vector<1x1xf32>
    %593 = vector.broadcast %592 : vector<1x1xf32> to vector<1x8xf32>
    %594 = arith.select %590, %593, %540 : vector<1x8xi1>, vector<1x8xf32>
    %595 = arith.truncf %588 : vector<1x128xf32> to vector<1x128xbf16>
    %c0_165 = arith.constant 0 : index
    %c0_166 = arith.constant 0 : index
    %596 = vector.load %arg12[%c0_165, %c0_166] : memref<128x512xbf16, #tpu.memory_space<vmem>>, vector<128x512xbf16>
    %cst_167 = arith.constant dense<0.000000e+00> : vector<1x512xf32>
    %597 = tpu.matmul %595, %596, %cst_167 {dimension_numbers = #tpu.dot_dimension_numbers<[1], [0], [0], [1], [0, 0, 1, 1], [], []>} : vector<1x128xbf16>, vector<128x512xbf16>, vector<1x512xf32> -> vector<1x512xf32>
    %598 = arith.truncf %573 : vector<1x128xf32> to vector<1x128xbf16>
    %c0_168 = arith.constant 0 : index
    %c0_169 = arith.constant 0 : index
    %599 = vector.load %arg13[%c0_168, %c0_169] : memref<128x512xbf16, #tpu.memory_space<vmem>>, vector<128x512xbf16>
    %cst_170 = arith.constant dense<0.000000e+00> : vector<1x512xf32>
    %600 = tpu.matmul %598, %599, %cst_170 {dimension_numbers = #tpu.dot_dimension_numbers<[1], [0], [0], [1], [0, 0, 1, 1], [], []>} : vector<1x128xbf16>, vector<128x512xbf16>, vector<1x512xf32> -> vector<1x512xf32>
    %601 = arith.addf %597, %600 : vector<1x512xf32>
    %602 = arith.addf %601, %265 : vector<1x512xf32>
    %603 = vector.extract_strided_slice %602 {offsets = [0, 0], sizes = [1, 128], strides = [1, 1]} : vector<1x512xf32> to vector<1x128xf32>
    %604 = arith.negf %603 : vector<1x128xf32>
    %605 = math.exp %604 : vector<1x128xf32>
    %cst_171 = arith.constant 1.000000e+00 : f32
    %606 = vector.broadcast %cst_171 : f32 to vector<1x128xf32>
    %607 = arith.addf %606, %605 : vector<1x128xf32>
    %608 = arith.divf %606, %607 : vector<1x128xf32>
    %609 = vector.extract_strided_slice %602 {offsets = [0, 128], sizes = [1, 128], strides = [1, 1]} : vector<1x512xf32> to vector<1x128xf32>
    %610 = arith.negf %609 : vector<1x128xf32>
    %611 = math.exp %610 : vector<1x128xf32>
    %cst_172 = arith.constant 1.000000e+00 : f32
    %612 = vector.broadcast %cst_172 : f32 to vector<1x128xf32>
    %613 = arith.addf %612, %611 : vector<1x128xf32>
    %614 = arith.divf %612, %613 : vector<1x128xf32>
    %615 = vector.extract_strided_slice %602 {offsets = [0, 256], sizes = [1, 128], strides = [1, 1]} : vector<1x512xf32> to vector<1x128xf32>
    %616 = math.tanh %615 : vector<1x128xf32>
    %617 = vector.extract_strided_slice %602 {offsets = [0, 384], sizes = [1, 128], strides = [1, 1]} : vector<1x512xf32> to vector<1x128xf32>
    %618 = arith.negf %617 : vector<1x128xf32>
    %619 = math.exp %618 : vector<1x128xf32>
    %cst_173 = arith.constant 1.000000e+00 : f32
    %620 = vector.broadcast %cst_173 : f32 to vector<1x128xf32>
    %621 = arith.addf %620, %619 : vector<1x128xf32>
    %622 = arith.divf %620, %621 : vector<1x128xf32>
    %623 = arith.mulf %614, %571 : vector<1x128xf32>
    %624 = arith.mulf %608, %616 : vector<1x128xf32>
    %625 = arith.addf %623, %624 : vector<1x128xf32>
    %626 = math.tanh %625 : vector<1x128xf32>
    %627 = arith.mulf %622, %626 : vector<1x128xf32>
    %628 = arith.truncf %627 : vector<1x128xf32> to vector<1x128xbf16>
    %c0_174 = arith.constant 0 : index
    %c0_175 = arith.constant 0 : index
    %629 = vector.load %arg15[%c0_174, %c0_175] : memref<128x128xbf16, #tpu.memory_space<vmem>>, vector<128x128xbf16>
    %cst_176 = arith.constant dense<0.000000e+00> : vector<1x128xf32>
    %630 = tpu.matmul %628, %629, %cst_176 {dimension_numbers = #tpu.dot_dimension_numbers<[1], [0], [0], [1], [0, 0, 1, 1], [], []>} : vector<1x128xbf16>, vector<128x128xbf16>, vector<1x128xf32> -> vector<1x128xf32>
    %631 = arith.addf %630, %266 : vector<1x128xf32>
    %cst_177 = arith.constant dense<0xFF800000> : vector<1xf32>
    %632 = vector.multi_reduction <maximumf>, %631, %cst_177 [1] : vector<1x128xf32> to vector<1xf32>
    %633 = vector.shape_cast %632 : vector<1xf32> to vector<1x1xf32>
    %634 = vector.broadcast %633 : vector<1x1xf32> to vector<1x128xf32>
    %635 = arith.cmpf oeq, %631, %634 : vector<1x128xf32>
    %c128_i32_178 = arith.constant 128 : i32
    %636 = vector.broadcast %c128_i32_178 : i32 to vector<1x128xi32>
    %637 = arith.select %635, %267, %636 : vector<1x128xi1>, vector<1x128xi32>
    %cst_179 = arith.constant dense<2147483647> : vector<1xi32>
    %638 = vector.multi_reduction <minsi>, %637, %cst_179 [1] : vector<1x128xi32> to vector<1xi32>
    %639 = vector.shape_cast %638 : vector<1xi32> to vector<1x1xi32>
    %640 = vector.extract %639[0, 0] : i32 from vector<1x1xi32>
    %641 = arith.index_cast %640 : i32 to index
    %c0_180 = arith.constant 0 : index
    %642 = vector.load %arg14[%641, %c0_180] : memref<128x128xf32, #tpu.memory_space<vmem>>, vector<1x128xf32>
    %c6_i32 = arith.constant 6 : i32
    %643 = vector.broadcast %c6_i32 : i32 to vector<1x8xi32>
    %644 = arith.cmpi eq, %268, %643 : vector<1x8xi32>
    %645 = arith.sitofp %639 : vector<1x1xi32> to vector<1x1xf32>
    %646 = vector.shape_cast %645 : vector<1x1xf32> to vector<1x1xf32>
    %647 = vector.broadcast %646 : vector<1x1xf32> to vector<1x8xf32>
    %648 = arith.select %644, %647, %594 : vector<1x8xi1>, vector<1x8xf32>
    %649 = arith.truncf %642 : vector<1x128xf32> to vector<1x128xbf16>
    %c0_181 = arith.constant 0 : index
    %c0_182 = arith.constant 0 : index
    %650 = vector.load %arg12[%c0_181, %c0_182] : memref<128x512xbf16, #tpu.memory_space<vmem>>, vector<128x512xbf16>
    %cst_183 = arith.constant dense<0.000000e+00> : vector<1x512xf32>
    %651 = tpu.matmul %649, %650, %cst_183 {dimension_numbers = #tpu.dot_dimension_numbers<[1], [0], [0], [1], [0, 0, 1, 1], [], []>} : vector<1x128xbf16>, vector<128x512xbf16>, vector<1x512xf32> -> vector<1x512xf32>
    %652 = arith.truncf %627 : vector<1x128xf32> to vector<1x128xbf16>
    %c0_184 = arith.constant 0 : index
    %c0_185 = arith.constant 0 : index
    %653 = vector.load %arg13[%c0_184, %c0_185] : memref<128x512xbf16, #tpu.memory_space<vmem>>, vector<128x512xbf16>
    %cst_186 = arith.constant dense<0.000000e+00> : vector<1x512xf32>
    %654 = tpu.matmul %652, %653, %cst_186 {dimension_numbers = #tpu.dot_dimension_numbers<[1], [0], [0], [1], [0, 0, 1, 1], [], []>} : vector<1x128xbf16>, vector<128x512xbf16>, vector<1x512xf32> -> vector<1x512xf32>
    %655 = arith.addf %651, %654 : vector<1x512xf32>
    %656 = arith.addf %655, %265 : vector<1x512xf32>
    %657 = vector.extract_strided_slice %656 {offsets = [0, 0], sizes = [1, 128], strides = [1, 1]} : vector<1x512xf32> to vector<1x128xf32>
    %658 = arith.negf %657 : vector<1x128xf32>
    %659 = math.exp %658 : vector<1x128xf32>
    %cst_187 = arith.constant 1.000000e+00 : f32
    %660 = vector.broadcast %cst_187 : f32 to vector<1x128xf32>
    %661 = arith.addf %660, %659 : vector<1x128xf32>
    %662 = arith.divf %660, %661 : vector<1x128xf32>
    %663 = vector.extract_strided_slice %656 {offsets = [0, 128], sizes = [1, 128], strides = [1, 1]} : vector<1x512xf32> to vector<1x128xf32>
    %664 = arith.negf %663 : vector<1x128xf32>
    %665 = math.exp %664 : vector<1x128xf32>
    %cst_188 = arith.constant 1.000000e+00 : f32
    %666 = vector.broadcast %cst_188 : f32 to vector<1x128xf32>
    %667 = arith.addf %666, %665 : vector<1x128xf32>
    %668 = arith.divf %666, %667 : vector<1x128xf32>
    %669 = vector.extract_strided_slice %656 {offsets = [0, 256], sizes = [1, 128], strides = [1, 1]} : vector<1x512xf32> to vector<1x128xf32>
    %670 = math.tanh %669 : vector<1x128xf32>
    %671 = vector.extract_strided_slice %656 {offsets = [0, 384], sizes = [1, 128], strides = [1, 1]} : vector<1x512xf32> to vector<1x128xf32>
    %672 = arith.negf %671 : vector<1x128xf32>
    %673 = math.exp %672 : vector<1x128xf32>
    %cst_189 = arith.constant 1.000000e+00 : f32
    %674 = vector.broadcast %cst_189 : f32 to vector<1x128xf32>
    %675 = arith.addf %674, %673 : vector<1x128xf32>
    %676 = arith.divf %674, %675 : vector<1x128xf32>
    %677 = arith.mulf %668, %625 : vector<1x128xf32>
    %678 = arith.mulf %662, %670 : vector<1x128xf32>
    %679 = arith.addf %677, %678 : vector<1x128xf32>
    %680 = math.tanh %679 : vector<1x128xf32>
    %681 = arith.mulf %676, %680 : vector<1x128xf32>
    %682 = arith.truncf %681 : vector<1x128xf32> to vector<1x128xbf16>
    %c0_190 = arith.constant 0 : index
    %c0_191 = arith.constant 0 : index
    %683 = vector.load %arg15[%c0_190, %c0_191] : memref<128x128xbf16, #tpu.memory_space<vmem>>, vector<128x128xbf16>
    %cst_192 = arith.constant dense<0.000000e+00> : vector<1x128xf32>
    %684 = tpu.matmul %682, %683, %cst_192 {dimension_numbers = #tpu.dot_dimension_numbers<[1], [0], [0], [1], [0, 0, 1, 1], [], []>} : vector<1x128xbf16>, vector<128x128xbf16>, vector<1x128xf32> -> vector<1x128xf32>
    %685 = arith.addf %684, %266 : vector<1x128xf32>
    %cst_193 = arith.constant dense<0xFF800000> : vector<1xf32>
    %686 = vector.multi_reduction <maximumf>, %685, %cst_193 [1] : vector<1x128xf32> to vector<1xf32>
    %687 = vector.shape_cast %686 : vector<1xf32> to vector<1x1xf32>
    %688 = vector.broadcast %687 : vector<1x1xf32> to vector<1x128xf32>
    %689 = arith.cmpf oeq, %685, %688 : vector<1x128xf32>
    %c128_i32_194 = arith.constant 128 : i32
    %690 = vector.broadcast %c128_i32_194 : i32 to vector<1x128xi32>
    %691 = arith.select %689, %267, %690 : vector<1x128xi1>, vector<1x128xi32>
    %cst_195 = arith.constant dense<2147483647> : vector<1xi32>
    %692 = vector.multi_reduction <minsi>, %691, %cst_195 [1] : vector<1x128xi32> to vector<1xi32>
    %693 = vector.shape_cast %692 : vector<1xi32> to vector<1x1xi32>
    %c7_i32 = arith.constant 7 : i32
    %694 = vector.broadcast %c7_i32 : i32 to vector<1x8xi32>
    %695 = arith.cmpi eq, %268, %694 : vector<1x8xi32>
    %696 = arith.sitofp %693 : vector<1x1xi32> to vector<1x1xf32>
    %697 = vector.shape_cast %696 : vector<1x1xf32> to vector<1x1xf32>
    %698 = vector.broadcast %697 : vector<1x1xf32> to vector<1x8xf32>
    %699 = arith.select %695, %698, %648 : vector<1x8xi1>, vector<1x8xf32>
    %c0_196 = arith.constant 0 : index
    %c0_197 = arith.constant 0 : index
    %700 = vector.load %arg11[%c0_196, %c0_197] : memref<1x8xf32, #tpu.memory_space<vmem>>, vector<1x8xf32>
    tpu.vector_store %arg11[%c0_196, %c0_197], %699 {strides = array<i32>} : memref<1x8xf32, #tpu.memory_space<vmem>>, vector<1x8xf32>,
    return
  }
}

</mosaic_0001>

<bundles_post_ra>
// kernel: tpu_custom_call.1
= control target key start
LH: loop header
LB: loop body
LE: loop exit
PB: predicated region body
PF: predicated region fallthrough
CT: control target
= control target key end

     0   :  { %16 = vsyncpa [#allocation8], 0  ;;  %s6691_s0 = inlined_call_operand.hbm [shape: f32[8,128], index: 0, kind: input, shape index: {}]   ;;  %s6692_s1 = inlined_call_operand.hbm [shape: f32[1,128], index: 1, kind: input, shape index: {}]   ;;  %s6693_s2 = inlined_call_operand.hbm [shape: bf16[128,512], index: 2, kind: input, shape index: {}]   ;;  %s6694_s3 = inlined_call_operand.hbm [shape: bf16[128,512], index: 3, kind: input, shape index: {}]   ;;  %s6695_s4 = inlined_call_operand.hbm [shape: f32[1,512], index: 4, kind: input, shape index: {}]   ;;  %s6696_s5 = inlined_call_operand.hbm [shape: bf16[128,512], index: 5, kind: input, shape index: {}]   ;;  %s6697_s6 = inlined_call_operand.hbm [shape: bf16[128,512], index: 6, kind: input, shape index: {}]   ;;  %s6698_s7 = inlined_call_operand.vmem [shape: f32[1,512], index: 7, kind: input, shape index: {}]   ;;  %s6699_s8 = inlined_call_operand.hbm [shape: f32[128,128], index: 8, kind: input, shape index: {}]   ;;  %s6700_s9 = inlined_call_operand.hbm [shape: bf16[128,128], index: 9, kind: input, shape index: {}]   ;;  %s6701_s10 = inlined_call_operand.vmem [shape: f32[1,128], index: 10, kind: input, shape index: {}]   ;;  %s6702_s11 = inlined_call_operand.hbm [shape: f32[1,8], index: 11, kind: output, shape index: {}]  }
   0x1   :  { %17 = vsyncpa [#allocation11], 0 }
   0x2   :  { %18 = vsyncpa [#allocation14], 0  ;;  %s36_s19 = sshll.u32 %s6692_s1, 4  ;;  %s37_s19 = int_to_ptr.hbm [resolvable:$true] %s36_s19 }
   0x3   :  { %19 = vsyncpa [#allocation9], 0  ;;  %s5215_s20 = smov [#allocation10]   ;;  %s59_s24 = sshll.u32 %s6694_s3, 4  ;;  %s60_s24 = int_to_ptr.hbm [resolvable:$true] %s59_s24 }
   0x4   :  { %s38_s21 = sshll.u32 %s5215_s20, 4  ;;  %s5216_s25 = smov [#allocation13]   ;;  %s39_s21 = int_to_ptr.vmem [resolvable:$true] %s38_s21 }
   0x5   :  { %41 = dma.hbm_to_vmem [thread:$0]  %s37_s19, 16, %s39_s21, [#allocation11]  }
   0x6   :  { %s61_s26 = sshll.u32 %s5216_s25, 4  ;;  %s25_s29 = sshll.u32 %s6691_s0, 4  ;;  %s62_s26 = int_to_ptr.vmem [resolvable:$true] %s61_s26  ;;  %s26_s29 = int_to_ptr.hbm [resolvable:$true] %s25_s29 }
   0x7   :  { %s5217_s1 = smov 256   ;;  %s5218_s30 = smov 16  }
   0x8   :  { %67 = dma.hbm_to_vmem [thread:$0]  %s60_s24, 4096, %s62_s26, [#allocation14], %s5217_s1, %s5217_s1, %s5218_s30  }
   0x9   :  { %s46_s14 = sshll.u32 %s6693_s2, 4  ;;  %s5219_s15 = smov [#allocation7]   ;;  %s47_s14 = int_to_ptr.hbm [resolvable:$true] %s46_s14 }
   0xa   :  { %s27_s16 = sshll.u32 %s5219_s15, 4  ;;  %s5220_s3 = smov [#allocation12]   ;;  %s28_s16 = int_to_ptr.vmem [resolvable:$true] %s27_s16 }
   0xb   :  { %30 = dma.hbm_to_vmem [thread:$0]  %s26_s29, 128, %s28_s16, [#allocation8]  }
   0xc   :  { %s48_s17 = sshll.u32 %s5220_s3, 4  ;;  %s73_s0 = sshll.u32 %s6695_s4, 4  ;;  %s49_s17 = int_to_ptr.vmem [resolvable:$true] %s48_s17  ;;  %s74_s0 = int_to_ptr.hbm [resolvable:$true] %s73_s0 }
   0xd   :  { %54 = dma.hbm_to_vmem [thread:$0]  %s47_s14, 4096, %s49_s17, [#allocation11], %s5217_s1, %s5217_s1, %s5218_s30  }
   0xe   :  { %s5221_s20 = smov [#allocation15]  }
   0xf   :  { %s75_s21 = sshll.u32 %s5221_s20, 4  ;;  %s76_s21 = int_to_ptr.vmem [resolvable:$true] %s75_s21 }
  0x10   :  { %78 = dma.hbm_to_vmem [thread:$0]  %s74_s0, 64, %s76_s21, [#allocation14]  }
  0x11   :  { %5199 = dma.done.wait [#allocation8], 128  }
  0x12   :  { %5200 = vsyncadd [#allocation8], 4294967168 }
  0x13   :  { %5201 = dma.done.wait [#allocation11], 4112  }
  0x14   :  { %5202 = vsyncadd [#allocation11], 4294963184 }
  0x15   :  { %5203 = dma.done.wait [#allocation14], 4160  }
  0x16   :  { %5204 = vsyncadd [#allocation14], 4294963136  ;;  %v4040_v0 = vld [vmem:[#allocation12 + $0xe0] sm:$0xf]  ;;  %v4552_v1 = vld [vmem:[#allocation12 + $0xec] sm:$0xf0] }
  0x17   :  { %v4550_v2 = vld [vmem:[#allocation12 + $0xe4] sm:$0xf]  ;;  %v4041_v3 = vor.u32 %v4552_v1, %v4040_v0  ;;  %v4042_v4 = vld [vmem:[#allocation12 + $0xf0] sm:$0xf0]  ;;  %v4551_v5 = vld [vmem:[#allocation12 + $0xec] sm:$0xf] }
  0x18   :  { %v4050_v6 = vld [vmem:[#allocation12 + $0xf8] sm:$0xf0]  ;;  %v4045_v7 = vor.u32 %v4550_v2, %v4042_v4  ;;  %v4048_v9 = vld [vmem:[#allocation12 + $0xe8] sm:$0xf]  ;;  %v4553_v10 = vld [vmem:[#allocation12 + $0xf4] sm:$0xf0] }
  0x19   :  { %v4053_v8 = vor.u32 %v4551_v5, %v4050_v6  ;;  %v4024_v11 = vld [vmem:[#allocation12 + $0xc0] sm:$0xf]  ;;  %363 = vmatpush.bf16.msra.mxu0 %v4041_v3  ;;  %v4049_v12 = vor.u32 %v4553_v10, %v4048_v9  ;;  %v4548_v13 = vld [vmem:[#allocation12 + $0xcc] sm:$0xf0]  ;;  %v4546_v14 = vld [vmem:[#allocation12 + $0xc4] sm:$0xf] }
  0x1a   :  { %v4026_v15 = vld [vmem:[#allocation12 + $0xd0] sm:$0xf0]  ;;  %376 = vmatpush.bf16.msra.mxu1 %v4045_v7  ;;  %v4025_v16 = vor.u32 %v4548_v13, %v4024_v11  ;;  %v4547_v18 = vld [vmem:[#allocation12 + $0xcc] sm:$0xf]  ;;  %v4034_v19 = vld [vmem:[#allocation12 + $0xd8] sm:$0xf0] }
  0x1b   :  { %402 = vmatpush.bf16.msra.mxu3 %v4053_v8  ;;  %v4029_v17 = vor.u32 %v4546_v14, %v4026_v15  ;;  %v4032_v20 = vld [vmem:[#allocation12 + $0xc8] sm:$0xf]  ;;  %389 = vmatpush.bf16.msra.mxu2 %v4049_v12  ;;  %v4037_v21 = vor.u32 %v4547_v18, %v4034_v19  ;;  %v4549_v22 = vld [vmem:[#allocation12 + $0xd4] sm:$0xf0]  ;;  %v4008_v23 = vld [vmem:[#allocation12 + $0xa0] sm:$0xf] }
  0x1c   :  { %v4544_v24 = vld [vmem:[#allocation12 + $0xac] sm:$0xf0]  ;;  %v4033_v25 = vor.u32 %v4549_v22, %v4032_v20  ;;  %v4542_v26 = vld [vmem:[#allocation12 + $0xa4] sm:$0xf]  ;;  %v4010_v27 = vld [vmem:[#allocation12 + $0xb0] sm:$0xf0] }
  0x1d   :  { %v4543_v28 = vld [vmem:[#allocation12 + $0xac] sm:$0xf]  ;;  %364 = vmatpush.bf16.msra.mxu0 %v4025_v16  ;;  %v4009_v29 = vor.u32 %v4544_v24, %v4008_v23  ;;  %v4018_v30 = vld [vmem:[#allocation12 + $0xb8] sm:$0xf0]  ;;  %v4016_v31 = vld [vmem:[#allocation12 + $0xa8] sm:$0xf]  ;;  %v4013_v33 = vor.u32 %v4542_v26, %v4010_v27 }
  0x1e   :  { %v4545_v32 = vld [vmem:[#allocation12 + $0xb4] sm:$0xf0]  ;;  %377 = vmatpush.bf16.msra.mxu1 %v4029_v17  ;;  %v4021_v34 = vor.u32 %v4543_v28, %v4018_v30  ;;  %v3992_v35 = vld [vmem:[#allocation12 + $0x80] sm:$0xf]  ;;  %v4540_v36 = vld [vmem:[#allocation12 + $0x8c] sm:$0xf0] }
  0x1f   :  { %403 = vmatpush.bf16.msra.mxu3 %v4037_v21  ;;  %v4538_v37 = vld [vmem:[#allocation12 + $0x84] sm:$0xf]  ;;  %390 = vmatpush.bf16.msra.mxu2 %v4033_v25  ;;  %v4017_v38 = vor.u32 %v4545_v32, %v4016_v31  ;;  %v3994_v39 = vld [vmem:[#allocation12 + $0x90] sm:$0xf0]  ;;  %v4539_v40 = vld [vmem:[#allocation12 + $0x8c] sm:$0xf]  ;;  %v3993_v44 = vor.u32 %v4540_v36, %v3992_v35 }
  0x20   :  { %v4002_v41 = vld [vmem:[#allocation12 + $0x98] sm:$0xf0]  ;;  %v4000_v42 = vld [vmem:[#allocation12 + $0x88] sm:$0xf]  ;;  %v4541_v43 = vld [vmem:[#allocation12 + $0x94] sm:$0xf0]  ;;  %v3997_v45 = vor.u32 %v4538_v37, %v3994_v39 }
  0x21   :  { %365 = vmatpush.bf16.msra.mxu0 %v4009_v29  ;;  %v4005_v46 = vor.u32 %v4539_v40, %v4002_v41  ;;  %v3976_v47 = vld [vmem:[#allocation12 + $0x60] sm:$0xf]  ;;  %v4536_v48 = vld [vmem:[#allocation12 + $0x6c] sm:$0xf0]  ;;  %v4534_v49 = vld [vmem:[#allocation12 + $0x64] sm:$0xf]  ;;  %v4001_v50 = vor.u32 %v4541_v43, %v4000_v42 }
  0x22   :  { %378 = vmatpush.bf16.msra.mxu1 %v4013_v33  ;;  %v3978_v51 = vld [vmem:[#allocation12 + $0x70] sm:$0xf0]  ;;  %v4535_v52 = vld [vmem:[#allocation12 + $0x6c] sm:$0xf]  ;;  %v3986_v53 = vld [vmem:[#allocation12 + $0x78] sm:$0xf0]  ;;  %v3977_v56 = vor.u32 %v4536_v48, %v3976_v47 }
  0x23   :  { %404 = vmatpush.bf16.msra.mxu3 %v4021_v34  ;;  %391 = vmatpush.bf16.msra.mxu2 %v4017_v38  ;;  %v3984_v54 = vld [vmem:[#allocation12 + $0x68] sm:$0xf]  ;;  %v4537_v55 = vld [vmem:[#allocation12 + $0x74] sm:$0xf0]  ;;  %v3981_v57 = vor.u32 %v4534_v49, %v3978_v51  ;;  %v3989_v58 = vor.u32 %v4535_v52, %v3986_v53  ;;  %v3960_v59 = vld [vmem:[#allocation12 + $0x40] sm:$0xf] }
  0x24   :  { %v4532_v60 = vld [vmem:[#allocation12 + $0x4c] sm:$0xf0]  ;;  %v4530_v61 = vld [vmem:[#allocation12 + $0x44] sm:$0xf]  ;;  %v3985_v62 = vor.u32 %v4537_v55, %v3984_v54  ;;  %v3962_v63 = vld [vmem:[#allocation12 + $0x50] sm:$0xf0] }
  0x25   :  { %366 = vmatpush.bf16.msra.mxu0 %v3993_v44  ;;  %v4531_v0 = vld [vmem:[#allocation12 + $0x4c] sm:$0xf]  ;;  %v3970_v1 = vld [vmem:[#allocation12 + $0x58] sm:$0xf0]  ;;  %v3968_v2 = vld [vmem:[#allocation12 + $0x48] sm:$0xf]  ;;  %v3961_v4 = vor.u32 %v4532_v60, %v3960_v59  ;;  %v3965_v5 = vor.u32 %v4530_v61, %v3962_v63 }
  0x26   :  { %379 = vmatpush.bf16.msra.mxu1 %v3997_v45  ;;  %v4533_v3 = vld [vmem:[#allocation12 + $0x54] sm:$0xf0]  ;;  %v3973_v6 = vor.u32 %v4531_v0, %v3970_v1  ;;  %v3944_v7 = vld [vmem:[#allocation12 + $0x20] sm:$0xf]  ;;  %v4528_v8 = vld [vmem:[#allocation12 + $0x2c] sm:$0xf0] }
  0x27   :  { %405 = vmatpush.bf16.msra.mxu3 %v4005_v46  ;;  %392 = vmatpush.bf16.msra.mxu2 %v4001_v50  ;;  %v4526_v9 = vld [vmem:[#allocation12 + $0x24] sm:$0xf]  ;;  %v3969_v10 = vor.u32 %v4533_v3, %v3968_v2  ;;  %v3946_v11 = vld [vmem:[#allocation12 + $0x30] sm:$0xf0]  ;;  %v4527_v12 = vld [vmem:[#allocation12 + $0x2c] sm:$0xf]  ;;  %v3945_v16 = vor.u32 %v4528_v8, %v3944_v7 }
  0x28   :  { %v3954_v13 = vld [vmem:[#allocation12 + $0x38] sm:$0xf0]  ;;  %v3952_v14 = vld [vmem:[#allocation12 + $0x28] sm:$0xf]  ;;  %v4529_v15 = vld [vmem:[#allocation12 + $0x34] sm:$0xf0]  ;;  %v3949_v19 = vor.u32 %v4526_v9, %v3946_v11 }
  0x29   :  { %367 = vmatpush.bf16.msra.mxu0 %v3977_v56  ;;  %v3928_v17 = vld [vmem:[#allocation12] sm:$0xf]  ;;  %v4524_v18 = vld [vmem:[#allocation12 + $0xc] sm:$0xf0]  ;;  %v3957_v20 = vor.u32 %v4527_v12, %v3954_v13  ;;  %v4522_v21 = vld [vmem:[#allocation12 + $0x4] sm:$0xf]  ;;  %v3953_v24 = vor.u32 %v4529_v15, %v3952_v14 }
  0x2a   :  { %380 = vmatpush.bf16.msra.mxu1 %v3981_v57  ;;  %v3930_v22 = vld [vmem:[#allocation12 + $0x10] sm:$0xf0]  ;;  %v4523_v23 = vld [vmem:[#allocation12 + $0xc] sm:$0xf]  ;;  %v3938_v25 = vld [vmem:[#allocation12 + $0x18] sm:$0xf0]  ;;  %v3929_v31 = vor.u32 %v4524_v18, %v3928_v17 }
  0x2b   :  { %406 = vmatpush.bf16.msra.mxu3 %v3989_v58  ;;  %393 = vmatpush.bf16.msra.mxu2 %v3985_v62  ;;  %v3936_v26 = vld [vmem:[#allocation12 + $0x8] sm:$0xf]  ;;  %v4525_v27 = vld [vmem:[#allocation12 + $0x14] sm:$0xf0]  ;;  %v4168_v28 = vld [vmem:[#allocation13 + $0xe0] sm:$0xf]  ;;  %v3933_v35 = vor.u32 %v4522_v21, %v3930_v22  ;;  %v3941_v36 = vor.u32 %v4523_v23, %v3938_v25 }
  0x2c   :  { %v4584_v29 = vld [vmem:[#allocation13 + $0xec] sm:$0xf0]  ;;  %v4582_v30 = vld [vmem:[#allocation13 + $0xe4] sm:$0xf]  ;;  %v4170_v32 = vld [vmem:[#allocation13 + $0xf0] sm:$0xf0]  ;;  %v3937_v40 = vor.u32 %v4525_v27, %v3936_v26 }
  0x2d   :  { %368 = vmatpush.bf16.msra.mxu0 %v3961_v4  ;;  %v4583_v33 = vld [vmem:[#allocation13 + $0xec] sm:$0xf]  ;;  %v4178_v34 = vld [vmem:[#allocation13 + $0xf8] sm:$0xf0]  ;;  %v4176_v37 = vld [vmem:[#allocation13 + $0xe8] sm:$0xf]  ;;  %v5303_v41 = vor.u32 %v4584_v29, %v4168_v28  ;;  %v5305_v42 = vor.u32 %v4582_v30, %v4170_v32 }
  0x2e   :  { %381 = vmatpush.bf16.msra.mxu1 %v3965_v5  ;;  %v4585_v38 = vld [vmem:[#allocation13 + $0xf4] sm:$0xf0]  ;;  %v5307_v43 = vor.u32 %v4583_v33, %v4178_v34  ;;  %v4152_v44 = vld [vmem:[#allocation13 + $0xc0] sm:$0xf]  ;;  %v4580_v45 = vld [vmem:[#allocation13 + $0xcc] sm:$0xf0] }
  0x2f   :  { %407 = vmatpush.bf16.msra.mxu3 %v3973_v6  ;;  %394 = vmatpush.bf16.msra.mxu2 %v3969_v10  ;;  %v159_v39 = vld [vmem:[#allocation7] sm:$0xff]  ;;  %v4578_v46 = vld [vmem:[#allocation13 + $0xc4] sm:$0xf]  ;;  %v5309_v47 = vor.u32 %v4585_v38, %v4176_v37  ;;  %v4579_v49 = vld [vmem:[#allocation13 + $0xcc] sm:$0xf]  ;;  %v5312_v54 = vor.u32 %v4580_v45, %v4152_v44  ;;  %s111_s22 = sshll.u32 %s6696_s5, 4  ;;  %s112_s22 = int_to_ptr.hbm [resolvable:$true] %s111_s22 }
  0x30   :  { %v4154_v48 = vld [vmem:[#allocation13 + $0xd0] sm:$0xf0]  ;;  %v4162_v50 = vld [vmem:[#allocation13 + $0xd8] sm:$0xf0]  ;;  %v160_v51 = vpack.c.bf16 %v159_v39, %v159_v39  ;;  %v4160_v52 = vld [vmem:[#allocation13 + $0xc8] sm:$0xf] }
  0x31   :  { %369 = vmatpush.bf16.msra.mxu0 %v3945_v16  ;;  %v4581_v53 = vld [vmem:[#allocation13 + $0xd4] sm:$0xf0]  ;;  %v5316_v55 = vor.u32 %v4578_v46, %v4154_v48  ;;  %v5318_v56 = vor.u32 %v4579_v49, %v4162_v50  ;;  %v4136_v57 = vld [vmem:[#allocation13 + $0xa0] sm:$0xf]  ;;  %v4576_v58 = vld [vmem:[#allocation13 + $0xac] sm:$0xf0] }
  0x32   :  { %382 = vmatpush.bf16.msra.mxu1 %v3949_v19  ;;  %v4574_v59 = vld [vmem:[#allocation13 + $0xa4] sm:$0xf]  ;;  %v5321_v60 = vor.u32 %v4581_v53, %v4160_v52  ;;  %v4138_v61 = vld [vmem:[#allocation13 + $0xb0] sm:$0xf0]  ;;  %v4575_v62 = vld [vmem:[#allocation13 + $0xac] sm:$0xf]  ;;  %v5324_v2 = vor.u32 %v4576_v58, %v4136_v57 }
  0x33   :  { %408 = vmatpush.bf16.msra.mxu3 %v3957_v20  ;;  %395 = vmatpush.bf16.msra.mxu2 %v3953_v24  ;;  %v4146_v63 = vld [vmem:[#allocation13 + $0xb8] sm:$0xf0]  ;;  %v4144_v0 = vld [vmem:[#allocation13 + $0xa8] sm:$0xf]  ;;  %v4577_v1 = vld [vmem:[#allocation13 + $0xb4] sm:$0xf0]  ;;  %v5328_v3 = vor.u32 %v4574_v59, %v4138_v61 }
  0x34   :  { %v5330_v4 = vor.u32 %v4575_v62, %v4146_v63  ;;  %v4120_v5 = vld [vmem:[#allocation13 + $0x80] sm:$0xf]  ;;  %v4572_v6 = vld [vmem:[#allocation13 + $0x8c] sm:$0xf0]  ;;  %v4570_v7 = vld [vmem:[#allocation13 + $0x84] sm:$0xf]  ;;  %v5333_v8 = vor.u32 %v4577_v1, %v4144_v0 }
  0x35   :  { %370 = vmatpush.bf16.msra.mxu0 %v3929_v31  ;;  %v4122_v9 = vld [vmem:[#allocation13 + $0x90] sm:$0xf0]  ;;  %v4571_v10 = vld [vmem:[#allocation13 + $0x8c] sm:$0xf]  ;;  %v4130_v11 = vld [vmem:[#allocation13 + $0x98] sm:$0xf0]  ;;  %v5336_v14 = vor.u32 %v4572_v6, %v4120_v5 }
  0x36   :  { %383 = vmatpush.bf16.msra.mxu1 %v3933_v35  ;;  %v4128_v12 = vld [vmem:[#allocation13 + $0x88] sm:$0xf]  ;;  %v4573_v13 = vld [vmem:[#allocation13 + $0x94] sm:$0xf0]  ;;  %v5340_v15 = vor.u32 %v4570_v7, %v4122_v9  ;;  %v5342_v16 = vor.u32 %v4571_v10, %v4130_v11  ;;  %v4104_v17 = vld [vmem:[#allocation13 + $0x60] sm:$0xf] }
  0x37   :  { %409 = vmatpush.bf16.msra.mxu3 %v3941_v36  ;;  %396 = vmatpush.bf16.msra.mxu2 %v3937_v40  ;;  %v4568_v18 = vld [vmem:[#allocation13 + $0x6c] sm:$0xf0]  ;;  %v4566_v19 = vld [vmem:[#allocation13 + $0x64] sm:$0xf]  ;;  %v5345_v20 = vor.u32 %v4573_v13, %v4128_v12  ;;  %v4106_v21 = vld [vmem:[#allocation13 + $0x70] sm:$0xf0] }
  0x38   :  { %371 = vmatmul.bf16.vlgmr.msra.gmra.mxu0 %v160_v51  ;;  %v4567_v22 = vld [vmem:[#allocation13 + $0x6c] sm:$0xf]  ;;  %v4114_v23 = vld [vmem:[#allocation13 + $0x78] sm:$0xf0]  ;;  %v4112_v24 = vld [vmem:[#allocation13 + $0x68] sm:$0xf]  ;;  %v5348_v26 = vor.u32 %v4568_v18, %v4104_v17  ;;  %v5352_v27 = vor.u32 %v4566_v19, %v4106_v21 }
  0x39   :  { %607 = vmatpush.bf16.msrb.mxu0 %v5303_v41  ;;  %384 = vmatmul.bf16.vlgmr.msra.gmra.mxu1 %v160_v51  ;;  %v4569_v25 = vld [vmem:[#allocation13 + $0x74] sm:$0xf0]  ;;  %v5354_v28 = vor.u32 %v4567_v22, %v4114_v23  ;;  %v4088_v29 = vld [vmem:[#allocation13 + $0x40] sm:$0xf]  ;;  %v4564_v30 = vld [vmem:[#allocation13 + $0x4c] sm:$0xf0] }
  0x3a   :  { %620 = vmatpush.bf16.msrb.mxu1 %v5305_v42  ;;  %410 = vmatmul.bf16.vlgmr.msra.gmra.mxu3 %v160_v51  ;;  %v4562_v31 = vld [vmem:[#allocation13 + $0x44] sm:$0xf]  ;;  %v5357_v32 = vor.u32 %v4569_v25, %v4112_v24  ;;  %v4090_v33 = vld [vmem:[#allocation13 + $0x50] sm:$0xf0]  ;;  %v4563_v34 = vld [vmem:[#allocation13 + $0x4c] sm:$0xf]  ;;  %v5360_v38 = vor.u32 %v4564_v30, %v4088_v29 }
  0x3b   :  { %646 = vmatpush.bf16.msrb.mxu3 %v5307_v43  ;;  %633 = vmatpush.bf16.msrb.mxu2 %v5309_v47  ;;  %v4098_v35 = vld [vmem:[#allocation13 + $0x58] sm:$0xf0]  ;;  %v4096_v36 = vld [vmem:[#allocation13 + $0x48] sm:$0xf]  ;;  %v4565_v37 = vld [vmem:[#allocation13 + $0x54] sm:$0xf0]  ;;  %v5364_v39 = vor.u32 %v4562_v31, %v4090_v33 }
  0x3c   :  { %397 = vmatmul.bf16.vlgmr.msra.gmra.mxu2 %v160_v51  ;;  %v5366_v40 = vor.u32 %v4563_v34, %v4098_v35  ;;  %v4072_v44 = vld [vmem:[#allocation13 + $0x20] sm:$0xf]  ;;  %v4560_v45 = vld [vmem:[#allocation13 + $0x2c] sm:$0xf0]  ;;  %v4558_v46 = vld [vmem:[#allocation13 + $0x24] sm:$0xf]  ;;  %v5369_v48 = vor.u32 %v4565_v37, %v4096_v36 }
  0x3d   :  { %608 = vmatpush.bf16.msrb.mxu0 %v5312_v54  ;;  %v4074_v49 = vld [vmem:[#allocation13 + $0x30] sm:$0xf0]  ;;  %v4559_v50 = vld [vmem:[#allocation13 + $0x2c] sm:$0xf]  ;;  %v4082_v51 = vld [vmem:[#allocation13 + $0x38] sm:$0xf0]  ;;  %v5372_v57 = vor.u32 %v4560_v45, %v4072_v44 }
  0x3e   :  { %621 = vmatpush.bf16.msrb.mxu1 %v5316_v55  ;;  %v4080_v52 = vld [vmem:[#allocation13 + $0x28] sm:$0xf]  ;;  %v4561_v53 = vld [vmem:[#allocation13 + $0x34] sm:$0xf0]  ;;  %v5376_v58 = vor.u32 %v4558_v46, %v4074_v49  ;;  %v5378_v59 = vor.u32 %v4559_v50, %v4082_v51  ;;  %v4056_v61 = vld [vmem:[#allocation13] sm:$0xf] }
  0x3f   :  { %647 = vmatpush.bf16.msrb.mxu3 %v5318_v56  ;;  %634 = vmatpush.bf16.msrb.mxu2 %v5321_v60  ;;  %v4556_v62 = vld [vmem:[#allocation13 + $0xc] sm:$0xf0]  ;;  %v4554_v63 = vld [vmem:[#allocation13 + $0x4] sm:$0xf]  ;;  %v5381_v0 = vor.u32 %v4561_v53, %v4080_v52  ;;  %v4058_v1 = vld [vmem:[#allocation13 + $0x10] sm:$0xf0] }
  0x40   :  { %v4555_v5 = vld [vmem:[#allocation13 + $0xc] sm:$0xf]  ;;  %v4066_v6 = vld [vmem:[#allocation13 + $0x18] sm:$0xf0]  ;;  %v4064_v7 = vld [vmem:[#allocation13 + $0x8] sm:$0xf]  ;;  %v5384_v10 = vor.u32 %v4556_v62, %v4056_v61  ;;  %v5388_v11 = vor.u32 %v4554_v63, %v4058_v1 }
  0x41   :  { %609 = vmatpush.bf16.msrb.mxu0 %v5324_v2  ;;  %v4557_v9 = vld [vmem:[#allocation13 + $0x14] sm:$0xf0]  ;;  %v5390_v12 = vor.u32 %v4555_v5, %v4066_v6  ;;  %v5222_v17 = vmov 0   ;;  %v193_v30 = vld [vmem:[#allocation15] sm:$0xf]  ;;  %s5223_s23 = smov [#allocation2]  }
  0x42   :  { %622 = vmatpush.bf16.msrb.mxu1 %v5328_v3  ;;  %v5393_v13 = vor.u32 %v4557_v9, %v4064_v7  ;;  %v195_v31 = vperm.slane %v193_v30, 0  ;;  %v196_v33 = vperm.slane %v193_v30, 1  ;;  %v198_v45 = vperm.slane %v193_v30, 3  ;;  %s113_s24 = sshll.u32 %s5223_s23, 4  ;;  %s125_s27 = sshll.u32 %s6697_s6, 4  ;;  %s114_s24 = int_to_ptr.vmem [resolvable:$true] %s113_s24  ;;  %s126_s27 = int_to_ptr.hbm [resolvable:$true] %s125_s27 }
  0x43   :  { %648 = vmatpush.bf16.msrb.mxu3 %v5330_v4  ;;  %635 = vmatpush.bf16.msrb.mxu2 %v5333_v8  ;;  %v197_v7 = vperm.slane %v193_v30, 2  ;;  %116 = dma.hbm_to_vmem [thread:$0]  %s112_s22, 4096, %s114_s24, [#allocation6] }
  0x44   :  { %s5224_s28 = smov [#allocation3]   ;;  %s139_s12 = sshll.u32 %s6699_s8, 4  ;;  %s140_s12 = int_to_ptr.hbm [resolvable:$true] %s139_s12 }
  0x45   :  { %610 = vmatpush.bf16.msrb.mxu0 %v5336_v14  ;;  %s127_s29 = sshll.u32 %s5224_s28, 4  ;;  %s5225_s5 = smov [#allocation4]   ;;  %s128_s29 = int_to_ptr.vmem [resolvable:$true] %s127_s29 }
  0x46   :  { %623 = vmatpush.bf16.msrb.mxu1 %v5340_v15  ;;  %130 = dma.hbm_to_vmem [thread:$0]  %s126_s27, 4096, %s128_s29, [#allocation6 + $0x1] }
  0x47   :  { %649 = vmatpush.bf16.msrb.mxu3 %v5342_v16  ;;  %636 = vmatpush.bf16.msrb.mxu2 %v5345_v20  ;;  %s141_s13 = sshll.u32 %s5225_s5, 4  ;;  %s153_s16 = sshll.u32 %s6700_s9, 4  ;;  %s142_s13 = int_to_ptr.vmem [resolvable:$true] %s141_s13  ;;  %s154_s16 = int_to_ptr.hbm [resolvable:$true] %s153_s16 }
  0x48   :  { %144 = dma.hbm_to_vmem [thread:$0]  %s140_s12, 2048, %s142_s13, [#allocation6 + $0x2] }
  0x49   :  { %611 = vmatpush.bf16.msrb.mxu0 %v5348_v26  ;;  %s5226_s6 = smov [#allocation5]  }
  0x4a   :  { %624 = vmatpush.bf16.msrb.mxu1 %v5352_v27  ;;  %s155_s3 = sshll.u32 %s5226_s6, 4  ;;  %s156_s3 = int_to_ptr.vmem [resolvable:$true] %s155_s3 }
  0x4b   :  { %650 = vmatpush.bf16.msrb.mxu3 %v5354_v28  ;;  %637 = vmatpush.bf16.msrb.mxu2 %v5357_v32  ;;  %158 = dma.hbm_to_vmem [thread:$0]  %s154_s16, 1024, %s156_s3, [#allocation6 + $0x3] }
  0x4d   :  { %612 = vmatpush.bf16.msrb.mxu0 %v5360_v38 }
  0x4e   :  { %625 = vmatpush.bf16.msrb.mxu1 %v5364_v39 }
  0x4f   :  { %651 = vmatpush.bf16.msrb.mxu3 %v5366_v40  ;;  %638 = vmatpush.bf16.msrb.mxu2 %v5369_v48 }
  0x51   :  { %613 = vmatpush.bf16.msrb.mxu0 %v5372_v57 }
  0x52   :  { %626 = vmatpush.bf16.msrb.mxu1 %v5376_v58 }
  0x53   :  { %652 = vmatpush.bf16.msrb.mxu3 %v5378_v59  ;;  %639 = vmatpush.bf16.msrb.mxu2 %v5381_v0 }
  0x55   :  { %614 = vmatpush.bf16.msrb.mxu0 %v5384_v10 }
  0x56   :  { %627 = vmatpush.bf16.msrb.mxu1 %v5388_v11 }
  0x57   :  { %653 = vmatpush.bf16.msrb.mxu3 %v5390_v12  ;;  %640 = vmatpush.bf16.msrb.mxu2 %v5393_v13 }
  0x58   :  { %615 = vmatmul.bf16.vlgmr.msrb.gmra.mxu0 %v5222_v17 }
  0x59   :  { %727 = vmatpush.bf16.msra.mxu0 %v5303_v41  ;;  %628 = vmatmul.bf16.vlgmr.msrb.gmra.mxu1 %v5222_v17 }
  0x5a   :  { %740 = vmatpush.bf16.msra.mxu1 %v5305_v42  ;;  %654 = vmatmul.bf16.vlgmr.msrb.gmra.mxu3 %v5222_v17 }
  0x5b   :  { %641 = vmatmul.bf16.vlgmr.msrb.gmra.mxu2 %v5222_v17  ;;  %766 = vmatpush.bf16.msra.mxu3 %v5307_v43 }
  0x5c   :  { %753 = vmatpush.bf16.msra.mxu2 %v5309_v47 }
  0x5d   :  { %728 = vmatpush.bf16.msra.mxu0 %v5312_v54 }
  0x5e   :  { %741 = vmatpush.bf16.msra.mxu1 %v5316_v55 }
  0x5f   :  { %767 = vmatpush.bf16.msra.mxu3 %v5318_v56 }
  0x60   :  { %754 = vmatpush.bf16.msra.mxu2 %v5321_v60 }
  0x61   :  { %729 = vmatpush.bf16.msra.mxu0 %v5324_v2 }
  0x62   :  { %742 = vmatpush.bf16.msra.mxu1 %v5328_v3 }
  0x63   :  { %768 = vmatpush.bf16.msra.mxu3 %v5330_v4 }
  0x64   :  { %755 = vmatpush.bf16.msra.mxu2 %v5333_v8 }
  0x65   :  { %730 = vmatpush.bf16.msra.mxu0 %v5336_v14 }
  0x66   :  { %743 = vmatpush.bf16.msra.mxu1 %v5340_v15 }
  0x67   :  { %769 = vmatpush.bf16.msra.mxu3 %v5342_v16 }
  0x68   :  { %756 = vmatpush.bf16.msra.mxu2 %v5345_v20 }
  0x69   :  { %731 = vmatpush.bf16.msra.mxu0 %v5348_v26 }
  0x6a   :  { %744 = vmatpush.bf16.msra.mxu1 %v5352_v27 }
  0x6b   :  { %770 = vmatpush.bf16.msra.mxu3 %v5354_v28 }
  0x6c   :  { %757 = vmatpush.bf16.msra.mxu2 %v5357_v32 }
  0x6d   :  { %732 = vmatpush.bf16.msra.mxu0 %v5360_v38 }
  0x6e   :  { %745 = vmatpush.bf16.msra.mxu1 %v5364_v39 }
  0x6f   :  { %771 = vmatpush.bf16.msra.mxu3 %v5366_v40 }
  0x70   :  { %758 = vmatpush.bf16.msra.mxu2 %v5369_v48 }
  0x71   :  { %733 = vmatpush.bf16.msra.mxu0 %v5372_v57 }
  0x72   :  { %746 = vmatpush.bf16.msra.mxu1 %v5376_v58 }
  0x73   :  { %772 = vmatpush.bf16.msra.mxu3 %v5378_v59 }
  0x74   :  { %759 = vmatpush.bf16.msra.mxu2 %v5381_v0 }
  0x75   :  { %734 = vmatpush.bf16.msra.mxu0 %v5384_v10 }
  0x76   :  { %747 = vmatpush.bf16.msra.mxu1 %v5388_v11 }
  0x77   :  { %773 = vmatpush.bf16.msra.mxu3 %v5390_v12 }
  0x78   :  { %760 = vmatpush.bf16.msra.mxu2 %v5393_v13 }
  0x79   :  { %866 = vmatpush.bf16.msrb.mxu0 %v5303_v41 }
  0x7a   :  { %879 = vmatpush.bf16.msrb.mxu1 %v5305_v42 }
  0x7b   :  { %905 = vmatpush.bf16.msrb.mxu3 %v5307_v43 }
  0x7c   :  { %892 = vmatpush.bf16.msrb.mxu2 %v5309_v47 }
  0x7d   :  { %867 = vmatpush.bf16.msrb.mxu0 %v5312_v54 }
  0x7e   :  { %880 = vmatpush.bf16.msrb.mxu1 %v5316_v55 }
  0x7f   :  { %906 = vmatpush.bf16.msrb.mxu3 %v5318_v56 }
  0x80   :  { %893 = vmatpush.bf16.msrb.mxu2 %v5321_v60 }
  0x81   :  { %868 = vmatpush.bf16.msrb.mxu0 %v5324_v2 }
  0x82   :  { %881 = vmatpush.bf16.msrb.mxu1 %v5328_v3 }
  0x83   :  { %907 = vmatpush.bf16.msrb.mxu3 %v5330_v4 }
  0x84   :  { %894 = vmatpush.bf16.msrb.mxu2 %v5333_v8 }
  0x85   :  { %869 = vmatpush.bf16.msrb.mxu0 %v5336_v14 }
  0x86   :  { %882 = vmatpush.bf16.msrb.mxu1 %v5340_v15 }
  0x87   :  { %908 = vmatpush.bf16.msrb.mxu3 %v5342_v16 }
  0x88   :  { %895 = vmatpush.bf16.msrb.mxu2 %v5345_v20 }
  0x89   :  { %870 = vmatpush.bf16.msrb.mxu0 %v5348_v26 }
  0x8a   :  { %883 = vmatpush.bf16.msrb.mxu1 %v5352_v27 }
  0x8b   :  { %909 = vmatpush.bf16.msrb.mxu3 %v5354_v28 }
  0x8c   :  { %896 = vmatpush.bf16.msrb.mxu2 %v5357_v32 }
  0x8d   :  { %871 = vmatpush.bf16.msrb.mxu0 %v5360_v38 }
  0x8e   :  { %884 = vmatpush.bf16.msrb.mxu1 %v5364_v39 }
  0x8f   :  { %910 = vmatpush.bf16.msrb.mxu3 %v5366_v40 }
  0x90   :  { %897 = vmatpush.bf16.msrb.mxu2 %v5369_v48 }
  0x91   :  { %872 = vmatpush.bf16.msrb.mxu0 %v5372_v57 }
  0x92   :  { %885 = vmatpush.bf16.msrb.mxu1 %v5376_v58 }
  0x93   :  { %911 = vmatpush.bf16.msrb.mxu3 %v5378_v59 }
  0x94   :  { %898 = vmatpush.bf16.msrb.mxu2 %v5381_v0 }
  0x95   :  { %873 = vmatpush.bf16.msrb.mxu0 %v5384_v10 }
  0x96   :  { %886 = vmatpush.bf16.msrb.mxu1 %v5388_v11 }
  0x97   :  { %912 = vmatpush.bf16.msrb.mxu3 %v5390_v12 }
  0x98   :  { %899 = vmatpush.bf16.msrb.mxu2 %v5393_v13 }
  0xb5   :  { %v372_v18 = vpop.f32.mrf.mxu0 }
  0xb6   :  { %v385_v19 = vpop.f32.mrf.mxu1  ;;  %v5463_v34 = vadd.f32 %v372_v18, %v195_v31 }
  0xb7   :  { %v5465_v35 = vadd.f32 %v385_v19, %v196_v33 }
  0xbd   :  { %v411_v21 = vpop.f32.mrf.mxu3  ;;  %v374_v22 = vpop.f32.mrf.mxu0 }
  0xbe   :  { %v387_v24 = vpop.f32.mrf.mxu1  ;;  %v5469_v51 = vadd.f32 %v411_v21, %v198_v45 }
  0xbf   :  { %v398_v23 = vpop.f32.mrf.mxu2 }
  0xc0   :  { %v5472_v19 = vadd.f32 %v398_v23, %v197_v7 }
  0xc5   :  { %v413_v25 = vpop.f32.mrf.mxu3 }
  0xc7   :  { %v400_v29 = vpop.f32.mrf.mxu2 }
  0xd5   :  { %v616_v36 = vpop.f32.mrf.mxu0 }
  0xd6   :  { %v659_v37 = vadd.f32 %v616_v36, %v5463_v34  ;;  %v629_v44 = vpop.f32.mrf.mxu1 }
  0xd7   :  { %v660_v46 = vadd.f32 %v629_v44, %v5465_v35 }
  0xd8   :  { %v4182_v49 = vmul.f32 -1.442695, %v659_v37 }
  0xd9   :  { %v4183_v50 = vmul.f32 -1.442695, %v660_v46 }
  0xda   :  { %4685 = vpow2.f32 %v4182_v49 }
  0xdb   :  { %4687 = vpow2.f32 %v4183_v50 }
  0xdd   :  { %v655_v52 = vpop.f32.mrf.mxu3  ;;  %v618_v62 = vpop.f32.mrf.mxu0 }
  0xde   :  { %v662_v53 = vadd.f32 %v655_v52, %v5469_v51  ;;  %v642_v61 = vpop.f32.mrf.mxu2  ;;  %v631_v63 = vpop.f32.mrf.mxu1 }
  0xdf   :  { %v661_v29 = vadd.f32 %v642_v61, %v5472_v19 }
  0xe0   :  { %v4184_v1 = vmul.f32 -1.442695, %v662_v53  ;;  %v4686_v5 = vpop.eup %4685 }
  0xe1   :  { %v4688_v6 = vpop.eup %4687  ;;  %v666_v9 = vadd.f32 1.0, %v4686_v5 }
  0xe2   :  { %4689 = vpow2.f32 %v4184_v1  ;;  %v685_v17 = vadd.f32 1.0, %v4688_v6 }
  0xe3   :  { %4691 = vrcp.f32 %v666_v9  ;;  %v678_v44 = vand.u32 2147483648, %v666_v9  ;;  %v676_v49 = vand.u32 2147483647, %v666_v9  ;;  %vm672_vm2 = vweird.f32 %v666_v9 }
  0xe4   :  { %4693 = vrcp.f32 %v685_v17  ;;  %v697_v45 = vand.u32 2147483648, %v685_v17  ;;  %v695_v50 = vand.u32 2147483647, %v685_v17  ;;  %vm691_vm3 = vweird.f32 %v685_v17 }
  0xe5   :  { %v657_v18 = vpop.f32.mrf.mxu3  ;;  %v679_v62 = vor.u32 1.1754944e-38, %v678_v44  ;;  %vm677_vm5 = vcmp.eq.f32.partialorder %v676_v49, 8.507059e+37 }
  0xe6   :  { %v644_v21 = vpop.f32.mrf.mxu2  ;;  %v698_v1 = vor.u32 1.1754944e-38, %v697_v45  ;;  %vm696_vm7 = vcmp.eq.f32.partialorder %v695_v50, 8.507059e+37 }
  0xe8   :  { %v4690_v22 = vpop.eup %4689 }
  0xe9   :  { %v705_v24 = vadd.f32 1.0, %v4690_v22  ;;  %v4692_v25 = vpop.eup %4691 }
  0xea   :  { %v4694_v31 = vpop.eup %4693  ;;  %v668_v33 = vmul.f32 %v4692_v25, %v666_v9  ;;  %vm673_vm0 = vweird.f32 %v4692_v25 }
  0xeb   :  { %4695 = vrcp.f32 %v705_v24  ;;  %v687_v36 = vmul.f32 %v4694_v31, %v685_v17  ;;  %vm692_vm1 = vweird.f32 %v4694_v31  ;;  %vm674_vm4 = vmor %vm672_vm2, %vm673_vm0  ;;  %v717_v17 = vand.u32 2147483648, %v705_v24 }
  0xec   :  { %v669_v37 = vsub.f32 1.0, %v668_v33  ;;  %4697 = vtanh.f32 %v661_v29  ;;  %vm693_vm6 = vmor %vm691_vm3, %vm692_vm1  ;;  %vm711_vm9 = vweird.f32 %v705_v24 }
  0xed   :  { %v688_v30 = vsub.f32 1.0, %v687_v36  ;;  %v718_v44 = vor.u32 1.1754944e-38, %v717_v17 }
  0xee   :  { %v670_v46 = vmul.f32 %v4692_v25, %v669_v37 }
  0xef   :  { %v689_v23 = vmul.f32 %v4694_v31, %v688_v30 }
  0xf0   :  { %v671_v53 = vadd.f32 %v4692_v25, %v670_v46 }
  0xf1   :  { %v4696_v52 = vpop.eup %4695  ;;  %v690_v63 = vadd.f32 %v4694_v31, %v689_v23 }
  0xf2   :  { %v707_v61 = vmul.f32 %v4696_v52, %v705_v24  ;;  %v675_v5 = vsel %vm674_vm4, %v4692_v25, %v671_v53  ;;  %v4698_v6 = vpop.eup %4697  ;;  %vm712_vm8 = vweird.f32 %v4696_v52  ;;  %v715_v25 = vand.u32 2147483647, %v705_v24 }
  0xf3   :  { %v680_v18 = vsel %vm677_vm5, %v679_v62, %v675_v5  ;;  %v694_v21 = vsel %vm693_vm6, %v4694_v31, %v690_v63  ;;  %vm713_vm10 = vmor %vm711_vm9, %vm712_vm8 }
  0xf4   :  { %v708_v7 = vsub.f32 1.0, %v707_v61  ;;  %v699_v22 = vsel %vm696_vm7, %v698_v1, %v694_v21  ;;  %v722_v29 = vmul.f32 %v4698_v6, %v680_v18  ;;  %vm716_vm11 = vcmp.eq.f32.partialorder %v715_v25, 8.507059e+37 }
  0xf5   :  { %v721_v33 = vmul.f32 0.0, %v699_v22 }
  0xf6   :  { %v709_v36 = vmul.f32 %v4696_v52, %v708_v7 }
  0xf7   :  { %v5475_v37 = vadd.f32 %v722_v29, %v721_v33 }
  0xf8   :  { %v710_v9 = vadd.f32 %v4696_v52, %v709_v36 }
  0xf9   :  { %4699 = vtanh.f32 %v5475_v37 }
  0xfa   :  { %v714_v30 = vsel %vm713_vm10, %v4696_v52, %v710_v9 }
  0xfb   :  { %v719_v31 = vsel %vm716_vm11, %v718_v44, %v714_v30 }
  0xff   :  { %v4700_v45 = vpop.eup %4699 }
 0x100   :  { %v725_v46 = vmul.f32 %v4700_v45, %v719_v31 }
 0x102   :  { %v726_v49 = vpack.c.bf16 %v725_v46, %v725_v46 }
 0x104   :  { %735 = vmatmul.bf16.vlgmr.msra.gmra.mxu0 %v726_v49  ;;  %748 = vmatmul.bf16.vlgmr.msra.gmra.mxu1 %v726_v49 }
 0x105   :  { %761 = vmatmul.bf16.vlgmr.msra.gmra.mxu2 %v726_v49  ;;  %774 = vmatmul.bf16.vlgmr.msra.gmra.mxu3 %v726_v49 }
 0x106   :  { %1004 = vmatpush.bf16.msra.mxu0 %v5303_v41  ;;  %1017 = vmatpush.bf16.msra.mxu1 %v5305_v42 }
 0x107   :  { %1030 = vmatpush.bf16.msra.mxu2 %v5309_v47  ;;  %1043 = vmatpush.bf16.msra.mxu3 %v5307_v43 }
 0x10a   :  { %1005 = vmatpush.bf16.msra.mxu0 %v5312_v54  ;;  %1018 = vmatpush.bf16.msra.mxu1 %v5316_v55 }
 0x10b   :  { %1031 = vmatpush.bf16.msra.mxu2 %v5321_v60  ;;  %1044 = vmatpush.bf16.msra.mxu3 %v5318_v56 }
 0x10e   :  { %1006 = vmatpush.bf16.msra.mxu0 %v5324_v2  ;;  %1019 = vmatpush.bf16.msra.mxu1 %v5328_v3 }
 0x10f   :  { %1032 = vmatpush.bf16.msra.mxu2 %v5333_v8  ;;  %1045 = vmatpush.bf16.msra.mxu3 %v5330_v4 }
 0x112   :  { %1007 = vmatpush.bf16.msra.mxu0 %v5336_v14  ;;  %1020 = vmatpush.bf16.msra.mxu1 %v5340_v15 }
 0x113   :  { %1033 = vmatpush.bf16.msra.mxu2 %v5345_v20  ;;  %1046 = vmatpush.bf16.msra.mxu3 %v5342_v16 }
 0x116   :  { %1008 = vmatpush.bf16.msra.mxu0 %v5348_v26  ;;  %1021 = vmatpush.bf16.msra.mxu1 %v5352_v27 }
 0x117   :  { %1034 = vmatpush.bf16.msra.mxu2 %v5357_v32  ;;  %1047 = vmatpush.bf16.msra.mxu3 %v5354_v28 }
 0x11a   :  { %1009 = vmatpush.bf16.msra.mxu0 %v5360_v38  ;;  %1022 = vmatpush.bf16.msra.mxu1 %v5364_v39 }
 0x11b   :  { %1035 = vmatpush.bf16.msra.mxu2 %v5369_v48  ;;  %1048 = vmatpush.bf16.msra.mxu3 %v5366_v40 }
 0x11e   :  { %1010 = vmatpush.bf16.msra.mxu0 %v5372_v57  ;;  %1023 = vmatpush.bf16.msra.mxu1 %v5376_v58 }
 0x11f   :  { %1036 = vmatpush.bf16.msra.mxu2 %v5381_v0  ;;  %1049 = vmatpush.bf16.msra.mxu3 %v5378_v59 }
 0x122   :  { %1011 = vmatpush.bf16.msra.mxu0 %v5384_v10  ;;  %1024 = vmatpush.bf16.msra.mxu1 %v5388_v11 }
 0x123   :  { %1037 = vmatpush.bf16.msra.mxu2 %v5393_v13  ;;  %1050 = vmatpush.bf16.msra.mxu3 %v5390_v12 }
 0x181   :  { %v736_v24 = vpop.f32.mrf.mxu0  ;;  %v749_v23 = vpop.f32.mrf.mxu1 }
 0x182   :  { %v783_v50 = vrot.slane %v736_v24, 7  ;;  %v784_v52 = vrot.slane %v749_v23, 7 }
 0x184   :  { %v791_v53 = vadd.f32 %v783_v50, %v5463_v34  ;;  %v792_v61 = vadd.f32 %v784_v52, %v5465_v35 }
 0x186   :  { %v4185_v62 = vmul.f32 -1.442695, %v791_v53  ;;  %v4186_v63 = vmul.f32 -1.442695, %v792_v61 }
 0x188   :  { %4701 = vpow2.f32 %v4185_v62  ;;  %v762_v1 = vpop.f32.mrf.mxu2  ;;  %v775_v5 = vpop.f32.mrf.mxu3 }
 0x189   :  { %4703 = vpow2.f32 %v4186_v63  ;;  %v786_v6 = vrot.slane %v775_v5, 7  ;;  %v738_v7 = vpop.f32.mrf.mxu0  ;;  %v751_v18 = vpop.f32.mrf.mxu1  ;;  %v785_v30 = vrot.slane %v762_v1, 7 }
 0x18b   :  { %v794_v21 = vadd.f32 %v786_v6, %v5469_v51  ;;  %v793_v46 = vadd.f32 %v785_v30, %v5472_v19 }
 0x18d   :  { %v4187_v22 = vmul.f32 -1.442695, %v794_v21 }
 0x18e   :  { %v4702_v29 = vpop.eup %4701 }
 0x18f   :  { %v4704_v33 = vpop.eup %4703  ;;  %v798_v36 = vadd.f32 1.0, %v4702_v29  ;;  %4705 = vpow2.f32 %v4187_v22  ;;  %v854_v29 = vrot.slane %v5475_v37, 7 }
 0x190   :  { %v817_v9 = vadd.f32 1.0, %v4704_v33  ;;  %v764_v17 = vpop.f32.mrf.mxu2  ;;  %v777_v25 = vpop.f32.mrf.mxu3 }
 0x191   :  { %4707 = vrcp.f32 %v798_v36  ;;  %v810_v53 = vand.u32 2147483648, %v798_v36  ;;  %v808_v63 = vand.u32 2147483647, %v798_v36  ;;  %vm804_vm14 = vweird.f32 %v798_v36 }
 0x192   :  { %4709 = vrcp.f32 %v817_v9  ;;  %v829_v61 = vand.u32 2147483648, %v817_v9  ;;  %v827_v1 = vand.u32 2147483647, %v817_v9  ;;  %vm823_vm15 = vweird.f32 %v817_v9 }
 0x193   :  { %v811_v18 = vor.u32 1.1754944e-38, %v810_v53  ;;  %vm809_vm2 = vcmp.eq.f32.partialorder %v808_v63, 8.507059e+37 }
 0x194   :  { %v830_v33 = vor.u32 1.1754944e-38, %v829_v61  ;;  %vm828_vm3 = vcmp.eq.f32.partialorder %v827_v1, 8.507059e+37 }
 0x195   :  { %v4706_v44 = vpop.eup %4705 }
 0x196   :  { %v837_v45 = vadd.f32 1.0, %v4706_v44 }
 0x197   :  { %v4708_v31 = vpop.eup %4707 }
 0x198   :  { %v4710_v49 = vpop.eup %4709  ;;  %v800_v24 = vmul.f32 %v4708_v31, %v798_v36  ;;  %4711 = vrcp.f32 %v837_v45  ;;  %vm805_vm12 = vweird.f32 %v4708_v31  ;;  %v849_v37 = vand.u32 2147483648, %v837_v45 }
 0x199   :  { %v819_v23 = vmul.f32 %v4710_v49, %v817_v9  ;;  %4713 = vtanh.f32 %v793_v46  ;;  %vm824_vm13 = vweird.f32 %v4710_v49  ;;  %vm806_vm0 = vmor %vm804_vm14, %vm805_vm12  ;;  %vm843_vm5 = vweird.f32 %v837_v45 }
 0x19a   :  { %v801_v50 = vsub.f32 1.0, %v800_v24  ;;  %vm825_vm1 = vmor %vm823_vm15, %vm824_vm13  ;;  %v847_v53 = vand.u32 2147483647, %v837_v45  ;;  %v850_v61 = vor.u32 1.1754944e-38, %v849_v37 }
 0x19b   :  { %v820_v52 = vsub.f32 1.0, %v819_v23 }
 0x19c   :  { %v802_v62 = vmul.f32 %v4708_v31, %v801_v50  ;;  %vm848_vm7 = vcmp.eq.f32.partialorder %v847_v53, 8.507059e+37 }
 0x19d   :  { %v821_v5 = vmul.f32 %v4710_v49, %v820_v52 }
 0x19e   :  { %v4712_v6 = vpop.eup %4711  ;;  %v803_v7 = vadd.f32 %v4708_v31, %v802_v62 }
 0x19f   :  { %v822_v21 = vadd.f32 %v4710_v49, %v821_v5  ;;  %v839_v22 = vmul.f32 %v4712_v6, %v837_v45  ;;  %v4714_v25 = vpop.eup %4713  ;;  %vm844_vm4 = vweird.f32 %v4712_v6 }
 0x1a0   :  { %v807_v17 = vsel %vm806_vm0, %v4708_v31, %v803_v7  ;;  %vm845_vm6 = vmor %vm843_vm5, %vm844_vm4 }
 0x1a1   :  { %v812_v30 = vsel %vm809_vm2, %v811_v18, %v807_v17  ;;  %v826_v44 = vsel %vm825_vm1, %v4710_v49, %v822_v21  ;;  %v840_v46 = vsub.f32 1.0, %v839_v22 }
 0x1a2   :  { %v831_v24 = vsel %vm828_vm3, %v830_v33, %v826_v44  ;;  %v857_v23 = vmul.f32 %v4714_v25, %v812_v30 }
 0x1a3   :  { %v856_v50 = vmul.f32 %v854_v29, %v831_v24  ;;  %v841_v36 = vmul.f32 %v4712_v6, %v840_v46 }
 0x1a5   :  { %v5515_v9 = vadd.f32 %v857_v23, %v856_v50  ;;  %v842_v52 = vadd.f32 %v4712_v6, %v841_v36 }
 0x1a7   :  { %4715 = vtanh.f32 %v5515_v9  ;;  %v846_v31 = vsel %vm845_vm6, %v4712_v6, %v842_v52 }
 0x1a8   :  { %v851_v62 = vsel %vm848_vm7, %v850_v61, %v846_v31 }
 0x1ad   :  { %v4716_v49 = vpop.eup %4715 }
 0x1ae   :  { %v860_v63 = vmul.f32 %v4716_v49, %v851_v62 }
 0x1b0   :  { %v861_v5 = vpack.c.bf16 %v860_v63, %v860_v63 }
 0x1b2   :  { %v863_v1 = vshrl.u32 %v861_v5, 16 }
 0x1b4   :  { %874 = vmatmul.bf16.vlgmr.msrb.gmra.mxu0 %v863_v1  ;;  %887 = vmatmul.bf16.vlgmr.msrb.gmra.mxu1 %v863_v1 }
 0x1b5   :  { %900 = vmatmul.bf16.vlgmr.msrb.gmra.mxu2 %v863_v1  ;;  %913 = vmatmul.bf16.vlgmr.msrb.gmra.mxu3 %v863_v1 }
 0x1b6   :  { %1144 = vmatpush.bf16.msrb.mxu0 %v5303_v41  ;;  %1157 = vmatpush.bf16.msrb.mxu1 %v5305_v42 }
 0x1b7   :  { %1170 = vmatpush.bf16.msrb.mxu2 %v5309_v47  ;;  %1183 = vmatpush.bf16.msrb.mxu3 %v5307_v43 }
 0x1ba   :  { %1145 = vmatpush.bf16.msrb.mxu0 %v5312_v54  ;;  %1158 = vmatpush.bf16.msrb.mxu1 %v5316_v55 }
 0x1bb   :  { %1171 = vmatpush.bf16.msrb.mxu2 %v5321_v60  ;;  %1184 = vmatpush.bf16.msrb.mxu3 %v5318_v56 }
 0x1be   :  { %1146 = vmatpush.bf16.msrb.mxu0 %v5324_v2  ;;  %1159 = vmatpush.bf16.msrb.mxu1 %v5328_v3 }
 0x1bf   :  { %1172 = vmatpush.bf16.msrb.mxu2 %v5333_v8  ;;  %1185 = vmatpush.bf16.msrb.mxu3 %v5330_v4 }
 0x1c2   :  { %1147 = vmatpush.bf16.msrb.mxu0 %v5336_v14  ;;  %1160 = vmatpush.bf16.msrb.mxu1 %v5340_v15 }
 0x1c3   :  { %1173 = vmatpush.bf16.msrb.mxu2 %v5345_v20  ;;  %1186 = vmatpush.bf16.msrb.mxu3 %v5342_v16 }
 0x1c6   :  { %1148 = vmatpush.bf16.msrb.mxu0 %v5348_v26  ;;  %1161 = vmatpush.bf16.msrb.mxu1 %v5352_v27 }
 0x1c7   :  { %1174 = vmatpush.bf16.msrb.mxu2 %v5357_v32  ;;  %1187 = vmatpush.bf16.msrb.mxu3 %v5354_v28 }
 0x1ca   :  { %1149 = vmatpush.bf16.msrb.mxu0 %v5360_v38  ;;  %1162 = vmatpush.bf16.msrb.mxu1 %v5364_v39 }
 0x1cb   :  { %1175 = vmatpush.bf16.msrb.mxu2 %v5369_v48  ;;  %1188 = vmatpush.bf16.msrb.mxu3 %v5366_v40 }
 0x1ce   :  { %1150 = vmatpush.bf16.msrb.mxu0 %v5372_v57  ;;  %1163 = vmatpush.bf16.msrb.mxu1 %v5376_v58 }
 0x1cf   :  { %1176 = vmatpush.bf16.msrb.mxu2 %v5381_v0  ;;  %1189 = vmatpush.bf16.msrb.mxu3 %v5378_v59 }
 0x1d2   :  { %1151 = vmatpush.bf16.msrb.mxu0 %v5384_v10  ;;  %1164 = vmatpush.bf16.msrb.mxu1 %v5388_v11 }
 0x1d3   :  { %1177 = vmatpush.bf16.msrb.mxu2 %v5393_v13  ;;  %1190 = vmatpush.bf16.msrb.mxu3 %v5390_v12 }
 0x231   :  { %v875_v45 = vpop.f32.mrf.mxu0  ;;  %v888_v6 = vpop.f32.mrf.mxu1 }
 0x232   :  { %v922_v7 = vrot.slane %v875_v45, 6  ;;  %v923_v18 = vrot.slane %v888_v6, 6 }
 0x234   :  { %v930_v21 = vadd.f32 %v922_v7, %v5463_v34  ;;  %v931_v22 = vadd.f32 %v923_v18, %v5465_v35 }
 0x236   :  { %v4188_v29 = vmul.f32 -1.442695, %v930_v21  ;;  %v4189_v33 = vmul.f32 -1.442695, %v931_v22 }
 0x238   :  { %4717 = vpow2.f32 %v4188_v29  ;;  %v901_v17 = vpop.f32.mrf.mxu2  ;;  %v914_v25 = vpop.f32.mrf.mxu3 }
 0x239   :  { %4719 = vpow2.f32 %v4189_v33  ;;  %v925_v30 = vrot.slane %v914_v25, 6  ;;  %v877_v44 = vpop.f32.mrf.mxu0  ;;  %v890_v46 = vpop.f32.mrf.mxu1  ;;  %v924_v61 = vrot.slane %v901_v17, 6 }
 0x23b   :  { %v933_v24 = vadd.f32 %v925_v30, %v5469_v51  ;;  %v932_v5 = vadd.f32 %v924_v61, %v5472_v19 }
 0x23d   :  { %v4190_v23 = vmul.f32 -1.442695, %v933_v24 }
 0x23e   :  { %v4718_v50 = vpop.eup %4717 }
 0x23f   :  { %v4720_v36 = vpop.eup %4719  ;;  %v937_v52 = vadd.f32 1.0, %v4718_v50  ;;  %4721 = vpow2.f32 %v4190_v23  ;;  %v993_v50 = vrot.slane %v5515_v9, 7 }
 0x240   :  { %v956_v37 = vadd.f32 1.0, %v4720_v36  ;;  %v903_v53 = vpop.f32.mrf.mxu2  ;;  %v916_v31 = vpop.f32.mrf.mxu3 }
 0x241   :  { %4723 = vrcp.f32 %v937_v52  ;;  %v949_v21 = vand.u32 2147483648, %v937_v52  ;;  %v947_v33 = vand.u32 2147483647, %v937_v52  ;;  %vm943_vm10 = vweird.f32 %v937_v52 }
 0x242   :  { %4725 = vrcp.f32 %v956_v37  ;;  %v968_v22 = vand.u32 2147483648, %v956_v37  ;;  %v966_v17 = vand.u32 2147483647, %v956_v37  ;;  %vm962_vm11 = vweird.f32 %v956_v37 }
 0x243   :  { %v950_v46 = vor.u32 1.1754944e-38, %v949_v21  ;;  %vm948_vm14 = vcmp.eq.f32.partialorder %v947_v33, 8.507059e+37 }
 0x244   :  { %v969_v36 = vor.u32 1.1754944e-38, %v968_v22  ;;  %vm967_vm15 = vcmp.eq.f32.partialorder %v966_v17, 8.507059e+37 }
 0x245   :  { %v4722_v49 = vpop.eup %4721 }
 0x246   :  { %v976_v62 = vadd.f32 1.0, %v4722_v49 }
 0x247   :  { %v4724_v63 = vpop.eup %4723 }
 0x248   :  { %v4726_v1 = vpop.eup %4725  ;;  %v939_v45 = vmul.f32 %v4724_v63, %v937_v52  ;;  %4727 = vrcp.f32 %v976_v62  ;;  %vm944_vm8 = vweird.f32 %v4724_v63  ;;  %v988_v9 = vand.u32 2147483648, %v976_v62 }
 0x249   :  { %v958_v6 = vmul.f32 %v4726_v1, %v956_v37  ;;  %4729 = vtanh.f32 %v932_v5  ;;  %vm963_vm9 = vweird.f32 %v4726_v1  ;;  %vm945_vm12 = vmor %vm943_vm10, %vm944_vm8  ;;  %vm982_vm1 = vweird.f32 %v976_v62 }
 0x24a   :  { %v940_v7 = vsub.f32 1.0, %v939_v45  ;;  %vm964_vm13 = vmor %vm962_vm11, %vm963_vm9  ;;  %v986_v21 = vand.u32 2147483647, %v976_v62  ;;  %v989_v22 = vor.u32 1.1754944e-38, %v988_v9 }
 0x24b   :  { %v959_v18 = vsub.f32 1.0, %v958_v6 }
 0x24c   :  { %v941_v29 = vmul.f32 %v4724_v63, %v940_v7  ;;  %vm987_vm3 = vcmp.eq.f32.partialorder %v986_v21, 8.507059e+37 }
 0x24d   :  { %v960_v25 = vmul.f32 %v4726_v1, %v959_v18 }
 0x24e   :  { %v4728_v30 = vpop.eup %4727  ;;  %v942_v44 = vadd.f32 %v4724_v63, %v941_v29 }
 0x24f   :  { %v961_v24 = vadd.f32 %v4726_v1, %v960_v25  ;;  %v978_v23 = vmul.f32 %v4728_v30, %v976_v62  ;;  %v4730_v31 = vpop.eup %4729  ;;  %vm983_vm0 = vweird.f32 %v4728_v30 }
 0x250   :  { %v946_v53 = vsel %vm945_vm12, %v4724_v63, %v942_v44  ;;  %vm984_vm2 = vmor %vm982_vm1, %vm983_vm0 }
 0x251   :  { %v951_v61 = vsel %vm948_vm14, %v950_v46, %v946_v53  ;;  %v965_v49 = vsel %vm964_vm13, %v4726_v1, %v961_v24  ;;  %v979_v5 = vsub.f32 1.0, %v978_v23 }
 0x252   :  { %v970_v45 = vsel %vm967_vm15, %v969_v36, %v965_v49  ;;  %v996_v6 = vmul.f32 %v4730_v31, %v951_v61 }
 0x253   :  { %v995_v7 = vmul.f32 %v993_v50, %v970_v45  ;;  %v980_v52 = vmul.f32 %v4728_v30, %v979_v5 }
 0x255   :  { %v5555_v37 = vadd.f32 %v996_v6, %v995_v7  ;;  %v981_v18 = vadd.f32 %v4728_v30, %v980_v52 }
 0x257   :  { %4731 = vtanh.f32 %v5555_v37  ;;  %v985_v63 = vsel %vm984_vm2, %v4728_v30, %v981_v18 }
 0x258   :  { %v990_v29 = vsel %vm987_vm3, %v989_v22, %v985_v63 }
 0x25d   :  { %v4732_v1 = vpop.eup %4731 }
 0x25e   :  { %v999_v33 = vmul.f32 %v4732_v1, %v990_v29 }
 0x260   :  { %v1000_v25 = vpack.c.bf16 %v999_v33, %v999_v33 }
 0x262   :  { %v1002_v17 = vrot.slane %v1000_v25, 1 }
 0x264   :  { %1012 = vmatmul.bf16.vlgmr.msra.gmra.mxu0 %v1002_v17  ;;  %1025 = vmatmul.bf16.vlgmr.msra.gmra.mxu1 %v1002_v17 }
 0x265   :  { %1038 = vmatmul.bf16.vlgmr.msra.gmra.mxu2 %v1002_v17  ;;  %1051 = vmatmul.bf16.vlgmr.msra.gmra.mxu3 %v1002_v17 }
 0x266   :  { %1282 = vmatpush.bf16.msra.mxu0 %v5303_v41  ;;  %1295 = vmatpush.bf16.msra.mxu1 %v5305_v42 }
 0x267   :  { %1308 = vmatpush.bf16.msra.mxu2 %v5309_v47  ;;  %1321 = vmatpush.bf16.msra.mxu3 %v5307_v43 }
 0x26a   :  { %1283 = vmatpush.bf16.msra.mxu0 %v5312_v54  ;;  %1296 = vmatpush.bf16.msra.mxu1 %v5316_v55 }
 0x26b   :  { %1309 = vmatpush.bf16.msra.mxu2 %v5321_v60  ;;  %1322 = vmatpush.bf16.msra.mxu3 %v5318_v56 }
 0x26e   :  { %1284 = vmatpush.bf16.msra.mxu0 %v5324_v2  ;;  %1297 = vmatpush.bf16.msra.mxu1 %v5328_v3 }
 0x26f   :  { %1310 = vmatpush.bf16.msra.mxu2 %v5333_v8  ;;  %1323 = vmatpush.bf16.msra.mxu3 %v5330_v4 }
 0x272   :  { %1285 = vmatpush.bf16.msra.mxu0 %v5336_v14  ;;  %1298 = vmatpush.bf16.msra.mxu1 %v5340_v15 }
 0x273   :  { %1311 = vmatpush.bf16.msra.mxu2 %v5345_v20  ;;  %1324 = vmatpush.bf16.msra.mxu3 %v5342_v16 }
 0x276   :  { %1286 = vmatpush.bf16.msra.mxu0 %v5348_v26  ;;  %1299 = vmatpush.bf16.msra.mxu1 %v5352_v27 }
 0x277   :  { %1312 = vmatpush.bf16.msra.mxu2 %v5357_v32  ;;  %1325 = vmatpush.bf16.msra.mxu3 %v5354_v28 }
 0x27a   :  { %1287 = vmatpush.bf16.msra.mxu0 %v5360_v38  ;;  %1300 = vmatpush.bf16.msra.mxu1 %v5364_v39 }
 0x27b   :  { %1313 = vmatpush.bf16.msra.mxu2 %v5369_v48  ;;  %1326 = vmatpush.bf16.msra.mxu3 %v5366_v40 }
 0x27e   :  { %1288 = vmatpush.bf16.msra.mxu0 %v5372_v57  ;;  %1301 = vmatpush.bf16.msra.mxu1 %v5376_v58 }
 0x27f   :  { %1314 = vmatpush.bf16.msra.mxu2 %v5381_v0  ;;  %1327 = vmatpush.bf16.msra.mxu3 %v5378_v59 }
 0x282   :  { %1289 = vmatpush.bf16.msra.mxu0 %v5384_v10  ;;  %1302 = vmatpush.bf16.msra.mxu1 %v5388_v11 }
 0x283   :  { %1315 = vmatpush.bf16.msra.mxu2 %v5393_v13  ;;  %1328 = vmatpush.bf16.msra.mxu3 %v5390_v12 }
 0x2e1   :  { %v1013_v62 = vpop.f32.mrf.mxu0  ;;  %v1026_v30 = vpop.f32.mrf.mxu1 }
 0x2e2   :  { %v1060_v44 = vrot.slane %v1013_v62, 5  ;;  %v1061_v46 = vrot.slane %v1026_v30, 5 }
 0x2e4   :  { %v1068_v24 = vadd.f32 %v1060_v44, %v5463_v34  ;;  %v1069_v23 = vadd.f32 %v1061_v46, %v5465_v35 }
 0x2e6   :  { %v4191_v50 = vmul.f32 -1.442695, %v1068_v24  ;;  %v4192_v36 = vmul.f32 -1.442695, %v1069_v23 }
 0x2e8   :  { %4733 = vpow2.f32 %v4191_v50  ;;  %v1039_v53 = vpop.f32.mrf.mxu2  ;;  %v1052_v31 = vpop.f32.mrf.mxu3 }
 0x2e9   :  { %4735 = vpow2.f32 %v4192_v36  ;;  %v1063_v61 = vrot.slane %v1052_v31, 5  ;;  %v1015_v49 = vpop.f32.mrf.mxu0  ;;  %v1028_v5 = vpop.f32.mrf.mxu1  ;;  %v1062_v22 = vrot.slane %v1039_v53, 5 }
 0x2eb   :  { %v1071_v45 = vadd.f32 %v1063_v61, %v5469_v51  ;;  %v1070_v25 = vadd.f32 %v1062_v22, %v5472_v19 }
 0x2ed   :  { %v4193_v6 = vmul.f32 -1.442695, %v1071_v45 }
 0x2ee   :  { %v4734_v7 = vpop.eup %4733 }
 0x2ef   :  { %v4736_v52 = vpop.eup %4735  ;;  %v1075_v18 = vadd.f32 1.0, %v4734_v7  ;;  %4737 = vpow2.f32 %v4193_v6  ;;  %v1131_v7 = vrot.slane %v5555_v37, 7 }
 0x2f0   :  { %v1094_v9 = vadd.f32 1.0, %v4736_v52  ;;  %v1041_v21 = vpop.f32.mrf.mxu2  ;;  %v1054_v63 = vpop.f32.mrf.mxu3 }
 0x2f1   :  { %4739 = vrcp.f32 %v1075_v18  ;;  %v1087_v24 = vand.u32 2147483648, %v1075_v18  ;;  %v1085_v36 = vand.u32 2147483647, %v1075_v18  ;;  %vm1081_vm6 = vweird.f32 %v1075_v18 }
 0x2f2   :  { %4741 = vrcp.f32 %v1094_v9  ;;  %v1106_v23 = vand.u32 2147483648, %v1094_v9  ;;  %v1104_v53 = vand.u32 2147483647, %v1094_v9  ;;  %vm1100_vm7 = vweird.f32 %v1094_v9 }
 0x2f3   :  { %v1088_v5 = vor.u32 1.1754944e-38, %v1087_v24  ;;  %vm1086_vm10 = vcmp.eq.f32.partialorder %v1085_v36, 8.507059e+37 }
 0x2f4   :  { %v1107_v52 = vor.u32 1.1754944e-38, %v1106_v23  ;;  %vm1105_vm11 = vcmp.eq.f32.partialorder %v1104_v53, 8.507059e+37 }
 0x2f5   :  { %v4738_v1 = vpop.eup %4737 }
 0x2f6   :  { %v1114_v29 = vadd.f32 1.0, %v4738_v1 }
 0x2f7   :  { %v4740_v33 = vpop.eup %4739 }
 0x2f8   :  { %v4742_v17 = vpop.eup %4741  ;;  %v1077_v62 = vmul.f32 %v4740_v33, %v1075_v18  ;;  %4743 = vrcp.f32 %v1114_v29  ;;  %vm1082_vm4 = vweird.f32 %v4740_v33  ;;  %v1126_v37 = vand.u32 2147483648, %v1114_v29 }
 0x2f9   :  { %v1096_v30 = vmul.f32 %v4742_v17, %v1094_v9  ;;  %4745 = vtanh.f32 %v1070_v25  ;;  %vm1101_vm5 = vweird.f32 %v4742_v17  ;;  %vm1083_vm8 = vmor %vm1081_vm6, %vm1082_vm4  ;;  %vm1120_vm13 = vweird.f32 %v1114_v29 }
 0x2fa   :  { %v1078_v44 = vsub.f32 1.0, %v1077_v62  ;;  %vm1102_vm9 = vmor %vm1100_vm7, %vm1101_vm5  ;;  %v1124_v24 = vand.u32 2147483647, %v1114_v29  ;;  %v1127_v23 = vor.u32 1.1754944e-38, %v1126_v37 }
 0x2fb   :  { %v1097_v46 = vsub.f32 1.0, %v1096_v30 }
 0x2fc   :  { %v1079_v50 = vmul.f32 %v4740_v33, %v1078_v44  ;;  %vm1125_vm15 = vcmp.eq.f32.partialorder %v1124_v24, 8.507059e+37 }
 0x2fd   :  { %v1098_v31 = vmul.f32 %v4742_v17, %v1097_v46 }
 0x2fe   :  { %v4744_v61 = vpop.eup %4743  ;;  %v1080_v49 = vadd.f32 %v4740_v33, %v1079_v50 }
 0x2ff   :  { %v1099_v45 = vadd.f32 %v4742_v17, %v1098_v31  ;;  %v1116_v6 = vmul.f32 %v4744_v61, %v1114_v29  ;;  %v4746_v63 = vpop.eup %4745  ;;  %vm1121_vm12 = vweird.f32 %v4744_v61 }
 0x300   :  { %v1084_v21 = vsel %vm1083_vm8, %v4740_v33, %v1080_v49  ;;  %vm1122_vm14 = vmor %vm1120_vm13, %vm1121_vm12 }
 0x301   :  { %v1089_v22 = vsel %vm1086_vm10, %v1088_v5, %v1084_v21  ;;  %v1103_v1 = vsel %vm1102_vm9, %v4742_v17, %v1099_v45  ;;  %v1117_v25 = vsub.f32 1.0, %v1116_v6 }
 0x302   :  { %v1108_v62 = vsel %vm1105_vm11, %v1107_v52, %v1103_v1  ;;  %v1134_v30 = vmul.f32 %v4746_v63, %v1089_v22 }
 0x303   :  { %v1133_v44 = vmul.f32 %v1131_v7, %v1108_v62  ;;  %v1118_v18 = vmul.f32 %v4744_v61, %v1117_v25 }
 0x305   :  { %v5595_v9 = vadd.f32 %v1134_v30, %v1133_v44  ;;  %v1119_v46 = vadd.f32 %v4744_v61, %v1118_v18 }
 0x307   :  { %4747 = vtanh.f32 %v5595_v9  ;;  %v1123_v33 = vsel %vm1122_vm14, %v4744_v61, %v1119_v46 }
 0x308   :  { %v1128_v50 = vsel %vm1125_vm15, %v1127_v23, %v1123_v33 }
 0x30d   :  { %v4748_v17 = vpop.eup %4747 }
 0x30e   :  { %v1137_v36 = vmul.f32 %v4748_v17, %v1128_v50 }
 0x310   :  { %v1138_v31 = vpack.c.bf16 %v1137_v36, %v1137_v36 }
 0x312   :  { %v1140_v53 = vshrl.u32 %v1138_v31, 16 }
 0x314   :  { %v1142_v49 = vrot.slane %v1140_v53, 1 }
 0x316   :  { %1152 = vmatmul.bf16.vlgmr.msrb.gmra.mxu0 %v1142_v49  ;;  %1165 = vmatmul.bf16.vlgmr.msrb.gmra.mxu1 %v1142_v49 }
 0x317   :  { %1178 = vmatmul.bf16.vlgmr.msrb.gmra.mxu2 %v1142_v49  ;;  %1191 = vmatmul.bf16.vlgmr.msrb.gmra.mxu3 %v1142_v49 }
 0x318   :  { %1422 = vmatpush.bf16.msrb.mxu0 %v5303_v41  ;;  %1435 = vmatpush.bf16.msrb.mxu1 %v5305_v42 }
 0x319   :  { %1448 = vmatpush.bf16.msrb.mxu2 %v5309_v47  ;;  %1461 = vmatpush.bf16.msrb.mxu3 %v5307_v43 }
 0x31c   :  { %1423 = vmatpush.bf16.msrb.mxu0 %v5312_v54  ;;  %1436 = vmatpush.bf16.msrb.mxu1 %v5316_v55 }
 0x31d   :  { %1449 = vmatpush.bf16.msrb.mxu2 %v5321_v60  ;;  %1462 = vmatpush.bf16.msrb.mxu3 %v5318_v56 }
 0x320   :  { %1424 = vmatpush.bf16.msrb.mxu0 %v5324_v2  ;;  %1437 = vmatpush.bf16.msrb.mxu1 %v5328_v3 }
 0x321   :  { %1450 = vmatpush.bf16.msrb.mxu2 %v5333_v8  ;;  %1463 = vmatpush.bf16.msrb.mxu3 %v5330_v4 }
 0x324   :  { %1425 = vmatpush.bf16.msrb.mxu0 %v5336_v14  ;;  %1438 = vmatpush.bf16.msrb.mxu1 %v5340_v15 }
 0x325   :  { %1451 = vmatpush.bf16.msrb.mxu2 %v5345_v20  ;;  %1464 = vmatpush.bf16.msrb.mxu3 %v5342_v16 }
 0x328   :  { %1426 = vmatpush.bf16.msrb.mxu0 %v5348_v26  ;;  %1439 = vmatpush.bf16.msrb.mxu1 %v5352_v27 }
 0x329   :  { %1452 = vmatpush.bf16.msrb.mxu2 %v5357_v32  ;;  %1465 = vmatpush.bf16.msrb.mxu3 %v5354_v28 }
 0x32c   :  { %1427 = vmatpush.bf16.msrb.mxu0 %v5360_v38  ;;  %1440 = vmatpush.bf16.msrb.mxu1 %v5364_v39 }
 0x32d   :  { %1453 = vmatpush.bf16.msrb.mxu2 %v5369_v48  ;;  %1466 = vmatpush.bf16.msrb.mxu3 %v5366_v40 }
 0x330   :  { %1428 = vmatpush.bf16.msrb.mxu0 %v5372_v57  ;;  %1441 = vmatpush.bf16.msrb.mxu1 %v5376_v58 }
 0x331   :  { %1454 = vmatpush.bf16.msrb.mxu2 %v5381_v0  ;;  %1467 = vmatpush.bf16.msrb.mxu3 %v5378_v59 }
 0x334   :  { %1429 = vmatpush.bf16.msrb.mxu0 %v5384_v10  ;;  %1442 = vmatpush.bf16.msrb.mxu1 %v5388_v11 }
 0x335   :  { %1455 = vmatpush.bf16.msrb.mxu2 %v5393_v13  ;;  %1468 = vmatpush.bf16.msrb.mxu3 %v5390_v12 }
 0x393   :  { %v1153_v29 = vpop.f32.mrf.mxu0  ;;  %v1166_v61 = vpop.f32.mrf.mxu1 }
 0x394   :  { %v1200_v5 = vrot.slane %v1153_v29, 4  ;;  %v1201_v45 = vrot.slane %v1166_v61, 4 }
 0x396   :  { %v1208_v6 = vadd.f32 %v1200_v5, %v5463_v34  ;;  %v1209_v7 = vadd.f32 %v1201_v45, %v5465_v35 }
 0x398   :  { %v4194_v52 = vmul.f32 -1.442695, %v1208_v6  ;;  %v4195_v21 = vmul.f32 -1.442695, %v1209_v7 }
 0x39a   :  { %4749 = vpow2.f32 %v4194_v52  ;;  %v1179_v63 = vpop.f32.mrf.mxu2  ;;  %v1192_v22 = vpop.f32.mrf.mxu3 }
 0x39b   :  { %4751 = vpow2.f32 %v4195_v21  ;;  %v1203_v1 = vrot.slane %v1192_v22, 4  ;;  %v1155_v25 = vpop.f32.mrf.mxu0  ;;  %v1168_v62 = vpop.f32.mrf.mxu1  ;;  %v1202_v17 = vrot.slane %v1179_v63, 4 }
 0x39d   :  { %v1211_v30 = vadd.f32 %v1203_v1, %v5469_v51  ;;  %v1210_v53 = vadd.f32 %v1202_v17, %v5472_v19 }
 0x39f   :  { %v4196_v44 = vmul.f32 -1.442695, %v1211_v30 }
 0x3a0   :  { %v4750_v18 = vpop.eup %4749 }
 0x3a1   :  { %v4752_v46 = vpop.eup %4751  ;;  %v1215_v37 = vadd.f32 1.0, %v4750_v18  ;;  %4753 = vpow2.f32 %v4196_v44  ;;  %v1271_v18 = vrot.slane %v5595_v9, 7 }
 0x3a2   :  { %v1234_v24 = vadd.f32 1.0, %v4752_v46  ;;  %v1181_v33 = vpop.f32.mrf.mxu2  ;;  %v1194_v23 = vpop.f32.mrf.mxu3 }
 0x3a3   :  { %4755 = vrcp.f32 %v1215_v37  ;;  %v1227_v6 = vand.u32 2147483648, %v1215_v37  ;;  %v1225_v21 = vand.u32 2147483647, %v1215_v37  ;;  %vm1221_vm2 = vweird.f32 %v1215_v37 }
 0x3a4   :  { %4757 = vrcp.f32 %v1234_v24  ;;  %v1246_v7 = vand.u32 2147483648, %v1234_v24  ;;  %v1244_v63 = vand.u32 2147483647, %v1234_v24  ;;  %vm1240_vm3 = vweird.f32 %v1234_v24 }
 0x3a5   :  { %v1228_v62 = vor.u32 1.1754944e-38, %v1227_v6  ;;  %vm1226_vm6 = vcmp.eq.f32.partialorder %v1225_v21, 8.507059e+37 }
 0x3a6   :  { %v1247_v46 = vor.u32 1.1754944e-38, %v1246_v7  ;;  %vm1245_vm7 = vcmp.eq.f32.partialorder %v1244_v63, 8.507059e+37 }
 0x3a7   :  { %v4754_v50 = vpop.eup %4753 }
 0x3a8   :  { %v1254_v36 = vadd.f32 1.0, %v4754_v50 }
 0x3a9   :  { %v4756_v31 = vpop.eup %4755 }
 0x3aa   :  { %v4758_v49 = vpop.eup %4757  ;;  %v1217_v29 = vmul.f32 %v4756_v31, %v1215_v37  ;;  %4759 = vrcp.f32 %v1254_v36  ;;  %vm1222_vm0 = vweird.f32 %v4756_v31  ;;  %v1266_v9 = vand.u32 2147483648, %v1254_v36 }
 0x3ab   :  { %v1236_v61 = vmul.f32 %v4758_v49, %v1234_v24  ;;  %4761 = vtanh.f32 %v1210_v53  ;;  %vm1241_vm1 = vweird.f32 %v4758_v49  ;;  %vm1223_vm4 = vmor %vm1221_vm2, %vm1222_vm0  ;;  %vm1260_vm9 = vweird.f32 %v1254_v36 }
 0x3ac   :  { %v1218_v5 = vsub.f32 1.0, %v1217_v29  ;;  %vm1242_vm5 = vmor %vm1240_vm3, %vm1241_vm1  ;;  %v1264_v6 = vand.u32 2147483647, %v1254_v36  ;;  %v1267_v7 = vor.u32 1.1754944e-38, %v1266_v9 }
 0x3ad   :  { %v1237_v45 = vsub.f32 1.0, %v1236_v61 }
 0x3ae   :  { %v1219_v52 = vmul.f32 %v4756_v31, %v1218_v5  ;;  %vm1265_vm11 = vcmp.eq.f32.partialorder %v1264_v6, 8.507059e+37 }
 0x3af   :  { %v1238_v22 = vmul.f32 %v4758_v49, %v1237_v45 }
 0x3b0   :  { %v4760_v1 = vpop.eup %4759  ;;  %v1220_v25 = vadd.f32 %v4756_v31, %v1219_v52 }
 0x3b1   :  { %v1239_v30 = vadd.f32 %v4758_v49, %v1238_v22  ;;  %v1256_v44 = vmul.f32 %v4760_v1, %v1254_v36  ;;  %v4762_v23 = vpop.eup %4761  ;;  %vm1261_vm8 = vweird.f32 %v4760_v1 }
 0x3b2   :  { %v1224_v33 = vsel %vm1223_vm4, %v4756_v31, %v1220_v25  ;;  %vm1262_vm10 = vmor %vm1260_vm9, %vm1261_vm8 }
 0x3b3   :  { %v1229_v17 = vsel %vm1226_vm6, %v1228_v62, %v1224_v33  ;;  %v1243_v50 = vsel %vm1242_vm5, %v4758_v49, %v1239_v30  ;;  %v1257_v53 = vsub.f32 1.0, %v1256_v44 }
 0x3b4   :  { %v1248_v29 = vsel %vm1245_vm7, %v1247_v46, %v1243_v50  ;;  %v1274_v61 = vmul.f32 %v4762_v23, %v1229_v17 }
 0x3b5   :  { %v1273_v5 = vmul.f32 %v1271_v18, %v1248_v29  ;;  %v1258_v37 = vmul.f32 %v4760_v1, %v1257_v53 }
 0x3b7   :  { %v5635_v24 = vadd.f32 %v1274_v61, %v1273_v5  ;;  %v1259_v45 = vadd.f32 %v4760_v1, %v1258_v37 }
 0x3b9   :  { %4763 = vtanh.f32 %v5635_v24  ;;  %v1263_v31 = vsel %vm1262_vm10, %v4760_v1, %v1259_v45  ;;  %v1409_v17 = vrot.slane %v5635_v24, 7 }
 0x3ba   :  { %v1268_v52 = vsel %vm1265_vm11, %v1267_v7, %v1263_v31 }
 0x3bf   :  { %v4764_v49 = vpop.eup %4763 }
 0x3c0   :  { %v1277_v21 = vmul.f32 %v4764_v49, %v1268_v52 }
 0x3c2   :  { %v1278_v22 = vpack.c.bf16 %v1277_v21, %v1277_v21 }
 0x3c4   :  { %v1280_v63 = vrot.slane %v1278_v22, 2 }
 0x3c6   :  { %1290 = vmatmul.bf16.vlgmr.msra.gmra.mxu0 %v1280_v63  ;;  %1303 = vmatmul.bf16.vlgmr.msra.gmra.mxu1 %v1280_v63 }
 0x3c7   :  { %1316 = vmatmul.bf16.vlgmr.msra.gmra.mxu2 %v1280_v63  ;;  %1329 = vmatmul.bf16.vlgmr.msra.gmra.mxu3 %v1280_v63 }
 0x3c8   :  { %1560 = vmatpush.bf16.msra.mxu0 %v5303_v41  ;;  %1573 = vmatpush.bf16.msra.mxu1 %v5305_v42 }
 0x3c9   :  { %1586 = vmatpush.bf16.msra.mxu2 %v5309_v47  ;;  %1599 = vmatpush.bf16.msra.mxu3 %v5307_v43 }
 0x3cc   :  { %1561 = vmatpush.bf16.msra.mxu0 %v5312_v54  ;;  %1574 = vmatpush.bf16.msra.mxu1 %v5316_v55 }
 0x3cd   :  { %1587 = vmatpush.bf16.msra.mxu2 %v5321_v60  ;;  %1600 = vmatpush.bf16.msra.mxu3 %v5318_v56 }
 0x3d0   :  { %1562 = vmatpush.bf16.msra.mxu0 %v5324_v2  ;;  %1575 = vmatpush.bf16.msra.mxu1 %v5328_v3 }
 0x3d1   :  { %1588 = vmatpush.bf16.msra.mxu2 %v5333_v8  ;;  %1601 = vmatpush.bf16.msra.mxu3 %v5330_v4 }
 0x3d4   :  { %1563 = vmatpush.bf16.msra.mxu0 %v5336_v14  ;;  %1576 = vmatpush.bf16.msra.mxu1 %v5340_v15 }
 0x3d5   :  { %1589 = vmatpush.bf16.msra.mxu2 %v5345_v20  ;;  %1602 = vmatpush.bf16.msra.mxu3 %v5342_v16 }
 0x3d8   :  { %1564 = vmatpush.bf16.msra.mxu0 %v5348_v26  ;;  %1577 = vmatpush.bf16.msra.mxu1 %v5352_v27 }
 0x3d9   :  { %1590 = vmatpush.bf16.msra.mxu2 %v5357_v32  ;;  %1603 = vmatpush.bf16.msra.mxu3 %v5354_v28 }
 0x3dc   :  { %1565 = vmatpush.bf16.msra.mxu0 %v5360_v38  ;;  %1578 = vmatpush.bf16.msra.mxu1 %v5364_v39 }
 0x3dd   :  { %1591 = vmatpush.bf16.msra.mxu2 %v5369_v48  ;;  %1604 = vmatpush.bf16.msra.mxu3 %v5366_v40 }
 0x3e0   :  { %1566 = vmatpush.bf16.msra.mxu0 %v5372_v57  ;;  %1579 = vmatpush.bf16.msra.mxu1 %v5376_v58 }
 0x3e1   :  { %1592 = vmatpush.bf16.msra.mxu2 %v5381_v0  ;;  %1605 = vmatpush.bf16.msra.mxu3 %v5378_v59 }
 0x3e4   :  { %1567 = vmatpush.bf16.msra.mxu0 %v5384_v10  ;;  %1580 = vmatpush.bf16.msra.mxu1 %v5388_v11 }
 0x3e5   :  { %1593 = vmatpush.bf16.msra.mxu2 %v5393_v13  ;;  %1606 = vmatpush.bf16.msra.mxu3 %v5390_v12 }
 0x443   :  { %v1291_v41 = vpop.f32.mrf.mxu0  ;;  %v1304_v42 = vpop.f32.mrf.mxu1 }
 0x444   :  { %v1338_v43 = vrot.slane %v1291_v41, 3  ;;  %v1339_v47 = vrot.slane %v1304_v42, 3 }
 0x446   :  { %v1346_v54 = vadd.f32 %v1338_v43, %v5463_v34  ;;  %v1347_v55 = vadd.f32 %v1339_v47, %v5465_v35 }
 0x448   :  { %v4197_v56 = vmul.f32 -1.442695, %v1346_v54  ;;  %v4198_v60 = vmul.f32 -1.442695, %v1347_v55 }
 0x44a   :  { %4765 = vpow2.f32 %v4197_v56  ;;  %v1317_v2 = vpop.f32.mrf.mxu2  ;;  %v1330_v3 = vpop.f32.mrf.mxu3 }
 0x44b   :  { %4767 = vpow2.f32 %v4198_v60  ;;  %v1341_v4 = vrot.slane %v1330_v3, 3  ;;  %v1293_v8 = vpop.f32.mrf.mxu0  ;;  %v1306_v14 = vpop.f32.mrf.mxu1  ;;  %v1340_v39 = vrot.slane %v1317_v2, 3 }
 0x44d   :  { %v1349_v15 = vadd.f32 %v1341_v4, %v5469_v51  ;;  %v1348_v58 = vadd.f32 %v1340_v39, %v5472_v19 }
 0x44f   :  { %v4199_v16 = vmul.f32 -1.442695, %v1349_v15 }
 0x450   :  { %v4766_v20 = vpop.eup %4765 }
 0x451   :  { %v4768_v26 = vpop.eup %4767  ;;  %v1353_v27 = vadd.f32 1.0, %v4766_v20  ;;  %4769 = vpow2.f32 %v4199_v16 }
 0x452   :  { %v1372_v28 = vadd.f32 1.0, %v4768_v26  ;;  %v1319_v32 = vpop.f32.mrf.mxu2  ;;  %v1332_v38 = vpop.f32.mrf.mxu3 }
 0x453   :  { %4771 = vrcp.f32 %v1353_v27  ;;  %v1365_v13 = vand.u32 2147483648, %v1353_v27  ;;  %v1363_v25 = vand.u32 2147483647, %v1353_v27  ;;  %vm1359_vm14 = vweird.f32 %v1353_v27 }
 0x454   :  { %4773 = vrcp.f32 %v1372_v28  ;;  %v1384_v36 = vand.u32 2147483648, %v1372_v28  ;;  %v1382_v30 = vand.u32 2147483647, %v1372_v28  ;;  %vm1378_vm15 = vweird.f32 %v1372_v28 }
 0x455   :  { %v1366_v46 = vor.u32 1.1754944e-38, %v1365_v13  ;;  %vm1364_vm2 = vcmp.eq.f32.partialorder %v1363_v25, 8.507059e+37 }
 0x456   :  { %v1385_v50 = vor.u32 1.1754944e-38, %v1384_v36  ;;  %vm1383_vm3 = vcmp.eq.f32.partialorder %v1382_v30, 8.507059e+37 }
 0x457   :  { %v4770_v40 = vpop.eup %4769 }
 0x458   :  { %v1392_v48 = vadd.f32 1.0, %v4770_v40 }
 0x459   :  { %v4772_v57 = vpop.eup %4771 }
 0x45a   :  { %v4774_v59 = vpop.eup %4773  ;;  %v1355_v0 = vmul.f32 %v4772_v57, %v1353_v27  ;;  %4775 = vrcp.f32 %v1392_v48  ;;  %vm1360_vm12 = vweird.f32 %v4772_v57  ;;  %v1404_v24 = vand.u32 2147483648, %v1392_v48 }
 0x45b   :  { %v1374_v10 = vmul.f32 %v4774_v59, %v1372_v28  ;;  %4777 = vtanh.f32 %v1348_v58  ;;  %vm1379_vm13 = vweird.f32 %v4774_v59  ;;  %vm1361_vm0 = vmor %vm1359_vm14, %vm1360_vm12  ;;  %vm1398_vm5 = vweird.f32 %v1392_v48 }
 0x45c   :  { %v1356_v11 = vsub.f32 1.0, %v1355_v0  ;;  %vm1380_vm1 = vmor %vm1378_vm15, %vm1379_vm13  ;;  %v1402_v52 = vand.u32 2147483647, %v1392_v48  ;;  %v1405_v22 = vor.u32 1.1754944e-38, %v1404_v24 }
 0x45d   :  { %v1375_v12 = vsub.f32 1.0, %v1374_v10 }
 0x45e   :  { %v1357_v1 = vmul.f32 %v4772_v57, %v1356_v11  ;;  %vm1403_vm7 = vcmp.eq.f32.partialorder %v1402_v52, 8.507059e+37 }
 0x45f   :  { %v1376_v62 = vmul.f32 %v4774_v59, %v1375_v12 }
 0x460   :  { %v4776_v44 = vpop.eup %4775  ;;  %v1358_v18 = vadd.f32 %v4772_v57, %v1357_v1 }
 0x461   :  { %v1377_v33 = vadd.f32 %v4774_v59, %v1376_v62  ;;  %v1394_v23 = vmul.f32 %v4776_v44, %v1392_v48  ;;  %v4778_v29 = vpop.eup %4777  ;;  %vm1399_vm4 = vweird.f32 %v4776_v44 }
 0x462   :  { %v1362_v53 = vsel %vm1361_vm0, %v4772_v57, %v1358_v18  ;;  %vm1400_vm6 = vmor %vm1398_vm5, %vm1399_vm4 }
 0x463   :  { %v1367_v61 = vsel %vm1364_vm2, %v1366_v46, %v1362_v53  ;;  %v1381_v5 = vsel %vm1380_vm1, %v4774_v59, %v1377_v33  ;;  %v1395_v37 = vsub.f32 1.0, %v1394_v23 }
 0x464   :  { %v1386_v45 = vsel %vm1383_vm3, %v1385_v50, %v1381_v5  ;;  %v1412_v9 = vmul.f32 %v4778_v29, %v1367_v61 }
 0x465   :  { %v1411_v6 = vmul.f32 %v1409_v17, %v1386_v45  ;;  %v1396_v31 = vmul.f32 %v4776_v44, %v1395_v37 }
 0x467   :  { %v5675_v7 = vadd.f32 %v1412_v9, %v1411_v6  ;;  %v1397_v49 = vadd.f32 %v4776_v44, %v1396_v31 }
 0x469   :  { %4779 = vtanh.f32 %v5675_v7  ;;  %v1401_v21 = vsel %vm1400_vm6, %v4776_v44, %v1397_v49  ;;  %v1549_v5 = vrot.slane %v5675_v7, 7 }
 0x46a   :  { %v1406_v41 = vsel %vm1403_vm7, %v1405_v22, %v1401_v21 }
 0x46f   :  { %v4780_v63 = vpop.eup %4779 }
 0x470   :  { %v1415_v42 = vmul.f32 %v4780_v63, %v1406_v41 }
 0x472   :  { %v1416_v43 = vpack.c.bf16 %v1415_v42, %v1415_v42 }
 0x474   :  { %v1418_v47 = vshrl.u32 %v1416_v43, 16 }
 0x476   :  { %v1420_v54 = vrot.slane %v1418_v47, 2 }
 0x478   :  { %1430 = vmatmul.bf16.vlgmr.msrb.gmra.mxu0 %v1420_v54  ;;  %1443 = vmatmul.bf16.vlgmr.msrb.gmra.mxu1 %v1420_v54 }
 0x479   :  { %1456 = vmatmul.bf16.vlgmr.msrb.gmra.mxu2 %v1420_v54  ;;  %1469 = vmatmul.bf16.vlgmr.msrb.gmra.mxu3 %v1420_v54 }
 0x4f5   :  { %v1431_v55 = vpop.f32.mrf.mxu0  ;;  %v1444_v56 = vpop.f32.mrf.mxu1 }
 0x4f6   :  { %v1478_v60 = vrot.slane %v1431_v55, 2  ;;  %v1479_v2 = vrot.slane %v1444_v56, 2 }
 0x4f8   :  { %v1486_v3 = vadd.f32 %v1478_v60, %v5463_v34  ;;  %v1487_v4 = vadd.f32 %v1479_v2, %v5465_v35 }
 0x4fa   :  { %v4200_v8 = vmul.f32 -1.442695, %v1486_v3  ;;  %v4201_v14 = vmul.f32 -1.442695, %v1487_v4 }
 0x4fc   :  { %4781 = vpow2.f32 %v4200_v8  ;;  %v1457_v15 = vpop.f32.mrf.mxu2  ;;  %v1470_v16 = vpop.f32.mrf.mxu3 }
 0x4fd   :  { %4783 = vpow2.f32 %v4201_v14  ;;  %v1481_v20 = vrot.slane %v1470_v16, 2  ;;  %v1433_v26 = vpop.f32.mrf.mxu0  ;;  %v1446_v27 = vpop.f32.mrf.mxu1  ;;  %v1480_v59 = vrot.slane %v1457_v15, 2 }
 0x4ff   :  { %v1489_v28 = vadd.f32 %v1481_v20, %v5469_v51  ;;  %v1488_v12 = vadd.f32 %v1480_v59, %v5472_v19 }
 0x501   :  { %v4202_v32 = vmul.f32 -1.442695, %v1489_v28 }
 0x502   :  { %v4782_v38 = vpop.eup %4781 }
 0x503   :  { %v4784_v39 = vpop.eup %4783  ;;  %v1493_v40 = vadd.f32 1.0, %v4782_v38  ;;  %4785 = vpow2.f32 %v4202_v32 }
 0x504   :  { %v1512_v48 = vadd.f32 1.0, %v4784_v39  ;;  %v1459_v57 = vpop.f32.mrf.mxu2  ;;  %v1472_v58 = vpop.f32.mrf.mxu3 }
 0x505   :  { %4787 = vrcp.f32 %v1493_v40  ;;  %v1505_v30 = vand.u32 2147483648, %v1493_v40  ;;  %v1503_v46 = vand.u32 2147483647, %v1493_v40  ;;  %vm1499_vm10 = vweird.f32 %v1493_v40 }
 0x506   :  { %4789 = vrcp.f32 %v1512_v48  ;;  %v1524_v44 = vand.u32 2147483648, %v1512_v48  ;;  %v1522_v23 = vand.u32 2147483647, %v1512_v48  ;;  %vm1518_vm11 = vweird.f32 %v1512_v48 }
 0x507   :  { %v1506_v53 = vor.u32 1.1754944e-38, %v1505_v30  ;;  %vm1504_vm14 = vcmp.eq.f32.partialorder %v1503_v46, 8.507059e+37 }
 0x508   :  { %v1525_v37 = vor.u32 1.1754944e-38, %v1524_v44  ;;  %vm1523_vm15 = vcmp.eq.f32.partialorder %v1522_v23, 8.507059e+37 }
 0x509   :  { %v4786_v0 = vpop.eup %4785 }
 0x50a   :  { %v1532_v10 = vadd.f32 1.0, %v4786_v0 }
 0x50b   :  { %v4788_v11 = vpop.eup %4787 }
 0x50c   :  { %v4790_v13 = vpop.eup %4789  ;;  %v1495_v36 = vmul.f32 %v4788_v11, %v1493_v40  ;;  %4791 = vrcp.f32 %v1532_v10  ;;  %vm1500_vm8 = vweird.f32 %v4788_v11  ;;  %v1544_v7 = vand.u32 2147483648, %v1532_v10 }
 0x50d   :  { %v1514_v1 = vmul.f32 %v4790_v13, %v1512_v48  ;;  %4793 = vtanh.f32 %v1488_v12  ;;  %vm1519_vm9 = vweird.f32 %v4790_v13  ;;  %vm1501_vm12 = vmor %vm1499_vm10, %vm1500_vm8  ;;  %vm1538_vm1 = vweird.f32 %v1532_v10 }
 0x50e   :  { %v1496_v25 = vsub.f32 1.0, %v1495_v36  ;;  %vm1520_vm13 = vmor %vm1518_vm11, %vm1519_vm9  ;;  %v1542_v42 = vand.u32 2147483647, %v1532_v10  ;;  %v1545_v47 = vor.u32 1.1754944e-38, %v1544_v7 }
 0x50f   :  { %v1515_v62 = vsub.f32 1.0, %v1514_v1 }
 0x510   :  { %v1497_v18 = vmul.f32 %v4788_v11, %v1496_v25  ;;  %vm1543_vm3 = vcmp.eq.f32.partialorder %v1542_v42, 8.507059e+37 }
 0x511   :  { %v1516_v33 = vmul.f32 %v4790_v13, %v1515_v62 }
 0x512   :  { %v4792_v17 = vpop.eup %4791  ;;  %v1498_v50 = vadd.f32 %v4788_v11, %v1497_v18 }
 0x513   :  { %v1517_v29 = vadd.f32 %v4790_v13, %v1516_v33  ;;  %v1534_v61 = vmul.f32 %v4792_v17, %v1532_v10  ;;  %v4794_v9 = vpop.eup %4793  ;;  %vm1539_vm0 = vweird.f32 %v4792_v17 }
 0x514   :  { %v1502_v45 = vsel %vm1501_vm12, %v4788_v11, %v1498_v50  ;;  %vm1540_vm2 = vmor %vm1538_vm1, %vm1539_vm0 }
 0x515   :  { %v1507_v6 = vsel %vm1504_vm14, %v1506_v53, %v1502_v45  ;;  %v1521_v31 = vsel %vm1520_vm13, %v4790_v13, %v1517_v29  ;;  %v1535_v49 = vsub.f32 1.0, %v1534_v61 }
 0x516   :  { %v1526_v24 = vsel %vm1523_vm15, %v1525_v37, %v1521_v31  ;;  %v1552_v52 = vmul.f32 %v4794_v9, %v1507_v6 }
 0x517   :  { %v1551_v21 = vmul.f32 %v1549_v5, %v1526_v24  ;;  %v1536_v22 = vmul.f32 %v4792_v17, %v1535_v49 }
 0x519   :  { %v5683_v63 = vadd.f32 %v1552_v52, %v1551_v21  ;;  %v1537_v41 = vadd.f32 %v4792_v17, %v1536_v22 }
 0x51b   :  { %4795 = vtanh.f32 %v5683_v63  ;;  %v1541_v43 = vsel %vm1540_vm2, %v4792_v17, %v1537_v41  ;;  %v1687_v5 = vrot.slane %v5683_v63, 7 }
 0x51c   :  { %v1546_v55 = vsel %vm1543_vm3, %v1545_v47, %v1541_v43 }
 0x521   :  { %v4796_v54 = vpop.eup %4795 }
 0x522   :  { %v1555_v56 = vmul.f32 %v4796_v54, %v1546_v55 }
 0x524   :  { %v1556_v60 = vpack.c.bf16 %v1555_v56, %v1555_v56 }
 0x526   :  { %v1558_v2 = vrot.slane %v1556_v60, 3 }
 0x528   :  { %1568 = vmatmul.bf16.vlgmr.msra.gmra.mxu0 %v1558_v2  ;;  %1581 = vmatmul.bf16.vlgmr.msra.gmra.mxu1 %v1558_v2 }
 0x529   :  { %1594 = vmatmul.bf16.vlgmr.msra.gmra.mxu2 %v1558_v2  ;;  %1607 = vmatmul.bf16.vlgmr.msra.gmra.mxu3 %v1558_v2 }
 0x5a5   :  { %v1569_v3 = vpop.f32.mrf.mxu0  ;;  %v1582_v4 = vpop.f32.mrf.mxu1 }
 0x5a6   :  { %v1616_v8 = vrot.slane %v1569_v3, 1  ;;  %v1617_v14 = vrot.slane %v1582_v4, 1 }
 0x5a8   :  { %v1624_v15 = vadd.f32 %v1616_v8, %v5463_v34  ;;  %v1625_v16 = vadd.f32 %v1617_v14, %v5465_v35 }
 0x5aa   :  { %v4203_v20 = vmul.f32 -1.442695, %v1624_v15  ;;  %v4204_v26 = vmul.f32 -1.442695, %v1625_v16 }
 0x5ac   :  { %4797 = vpow2.f32 %v4203_v20  ;;  %v1595_v27 = vpop.f32.mrf.mxu2  ;;  %v1608_v28 = vpop.f32.mrf.mxu3 }
 0x5ad   :  { %4799 = vpow2.f32 %v4204_v26  ;;  %v1619_v32 = vrot.slane %v1608_v28, 1  ;;  %v1571_v38 = vpop.f32.mrf.mxu0  ;;  %v1584_v39 = vpop.f32.mrf.mxu1  ;;  %v1618_v35 = vrot.slane %v1595_v27, 1 }
 0x5af   :  { %v1627_v40 = vadd.f32 %v1619_v32, %v5469_v51  ;;  %v1626_v36 = vadd.f32 %v1618_v35, %v5472_v19 }
 0x5b1   :  { %v4205_v48 = vmul.f32 -1.442695, %v1627_v40 }
 0x5b2   :  { %v4798_v57 = vpop.eup %4797 }
 0x5b3   :  { %v4800_v58 = vpop.eup %4799  ;;  %v1631_v59 = vadd.f32 1.0, %v4798_v57  ;;  %4801 = vpow2.f32 %v4205_v48 }
 0x5b4   :  { %v1650_v0 = vadd.f32 1.0, %v4800_v58  ;;  %v1597_v34 = vpop.f32.mrf.mxu2  ;;  %v1610_v10 = vpop.f32.mrf.mxu3 }
 0x5b5   :  { %4803 = vrcp.f32 %v1631_v59  ;;  %v1643_v44 = vand.u32 2147483648, %v1631_v59  ;;  %v1641_v33 = vand.u32 2147483647, %v1631_v59  ;;  %vm1637_vm6 = vweird.f32 %v1631_v59 }
 0x5b6   :  { %4805 = vrcp.f32 %v1650_v0  ;;  %v1662_v18 = vand.u32 2147483648, %v1650_v0  ;;  %v1660_v17 = vand.u32 2147483647, %v1650_v0  ;;  %vm1656_vm7 = vweird.f32 %v1650_v0 }
 0x5b7   :  { %v1644_v19 = vor.u32 1.1754944e-38, %v1643_v44  ;;  %vm1642_vm10 = vcmp.eq.f32.partialorder %v1641_v33, 8.507059e+37 }
 0x5b8   :  { %v1663_v37 = vor.u32 1.1754944e-38, %v1662_v18  ;;  %vm1661_vm11 = vcmp.eq.f32.partialorder %v1660_v17, 8.507059e+37 }
 0x5b9   :  { %v4802_v11 = vpop.eup %4801 }
 0x5ba   :  { %v1670_v12 = vadd.f32 1.0, %v4802_v11 }
 0x5bb   :  { %v4804_v13 = vpop.eup %4803 }
 0x5bc   :  { %v4806_v1 = vpop.eup %4805  ;;  %v1633_v25 = vmul.f32 %v4804_v13, %v1631_v59  ;;  %4807 = vrcp.f32 %v1670_v12  ;;  %vm1638_vm4 = vweird.f32 %v4804_v13  ;;  %v1682_v63 = vand.u32 2147483648, %v1670_v12 }
 0x5bd   :  { %v1652_v51 = vmul.f32 %v4806_v1, %v1650_v0  ;;  %4809 = vtanh.f32 %v1626_v36  ;;  %vm1657_vm5 = vweird.f32 %v4806_v1  ;;  %vm1639_vm8 = vmor %vm1637_vm6, %vm1638_vm4  ;;  %vm1676_vm13 = vweird.f32 %v1670_v12 }
 0x5be   :  { %v1634_v62 = vsub.f32 1.0, %v1633_v25  ;;  %vm1658_vm9 = vmor %vm1656_vm7, %vm1657_vm5  ;;  %v1680_v42 = vand.u32 2147483647, %v1670_v12  ;;  %v1683_v47 = vor.u32 1.1754944e-38, %v1682_v63 }
 0x5bf   :  { %v1653_v30 = vsub.f32 1.0, %v1652_v51 }
 0x5c0   :  { %v1635_v46 = vmul.f32 %v4804_v13, %v1634_v62  ;;  %vm1681_vm15 = vcmp.eq.f32.partialorder %v1680_v42, 8.507059e+37 }
 0x5c1   :  { %v1654_v23 = vmul.f32 %v4806_v1, %v1653_v30 }
 0x5c2   :  { %v4808_v50 = vpop.eup %4807  ;;  %v1636_v53 = vadd.f32 %v4804_v13, %v1635_v46 }
 0x5c3   :  { %v1655_v29 = vadd.f32 %v4806_v1, %v1654_v23  ;;  %v1672_v61 = vmul.f32 %v4808_v50, %v1670_v12  ;;  %v4810_v9 = vpop.eup %4809  ;;  %vm1677_vm12 = vweird.f32 %v4808_v50 }
 0x5c4   :  { %v1640_v45 = vsel %vm1639_vm8, %v4804_v13, %v1636_v53  ;;  %vm1678_vm14 = vmor %vm1676_vm13, %vm1677_vm12 }
 0x5c5   :  { %v1645_v6 = vsel %vm1642_vm10, %v1644_v19, %v1640_v45  ;;  %v1659_v31 = vsel %vm1658_vm9, %v4806_v1, %v1655_v29  ;;  %v1673_v49 = vsub.f32 1.0, %v1672_v61 }
 0x5c6   :  { %v1664_v24 = vsel %vm1661_vm11, %v1663_v37, %v1659_v31  ;;  %v1690_v52 = vmul.f32 %v4810_v9, %v1645_v6 }
 0x5c7   :  { %v1689_v21 = vmul.f32 %v1687_v5, %v1664_v24  ;;  %v1674_v22 = vmul.f32 %v4808_v50, %v1673_v49 }
 0x5c9   :  { %v5703_v41 = vadd.f32 %v1690_v52, %v1689_v21  ;;  %v1675_v7 = vadd.f32 %v4808_v50, %v1674_v22 }
 0x5cb   :  { %6804 = vst [vmem:[#allocation35_spill] sm:$0xff] %v5703_v41  ;;  %4811 = vtanh.f32 %v5703_v41  ;;  %v1679_v43 = vsel %vm1678_vm14, %v4808_v50, %v1675_v7 }
 0x5cc   :  { %v1684_v55 = vsel %vm1681_vm15, %v1683_v47, %v1679_v43 }
 0x5d1   :  { %v4812_v54 = vpop.eup %4811 }
 0x5d2   :  { %v5706_v56 = vmul.f32 %v4812_v54, %v1684_v55 }
 0x5d3   :  { %5205 = dma.done.wait [#allocation6], 4096 }
 0x5d4   :  { %5206 = vsyncadd [#allocation6], 4294963200 }
 0x5d5   :  { %5207 = dma.done.wait [#allocation6 + $0x1], 4096 }
 0x5d6   :  { %5208 = vsyncadd [#allocation6 + $0x1], 4294963200 }
 0x5d7   :  { %5209 = dma.done.wait [#allocation6 + $0x2], 2048 }
 0x5d8   :  { %5210 = vsyncadd [#allocation6 + $0x2], 4294965248 }
 0x5d9   :  { %5211 = dma.done.wait [#allocation6 + $0x3], 1024 }
 0x5da   :  { %5212 = vsyncadd [#allocation6 + $0x3], 4294966272  ;;  %v4320_v60 = vld [vmem:[#allocation3 + $0xe0] sm:$0xf]  ;;  %v4648_v2 = vld [vmem:[#allocation3 + $0xec] sm:$0xf0] }
 0x5db   :  { %v4646_v3 = vld [vmem:[#allocation3 + $0xe4] sm:$0xf]  ;;  %v5708_v4 = vor.u32 %v4648_v2, %v4320_v60  ;;  %v4322_v8 = vld [vmem:[#allocation3 + $0xf0] sm:$0xf0]  ;;  %v4328_v14 = vld [vmem:[#allocation3 + $0xe8] sm:$0xf] }
 0x5dc   :  { %v4649_v15 = vld [vmem:[#allocation3 + $0xf4] sm:$0xf0]  ;;  %v5710_v16 = vor.u32 %v4646_v3, %v4322_v8  ;;  %v4647_v26 = vld [vmem:[#allocation3 + $0xec] sm:$0xf]  ;;  %v4330_v27 = vld [vmem:[#allocation3 + $0xf8] sm:$0xf0] }
 0x5dd   :  { %v5712_v20 = vor.u32 %v4649_v15, %v4328_v14  ;;  %v4304_v28 = vld [vmem:[#allocation3 + $0xc0] sm:$0xf]  ;;  %1942 = vmatpush.bf16.msrb.mxu0 %v5708_v4  ;;  %v5715_v32 = vor.u32 %v4647_v26, %v4330_v27  ;;  %v4644_v38 = vld [vmem:[#allocation3 + $0xcc] sm:$0xf0]  ;;  %v4642_v39 = vld [vmem:[#allocation3 + $0xc4] sm:$0xf] }
 0x5de   :  { %v4306_v40 = vld [vmem:[#allocation3 + $0xd0] sm:$0xf0]  ;;  %1955 = vmatpush.bf16.msrb.mxu1 %v5710_v16  ;;  %v5719_v48 = vor.u32 %v4644_v38, %v4304_v28  ;;  %v4312_v58 = vld [vmem:[#allocation3 + $0xc8] sm:$0xf]  ;;  %v4645_v59 = vld [vmem:[#allocation3 + $0xd4] sm:$0xf0] }
 0x5df   :  { %6805 = vst [vmem:[#allocation36_spill] sm:$0xff] %v5715_v32  ;;  %1968 = vmatpush.bf16.msrb.mxu2 %v5712_v20  ;;  %v5721_v57 = vor.u32 %v4642_v39, %v4306_v40  ;;  %v4643_v0 = vld [vmem:[#allocation3 + $0xcc] sm:$0xf]  ;;  %1981 = vmatpush.bf16.msrb.mxu3 %v5715_v32  ;;  %v5724_v34 = vor.u32 %v4645_v59, %v4312_v58  ;;  %v4314_v10 = vld [vmem:[#allocation3 + $0xd8] sm:$0xf0]  ;;  %vm2363_vm12 = vcmask 1040384  }
 0x5e0   :  { %v4288_v35 = vld [vmem:[#allocation3 + $0xa0] sm:$0xf]  ;;  %v4640_v11 = vld [vmem:[#allocation3 + $0xac] sm:$0xf0]  ;;  %v5726_v12 = vor.u32 %v4643_v0, %v4314_v10  ;;  %v4638_v13 = vld [vmem:[#allocation3 + $0xa4] sm:$0xf] }
 0x5e1   :  { %v4290_v36 = vld [vmem:[#allocation3 + $0xb0] sm:$0xf0]  ;;  %v4296_v1 = vld [vmem:[#allocation3 + $0xa8] sm:$0xf]  ;;  %1943 = vmatpush.bf16.msrb.mxu0 %v5719_v48  ;;  %v5729_v25 = vor.u32 %v4640_v11, %v4288_v35  ;;  %v4641_v51 = vld [vmem:[#allocation3 + $0xb4] sm:$0xf0] }
 0x5e2   :  { %6806 = vst [vmem:[#allocation37_spill] sm:$0xff] %v5726_v12  ;;  %v4639_v62 = vld [vmem:[#allocation3 + $0xac] sm:$0xf]  ;;  %v4298_v30 = vld [vmem:[#allocation3 + $0xb8] sm:$0xf0]  ;;  %1956 = vmatpush.bf16.msrb.mxu1 %v5721_v57  ;;  %v5733_v44 = vor.u32 %v4638_v13, %v4290_v36  ;;  %v5735_v18 = vor.u32 %v4641_v51, %v4296_v1  ;;  %s5227_s12 = smov [#allocation16]  }
 0x5e3   :  { %1969 = vmatpush.bf16.msrb.mxu2 %v5724_v34  ;;  %v4272_v46 = vld [vmem:[#allocation3 + $0x80] sm:$0xf]  ;;  %v4636_v33 = vld [vmem:[#allocation3 + $0x8c] sm:$0xf0]  ;;  %v4634_v23 = vld [vmem:[#allocation3 + $0x84] sm:$0xf]  ;;  %1982 = vmatpush.bf16.msrb.mxu3 %v5726_v12  ;;  %v5738_v17 = vor.u32 %v4639_v62, %v4298_v30  ;;  %v1744_v62 = vpack.c.bf16 %v5706_v56, %v5706_v56 }
 0x5e4   :  { %v4274_v50 = vld [vmem:[#allocation3 + $0x90] sm:$0xf0]  ;;  %v4280_v53 = vld [vmem:[#allocation3 + $0x88] sm:$0xf]  ;;  %v4637_v19 = vld [vmem:[#allocation3 + $0x94] sm:$0xf0]  ;;  %v5741_v5 = vor.u32 %v4636_v33, %v4272_v46 }
 0x5e5   :  { %6807 = vst [vmem:[#allocation38_spill] sm:$0xff] %v5738_v17  ;;  %v4635_v29 = vld [vmem:[#allocation3 + $0x8c] sm:$0xf]  ;;  %v4282_v61 = vld [vmem:[#allocation3 + $0x98] sm:$0xf0]  ;;  %1944 = vmatpush.bf16.msrb.mxu0 %v5729_v25  ;;  %v5745_v37 = vor.u32 %v4634_v23, %v4274_v50  ;;  %v5747_v45 = vor.u32 %v4637_v19, %v4280_v53  ;;  %s3878_s5 = sshll.u32 %s5227_s12, 4  ;;  %s3879_s5 = int_to_ptr.vmem [resolvable:$true] %s3878_s5 }
 0x5e6   :  { %1957 = vmatpush.bf16.msrb.mxu1 %v5733_v44  ;;  %v4256_v9 = vld [vmem:[#allocation3 + $0x60] sm:$0xf]  ;;  %v4632_v6 = vld [vmem:[#allocation3 + $0x6c] sm:$0xf0]  ;;  %v4630_v31 = vld [vmem:[#allocation3 + $0x64] sm:$0xf]  ;;  %v5750_v49 = vor.u32 %v4635_v29, %v4282_v61 }
 0x5e7   :  { %1970 = vmatpush.bf16.msrb.mxu2 %v5735_v18  ;;  %1983 = vmatpush.bf16.msrb.mxu3 %v5738_v17  ;;  %v4258_v24 = vld [vmem:[#allocation3 + $0x70] sm:$0xf0]  ;;  %v4264_v52 = vld [vmem:[#allocation3 + $0x68] sm:$0xf]  ;;  %v4633_v21 = vld [vmem:[#allocation3 + $0x74] sm:$0xf0]  ;;  %v5753_v63 = vor.u32 %v4632_v6, %v4256_v9 }
 0x5e8   :  { %6808 = vst [vmem:[#allocation39_spill] sm:$0xff] %v5750_v49  ;;  %v4631_v22 = vld [vmem:[#allocation3 + $0x6c] sm:$0xf]  ;;  %v4266_v7 = vld [vmem:[#allocation3 + $0x78] sm:$0xf0]  ;;  %v5757_v42 = vor.u32 %v4630_v31, %v4258_v24  ;;  %v5759_v43 = vor.u32 %v4633_v21, %v4264_v52  ;;  %v1778_v21 = vshrl.u32 %v1744_v62, 16 }
 0x5e9   :  { %1945 = vmatpush.bf16.msrb.mxu0 %v5741_v5  ;;  %v4240_v47 = vld [vmem:[#allocation3 + $0x40] sm:$0xf]  ;;  %v4628_v54 = vld [vmem:[#allocation3 + $0x4c] sm:$0xf0]  ;;  %v4626_v55 = vld [vmem:[#allocation3 + $0x44] sm:$0xf]  ;;  %v5762_v60 = vor.u32 %v4631_v22, %v4266_v7 }
 0x5ea   :  { %1958 = vmatpush.bf16.msrb.mxu1 %v5745_v37  ;;  %v4242_v2 = vld [vmem:[#allocation3 + $0x50] sm:$0xf0]  ;;  %v4248_v3 = vld [vmem:[#allocation3 + $0x48] sm:$0xf]  ;;  %v4629_v8 = vld [vmem:[#allocation3 + $0x54] sm:$0xf0]  ;;  %v5765_v26 = vor.u32 %v4628_v54, %v4240_v47 }
 0x5eb   :  { %1971 = vmatpush.bf16.msrb.mxu2 %v5747_v45  ;;  %1984 = vmatpush.bf16.msrb.mxu3 %v5750_v49  ;;  %6809 = vst [vmem:[#allocation40_spill] sm:$0xff] %v5762_v60  ;;  %v4627_v14 = vld [vmem:[#allocation3 + $0x4c] sm:$0xf]  ;;  %v4250_v15 = vld [vmem:[#allocation3 + $0x58] sm:$0xf0]  ;;  %v5769_v27 = vor.u32 %v4626_v55, %v4242_v2  ;;  %v5771_v28 = vor.u32 %v4629_v8, %v4248_v3  ;;  %s3880_s15 = sshll.u32 %s6702_s11, 4  ;;  %s3881_s15 = int_to_ptr.hbm [resolvable:$true] %s3880_s15 }
 0x5ec   :  { %v4224_v38 = vld [vmem:[#allocation3 + $0x20] sm:$0xf]  ;;  %v4624_v39 = vld [vmem:[#allocation3 + $0x2c] sm:$0xf0]  ;;  %v4622_v40 = vld [vmem:[#allocation3 + $0x24] sm:$0xf]  ;;  %v5774_v58 = vor.u32 %v4627_v14, %v4250_v15 }
 0x5ed   :  { %1946 = vmatpush.bf16.msrb.mxu0 %v5753_v63  ;;  %v4226_v59 = vld [vmem:[#allocation3 + $0x30] sm:$0xf0]  ;;  %v4232_v0 = vld [vmem:[#allocation3 + $0x28] sm:$0xf]  ;;  %v4625_v10 = vld [vmem:[#allocation3 + $0x34] sm:$0xf0]  ;;  %v5777_v13 = vor.u32 %v4624_v39, %v4224_v38 }
 0x5ee   :  { %1959 = vmatpush.bf16.msrb.mxu1 %v5757_v42  ;;  %6810 = vst [vmem:[#allocation41_spill] sm:$0xff] %v5774_v58  ;;  %v4623_v35 = vld [vmem:[#allocation3 + $0x2c] sm:$0xf]  ;;  %v4234_v11 = vld [vmem:[#allocation3 + $0x38] sm:$0xf0]  ;;  %v5783_v30 = vor.u32 %v4622_v40, %v4226_v59  ;;  %v5785_v46 = vor.u32 %v4625_v10, %v4232_v0  ;;  %v1780_v10 = vrot.slane %v1778_v21, 3 }
 0x5ef   :  { %1972 = vmatpush.bf16.msrb.mxu2 %v5759_v43  ;;  %1985 = vmatpush.bf16.msrb.mxu3 %v5762_v60  ;;  %v4208_v36 = vld [vmem:[#allocation3] sm:$0xf]  ;;  %v4620_v1 = vld [vmem:[#allocation3 + $0xc] sm:$0xf0]  ;;  %v4618_v51 = vld [vmem:[#allocation3 + $0x4] sm:$0xf]  ;;  %v5788_v53 = vor.u32 %v4623_v35, %v4234_v11 }
 0x5f0   :  { %6811 = vst [vmem:[#allocation42_spill] sm:$0xff] %v5785_v46  ;;  %v4210_v33 = vld [vmem:[#allocation3 + $0x10] sm:$0xf0]  ;;  %v4216_v23 = vld [vmem:[#allocation3 + $0x8] sm:$0xf]  ;;  %v5791_v31 = vor.u32 %v4620_v1, %v4208_v36 }
 0x5f1   :  { %1947 = vmatpush.bf16.msrb.mxu0 %v5765_v26  ;;  %v4621_v50 = vld [vmem:[#allocation3 + $0x14] sm:$0xf0]  ;;  %6812 = vst [vmem:[#allocation43_spill] sm:$0xff] %v5788_v53  ;;  %v4619_v19 = vld [vmem:[#allocation3 + $0xc] sm:$0xf]  ;;  %v5795_v22 = vor.u32 %v4618_v51, %v4210_v33 }
 0x5f2   :  { %1960 = vmatpush.bf16.msrb.mxu1 %v5769_v27  ;;  %v4218_v29 = vld [vmem:[#allocation3 + $0x18] sm:$0xf0]  ;;  %v4448_v61 = vld [vmem:[#allocation2 + $0xe0] sm:$0xf]  ;;  %v4616_v9 = vld [vmem:[#allocation2 + $0xec] sm:$0xf0]  ;;  %v5797_v7 = vor.u32 %v4621_v50, %v4216_v23 }
 0x5f3   :  { %1973 = vmatpush.bf16.msrb.mxu2 %v5771_v28  ;;  %1986 = vmatpush.bf16.msrb.mxu3 %v5774_v58  ;;  %v4614_v56 = vld [vmem:[#allocation2 + $0xe4] sm:$0xf]  ;;  %v4450_v6 = vld [vmem:[#allocation2 + $0xf0] sm:$0xf0]  ;;  %v4456_v24 = vld [vmem:[#allocation2 + $0xe8] sm:$0xf]  ;;  %v5800_v55 = vor.u32 %v4619_v19, %v4218_v29  ;;  %v5802_v2 = vor.u32 %v4616_v9, %v4448_v61 }
 0x5f4   :  { %v4617_v52 = vld [vmem:[#allocation2 + $0xf4] sm:$0xf0]  ;;  %6813 = vst [vmem:[#allocation44_spill] sm:$0xff] %v5797_v7  ;;  %v4615_v47 = vld [vmem:[#allocation2 + $0xec] sm:$0xf]  ;;  %v5804_v8 = vor.u32 %v4614_v56, %v4450_v6 }
 0x5f5   :  { %1948 = vmatpush.bf16.msrb.mxu0 %v5777_v13  ;;  %v4458_v54 = vld [vmem:[#allocation2 + $0xf8] sm:$0xf0]  ;;  %6814 = vst [vmem:[#allocation45_spill] sm:$0xff] %v5800_v55  ;;  %v4432_v3 = vld [vmem:[#allocation2 + $0xc0] sm:$0xf]  ;;  %v5806_v14 = vor.u32 %v4617_v52, %v4456_v24 }
 0x5f6   :  { %1961 = vmatpush.bf16.msrb.mxu1 %v5783_v30  ;;  %6815 = vst [vmem:[#allocation46_spill] sm:$0xff] %v5802_v2  ;;  %v4612_v15 = vld [vmem:[#allocation2 + $0xcc] sm:$0xf0]  ;;  %v4610_v38 = vld [vmem:[#allocation2 + $0xc4] sm:$0xf]  ;;  %v5809_v40 = vor.u32 %v4615_v47, %v4458_v54 }
 0x5f7   :  { %1974 = vmatpush.bf16.msrb.mxu2 %v5785_v46  ;;  %1987 = vmatpush.bf16.msrb.mxu3 %v5788_v53  ;;  %6816 = vst [vmem:[#allocation47_spill] sm:$0xff] %v5804_v8  ;;  %v4434_v39 = vld [vmem:[#allocation2 + $0xd0] sm:$0xf0]  ;;  %v4440_v59 = vld [vmem:[#allocation2 + $0xc8] sm:$0xf]  ;;  %v5815_v36 = vor.u32 %v4612_v15, %v4432_v3 }
 0x5f8   :  { %6817 = vst [vmem:[#allocation48_spill] sm:$0xff] %v5806_v14  ;;  %v4613_v0 = vld [vmem:[#allocation2 + $0xd4] sm:$0xf0]  ;;  %v4611_v35 = vld [vmem:[#allocation2 + $0xcc] sm:$0xf]  ;;  %v5819_v1 = vor.u32 %v4610_v38, %v4434_v39 }
 0x5f9   :  { %1949 = vmatpush.bf16.msrb.mxu0 %v5791_v31  ;;  %6818 = vst [vmem:[#allocation49_spill] sm:$0xff] %v5809_v40  ;;  %v4442_v11 = vld [vmem:[#allocation2 + $0xd8] sm:$0xf0]  ;;  %v5821_v51 = vor.u32 %v4613_v0, %v4440_v59  ;;  %v4416_v62 = vld [vmem:[#allocation2 + $0xa0] sm:$0xf] }
 0x5fa   :  { %1962 = vmatpush.bf16.msrb.mxu1 %v5795_v22  ;;  %6819 = vst [vmem:[#allocation50_spill] sm:$0xff] %v5815_v36  ;;  %v4608_v33 = vld [vmem:[#allocation2 + $0xac] sm:$0xf0]  ;;  %v4606_v23 = vld [vmem:[#allocation2 + $0xa4] sm:$0xf]  ;;  %v5824_v50 = vor.u32 %v4611_v35, %v4442_v11 }
 0x5fb   :  { %1975 = vmatpush.bf16.msrb.mxu2 %v5797_v7  ;;  %1988 = vmatpush.bf16.msrb.mxu3 %v5800_v55  ;;  %6820 = vst [vmem:[#allocation51_spill] sm:$0xff] %v5819_v1  ;;  %v4418_v19 = vld [vmem:[#allocation2 + $0xb0] sm:$0xf0]  ;;  %v4424_v29 = vld [vmem:[#allocation2 + $0xa8] sm:$0xf]  ;;  %v5827_v6 = vor.u32 %v4608_v33, %v4416_v62 }
 0x5fc   :  { %6821 = vst [vmem:[#allocation52_spill] sm:$0xff] %v5821_v51  ;;  %1950 = vmatmul.bf16.vlgmr.msrb.gmra.mxu0 %v1780_v10  ;;  %v4609_v61 = vld [vmem:[#allocation2 + $0xb4] sm:$0xf0]  ;;  %v4607_v9 = vld [vmem:[#allocation2 + $0xac] sm:$0xf]  ;;  %v5831_v24 = vor.u32 %v4606_v23, %v4418_v19 }
 0x5fd   :  { %2154 = vmatpush.bf16.msra.mxu0 %v5802_v2  ;;  %6822 = vst [vmem:[#allocation53_spill] sm:$0xff] %v5824_v50  ;;  %1963 = vmatmul.bf16.vlgmr.msrb.gmra.mxu1 %v1780_v10  ;;  %v4426_v56 = vld [vmem:[#allocation2 + $0xb8] sm:$0xf0]  ;;  %v5833_v52 = vor.u32 %v4609_v61, %v4424_v29  ;;  %v4400_v21 = vld [vmem:[#allocation2 + $0x80] sm:$0xf] }
 0x5fe   :  { %2167 = vmatpush.bf16.msra.mxu1 %v5804_v8  ;;  %1989 = vmatmul.bf16.vlgmr.msrb.gmra.mxu3 %v1780_v10  ;;  %6823 = vst [vmem:[#allocation54_spill] sm:$0xff] %v5827_v6  ;;  %v4604_v47 = vld [vmem:[#allocation2 + $0x8c] sm:$0xf0]  ;;  %v4602_v54 = vld [vmem:[#allocation2 + $0x84] sm:$0xf]  ;;  %v5836_v3 = vor.u32 %v4607_v9, %v4426_v56 }
 0x5ff   :  { %2180 = vmatpush.bf16.msra.mxu2 %v5806_v14  ;;  %2193 = vmatpush.bf16.msra.mxu3 %v5809_v40  ;;  %6824 = vst [vmem:[#allocation55_spill] sm:$0xff] %v5831_v24  ;;  %v4402_v15 = vld [vmem:[#allocation2 + $0x90] sm:$0xf0]  ;;  %v4408_v38 = vld [vmem:[#allocation2 + $0x88] sm:$0xf] }
 0x600   :  { %1976 = vmatmul.bf16.vlgmr.msrb.gmra.mxu2 %v1780_v10  ;;  %6825 = vst [vmem:[#allocation56_spill] sm:$0xff] %v5833_v52  ;;  %v4605_v39 = vld [vmem:[#allocation2 + $0x94] sm:$0xf0]  ;;  %v4603_v59 = vld [vmem:[#allocation2 + $0x8c] sm:$0xf]  ;;  %v5839_v10 = vor.u32 %v4604_v47, %v4400_v21  ;;  %v5843_v35 = vor.u32 %v4602_v54, %v4402_v15 }
 0x601   :  { %2155 = vmatpush.bf16.msra.mxu0 %v5815_v36  ;;  %6826 = vst [vmem:[#allocation57_spill] sm:$0xff] %v5836_v3  ;;  %v4410_v0 = vld [vmem:[#allocation2 + $0x98] sm:$0xf0]  ;;  %v5845_v11 = vor.u32 %v4605_v39, %v4408_v38  ;;  %v4384_v62 = vld [vmem:[#allocation2 + $0x60] sm:$0xf] }
 0x602   :  { %2168 = vmatpush.bf16.msra.mxu1 %v5819_v1  ;;  %6827 = vst [vmem:[#allocation58_spill] sm:$0xff] %v5839_v10  ;;  %v4600_v33 = vld [vmem:[#allocation2 + $0x6c] sm:$0xf0]  ;;  %v4598_v23 = vld [vmem:[#allocation2 + $0x64] sm:$0xf]  ;;  %v5848_v19 = vor.u32 %v4603_v59, %v4410_v0 }
 0x603   :  { %2181 = vmatpush.bf16.msra.mxu2 %v5821_v51  ;;  %2194 = vmatpush.bf16.msra.mxu3 %v5824_v50  ;;  %6828 = vst [vmem:[#allocation59_spill] sm:$0xff] %v5843_v35  ;;  %v4386_v29 = vld [vmem:[#allocation2 + $0x70] sm:$0xf0]  ;;  %v4392_v61 = vld [vmem:[#allocation2 + $0x68] sm:$0xf]  ;;  %v5851_v47 = vor.u32 %v4600_v33, %v4384_v62 }
 0x604   :  { %6829 = vst [vmem:[#allocation60_spill] sm:$0xff] %v5845_v11  ;;  %v4601_v9 = vld [vmem:[#allocation2 + $0x74] sm:$0xf0]  ;;  %v4599_v56 = vld [vmem:[#allocation2 + $0x6c] sm:$0xf]  ;;  %v5855_v54 = vor.u32 %v4598_v23, %v4386_v29 }
 0x605   :  { %2156 = vmatpush.bf16.msra.mxu0 %v5827_v6  ;;  %6830 = vst [vmem:[#allocation61_spill] sm:$0xff] %v5848_v19  ;;  %v4394_v21 = vld [vmem:[#allocation2 + $0x78] sm:$0xf0]  ;;  %v5857_v15 = vor.u32 %v4601_v9, %v4392_v61  ;;  %v4368_v38 = vld [vmem:[#allocation2 + $0x40] sm:$0xf] }
 0x606   :  { %2169 = vmatpush.bf16.msra.mxu1 %v5831_v24  ;;  %6831 = vst [vmem:[#allocation62_spill] sm:$0xff] %v5851_v47  ;;  %v4596_v39 = vld [vmem:[#allocation2 + $0x4c] sm:$0xf0]  ;;  %v4594_v59 = vld [vmem:[#allocation2 + $0x44] sm:$0xf]  ;;  %v5860_v0 = vor.u32 %v4599_v56, %v4394_v21 }
 0x607   :  { %2182 = vmatpush.bf16.msra.mxu2 %v5833_v52  ;;  %2195 = vmatpush.bf16.msra.mxu3 %v5836_v3  ;;  %6832 = vst [vmem:[#allocation63_spill] sm:$0xff] %v5855_v54  ;;  %v4370_v3 = vld [vmem:[#allocation2 + $0x50] sm:$0xf0]  ;;  %v4376_v50 = vld [vmem:[#allocation2 + $0x48] sm:$0xf]  ;;  %v5863_v55 = vor.u32 %v4596_v39, %v4368_v38 }
 0x608   :  { %6833 = vst [vmem:[#allocation64_spill] sm:$0xff] %v5857_v15  ;;  %v4597_v40 = vld [vmem:[#allocation2 + $0x54] sm:$0xf0]  ;;  %v4595_v62 = vld [vmem:[#allocation2 + $0x4c] sm:$0xf]  ;;  %v5867_v23 = vor.u32 %v4594_v59, %v4370_v3 }
 0x609   :  { %2157 = vmatpush.bf16.msra.mxu0 %v5839_v10  ;;  %6834 = vst [vmem:[#allocation65_spill] sm:$0xff] %v5860_v0  ;;  %v4378_v33 = vld [vmem:[#allocation2 + $0x58] sm:$0xf0]  ;;  %v5869_v29 = vor.u32 %v4597_v40, %v4376_v50  ;;  %v4352_v61 = vld [vmem:[#allocation2 + $0x20] sm:$0xf] }
 0x60a   :  { %2170 = vmatpush.bf16.msra.mxu1 %v5843_v35  ;;  %6835 = vst [vmem:[#allocation66_spill] sm:$0xff] %v5863_v55  ;;  %v4592_v9 = vld [vmem:[#allocation2 + $0x2c] sm:$0xf0]  ;;  %v4590_v56 = vld [vmem:[#allocation2 + $0x24] sm:$0xf]  ;;  %v5872_v21 = vor.u32 %v4595_v62, %v4378_v33 }
 0x60b   :  { %2183 = vmatpush.bf16.msra.mxu2 %v5845_v11  ;;  %2196 = vmatpush.bf16.msra.mxu3 %v5848_v19  ;;  %6836 = vst [vmem:[#allocation67_spill] sm:$0xff] %v5867_v23  ;;  %v4354_v19 = vld [vmem:[#allocation2 + $0x30] sm:$0xf0]  ;;  %v4360_v41 = vld [vmem:[#allocation2 + $0x28] sm:$0xf]  ;;  %v5875_v58 = vor.u32 %v4592_v9, %v4352_v61 }
 0x60c   :  { %6837 = vst [vmem:[#allocation68_spill] sm:$0xff] %v5869_v29  ;;  %v4593_v53 = vld [vmem:[#allocation2 + $0x34] sm:$0xf0]  ;;  %v4591_v38 = vld [vmem:[#allocation2 + $0x2c] sm:$0xf]  ;;  %v5879_v40 = vor.u32 %v4590_v56, %v4354_v19 }
 0x60d   :  { %2158 = vmatpush.bf16.msra.mxu0 %v5851_v47  ;;  %v4362_v39 = vld [vmem:[#allocation2 + $0x38] sm:$0xf0]  ;;  %6838 = vst [vmem:[#allocation69_spill] sm:$0xff] %v5875_v58  ;;  %v5881_v50 = vor.u32 %v4593_v53, %v4360_v41  ;;  %v4336_v3 = vld [vmem:[#allocation2] sm:$0xf] }
 0x60e   :  { %2171 = vmatpush.bf16.msra.mxu1 %v5855_v54  ;;  %6839 = vst [vmem:[#allocation70_spill] sm:$0xff] %v5879_v40  ;;  %v4588_v59 = vld [vmem:[#allocation2 + $0xc] sm:$0xf0]  ;;  %v4586_v62 = vld [vmem:[#allocation2 + $0x4] sm:$0xf]  ;;  %v5884_v33 = vor.u32 %v4591_v38, %v4362_v39 }
 0x60f   :  { %2184 = vmatpush.bf16.msra.mxu2 %v5857_v15  ;;  %2197 = vmatpush.bf16.msra.mxu3 %v5860_v0  ;;  %6840 = vst [vmem:[#allocation71_spill] sm:$0xff] %v5881_v50  ;;  %v4338_v0 = vld [vmem:[#allocation2 + $0x10] sm:$0xf0]  ;;  %v4344_v60 = vld [vmem:[#allocation2 + $0x8] sm:$0xf]  ;;  %v5887_v17 = vor.u32 %v4588_v59, %v4336_v3 }
 0x610   :  { %v4589_v49 = vld [vmem:[#allocation2 + $0x14] sm:$0xf0]  ;;  %v4587_v61 = vld [vmem:[#allocation2 + $0xc] sm:$0xf]  ;;  %v4346_v9 = vld [vmem:[#allocation2 + $0x18] sm:$0xf0]  ;;  %v5891_v41 = vor.u32 %v4586_v62, %v4338_v0 }
 0x611   :  { %2159 = vmatpush.bf16.msra.mxu0 %v5863_v55  ;;  %6841 = vst [vmem:[#allocation72_spill] sm:$0xff] %v5887_v17  ;;  %v1710_v19 = vld [vmem:[#allocation10] sm:$0x1]  ;;  %v5893_v53 = vor.u32 %v4589_v49, %v4344_v60  ;;  %v5896_v56 = vor.u32 %v4587_v61, %v4346_v9  ;;  %v5950_v0 = vld [vmem:[#allocation5 + $0x38] sm:$0xff]  ;;  %v5953_v39 = vld [vmem:[#allocation5 + $0x30] sm:$0xff] }
 0x612   :  { %2172 = vmatpush.bf16.msra.mxu1 %v5867_v23  ;;  %6842 = vst [vmem:[#allocation73_spill] sm:$0xff] %v5891_v41  ;;  %v1711_v38 = vpack.c.bf16 %v1710_v19, %v1710_v19  ;;  %v5956_v9 = vld [vmem:[#allocation5 + $0x28] sm:$0xff]  ;;  %v5959_v19 = vld [vmem:[#allocation5 + $0x20] sm:$0xff] }
 0x613   :  { %2185 = vmatpush.bf16.msra.mxu2 %v5869_v29  ;;  %2198 = vmatpush.bf16.msra.mxu3 %v5872_v21  ;;  %6843 = vst [vmem:[#allocation74_spill] sm:$0xff] %v5893_v53 }
 0x615   :  { %2160 = vmatpush.bf16.msra.mxu0 %v5875_v58 }
 0x616   :  { %2173 = vmatpush.bf16.msra.mxu1 %v5879_v40 }
 0x617   :  { %2186 = vmatpush.bf16.msra.mxu2 %v5881_v50  ;;  %2199 = vmatpush.bf16.msra.mxu3 %v5884_v33 }
 0x619   :  { %2161 = vmatpush.bf16.msra.mxu0 %v5887_v17 }
 0x61a   :  { %2174 = vmatpush.bf16.msra.mxu1 %v5891_v41 }
 0x61b   :  { %2187 = vmatpush.bf16.msra.mxu2 %v5893_v53  ;;  %2200 = vmatpush.bf16.msra.mxu3 %v5896_v56 }
 0x61c   :  { %2162 = vmatmul.bf16.vlgmr.msra.gmra.mxu0 %v1711_v38 }
 0x61d   :  { %2175 = vmatmul.bf16.vlgmr.msra.gmra.mxu1 %v1711_v38  ;;  %2350 = vmatpush.bf16.msrb.mxu0 %v5950_v0 }
 0x61e   :  { %2391 = vmatpush.bf16.msrb.mxu1 %v5708_v4  ;;  %2188 = vmatmul.bf16.vlgmr.msra.gmra.mxu2 %v1711_v38 }
 0x61f   :  { %2404 = vmatpush.bf16.msrb.mxu2 %v5710_v16  ;;  %2201 = vmatmul.bf16.vlgmr.msra.gmra.mxu3 %v1711_v38 }
 0x620   :  { %2417 = vmatpush.bf16.msrb.mxu3 %v5712_v20 }
 0x621   :  { %2351 = vmatpush.bf16.msrb.mxu0 %v5953_v39 }
 0x622   :  { %2392 = vmatpush.bf16.msrb.mxu1 %v5719_v48 }
 0x623   :  { %2405 = vmatpush.bf16.msrb.mxu2 %v5721_v57 }
 0x624   :  { %2418 = vmatpush.bf16.msrb.mxu3 %v5724_v34 }
 0x625   :  { %2352 = vmatpush.bf16.msrb.mxu0 %v5956_v9 }
 0x626   :  { %2393 = vmatpush.bf16.msrb.mxu1 %v5729_v25 }
 0x627   :  { %2406 = vmatpush.bf16.msrb.mxu2 %v5733_v44 }
 0x628   :  { %2419 = vmatpush.bf16.msrb.mxu3 %v5735_v18 }
 0x629   :  { %2353 = vmatpush.bf16.msrb.mxu0 %v5959_v19 }
 0x62a   :  { %2394 = vmatpush.bf16.msrb.mxu1 %v5741_v5 }
 0x62b   :  { %2407 = vmatpush.bf16.msrb.mxu2 %v5745_v37 }
 0x62c   :  { %2420 = vmatpush.bf16.msrb.mxu3 %v5747_v45 }
 0x62e   :  { %2395 = vmatpush.bf16.msrb.mxu1 %v5753_v63 }
 0x62f   :  { %2408 = vmatpush.bf16.msrb.mxu2 %v5757_v42 }
 0x630   :  { %2421 = vmatpush.bf16.msrb.mxu3 %v5759_v43 }
 0x632   :  { %2396 = vmatpush.bf16.msrb.mxu1 %v5765_v26 }
 0x633   :  { %2409 = vmatpush.bf16.msrb.mxu2 %v5769_v27 }
 0x634   :  { %2422 = vmatpush.bf16.msrb.mxu3 %v5771_v28 }
 0x636   :  { %2397 = vmatpush.bf16.msrb.mxu1 %v5777_v13 }
 0x637   :  { %2410 = vmatpush.bf16.msrb.mxu2 %v5783_v30 }
 0x638   :  { %2423 = vmatpush.bf16.msrb.mxu3 %v5785_v46 }
 0x63a   :  { %2398 = vmatpush.bf16.msrb.mxu1 %v5791_v31 }
 0x63b   :  { %2411 = vmatpush.bf16.msrb.mxu2 %v5795_v22 }
 0x63c   :  { %2424 = vmatpush.bf16.msrb.mxu3 %v5797_v7 }
 0x63e   :  { %2443 = vmatpush.bf16.msra.mxu1 %v5802_v2 }
 0x63f   :  { %2456 = vmatpush.bf16.msra.mxu2 %v5804_v8 }
 0x640   :  { %2469 = vmatpush.bf16.msra.mxu3 %v5806_v14 }
 0x642   :  { %2444 = vmatpush.bf16.msra.mxu1 %v5815_v36 }
 0x643   :  { %2457 = vmatpush.bf16.msra.mxu2 %v5819_v1 }
 0x644   :  { %2470 = vmatpush.bf16.msra.mxu3 %v5821_v51 }
 0x646   :  { %2445 = vmatpush.bf16.msra.mxu1 %v5827_v6 }
 0x647   :  { %2458 = vmatpush.bf16.msra.mxu2 %v5831_v24 }
 0x648   :  { %2471 = vmatpush.bf16.msra.mxu3 %v5833_v52 }
 0x64a   :  { %2446 = vmatpush.bf16.msra.mxu1 %v5839_v10 }
 0x64b   :  { %2459 = vmatpush.bf16.msra.mxu2 %v5843_v35 }
 0x64c   :  { %2472 = vmatpush.bf16.msra.mxu3 %v5845_v11 }
 0x64e   :  { %2447 = vmatpush.bf16.msra.mxu1 %v5851_v47 }
 0x64f   :  { %2460 = vmatpush.bf16.msra.mxu2 %v5855_v54 }
 0x650   :  { %2473 = vmatpush.bf16.msra.mxu3 %v5857_v15 }
 0x652   :  { %2448 = vmatpush.bf16.msra.mxu1 %v5863_v55 }
 0x653   :  { %2461 = vmatpush.bf16.msra.mxu2 %v5867_v23 }
 0x654   :  { %2474 = vmatpush.bf16.msra.mxu3 %v5869_v29  ;;  %v5978_v29 = vld [vmem:[#allocation5] sm:$0xff] }
 0x656   :  { %2449 = vmatpush.bf16.msra.mxu1 %v5875_v58 }
 0x657   :  { %2462 = vmatpush.bf16.msra.mxu2 %v5879_v40 }
 0x658   :  { %2475 = vmatpush.bf16.msra.mxu3 %v5881_v50 }
 0x65a   :  { %2450 = vmatpush.bf16.msra.mxu1 %v5887_v17  ;;  %v5965_v17 = vld [vmem:[#allocation5 + $0x10] sm:$0xff] }
 0x65b   :  { %2463 = vmatpush.bf16.msra.mxu2 %v5891_v41  ;;  %v5962_v41 = vld [vmem:[#allocation5 + $0x18] sm:$0xff] }
 0x65c   :  { %2476 = vmatpush.bf16.msra.mxu3 %v5893_v53  ;;  %2354 = vmatpush.bf16.msrb.mxu0 %v5962_v41 }
 0x660   :  { %2355 = vmatpush.bf16.msrb.mxu0 %v5965_v17 }
 0x679   :  { %v1951_v49 = vpop.f32.mrf.mxu0 }
 0x67a   :  { %v1964_v60 = vpop.f32.mrf.mxu1 }
 0x681   :  { %v1990_v3 = vpop.f32.mrf.mxu3  ;;  %v1953_v59 = vpop.f32.mrf.mxu0 }
 0x682   :  { %v1966_v61 = vpop.f32.mrf.mxu1  ;;  %v1706_v59 = vld [vmem:[%s6698_s7] sm:$0xf] }
 0x683   :  { %v1977_v62 = vpop.f32.mrf.mxu2  ;;  %v5971_v61 = vld [vmem:[#allocation5 + $0x8] sm:$0xff]  ;;  %v5973_v50 = vperm.slane %v1706_v59, 0  ;;  %v5984_v35 = vperm.slane %v1706_v59, 3  ;;  %v5990_v24 = vperm.slane %v1706_v59, 2 }
 0x684   :  { %2356 = vmatpush.bf16.msrb.mxu0 %v5971_v61 }
 0x685   :  { %6844 = vst [vmem:[#allocation75_spill] sm:$0xff] %v5973_v50 }
 0x686   :  { %6846 = vst [vmem:[#allocation77_spill] sm:$0xff] %v5984_v35 }
 0x687   :  { %6849 = vst [vmem:[#allocation78_spill] sm:$0xff] %v5990_v24 }
 0x688   :  { %2357 = vmatpush.bf16.msrb.mxu0 %v5978_v29 }
 0x689   :  { %v1992_v38 = vpop.f32.mrf.mxu3 }
 0x68a   :  { %v5976_v38 = vperm.slane %v1706_v59, 1 }
 0x68b   :  { %v1979_v53 = vpop.f32.mrf.mxu2 }
 0x68c   :  { %6845 = vst [vmem:[#allocation76_spill] sm:$0xff] %v5976_v38  ;;  %2430 = vmatpush.bf16.msra.mxu0 %v5715_v32 }
 0x690   :  { %2431 = vmatpush.bf16.msra.mxu0 %v5726_v12  ;;  %v6854_v12 = vld [vmem:[#allocation45_spill] sm:$0xff] }
 0x699   :  { %v2163_v53 = vpop.f32.mrf.mxu0 }
 0x69a   :  { %v2164_v40 = vadd.f32 %v2163_v53, %v1951_v49  ;;  %v2176_v58 = vpop.f32.mrf.mxu1 }
 0x69b   :  { %v2177_v23 = vadd.f32 %v2176_v58, %v1964_v60 }
 0x69c   :  { %v2215_v55 = vadd.f32 %v5973_v50, %v2164_v40  ;;  %v6847_v50 = vld [vmem:[#allocation38_spill] sm:$0xff] }
 0x69d   :  { %v2216_v15 = vadd.f32 %v5976_v38, %v2177_v23  ;;  %2432 = vmatpush.bf16.msra.mxu0 %v6847_v50  ;;  %v6852_v50 = vld [vmem:[#allocation43_spill] sm:$0xff] }
 0x69e   :  { %v4462_v54 = vmul.f32 -1.442695, %v2215_v55 }
 0x69f   :  { %v4463_v47 = vmul.f32 -1.442695, %v2216_v15 }
 0x6a0   :  { %4813 = vpow2.f32 %v4462_v54 }
 0x6a1   :  { %v2189_v11 = vpop.f32.mrf.mxu2  ;;  %4815 = vpow2.f32 %v4463_v47  ;;  %v2165_v53 = vpop.f32.mrf.mxu0  ;;  %v6848_v47 = vld [vmem:[#allocation39_spill] sm:$0xff] }
 0x6a2   :  { %v2202_v49 = vpop.f32.mrf.mxu3  ;;  %v2178_v60 = vpop.f32.mrf.mxu1  ;;  %2433 = vmatpush.bf16.msra.mxu0 %v6848_v47  ;;  %v2190_v53 = vadd.f32 %v2189_v11, %v1977_v62 }
 0x6a3   :  { %v2203_v58 = vadd.f32 %v2202_v49, %v1990_v3  ;;  %v6850_v3 = vld [vmem:[#allocation40_spill] sm:$0xff] }
 0x6a4   :  { %v2217_v60 = vadd.f32 %v5990_v24, %v2190_v53 }
 0x6a5   :  { %v2218_v40 = vadd.f32 %v5984_v35, %v2203_v58 }
 0x6a6   :  { %v4814_v23 = vpop.eup %4813  ;;  %2434 = vmatpush.bf16.msra.mxu0 %v6850_v3 }
 0x6a7   :  { %v4464_v38 = vmul.f32 -1.442695, %v2218_v40  ;;  %v4816_v10 = vpop.eup %4815  ;;  %v2222_v55 = vadd.f32 1.0, %v4814_v23 }
 0x6a8   :  { %v2241_v15 = vadd.f32 1.0, %v4816_v10 }
 0x6a9   :  { %4817 = vpow2.f32 %v4464_v38  ;;  %v2191_v54 = vpop.f32.mrf.mxu2  ;;  %v6851_v38 = vld [vmem:[#allocation41_spill] sm:$0xff]  ;;  %v2234_v47 = vand.u32 2147483648, %v2222_v55  ;;  %v2232_v59 = vand.u32 2147483647, %v2222_v55  ;;  %vm2228_vm2 = vweird.f32 %v2222_v55 }
 0x6aa   :  { %4819 = vrcp.f32 %v2222_v55  ;;  %v2204_v52 = vpop.f32.mrf.mxu3  ;;  %2435 = vmatpush.bf16.msra.mxu0 %v6851_v38  ;;  %v2253_v11 = vand.u32 2147483648, %v2241_v15  ;;  %v2251_v6 = vand.u32 2147483647, %v2241_v15  ;;  %vm2247_vm3 = vweird.f32 %v2241_v15 }
 0x6ab   :  { %4821 = vrcp.f32 %v2241_v15  ;;  %v2235_v24 = vor.u32 1.1754944e-38, %v2234_v47  ;;  %vm2233_vm6 = vcmp.eq.f32.partialorder %v2232_v59, 8.507059e+37  ;;  %v6859_v59 = vld [vmem:[#allocation65_spill] sm:$0xff] }
 0x6ac   :  { %vm2252_vm7 = vcmp.eq.f32.partialorder %v2251_v6, 8.507059e+37 }
 0x6ae   :  { %2436 = vmatpush.bf16.msra.mxu0 %v6852_v50 }
 0x6af   :  { %v4818_v49 = vpop.eup %4817 }
 0x6b0   :  { %v4820_v58 = vpop.eup %4819  ;;  %v2261_v40 = vadd.f32 1.0, %v4818_v49 }
 0x6b1   :  { %v4822_v35 = vpop.eup %4821  ;;  %v2224_v23 = vmul.f32 %v4820_v58, %v2222_v55  ;;  %vm2229_vm0 = vweird.f32 %v4820_v58 }
 0x6b2   :  { %v2243_v10 = vmul.f32 %v4822_v35, %v2241_v15  ;;  %4823 = vrcp.f32 %v2261_v40  ;;  %vm2248_vm1 = vweird.f32 %v4822_v35  ;;  %vm2230_vm4 = vmor %vm2228_vm2, %vm2229_vm0  ;;  %2437 = vmatpush.bf16.msra.mxu0 %v6854_v12  ;;  %vm2267_vm9 = vweird.f32 %v2261_v40 }
 0x6b3   :  { %v2225_v52 = vsub.f32 1.0, %v2224_v23  ;;  %4825 = vtanh.f32 %v2217_v60  ;;  %v6853_v23 = vld [vmem:[#allocation35_spill] sm:$0xff]  ;;  %vm2249_vm5 = vmor %vm2247_vm3, %vm2248_vm1  ;;  %v2254_v60 = vor.u32 1.1754944e-38, %v2253_v11  ;;  %v2271_v11 = vand.u32 2147483647, %v2261_v40 }
 0x6b4   :  { %v2244_v54 = vsub.f32 1.0, %v2243_v10  ;;  %v2278_v10 = vrot.slane %v6853_v23, 7 }
 0x6b5   :  { %v2226_v62 = vmul.f32 %v4820_v58, %v2225_v52  ;;  %vm2272_vm11 = vcmp.eq.f32.partialorder %v2271_v11, 8.507059e+37 }
 0x6b6   :  { %v2245_v3 = vmul.f32 %v4822_v35, %v2244_v54 }
 0x6b7   :  { %v2227_v53 = vadd.f32 %v4820_v58, %v2226_v62 }
 0x6b8   :  { %v4824_v49 = vpop.eup %4823  ;;  %v2246_v38 = vadd.f32 %v4822_v35, %v2245_v3 }
 0x6b9   :  { %v2231_v51 = vsel %vm2230_vm4, %v4820_v58, %v2227_v53  ;;  %v2263_v52 = vmul.f32 %v4824_v49, %v2261_v40  ;;  %v4826_v1 = vpop.eup %4825  ;;  %vm2268_vm8 = vweird.f32 %v4824_v49  ;;  %v2273_v58 = vand.u32 2147483648, %v2261_v40  ;;  %v6857_v40 = vld [vmem:[#allocation57_spill] sm:$0xff] }
 0x6ba   :  { %v2236_v54 = vsel %vm2233_vm6, %v2235_v24, %v2231_v51  ;;  %v2250_v36 = vsel %vm2249_vm5, %v4822_v35, %v2246_v38  ;;  %vm2269_vm10 = vmor %vm2267_vm9, %vm2268_vm8  ;;  %v6858_v38 = vld [vmem:[#allocation61_spill] sm:$0xff] }
 0x6bb   :  { %v2255_v62 = vsel %vm2252_vm7, %v2254_v60, %v2250_v36  ;;  %v2281_v55 = vmul.f32 %v4826_v1, %v2236_v54  ;;  %v2264_v50 = vsub.f32 1.0, %v2263_v52  ;;  %v2274_v24 = vor.u32 1.1754944e-38, %v2273_v58  ;;  %v6044_v53 = vld [vmem:[%s6701_s10] sm:$0x1] }
 0x6bc   :  { %v2280_v15 = vmul.f32 %v2278_v10, %v2255_v62  ;;  %6860 = vst [vmem:[#allocation35_spill] sm:$0xff] %v6044_v53 }
 0x6bd   :  { %v2265_v14 = vmul.f32 %v4824_v49, %v2264_v50  ;;  %v6855_v50 = vld [vmem:[#allocation49_spill] sm:$0xff] }
 0x6be   :  { %v5998_v47 = vadd.f32 %v2281_v55, %v2280_v15 }
 0x6bf   :  { %v2266_v3 = vadd.f32 %v4824_v49, %v2265_v14  ;;  %v6856_v14 = vld [vmem:[#allocation53_spill] sm:$0xff] }
 0x6c0   :  { %4827 = vtanh.f32 %v5998_v47 }
 0x6c1   :  { %v2270_v51 = vsel %vm2269_vm10, %v4824_v49, %v2266_v3 }
 0x6c2   :  { %v2275_v35 = vsel %vm2272_vm11, %v2274_v24, %v2270_v51  ;;  %v1708_v51 = vlaneseq }
 0x6c4   :  { %v6056_v24 = vand.u32 127, %v1708_v51 }
 0x6c6   :  { %v4828_v6 = vpop.eup %4827  ;;  %6861 = vst [vmem:[#allocation49_spill] sm:$0xff] %v6056_v24 }
 0x6c7   :  { %v2284_v36 = vmul.f32 %v4828_v6, %v2275_v35 }
 0x6c9   :  { %v2285_v1 = vpack.c.bf16 %v2284_v36, %v2284_v36 }
 0x6cb   :  { %2358 = vmatmul.bf16.vlgmr.msrb.gmra.mxu0 %v2285_v1  ;;  %2399 = vmatmul.bf16.vlgmr.msrb.gmra.mxu1 %v2285_v1 }
 0x6cc   :  { %2412 = vmatmul.bf16.vlgmr.msrb.gmra.mxu2 %v2285_v1  ;;  %2425 = vmatmul.bf16.vlgmr.msrb.gmra.mxu3 %v2285_v1 }
 0x6cd   :  { %2482 = vmatpush.bf16.msrb.mxu0 %v6855_v50  ;;  %2563 = vmatpush.bf16.msrb.mxu1 %v5950_v0 }
 0x6ce   :  { %2603 = vmatpush.bf16.msrb.mxu2 %v5708_v4  ;;  %2616 = vmatpush.bf16.msrb.mxu3 %v5710_v16 }
 0x6d1   :  { %2483 = vmatpush.bf16.msrb.mxu0 %v6856_v14  ;;  %2564 = vmatpush.bf16.msrb.mxu1 %v5953_v39 }
 0x6d2   :  { %2604 = vmatpush.bf16.msrb.mxu2 %v5719_v48  ;;  %2617 = vmatpush.bf16.msrb.mxu3 %v5721_v57 }
 0x6d5   :  { %2484 = vmatpush.bf16.msrb.mxu0 %v6857_v40  ;;  %2565 = vmatpush.bf16.msrb.mxu1 %v5956_v9 }
 0x6d6   :  { %2605 = vmatpush.bf16.msrb.mxu2 %v5729_v25  ;;  %2618 = vmatpush.bf16.msrb.mxu3 %v5733_v44 }
 0x6d9   :  { %2485 = vmatpush.bf16.msrb.mxu0 %v6858_v38  ;;  %2566 = vmatpush.bf16.msrb.mxu1 %v5959_v19 }
 0x6da   :  { %2606 = vmatpush.bf16.msrb.mxu2 %v5741_v5  ;;  %2619 = vmatpush.bf16.msrb.mxu3 %v5745_v37 }
 0x6db   :  { %2438 = vmatmul.bf16.vlgmr.msra.gmra.mxu0 %v2285_v1 }
 0x6dd   :  { %2486 = vmatpush.bf16.msrb.mxu0 %v6859_v59  ;;  %2567 = vmatpush.bf16.msrb.mxu1 %v5962_v41 }
 0x6de   :  { %2607 = vmatpush.bf16.msrb.mxu2 %v5753_v63  ;;  %2620 = vmatpush.bf16.msrb.mxu3 %v5757_v42 }
 0x6e1   :  { %2487 = vmatpush.bf16.msrb.mxu0 %v5872_v21  ;;  %2568 = vmatpush.bf16.msrb.mxu1 %v5965_v17 }
 0x6e2   :  { %2608 = vmatpush.bf16.msrb.mxu2 %v5765_v26  ;;  %2621 = vmatpush.bf16.msrb.mxu3 %v5769_v27 }
 0x6e5   :  { %2488 = vmatpush.bf16.msrb.mxu0 %v5884_v33  ;;  %2569 = vmatpush.bf16.msrb.mxu1 %v5971_v61 }
 0x6e6   :  { %2609 = vmatpush.bf16.msrb.mxu2 %v5777_v13  ;;  %2622 = vmatpush.bf16.msrb.mxu3 %v5783_v30 }
 0x6e9   :  { %2489 = vmatpush.bf16.msrb.mxu0 %v5896_v56  ;;  %2570 = vmatpush.bf16.msrb.mxu1 %v5978_v29 }
 0x6ea   :  { %2610 = vmatpush.bf16.msrb.mxu2 %v5791_v31  ;;  %2623 = vmatpush.bf16.msrb.mxu3 %v5795_v22 }
 0x6ed   :  { %2629 = vmatpush.bf16.msra.mxu0 %v5712_v20 }
 0x6f1   :  { %2630 = vmatpush.bf16.msra.mxu0 %v5724_v34 }
 0x6f5   :  { %2631 = vmatpush.bf16.msra.mxu0 %v5735_v18 }
 0x6f9   :  { %2632 = vmatpush.bf16.msra.mxu0 %v5747_v45 }
 0x6fd   :  { %2633 = vmatpush.bf16.msra.mxu0 %v5759_v43 }
 0x701   :  { %2634 = vmatpush.bf16.msra.mxu0 %v5771_v28 }
 0x705   :  { %2635 = vmatpush.bf16.msra.mxu0 %v5785_v46 }
 0x709   :  { %2636 = vmatpush.bf16.msra.mxu0 %v5797_v7 }
 0x748   :  { %v2359_v49 = vpop.f32.mrf.mxu0  ;;  %v6046_v23 = vpop.f32.mrf.mxu1 }
 0x749   :  { %v2360_v10 = vadd.f32 %v2359_v49, %v6044_v53 }
 0x74b   :  { %v2364_v60 = vsel %vm2363_vm12, %v2360_v10, -inf }
 0x74c   :  { %2365 = vmax.xlane.f32.xlu0 %v2364_v60 }
 0x74f   :  { %v6050_v52 = vpop.f32.mrf.mxu2  ;;  %v6052_v54 = vpop.f32.mrf.mxu3 }
 0x750   :  { %v2361_v62 = vpop.f32.mrf.mxu0  ;;  %v2402_v55 = vpop.f32.mrf.mxu1 }
 0x757   :  { %v2415_v15 = vpop.f32.mrf.mxu2  ;;  %v2428_v3 = vpop.f32.mrf.mxu3 }
 0x758   :  { %v6054_v58 = vpop.f32.mrf.mxu0 }
 0x760   :  { %v2441_v11 = vpop.f32.mrf.mxu0 }
 0x7bf   :  { %v2366_v6 = vpop.xlane.xlu0 %2365 }
 0x7c0   :  { %vm2367_vm13 = vcmp.eq.f32.partialorder %v2360_v10, %v2366_v6 }
 0x7c1   :  { %v2368_v35 = vsel %vm2367_vm13, %v6056_v24, 128 }
 0x7c2   :  { %v2369_v36 = vsel %vm2363_vm12, %v2368_v35, 2147483647  ;;  %v6863_v35 = vld [vmem:[#allocation48_spill] sm:$0xff] }
 0x7c3   :  { %v2371_v1 = vshra.s32 %v2369_v36, 16  ;;  %v2370_v60 = vand.u32 65535, %v2369_v36  ;;  %v6865_v36 = vld [vmem:[#allocation50_spill] sm:$0xff] }
 0x7c5   :  { %v2373_v49 = vcvt.s32.f32 %v2371_v1  ;;  %v2372_v55 = vcvt.s32.f32 %v2370_v60  ;;  %v6866_v1 = vld [vmem:[#allocation51_spill] sm:$0xff]  ;;  %v6868_v60 = vld [vmem:[#allocation38_spill] sm:$0xff] }
 0x7c7   :  { %2374 = vmin.xlane.f32.xlu0 %v2373_v49 }
 0x83a   :  { %v2375_v62 = vpop.xlane.xlu0 %2374 }
 0x83b   :  { %vm2376_vm14 = vcmp.eq.f32.partialorder %v2373_v49, %v2375_v62  ;;  %v2381_v3 = vcvt.f32.s32 %v2375_v62  ;;  %v6867_v49 = vld [vmem:[#allocation52_spill] sm:$0xff]  ;;  %v6869_v62 = vld [vmem:[#allocation54_spill] sm:$0xff] }
 0x83c   :  { %v2377_v15 = vsel %vm2376_vm14, %v2372_v55, inf  ;;  %v6870_v55 = vld [vmem:[#allocation55_spill] sm:$0xff] }
 0x83d   :  { %2378 = vmin.xlane.f32.xlu1 %v2377_v15  ;;  %v2382_v53 = vshll.u32 %v2381_v3, 16  ;;  %v6871_v15 = vld [vmem:[#allocation56_spill] sm:$0xff]  ;;  %v6872_v3 = vld [vmem:[#allocation39_spill] sm:$0xff] }
 0x8b0   :  { %v2379_v11 = vpop.xlane.xlu1 %2378 }
 0x8b1   :  { %v2380_v51 = vcvt.f32.s32 %v2379_v11  ;;  %v6873_v11 = vld [vmem:[#allocation58_spill] sm:$0xff] }
 0x8b3   :  { %v6060_v7 = vadd.s32 %v2382_v53, %v2380_v51  ;;  %v6864_v53 = vld [vmem:[#allocation37_spill] sm:$0xff]  ;;  %v6874_v51 = vld [vmem:[#allocation59_spill] sm:$0xff] }
 0x8b5   :  { %6862 = vst [vmem:[#allocation53_spill] sm:$0xff] %v6060_v7 }
 0x8b6   :  { %4658 = vpush %v6060_v7 }
 0x8e7   :  { %s4659_s18 = spop %4658 }
 0x8e8   :  { %s2385_s19 = scalar_lea.vmem [#allocation4], %s4659_s18 }
 0x8e9   :  { %v2386_v10 = vld [vmem:[%s2385_s19] sm:$0x1] }
 0x8ea   :  { %v2390_v6 = vpack.c.bf16 %v2386_v10, %v2386_v10  ;;  %v6875_v10 = vld [vmem:[#allocation60_spill] sm:$0xff] }
 0x8ec   :  { %2451 = vmatmul.bf16.vlgmr.msra.gmra.mxu1 %v2390_v6  ;;  %2464 = vmatmul.bf16.vlgmr.msra.gmra.mxu2 %v2390_v6 }
 0x8ed   :  { %2477 = vmatmul.bf16.vlgmr.msra.gmra.mxu3 %v2390_v6  ;;  %2490 = vmatmul.bf16.vlgmr.msrb.gmra.mxu0 %v2390_v6  ;;  %v6876_v6 = vld [vmem:[#allocation40_spill] sm:$0xff] }
 0x8ee   :  { %2642 = vmatpush.bf16.msra.mxu1 %v5715_v32  ;;  %2655 = vmatpush.bf16.msra.mxu2 %v5802_v2 }
 0x8ef   :  { %2668 = vmatpush.bf16.msra.mxu3 %v5804_v8  ;;  %2681 = vmatpush.bf16.msrb.mxu0 %v6863_v35 }
 0x8f2   :  { %2643 = vmatpush.bf16.msra.mxu1 %v6864_v53  ;;  %2656 = vmatpush.bf16.msra.mxu2 %v6865_v36  ;;  %v6892_v36 = vld [vmem:[#allocation77_spill] sm:$0xff] }
 0x8f3   :  { %2669 = vmatpush.bf16.msra.mxu3 %v6866_v1  ;;  %2682 = vmatpush.bf16.msrb.mxu0 %v6867_v49  ;;  %v6877_v1 = vld [vmem:[#allocation62_spill] sm:$0xff]  ;;  %v6878_v49 = vld [vmem:[#allocation63_spill] sm:$0xff] }
 0x8f6   :  { %2644 = vmatpush.bf16.msra.mxu1 %v6868_v60  ;;  %2657 = vmatpush.bf16.msra.mxu2 %v6869_v62  ;;  %v6879_v60 = vld [vmem:[#allocation64_spill] sm:$0xff]  ;;  %v6880_v62 = vld [vmem:[#allocation41_spill] sm:$0xff] }
 0x8f7   :  { %2670 = vmatpush.bf16.msra.mxu3 %v6870_v55  ;;  %2683 = vmatpush.bf16.msrb.mxu0 %v6871_v15  ;;  %v6881_v55 = vld [vmem:[#allocation66_spill] sm:$0xff]  ;;  %v6882_v15 = vld [vmem:[#allocation67_spill] sm:$0xff] }
 0x8fa   :  { %2645 = vmatpush.bf16.msra.mxu1 %v6872_v3  ;;  %2658 = vmatpush.bf16.msra.mxu2 %v6873_v11  ;;  %v6883_v3 = vld [vmem:[#allocation68_spill] sm:$0xff]  ;;  %v6884_v11 = vld [vmem:[#allocation43_spill] sm:$0xff] }
 0x8fb   :  { %2671 = vmatpush.bf16.msra.mxu3 %v6874_v51  ;;  %2684 = vmatpush.bf16.msrb.mxu0 %v6875_v10  ;;  %v6885_v51 = vld [vmem:[#allocation69_spill] sm:$0xff]  ;;  %v6886_v10 = vld [vmem:[#allocation70_spill] sm:$0xff] }
 0x8fe   :  { %2646 = vmatpush.bf16.msra.mxu1 %v6876_v6  ;;  %2659 = vmatpush.bf16.msra.mxu2 %v6877_v1  ;;  %v6887_v6 = vld [vmem:[#allocation71_spill] sm:$0xff] }
 0x8ff   :  { %2672 = vmatpush.bf16.msra.mxu3 %v6878_v49  ;;  %2685 = vmatpush.bf16.msrb.mxu0 %v6879_v60  ;;  %v6888_v49 = vld [vmem:[#allocation72_spill] sm:$0xff]  ;;  %v6889_v60 = vld [vmem:[#allocation73_spill] sm:$0xff]  ;;  %v6891_v1 = vld [vmem:[#allocation75_spill] sm:$0xff] }
 0x902   :  { %2647 = vmatpush.bf16.msra.mxu1 %v6880_v62  ;;  %2660 = vmatpush.bf16.msra.mxu2 %v6881_v55  ;;  %v6890_v62 = vld [vmem:[#allocation74_spill] sm:$0xff] }
 0x903   :  { %2673 = vmatpush.bf16.msra.mxu3 %v6882_v15  ;;  %2686 = vmatpush.bf16.msrb.mxu0 %v6883_v3 }
 0x906   :  { %2648 = vmatpush.bf16.msra.mxu1 %v6884_v11  ;;  %2661 = vmatpush.bf16.msra.mxu2 %v6885_v51 }
 0x907   :  { %2674 = vmatpush.bf16.msra.mxu3 %v6886_v10  ;;  %2687 = vmatpush.bf16.msrb.mxu0 %v6887_v6 }
 0x90a   :  { %2649 = vmatpush.bf16.msra.mxu1 %v6854_v12  ;;  %2662 = vmatpush.bf16.msra.mxu2 %v6888_v49 }
 0x90b   :  { %2675 = vmatpush.bf16.msra.mxu3 %v6889_v60  ;;  %2688 = vmatpush.bf16.msrb.mxu0 %v6890_v62  ;;  %v6893_v62 = vld [vmem:[#allocation76_spill] sm:$0xff] }
 0x969   :  { %v2452_v55 = vpop.f32.mrf.mxu1 }
 0x96a   :  { %v2453_v15 = vadd.f32 %v2452_v55, %v6046_v23  ;;  %v2491_v3 = vpop.f32.mrf.mxu0 }
 0x96b   :  { %v2492_v11 = vadd.f32 %v2491_v3, %v6054_v58 }
 0x96c   :  { %v2495_v51 = vadd.f32 %v2453_v15, %v6891_v1 }
 0x96d   :  { %v2498_v10 = vadd.f32 %v2492_v11, %v6892_v36 }
 0x96e   :  { %v4497_v53 = vmul.f32 -1.442695, %v2495_v51 }
 0x96f   :  { %v4499_v6 = vmul.f32 -1.442695, %v2498_v10  ;;  %v2465_v35 = vpop.f32.mrf.mxu2 }
 0x970   :  { %4829 = vpow2.f32 %v4497_v53  ;;  %v2466_v49 = vadd.f32 %v2465_v35, %v6050_v52  ;;  %v2478_v12 = vpop.f32.mrf.mxu3 }
 0x971   :  { %4831 = vpow2.f32 %v4499_v6  ;;  %v2454_v60 = vpop.f32.mrf.mxu1  ;;  %v2479_v35 = vadd.f32 %v2478_v12, %v6052_v54  ;;  %v6894_v6 = vld [vmem:[#allocation78_spill] sm:$0xff] }
 0x972   :  { %v2496_v8 = vadd.f32 %v2466_v49, %v6893_v62  ;;  %v2493_v2 = vpop.f32.mrf.mxu0 }
 0x974   :  { %v4498_v23 = vmul.f32 -1.442695, %v2496_v8 }
 0x976   :  { %v4830_v55 = vpop.eup %4829  ;;  %4833 = vpow2.f32 %v4498_v23  ;;  %v2497_v23 = vadd.f32 %v2479_v35, %v6894_v6 }
 0x977   :  { %v4832_v58 = vpop.eup %4831  ;;  %v2502_v3 = vadd.f32 1.0, %v4830_v55  ;;  %v2467_v15 = vpop.f32.mrf.mxu2 }
 0x978   :  { %v2480_v1 = vpop.f32.mrf.mxu3  ;;  %v2541_v11 = vadd.f32 1.0, %v4832_v58 }
 0x979   :  { %4835 = vrcp.f32 %v2502_v3  ;;  %v2514_v15 = vand.u32 2147483648, %v2502_v3  ;;  %vm2508_vm0 = vweird.f32 %v2502_v3 }
 0x97a   :  { %4837 = vrcp.f32 %v2541_v11  ;;  %vm2547_vm8 = vweird.f32 %v2541_v11 }
 0x97c   :  { %v4834_v51 = vpop.eup %4833 }
 0x97d   :  { %v2521_v10 = vadd.f32 1.0, %v4834_v51  ;;  %v2512_v51 = vand.u32 2147483647, %v2502_v3 }
 0x97f   :  { %v4836_v53 = vpop.eup %4835  ;;  %4839 = vrcp.f32 %v2521_v10  ;;  %v2533_v36 = vand.u32 2147483648, %v2521_v10  ;;  %v2531_v54 = vand.u32 2147483647, %v2521_v10  ;;  %vm2527_vm3 = vweird.f32 %v2521_v10 }
 0x980   :  { %v2504_v52 = vmul.f32 %v4836_v53, %v2502_v3  ;;  %v4838_v49 = vpop.eup %4837  ;;  %vm2509_vm15 = vweird.f32 %v4836_v53  ;;  %4841 = vtanh.f32 %v2497_v23  ;;  %vm2513_vm4 = vcmp.eq.f32.partialorder %v2512_v51, 8.507059e+37 }
 0x981   :  { %v2543_v1 = vmul.f32 %v4838_v49, %v2541_v11  ;;  %vm2510_vm1 = vmor %vm2508_vm0, %vm2509_vm15  ;;  %vm2532_vm6 = vcmp.eq.f32.partialorder %v2531_v54, 8.507059e+37  ;;  %vm2548_vm7 = vweird.f32 %v4838_v49  ;;  %v6898_v54 = vld [vmem:[#allocation49_spill] sm:$0xff] }
 0x982   :  { %v2505_v60 = vsub.f32 1.0, %v2504_v52  ;;  %vm2549_vm9 = vmor %vm2547_vm8, %vm2548_vm7  ;;  %vm2387_vm14 = vcmp.eq.s32.totalorder %v6898_v54, 0  ;;  %vm2599_vm15 = vcmp.eq.s32.totalorder %v6898_v54, 1 }
 0x983   :  { %v2544_v52 = vsub.f32 1.0, %v2543_v1 }
 0x984   :  { %v2506_v2 = vmul.f32 %v4836_v53, %v2505_v60  ;;  %v2515_v60 = vor.u32 1.1754944e-38, %v2514_v15 }
 0x985   :  { %v4840_v8 = vpop.eup %4839  ;;  %v2545_v24 = vmul.f32 %v4838_v49, %v2544_v52 }
 0x986   :  { %v2523_v62 = vmul.f32 %v4840_v8, %v2521_v10  ;;  %v2507_v55 = vadd.f32 %v4836_v53, %v2506_v2  ;;  %vm2528_vm2 = vweird.f32 %v4840_v8  ;;  %v2534_v2 = vor.u32 1.1754944e-38, %v2533_v36 }
 0x987   :  { %vm2529_vm5 = vmor %vm2527_vm3, %vm2528_vm2 }
 0x988   :  { %v2524_v58 = vsub.f32 1.0, %v2523_v62  ;;  %v2511_v12 = vsel %vm2510_vm1, %v4836_v53, %v2507_v55  ;;  %v4842_v62 = vpop.eup %4841  ;;  %v2546_v53 = vadd.f32 %v4838_v49, %v2545_v24  ;;  %v2553_v55 = vand.u32 2147483648, %v2541_v11 }
 0x989   :  { %v2516_v6 = vsel %vm2513_vm4, %v2515_v60, %v2511_v12 }
 0x98a   :  { %v2525_v32 = vmul.f32 %v4840_v8, %v2524_v58  ;;  %v2558_v23 = vmul.f32 %v4842_v62, %v2516_v6  ;;  %v2550_v36 = vsel %vm2549_vm9, %v4838_v49, %v2546_v53  ;;  %v2554_v10 = vor.u32 1.1754944e-38, %v2553_v55 }
 0x98c   :  { %v2526_v35 = vadd.f32 %v4840_v8, %v2525_v32  ;;  %v2551_v32 = vand.u32 2147483647, %v2541_v11 }
 0x98e   :  { %v2530_v7 = vsel %vm2529_vm5, %v4840_v8, %v2526_v35  ;;  %vm2552_vm10 = vcmp.eq.f32.partialorder %v2551_v32, 8.507059e+37 }
 0x98f   :  { %v2535_v3 = vsel %vm2532_vm6, %v2534_v2, %v2530_v7  ;;  %v2555_v1 = vsel %vm2552_vm10, %v2554_v10, %v2550_v36 }
 0x990   :  { %v2557_v46 = vmul.f32 %v2535_v3, %v5998_v47 }
 0x992   :  { %v6104_v58 = vadd.f32 %v2558_v23, %v2557_v46  ;;  %v6896_v46 = vld [vmem:[#allocation44_spill] sm:$0xff] }
 0x994   :  { %4843 = vtanh.f32 %v6104_v58 }
 0x99a   :  { %v4844_v8 = vpop.eup %4843 }
 0x99b   :  { %v2561_v15 = vmul.f32 %v4844_v8, %v2555_v1  ;;  %v6899_v8 = vld [vmem:[#allocation53_spill] sm:$0xff] }
 0x99c   :  { %v2388_v1 = vcvt.s32.f32 %v6899_v8  ;;  %v6917_v8 = vld [vmem:[#allocation62_spill] sm:$0xff] }
 0x99d   :  { %v2562_v7 = vpack.c.bf16 %v2561_v15, %v2561_v15 }
 0x99f   :  { %2571 = vmatmul.bf16.vlgmr.msrb.gmra.mxu1 %v2562_v7  ;;  %2611 = vmatmul.bf16.vlgmr.msrb.gmra.mxu2 %v2562_v7 }
 0x9a0   :  { %2624 = vmatmul.bf16.vlgmr.msrb.gmra.mxu3 %v2562_v7  ;;  %2637 = vmatmul.bf16.vlgmr.msra.gmra.mxu0 %v2562_v7 }
 0x9a1   :  { %2694 = vmatpush.bf16.msrb.mxu1 %v6855_v50  ;;  %2775 = vmatpush.bf16.msrb.mxu2 %v5950_v0 }
 0x9a2   :  { %2815 = vmatpush.bf16.msrb.mxu3 %v5708_v4  ;;  %2828 = vmatpush.bf16.msra.mxu0 %v5710_v16 }
 0x9a5   :  { %2695 = vmatpush.bf16.msrb.mxu1 %v6856_v14  ;;  %2776 = vmatpush.bf16.msrb.mxu2 %v5953_v39 }
 0x9a6   :  { %2816 = vmatpush.bf16.msrb.mxu3 %v5719_v48  ;;  %2829 = vmatpush.bf16.msra.mxu0 %v5721_v57 }
 0x9a9   :  { %2696 = vmatpush.bf16.msrb.mxu1 %v6857_v40  ;;  %2777 = vmatpush.bf16.msrb.mxu2 %v5956_v9 }
 0x9aa   :  { %2817 = vmatpush.bf16.msrb.mxu3 %v5729_v25  ;;  %2830 = vmatpush.bf16.msra.mxu0 %v5733_v44 }
 0x9ad   :  { %2697 = vmatpush.bf16.msrb.mxu1 %v6858_v38  ;;  %2778 = vmatpush.bf16.msrb.mxu2 %v5959_v19 }
 0x9ae   :  { %2818 = vmatpush.bf16.msrb.mxu3 %v5741_v5  ;;  %2831 = vmatpush.bf16.msra.mxu0 %v5745_v37 }
 0x9af   :  { %2650 = vmatmul.bf16.vlgmr.msra.gmra.mxu1 %v2562_v7 }
 0x9b1   :  { %2698 = vmatpush.bf16.msrb.mxu1 %v6859_v59  ;;  %2779 = vmatpush.bf16.msrb.mxu2 %v5962_v41  ;;  %v6897_v41 = vld [vmem:[#allocation35_spill] sm:$0xff] }
 0x9b2   :  { %2819 = vmatpush.bf16.msrb.mxu3 %v5753_v63  ;;  %2832 = vmatpush.bf16.msra.mxu0 %v5757_v42 }
 0x9b5   :  { %2699 = vmatpush.bf16.msrb.mxu1 %v5872_v21  ;;  %2780 = vmatpush.bf16.msrb.mxu2 %v5965_v17  ;;  %v6895_v17 = vld [vmem:[#allocation42_spill] sm:$0xff] }
 0x9b6   :  { %2820 = vmatpush.bf16.msrb.mxu3 %v5765_v26  ;;  %2833 = vmatpush.bf16.msra.mxu0 %v5769_v27 }
 0x9b9   :  { %2700 = vmatpush.bf16.msrb.mxu1 %v5884_v33  ;;  %2781 = vmatpush.bf16.msrb.mxu2 %v5971_v61 }
 0x9ba   :  { %2821 = vmatpush.bf16.msrb.mxu3 %v5777_v13  ;;  %2834 = vmatpush.bf16.msra.mxu0 %v5783_v30 }
 0x9bd   :  { %2701 = vmatpush.bf16.msrb.mxu1 %v5896_v56  ;;  %2782 = vmatpush.bf16.msrb.mxu2 %v5978_v29 }
 0x9be   :  { %2822 = vmatpush.bf16.msrb.mxu3 %v5791_v31  ;;  %2835 = vmatpush.bf16.msra.mxu0 %v5795_v22 }
 0x9c1   :  { %2841 = vmatpush.bf16.msra.mxu1 %v5712_v20 }
 0x9c5   :  { %2842 = vmatpush.bf16.msra.mxu1 %v5724_v34 }
 0x9c9   :  { %2843 = vmatpush.bf16.msra.mxu1 %v5735_v18 }
 0x9cd   :  { %2844 = vmatpush.bf16.msra.mxu1 %v5747_v45 }
 0x9d1   :  { %2845 = vmatpush.bf16.msra.mxu1 %v5759_v43 }
 0x9d5   :  { %2846 = vmatpush.bf16.msra.mxu1 %v5771_v28 }
 0x9d9   :  { %2847 = vmatpush.bf16.msra.mxu1 %v6895_v17 }
 0x9dd   :  { %2848 = vmatpush.bf16.msra.mxu1 %v6896_v46 }
 0xa1c   :  { %v2572_v29 = vpop.f32.mrf.mxu1 }
 0xa1d   :  { %v2573_v0 = vadd.f32 %v2572_v29, %v6897_v41  ;;  %v6148_v39 = vpop.f32.mrf.mxu0  ;;  %v2389_v29 = vsel %vm2387_vm14, %v2388_v1, 0.0  ;;  %v6918_v1 = vld [vmem:[#allocation63_spill] sm:$0xff] }
 0xa1f   :  { %v2576_v9 = vsel %vm2363_vm12, %v2573_v0, -inf }
 0xa20   :  { %2577 = vmax.xlane.f32.xlu1 %v2576_v9 }
 0xa22   :  { %v6151_v19 = vpop.f32.mrf.mxu2 }
 0xa23   :  { %v6153_v61 = vpop.f32.mrf.mxu3 }
 0xa24   :  { %v2574_v47 = vpop.f32.mrf.mxu1 }
 0xa25   :  { %v2640_v24 = vpop.f32.mrf.mxu0 }
 0xa26   :  { %v6900_v24 = vld [vmem:[#allocation36_spill] sm:$0xff] }
 0xa2a   :  { %v2614_v11 = vpop.f32.mrf.mxu2 }
 0xa2b   :  { %v2627_v49 = vpop.f32.mrf.mxu3  ;;  %v6901_v11 = vld [vmem:[#allocation46_spill] sm:$0xff] }
 0xa2c   :  { %v6155_v6 = vpop.f32.mrf.mxu1  ;;  %v6902_v49 = vld [vmem:[#allocation47_spill] sm:$0xff] }
 0xa34   :  { %v2653_v51 = vpop.f32.mrf.mxu1 }
 0xa35   :  { %v6903_v51 = vld [vmem:[#allocation48_spill] sm:$0xff] }
 0xa93   :  { %v2578_v12 = vpop.xlane.xlu1 %2577 }
 0xa94   :  { %vm2579_vm11 = vcmp.eq.f32.partialorder %v2573_v0, %v2578_v12  ;;  %v6904_v12 = vld [vmem:[#allocation37_spill] sm:$0xff] }
 0xa95   :  { %v2580_v52 = vsel %vm2579_vm11, %v6898_v54, 128 }
 0xa96   :  { %v2581_v60 = vsel %vm2363_vm12, %v2580_v52, 2147483647  ;;  %v6905_v52 = vld [vmem:[#allocation50_spill] sm:$0xff] }
 0xa97   :  { %v2583_v35 = vshra.s32 %v2581_v60, 16  ;;  %v2582_v62 = vand.u32 65535, %v2581_v60  ;;  %v6906_v60 = vld [vmem:[#allocation51_spill] sm:$0xff] }
 0xa99   :  { %v2585_v2 = vcvt.s32.f32 %v2583_v35  ;;  %v2584_v23 = vcvt.s32.f32 %v2582_v62  ;;  %v6907_v35 = vld [vmem:[#allocation52_spill] sm:$0xff]  ;;  %v6909_v62 = vld [vmem:[#allocation54_spill] sm:$0xff] }
 0xa9b   :  { %2586 = vmin.xlane.f32.xlu2 %v2585_v2 }
 0xb0e   :  { %v2587_v3 = vpop.xlane.xlu2 %2586 }
 0xb0f   :  { %vm2588_vm13 = vcmp.eq.f32.partialorder %v2585_v2, %v2587_v3  ;;  %v2593_v55 = vcvt.f32.s32 %v2587_v3  ;;  %v6908_v2 = vld [vmem:[#allocation38_spill] sm:$0xff]  ;;  %v6910_v3 = vld [vmem:[#allocation55_spill] sm:$0xff] }
 0xb10   :  { %v2589_v53 = vsel %vm2588_vm13, %v2584_v23, inf  ;;  %v6911_v23 = vld [vmem:[#allocation56_spill] sm:$0xff] }
 0xb11   :  { %2590 = vmin.xlane.f32.xlu2 %v2589_v53  ;;  %v2594_v36 = vshll.u32 %v2593_v55, 16  ;;  %v6912_v53 = vld [vmem:[#allocation39_spill] sm:$0xff]  ;;  %v6913_v55 = vld [vmem:[#allocation58_spill] sm:$0xff] }
 0xb84   :  { %v2591_v32 = vpop.xlane.xlu2 %2590 }
 0xb85   :  { %v2592_v10 = vcvt.f32.s32 %v2591_v32  ;;  %v6914_v32 = vld [vmem:[#allocation59_spill] sm:$0xff] }
 0xb87   :  { %v2595_v15 = vadd.s32 %v2594_v36, %v2592_v10  ;;  %v6915_v36 = vld [vmem:[#allocation60_spill] sm:$0xff] }
 0xb88   :  { %v6916_v10 = vld [vmem:[#allocation40_spill] sm:$0xff] }
 0xb89   :  { %4660 = vpush %v2595_v15  ;;  %v2600_v7 = vcvt.s32.f32 %v2595_v15  ;;  %v6919_v15 = vld [vmem:[#allocation64_spill] sm:$0xff] }
 0xb8b   :  { %v6162_v0 = vsel %vm2599_vm15, %v2600_v7, %v2389_v29  ;;  %v6920_v7 = vld [vmem:[#allocation41_spill] sm:$0xff]  ;;  %v6921_v29 = vld [vmem:[#allocation66_spill] sm:$0xff]  ;;  %vm2811_vm15 = vcmp.eq.s32.totalorder %v6898_v54, 2 }
 0xbba   :  { %s4661_s0 = spop %4660 }
 0xbbb   :  { %s2597_s20 = scalar_lea.vmem [#allocation4], %s4661_s0 }
 0xbbc   :  { %v2598_v9 = vld [vmem:[%s2597_s20] sm:$0x1] }
 0xbbd   :  { %v2602_v47 = vpack.c.bf16 %v2598_v9, %v2598_v9  ;;  %v6922_v9 = vld [vmem:[#allocation67_spill] sm:$0xff] }
 0xbbf   :  { %2663 = vmatmul.bf16.vlgmr.msra.gmra.mxu2 %v2602_v47  ;;  %2676 = vmatmul.bf16.vlgmr.msra.gmra.mxu3 %v2602_v47 }
 0xbc0   :  { %2689 = vmatmul.bf16.vlgmr.msrb.gmra.mxu0 %v2602_v47  ;;  %2702 = vmatmul.bf16.vlgmr.msrb.gmra.mxu1 %v2602_v47  ;;  %v6923_v47 = vld [vmem:[#allocation68_spill] sm:$0xff] }
 0xbc1   :  { %2854 = vmatpush.bf16.msra.mxu2 %v6900_v24  ;;  %2867 = vmatpush.bf16.msra.mxu3 %v6901_v11 }
 0xbc2   :  { %2880 = vmatpush.bf16.msrb.mxu0 %v6902_v49  ;;  %2893 = vmatpush.bf16.msrb.mxu1 %v6903_v51 }
 0xbc5   :  { %2855 = vmatpush.bf16.msra.mxu2 %v6904_v12  ;;  %2868 = vmatpush.bf16.msra.mxu3 %v6905_v52 }
 0xbc6   :  { %2881 = vmatpush.bf16.msrb.mxu0 %v6906_v60  ;;  %2894 = vmatpush.bf16.msrb.mxu1 %v6907_v35 }
 0xbc9   :  { %2856 = vmatpush.bf16.msra.mxu2 %v6908_v2  ;;  %2869 = vmatpush.bf16.msra.mxu3 %v6909_v62  ;;  %v6934_v62 = vld [vmem:[#allocation76_spill] sm:$0xff] }
 0xbca   :  { %2882 = vmatpush.bf16.msrb.mxu0 %v6910_v3  ;;  %2895 = vmatpush.bf16.msrb.mxu1 %v6911_v23 }
 0xbcd   :  { %2857 = vmatpush.bf16.msra.mxu2 %v6912_v53  ;;  %2870 = vmatpush.bf16.msra.mxu3 %v6913_v55  ;;  %v6924_v55 = vld [vmem:[#allocation43_spill] sm:$0xff]  ;;  %v6932_v53 = vld [vmem:[#allocation77_spill] sm:$0xff] }
 0xbce   :  { %2883 = vmatpush.bf16.msrb.mxu0 %v6914_v32  ;;  %2896 = vmatpush.bf16.msrb.mxu1 %v6915_v36  ;;  %v6925_v32 = vld [vmem:[#allocation69_spill] sm:$0xff]  ;;  %v6926_v36 = vld [vmem:[#allocation70_spill] sm:$0xff] }
 0xbd1   :  { %2858 = vmatpush.bf16.msra.mxu2 %v6916_v10  ;;  %2871 = vmatpush.bf16.msra.mxu3 %v6917_v8  ;;  %v6927_v10 = vld [vmem:[#allocation71_spill] sm:$0xff]  ;;  %v6928_v8 = vld [vmem:[#allocation45_spill] sm:$0xff] }
 0xbd2   :  { %2884 = vmatpush.bf16.msrb.mxu0 %v6918_v1  ;;  %2897 = vmatpush.bf16.msrb.mxu1 %v6919_v15  ;;  %v6929_v1 = vld [vmem:[#allocation72_spill] sm:$0xff]  ;;  %v6930_v15 = vld [vmem:[#allocation73_spill] sm:$0xff] }
 0xbd5   :  { %2859 = vmatpush.bf16.msra.mxu2 %v6920_v7  ;;  %2872 = vmatpush.bf16.msra.mxu3 %v6921_v29  ;;  %v6931_v7 = vld [vmem:[#allocation74_spill] sm:$0xff] }
 0xbd6   :  { %2885 = vmatpush.bf16.msrb.mxu0 %v6922_v9  ;;  %2898 = vmatpush.bf16.msrb.mxu1 %v6923_v47 }
 0xbd9   :  { %2860 = vmatpush.bf16.msra.mxu2 %v6924_v55  ;;  %2873 = vmatpush.bf16.msra.mxu3 %v6925_v32 }
 0xbda   :  { %2886 = vmatpush.bf16.msrb.mxu0 %v6926_v36  ;;  %2899 = vmatpush.bf16.msrb.mxu1 %v6927_v10 }
 0xbdd   :  { %2861 = vmatpush.bf16.msra.mxu2 %v6928_v8  ;;  %2874 = vmatpush.bf16.msra.mxu3 %v6929_v1  ;;  %v6933_v8 = vld [vmem:[#allocation75_spill] sm:$0xff] }
 0xbde   :  { %2887 = vmatpush.bf16.msrb.mxu0 %v6930_v15  ;;  %2900 = vmatpush.bf16.msrb.mxu1 %v6931_v7 }
 0xc3d   :  { %v2690_v29 = vpop.f32.mrf.mxu0  ;;  %v2703_v9 = vpop.f32.mrf.mxu1 }
 0xc3e   :  { %v2704_v47 = vadd.f32 %v2703_v9, %v6155_v6 }
 0xc40   :  { %v2710_v55 = vadd.f32 %v2704_v47, %v6932_v53 }
 0xc42   :  { %v4502_v23 = vmul.f32 -1.442695, %v2710_v55  ;;  %v2664_v32 = vpop.f32.mrf.mxu2  ;;  %v2677_v3 = vpop.f32.mrf.mxu3 }
 0xc43   :  { %v2665_v36 = vadd.f32 %v2664_v32, %v6151_v19  ;;  %v2678_v10 = vadd.f32 %v2677_v3, %v6153_v61  ;;  %v2691_v3 = vadd.f32 %v2690_v29, %v6148_v39  ;;  %v6935_v32 = vld [vmem:[#allocation78_spill] sm:$0xff] }
 0xc44   :  { %4845 = vpow2.f32 %v4502_v23 }
 0xc45   :  { %v2707_v1 = vadd.f32 %v2665_v36, %v6933_v8  ;;  %v2708_v15 = vadd.f32 %v2678_v10, %v6934_v62  ;;  %v2692_v2 = vpop.f32.mrf.mxu0  ;;  %v2705_v7 = vpop.f32.mrf.mxu1  ;;  %v2709_v36 = vadd.f32 %v2691_v3, %v6935_v32 }
 0xc47   :  { %v4500_v35 = vmul.f32 -1.442695, %v2707_v1  ;;  %v4501_v60 = vmul.f32 -1.442695, %v2708_v15 }
 0xc49   :  { %4847 = vpow2.f32 %v4500_v35 }
 0xc4a   :  { %v4846_v6 = vpop.eup %4845  ;;  %4849 = vpow2.f32 %v4501_v60  ;;  %v2666_v9 = vpop.f32.mrf.mxu2 }
 0xc4b   :  { %v2679_v55 = vpop.f32.mrf.mxu3  ;;  %v2753_v47 = vadd.f32 1.0, %v4846_v6 }
 0xc4d   :  { %4851 = vrcp.f32 %v2753_v47  ;;  %vm2759_vm9 = vweird.f32 %v2753_v47 }
 0xc4f   :  { %v4848_v53 = vpop.eup %4847 }
 0xc50   :  { %v4850_v52 = vpop.eup %4849  ;;  %v2714_v19 = vadd.f32 1.0, %v4848_v53 }
 0xc51   :  { %v2733_v61 = vadd.f32 1.0, %v4850_v52 }
 0xc52   :  { %4853 = vrcp.f32 %v2714_v19  ;;  %v2726_v7 = vand.u32 2147483648, %v2714_v19  ;;  %v2724_v53 = vand.u32 2147483647, %v2714_v19  ;;  %vm2720_vm2 = vweird.f32 %v2714_v19 }
 0xc53   :  { %4855 = vrcp.f32 %v2733_v61  ;;  %v4852_v23 = vpop.eup %4851  ;;  %v2745_v52 = vand.u32 2147483648, %v2733_v61  ;;  %v2743_v8 = vand.u32 2147483647, %v2733_v61  ;;  %vm2739_vm4 = vweird.f32 %v2733_v61 }
 0xc54   :  { %v2755_v60 = vmul.f32 %v4852_v23, %v2753_v47  ;;  %4857 = vtanh.f32 %v2709_v36  ;;  %v2727_v3 = vor.u32 1.1754944e-38, %v2726_v7  ;;  %vm2725_vm5 = vcmp.eq.f32.partialorder %v2724_v53, 8.507059e+37  ;;  %v6245_v53 = vld [vmem:[#allocation5 + $0x8] sm:$0xff] }
 0xc55   :  { %v2746_v36 = vor.u32 1.1754944e-38, %v2745_v52  ;;  %vm2744_vm7 = vcmp.eq.f32.partialorder %v2743_v8, 8.507059e+37  ;;  %vm2760_vm8 = vweird.f32 %v4852_v23  ;;  %v2765_v7 = vand.u32 2147483648, %v2753_v47  ;;  %v6251_v52 = vld [vmem:[#allocation5] sm:$0xff] }
 0xc56   :  { %v2756_v39 = vsub.f32 1.0, %v2755_v60  ;;  %vm2761_vm10 = vmor %vm2759_vm9, %vm2760_vm8 }
 0xc58   :  { %v4854_v2 = vpop.eup %4853  ;;  %v2757_v12 = vmul.f32 %v4852_v23, %v2756_v39 }
 0xc59   :  { %v4856_v10 = vpop.eup %4855  ;;  %v2716_v35 = vmul.f32 %v4854_v2, %v2714_v19  ;;  %vm2721_vm0 = vweird.f32 %v4854_v2 }
 0xc5a   :  { %v2735_v1 = vmul.f32 %v4856_v10, %v2733_v61  ;;  %vm2740_vm1 = vweird.f32 %v4856_v10  ;;  %vm2722_vm3 = vmor %vm2720_vm2, %vm2721_vm0  ;;  %v2758_v19 = vadd.f32 %v4852_v23, %v2757_v12  ;;  %v2763_v61 = vand.u32 2147483647, %v2753_v47  ;;  %v6227_v12 = vld [vmem:[#allocation5 + $0x20] sm:$0xff]  ;;  %v6233_v47 = vld [vmem:[#allocation5 + $0x18] sm:$0xff] }
 0xc5b   :  { %v2717_v15 = vsub.f32 1.0, %v2716_v35  ;;  %vm2741_vm6 = vmor %vm2739_vm4, %vm2740_vm1  ;;  %v4858_v35 = vpop.eup %4857 }
 0xc5c   :  { %v2736_v6 = vsub.f32 1.0, %v2735_v1  ;;  %vm2764_vm11 = vcmp.eq.f32.partialorder %v2763_v61, 8.507059e+37 }
 0xc5d   :  { %v2718_v9 = vmul.f32 %v4854_v2, %v2717_v15 }
 0xc5e   :  { %v2737_v55 = vmul.f32 %v4856_v10, %v2736_v6 }
 0xc5f   :  { %v2719_v29 = vadd.f32 %v4854_v2, %v2718_v9  ;;  %v2766_v9 = vor.u32 1.1754944e-38, %v2765_v7 }
 0xc60   :  { %v2738_v32 = vadd.f32 %v4856_v10, %v2737_v55 }
 0xc61   :  { %v2723_v62 = vsel %vm2722_vm3, %v4854_v2, %v2719_v29  ;;  %v2762_v2 = vsel %vm2761_vm10, %v4852_v23, %v2758_v19  ;;  %v6239_v23 = vld [vmem:[#allocation5 + $0x10] sm:$0xff] }
 0xc62   :  { %v2728_v1 = vsel %vm2725_vm5, %v2727_v3, %v2723_v62  ;;  %v2742_v15 = vsel %vm2741_vm6, %v4856_v10, %v2738_v32  ;;  %v2767_v8 = vsel %vm2764_vm11, %v2766_v9, %v2762_v2 }
 0xc63   :  { %v2770_v51 = vmul.f32 %v4858_v35, %v2728_v1  ;;  %v2747_v6 = vsel %vm2744_vm7, %v2746_v36, %v2742_v15 }
 0xc64   :  { %v2769_v49 = vmul.f32 %v2747_v6, %v6104_v58  ;;  %v6209_v58 = vld [vmem:[#allocation5 + $0x38] sm:$0xff] }
 0xc66   :  { %v6205_v60 = vadd.f32 %v2770_v51, %v2769_v49  ;;  %v6215_v49 = vld [vmem:[#allocation5 + $0x30] sm:$0xff]  ;;  %v6221_v51 = vld [vmem:[#allocation5 + $0x28] sm:$0xff] }
 0xc68   :  { %4859 = vtanh.f32 %v6205_v60 }
 0xc6e   :  { %v4860_v62 = vpop.eup %4859 }
 0xc6f   :  { %v2773_v32 = vmul.f32 %v4860_v62, %v2767_v8 }
 0xc71   :  { %v2774_v10 = vpack.c.bf16 %v2773_v32, %v2773_v32 }
 0xc73   :  { %2783 = vmatmul.bf16.vlgmr.msrb.gmra.mxu2 %v2774_v10  ;;  %2823 = vmatmul.bf16.vlgmr.msrb.gmra.mxu3 %v2774_v10 }
 0xc74   :  { %2836 = vmatmul.bf16.vlgmr.msra.gmra.mxu0 %v2774_v10  ;;  %2849 = vmatmul.bf16.vlgmr.msra.gmra.mxu1 %v2774_v10 }
 0xc75   :  { %2906 = vmatpush.bf16.msrb.mxu2 %v6855_v50  ;;  %2987 = vmatpush.bf16.msrb.mxu3 %v6209_v58 }
 0xc76   :  { %3027 = vmatpush.bf16.msra.mxu0 %v5708_v4  ;;  %3040 = vmatpush.bf16.msra.mxu1 %v5710_v16 }
 0xc79   :  { %2907 = vmatpush.bf16.msrb.mxu2 %v6856_v14  ;;  %2988 = vmatpush.bf16.msrb.mxu3 %v6215_v49 }
 0xc7a   :  { %3028 = vmatpush.bf16.msra.mxu0 %v5719_v48  ;;  %3041 = vmatpush.bf16.msra.mxu1 %v5721_v57 }
 0xc7d   :  { %2908 = vmatpush.bf16.msrb.mxu2 %v6857_v40  ;;  %2989 = vmatpush.bf16.msrb.mxu3 %v6221_v51 }
 0xc7e   :  { %3029 = vmatpush.bf16.msra.mxu0 %v5729_v25  ;;  %3042 = vmatpush.bf16.msra.mxu1 %v5733_v44 }
 0xc81   :  { %2909 = vmatpush.bf16.msrb.mxu2 %v6858_v38  ;;  %2990 = vmatpush.bf16.msrb.mxu3 %v6227_v12 }
 0xc82   :  { %3030 = vmatpush.bf16.msra.mxu0 %v5741_v5  ;;  %3043 = vmatpush.bf16.msra.mxu1 %v5745_v37 }
 0xc83   :  { %2862 = vmatmul.bf16.vlgmr.msra.gmra.mxu2 %v2774_v10 }
 0xc85   :  { %2910 = vmatpush.bf16.msrb.mxu2 %v6859_v59  ;;  %2991 = vmatpush.bf16.msrb.mxu3 %v6233_v47 }
 0xc86   :  { %3031 = vmatpush.bf16.msra.mxu0 %v5753_v63  ;;  %3044 = vmatpush.bf16.msra.mxu1 %v5757_v42 }
 0xc89   :  { %2911 = vmatpush.bf16.msrb.mxu2 %v5872_v21  ;;  %2992 = vmatpush.bf16.msrb.mxu3 %v6239_v23 }
 0xc8a   :  { %3032 = vmatpush.bf16.msra.mxu0 %v5765_v26  ;;  %3045 = vmatpush.bf16.msra.mxu1 %v5769_v27 }
 0xc8d   :  { %2912 = vmatpush.bf16.msrb.mxu2 %v5884_v33  ;;  %2993 = vmatpush.bf16.msrb.mxu3 %v6245_v53 }
 0xc8e   :  { %3033 = vmatpush.bf16.msra.mxu0 %v5777_v13  ;;  %3046 = vmatpush.bf16.msra.mxu1 %v5783_v30 }
 0xc91   :  { %2913 = vmatpush.bf16.msrb.mxu2 %v5896_v56  ;;  %2994 = vmatpush.bf16.msrb.mxu3 %v6251_v52 }
 0xc92   :  { %3034 = vmatpush.bf16.msra.mxu0 %v5791_v31  ;;  %3047 = vmatpush.bf16.msra.mxu1 %v5795_v22 }
 0xc95   :  { %3053 = vmatpush.bf16.msra.mxu2 %v5712_v20 }
 0xc99   :  { %3054 = vmatpush.bf16.msra.mxu2 %v5724_v34 }
 0xc9d   :  { %3055 = vmatpush.bf16.msra.mxu2 %v5735_v18 }
 0xca1   :  { %3056 = vmatpush.bf16.msra.mxu2 %v5747_v45 }
 0xca5   :  { %3057 = vmatpush.bf16.msra.mxu2 %v5759_v43 }
 0xca9   :  { %3058 = vmatpush.bf16.msra.mxu2 %v5771_v28 }
 0xcad   :  { %3059 = vmatpush.bf16.msra.mxu2 %v6895_v17 }
 0xcb1   :  { %3060 = vmatpush.bf16.msra.mxu2 %v6896_v46 }
 0xcf1   :  { %v6264_v55 = vpop.f32.mrf.mxu0  ;;  %v6266_v39 = vpop.f32.mrf.mxu1 }
 0xcf6   :  { %v2784_v29 = vpop.f32.mrf.mxu2  ;;  %v6268_v3 = vpop.f32.mrf.mxu3 }
 0xcf7   :  { %v2785_v36 = vadd.f32 %v2784_v29, %v6897_v41 }
 0xcf9   :  { %v2839_v35 = vpop.f32.mrf.mxu0  ;;  %v2852_v1 = vpop.f32.mrf.mxu1  ;;  %v2788_v15 = vsel %vm2363_vm12, %v2785_v36, -inf }
 0xcfa   :  { %2789 = vmax.xlane.f32.xlu0 %v2788_v15 }
 0xcfe   :  { %v2786_v6 = vpop.f32.mrf.mxu2  ;;  %v2826_v19 = vpop.f32.mrf.mxu3 }
 0xd06   :  { %v6272_v7 = vpop.f32.mrf.mxu2 }
 0xd0e   :  { %v2865_v61 = vpop.f32.mrf.mxu2 }
 0xd6d   :  { %v2790_v2 = vpop.xlane.xlu0 %2789 }
 0xd6e   :  { %vm2791_vm13 = vcmp.eq.f32.partialorder %v2785_v36, %v2790_v2 }
 0xd6f   :  { %v2792_v9 = vsel %vm2791_vm13, %v6898_v54, 128 }
 0xd70   :  { %v2793_v62 = vsel %vm2363_vm12, %v2792_v9, 2147483647 }
 0xd71   :  { %v2795_v8 = vshra.s32 %v2793_v62, 16  ;;  %v2794_v41 = vand.u32 65535, %v2793_v62 }
 0xd73   :  { %v2797_v32 = vcvt.s32.f32 %v2795_v8  ;;  %v2796_v29 = vcvt.s32.f32 %v2794_v41  ;;  %v6937_v8 = vld [vmem:[#allocation47_spill] sm:$0xff]  ;;  %v6939_v41 = vld [vmem:[#allocation37_spill] sm:$0xff] }
 0xd75   :  { %2798 = vmin.xlane.f32.xlu1 %v2797_v32 }
 0xde8   :  { %v2799_v10 = vpop.xlane.xlu1 %2798 }
 0xde9   :  { %vm2800_vm14 = vcmp.eq.f32.partialorder %v2797_v32, %v2799_v10  ;;  %v2805_v1 = vcvt.f32.s32 %v2799_v10  ;;  %v6938_v32 = vld [vmem:[#allocation48_spill] sm:$0xff]  ;;  %v6941_v10 = vld [vmem:[#allocation51_spill] sm:$0xff] }
 0xdea   :  { %v2801_v35 = vsel %vm2800_vm14, %v2796_v29, inf  ;;  %v6942_v29 = vld [vmem:[#allocation52_spill] sm:$0xff] }
 0xdeb   :  { %2802 = vmin.xlane.f32.xlu2 %v2801_v35  ;;  %v2806_v6 = vshll.u32 %v2805_v1, 16  ;;  %v6943_v35 = vld [vmem:[#allocation38_spill] sm:$0xff] }
 0xdec   :  { %v6944_v1 = vld [vmem:[#allocation54_spill] sm:$0xff] }
 0xe5e   :  { %v2803_v15 = vpop.xlane.xlu2 %2802 }
 0xe5f   :  { %v2804_v19 = vcvt.f32.s32 %v2803_v15  ;;  %v6945_v15 = vld [vmem:[#allocation55_spill] sm:$0xff] }
 0xe61   :  { %v2807_v61 = vadd.s32 %v2806_v6, %v2804_v19  ;;  %v6946_v6 = vld [vmem:[#allocation56_spill] sm:$0xff]  ;;  %v6947_v19 = vld [vmem:[#allocation39_spill] sm:$0xff] }
 0xe63   :  { %4662 = vpush %v2807_v61  ;;  %v2812_v36 = vcvt.s32.f32 %v2807_v61  ;;  %v6948_v61 = vld [vmem:[#allocation58_spill] sm:$0xff] }
 0xe65   :  { %v6278_v2 = vsel %vm2811_vm15, %v2812_v36, %v6162_v0  ;;  %v6940_v0 = vld [vmem:[#allocation50_spill] sm:$0xff]  ;;  %v6949_v36 = vld [vmem:[#allocation59_spill] sm:$0xff] }
 0xe66   :  { %6936 = vst [vmem:[#allocation57_spill] sm:$0xff] %v6278_v2 }
 0xe94   :  { %s4663_s21 = spop %4662 }
 0xe95   :  { %s2809_s2 = scalar_lea.vmem [#allocation4], %s4663_s21 }
 0xe96   :  { %v2810_v9 = vld [vmem:[%s2809_s2] sm:$0x1] }
 0xe97   :  { %v2814_v62 = vpack.c.bf16 %v2810_v9, %v2810_v9  ;;  %v6950_v9 = vld [vmem:[#allocation60_spill] sm:$0xff] }
 0xe99   :  { %2875 = vmatmul.bf16.vlgmr.msra.gmra.mxu3 %v2814_v62  ;;  %2888 = vmatmul.bf16.vlgmr.msrb.gmra.mxu0 %v2814_v62 }
 0xe9a   :  { %2901 = vmatmul.bf16.vlgmr.msrb.gmra.mxu1 %v2814_v62  ;;  %2914 = vmatmul.bf16.vlgmr.msrb.gmra.mxu2 %v2814_v62  ;;  %v6951_v62 = vld [vmem:[#allocation40_spill] sm:$0xff] }
 0xe9b   :  { %3066 = vmatpush.bf16.msra.mxu3 %v6900_v24  ;;  %3079 = vmatpush.bf16.msrb.mxu0 %v6901_v11  ;;  %v6969_v11 = vld [vmem:[#allocation77_spill] sm:$0xff] }
 0xe9c   :  { %3092 = vmatpush.bf16.msrb.mxu1 %v6937_v8  ;;  %3105 = vmatpush.bf16.msrb.mxu2 %v6938_v32 }
 0xe9f   :  { %3067 = vmatpush.bf16.msra.mxu3 %v6939_v41  ;;  %3080 = vmatpush.bf16.msrb.mxu0 %v6940_v0  ;;  %v6967_v0 = vld [vmem:[#allocation76_spill] sm:$0xff] }
 0xea0   :  { %3093 = vmatpush.bf16.msrb.mxu1 %v6941_v10  ;;  %3106 = vmatpush.bf16.msrb.mxu2 %v6942_v29  ;;  %v6952_v10 = vld [vmem:[#allocation62_spill] sm:$0xff]  ;;  %v6953_v29 = vld [vmem:[#allocation63_spill] sm:$0xff] }
 0xea3   :  { %3068 = vmatpush.bf16.msra.mxu3 %v6943_v35  ;;  %3081 = vmatpush.bf16.msrb.mxu0 %v6944_v1  ;;  %v6954_v35 = vld [vmem:[#allocation64_spill] sm:$0xff]  ;;  %v6955_v1 = vld [vmem:[#allocation41_spill] sm:$0xff] }
 0xea4   :  { %3094 = vmatpush.bf16.msrb.mxu1 %v6945_v15  ;;  %3107 = vmatpush.bf16.msrb.mxu2 %v6946_v6  ;;  %v6956_v15 = vld [vmem:[#allocation66_spill] sm:$0xff]  ;;  %v6957_v6 = vld [vmem:[#allocation67_spill] sm:$0xff] }
 0xea7   :  { %3069 = vmatpush.bf16.msra.mxu3 %v6947_v19  ;;  %3082 = vmatpush.bf16.msrb.mxu0 %v6948_v61  ;;  %v6958_v19 = vld [vmem:[#allocation68_spill] sm:$0xff]  ;;  %v6959_v61 = vld [vmem:[#allocation43_spill] sm:$0xff] }
 0xea8   :  { %3095 = vmatpush.bf16.msrb.mxu1 %v6949_v36  ;;  %3108 = vmatpush.bf16.msrb.mxu2 %v6950_v9  ;;  %v6960_v36 = vld [vmem:[#allocation69_spill] sm:$0xff]  ;;  %v6961_v9 = vld [vmem:[#allocation70_spill] sm:$0xff] }
 0xeab   :  { %3070 = vmatpush.bf16.msra.mxu3 %v6951_v62  ;;  %3083 = vmatpush.bf16.msrb.mxu0 %v6952_v10  ;;  %v6962_v62 = vld [vmem:[#allocation71_spill] sm:$0xff]  ;;  %v6963_v10 = vld [vmem:[#allocation45_spill] sm:$0xff] }
 0xeac   :  { %3096 = vmatpush.bf16.msrb.mxu1 %v6953_v29  ;;  %3109 = vmatpush.bf16.msrb.mxu2 %v6954_v35  ;;  %v6964_v29 = vld [vmem:[#allocation72_spill] sm:$0xff]  ;;  %v6965_v35 = vld [vmem:[#allocation73_spill] sm:$0xff] }
 0xeaf   :  { %3071 = vmatpush.bf16.msra.mxu3 %v6955_v1  ;;  %3084 = vmatpush.bf16.msrb.mxu0 %v6956_v15  ;;  %v6966_v1 = vld [vmem:[#allocation74_spill] sm:$0xff] }
 0xeb0   :  { %3097 = vmatpush.bf16.msrb.mxu1 %v6957_v6  ;;  %3110 = vmatpush.bf16.msrb.mxu2 %v6958_v19 }
 0xeb3   :  { %3072 = vmatpush.bf16.msra.mxu3 %v6959_v61  ;;  %3085 = vmatpush.bf16.msrb.mxu0 %v6960_v36 }
 0xeb4   :  { %3098 = vmatpush.bf16.msrb.mxu1 %v6961_v9  ;;  %3111 = vmatpush.bf16.msrb.mxu2 %v6962_v62 }
 0xeb7   :  { %3073 = vmatpush.bf16.msra.mxu3 %v6963_v10  ;;  %3086 = vmatpush.bf16.msrb.mxu0 %v6964_v29  ;;  %v6968_v29 = vld [vmem:[#allocation75_spill] sm:$0xff] }
 0xeb8   :  { %3099 = vmatpush.bf16.msrb.mxu1 %v6965_v35  ;;  %3112 = vmatpush.bf16.msrb.mxu2 %v6966_v1 }
 0xf16   :  { %v2889_v15 = vpop.f32.mrf.mxu0 }
 0xf17   :  { %v2890_v6 = vadd.f32 %v2889_v15, %v6264_v55  ;;  %v2902_v19 = vpop.f32.mrf.mxu1 }
 0xf19   :  { %v2920_v61 = vadd.f32 %v2890_v6, %v6967_v0 }
 0xf1b   :  { %v4504_v41 = vmul.f32 -1.442695, %v2920_v61 }
 0xf1c   :  { %v2876_v36 = vpop.f32.mrf.mxu3 }
 0xf1d   :  { %4861 = vpow2.f32 %v4504_v41  ;;  %v2877_v9 = vadd.f32 %v2876_v36, %v6268_v3  ;;  %v2915_v62 = vpop.f32.mrf.mxu2 }
 0xf1e   :  { %v2916_v10 = vadd.f32 %v2915_v62, %v6272_v7  ;;  %v2891_v32 = vpop.f32.mrf.mxu0 }
 0xf1f   :  { %v2919_v8 = vadd.f32 %v2877_v9, %v6968_v29  ;;  %v2904_v35 = vpop.f32.mrf.mxu1  ;;  %v6970_v9 = vld [vmem:[#allocation78_spill] sm:$0xff] }
 0xf20   :  { %v2922_v1 = vadd.f32 %v2916_v10, %v6969_v11  ;;  %v2903_v35 = vadd.f32 %v2902_v19, %v6266_v39 }
 0xf21   :  { %v4503_v24 = vmul.f32 -1.442695, %v2919_v8 }
 0xf22   :  { %v4505_v2 = vmul.f32 -1.442695, %v2922_v1 }
 0xf23   :  { %v4862_v55 = vpop.eup %4861  ;;  %4863 = vpow2.f32 %v4503_v24  ;;  %v2921_v24 = vadd.f32 %v2903_v35, %v6970_v9 }
 0xf24   :  { %v2945_v15 = vadd.f32 1.0, %v4862_v55  ;;  %4865 = vpow2.f32 %v4505_v2  ;;  %v2878_v6 = vpop.f32.mrf.mxu3 }
 0xf25   :  { %v2917_v61 = vpop.f32.mrf.mxu2 }
 0xf26   :  { %4867 = vrcp.f32 %v2945_v15  ;;  %v2957_v6 = vand.u32 2147483648, %v2945_v15  ;;  %vm2951_vm1 = vweird.f32 %v2945_v15 }
 0xf28   :  { %v2958_v19 = vor.u32 1.1754944e-38, %v2957_v6 }
 0xf29   :  { %v4864_v41 = vpop.eup %4863 }
 0xf2a   :  { %v4866_v3 = vpop.eup %4865  ;;  %v2926_v36 = vadd.f32 1.0, %v4864_v41  ;;  %v2955_v41 = vand.u32 2147483647, %v2945_v15 }
 0xf2b   :  { %v2965_v0 = vadd.f32 1.0, %v4866_v3 }
 0xf2c   :  { %v4868_v7 = vpop.eup %4867  ;;  %4869 = vrcp.f32 %v2926_v36  ;;  %v2938_v11 = vand.u32 2147483648, %v2926_v36  ;;  %v2936_v39 = vand.u32 2147483647, %v2926_v36  ;;  %vm2956_vm4 = vcmp.eq.f32.partialorder %v2955_v41, 8.507059e+37  ;;  %v6371_v41 = vld [vmem:[%s6701_s10] sm:$0x1] }
 0xf2d   :  { %v2947_v32 = vmul.f32 %v4868_v7, %v2945_v15  ;;  %4871 = vrcp.f32 %v2965_v0  ;;  %vm2952_vm0 = vweird.f32 %v4868_v7  ;;  %vm2932_vm5 = vweird.f32 %v2926_v36  ;;  %6973 = vst [vmem:[#allocation61_spill] sm:$0xff] %v6371_v41 }
 0xf2e   :  { %vm2953_vm2 = vmor %vm2951_vm1, %vm2952_vm0  ;;  %4873 = vtanh.f32 %v2921_v24  ;;  %vm2937_vm7 = vcmp.eq.f32.partialorder %v2936_v39, 8.507059e+37  ;;  %v2977_v6 = vand.u32 2147483648, %v2965_v0  ;;  %vm2971_vm9 = vweird.f32 %v2965_v0 }
 0xf2f   :  { %v2948_v10 = vsub.f32 1.0, %v2947_v32 }
 0xf31   :  { %v2949_v8 = vmul.f32 %v4868_v7, %v2948_v10 }
 0xf32   :  { %v4870_v1 = vpop.eup %4869 }
 0xf33   :  { %v4872_v62 = vpop.eup %4871  ;;  %v2950_v2 = vadd.f32 %v4868_v7, %v2949_v8  ;;  %v2928_v55 = vmul.f32 %v4870_v1, %v2926_v36  ;;  %vm2933_vm3 = vweird.f32 %v4870_v1  ;;  %v2939_v8 = vor.u32 1.1754944e-38, %v2938_v11 }
 0xf34   :  { %v2967_v61 = vmul.f32 %v4872_v62, %v2965_v0  ;;  %vm2934_vm6 = vmor %vm2932_vm5, %vm2933_vm3  ;;  %v4874_v46 = vpop.eup %4873  ;;  %vm2972_vm8 = vweird.f32 %v4872_v62  ;;  %v2978_v11 = vor.u32 1.1754944e-38, %v2977_v6 }
 0xf35   :  { %v2929_v3 = vsub.f32 1.0, %v2928_v55  ;;  %v2954_v29 = vsel %vm2953_vm2, %v4868_v7, %v2950_v2  ;;  %vm2973_vm10 = vmor %vm2971_vm9, %vm2972_vm8 }
 0xf36   :  { %v2968_v32 = vsub.f32 1.0, %v2967_v61  ;;  %v2959_v10 = vsel %vm2956_vm4, %v2958_v19, %v2954_v29 }
 0xf37   :  { %v2930_v54 = vmul.f32 %v4870_v1, %v2929_v3  ;;  %v2981_v24 = vmul.f32 %v2959_v10, %v6205_v60 }
 0xf38   :  { %v2969_v55 = vmul.f32 %v4872_v62, %v2968_v32 }
 0xf39   :  { %v2931_v35 = vadd.f32 %v4870_v1, %v2930_v54  ;;  %v2975_v54 = vand.u32 2147483647, %v2965_v0 }
 0xf3a   :  { %v2970_v2 = vadd.f32 %v4872_v62, %v2969_v55 }
 0xf3b   :  { %v2935_v9 = vsel %vm2934_vm6, %v4870_v1, %v2931_v35  ;;  %vm2976_vm11 = vcmp.eq.f32.partialorder %v2975_v54, 8.507059e+37 }
 0xf3c   :  { %v2940_v15 = vsel %vm2937_vm7, %v2939_v8, %v2935_v9  ;;  %v2974_v29 = vsel %vm2973_vm10, %v4872_v62, %v2970_v2  ;;  %v6974_v2 = vld [vmem:[#allocation49_spill] sm:$0xff] }
 0xf3d   :  { %v2982_v17 = vmul.f32 %v4874_v46, %v2940_v15  ;;  %v2979_v1 = vsel %vm2976_vm11, %v2978_v11, %v2974_v29  ;;  %v6972_v46 = vld [vmem:[#allocation44_spill] sm:$0xff]  ;;  %vm3023_vm15 = vcmp.eq.s32.totalorder %v6974_v2, 3 }
 0xf3f   :  { %v6321_v7 = vadd.f32 %v2982_v17, %v2981_v24  ;;  %v6971_v17 = vld [vmem:[#allocation42_spill] sm:$0xff] }
 0xf41   :  { %4875 = vtanh.f32 %v6321_v7 }
 0xf47   :  { %v4876_v36 = vpop.eup %4875 }
 0xf48   :  { %v2985_v9 = vmul.f32 %v4876_v36, %v2979_v1 }
 0xf4a   :  { %v2986_v61 = vpack.c.bf16 %v2985_v9, %v2985_v9 }
 0xf4c   :  { %2995 = vmatmul.bf16.vlgmr.msrb.gmra.mxu3 %v2986_v61  ;;  %3035 = vmatmul.bf16.vlgmr.msra.gmra.mxu0 %v2986_v61 }
 0xf4d   :  { %3048 = vmatmul.bf16.vlgmr.msra.gmra.mxu1 %v2986_v61  ;;  %3061 = vmatmul.bf16.vlgmr.msra.gmra.mxu2 %v2986_v61 }
 0xf4e   :  { %3118 = vmatpush.bf16.msrb.mxu3 %v6855_v50  ;;  %3199 = vmatpush.bf16.msra.mxu0 %v6209_v58 }
 0xf4f   :  { %3239 = vmatpush.bf16.msra.mxu1 %v5708_v4  ;;  %3252 = vmatpush.bf16.msra.mxu2 %v5710_v16 }
 0xf52   :  { %3119 = vmatpush.bf16.msrb.mxu3 %v6856_v14  ;;  %3200 = vmatpush.bf16.msra.mxu0 %v6215_v49 }
 0xf53   :  { %3240 = vmatpush.bf16.msra.mxu1 %v5719_v48  ;;  %3253 = vmatpush.bf16.msra.mxu2 %v5721_v57 }
 0xf56   :  { %3120 = vmatpush.bf16.msrb.mxu3 %v6857_v40  ;;  %3201 = vmatpush.bf16.msra.mxu0 %v6221_v51 }
 0xf57   :  { %3241 = vmatpush.bf16.msra.mxu1 %v5729_v25  ;;  %3254 = vmatpush.bf16.msra.mxu2 %v5733_v44 }
 0xf5a   :  { %3121 = vmatpush.bf16.msrb.mxu3 %v6858_v38  ;;  %3202 = vmatpush.bf16.msra.mxu0 %v6227_v12 }
 0xf5b   :  { %3242 = vmatpush.bf16.msra.mxu1 %v5741_v5  ;;  %3255 = vmatpush.bf16.msra.mxu2 %v5745_v37 }
 0xf5c   :  { %3074 = vmatmul.bf16.vlgmr.msra.gmra.mxu3 %v2986_v61 }
 0xf5e   :  { %3122 = vmatpush.bf16.msrb.mxu3 %v6859_v59  ;;  %3203 = vmatpush.bf16.msra.mxu0 %v6233_v47 }
 0xf5f   :  { %3243 = vmatpush.bf16.msra.mxu1 %v5753_v63  ;;  %3256 = vmatpush.bf16.msra.mxu2 %v5757_v42 }
 0xf62   :  { %3123 = vmatpush.bf16.msrb.mxu3 %v5872_v21  ;;  %3204 = vmatpush.bf16.msra.mxu0 %v6239_v23 }
 0xf63   :  { %3244 = vmatpush.bf16.msra.mxu1 %v5765_v26  ;;  %3257 = vmatpush.bf16.msra.mxu2 %v5769_v27 }
 0xf66   :  { %3124 = vmatpush.bf16.msrb.mxu3 %v5884_v33  ;;  %3205 = vmatpush.bf16.msra.mxu0 %v6245_v53 }
 0xf67   :  { %3245 = vmatpush.bf16.msra.mxu1 %v5777_v13  ;;  %3258 = vmatpush.bf16.msra.mxu2 %v5783_v30 }
 0xf6a   :  { %3125 = vmatpush.bf16.msrb.mxu3 %v5896_v56  ;;  %3206 = vmatpush.bf16.msra.mxu0 %v6251_v52 }
 0xf6b   :  { %3246 = vmatpush.bf16.msra.mxu1 %v5791_v31  ;;  %3259 = vmatpush.bf16.msra.mxu2 %v5795_v22 }
 0xf6e   :  { %3265 = vmatpush.bf16.msra.mxu3 %v5712_v20 }
 0xf72   :  { %3266 = vmatpush.bf16.msra.mxu3 %v5724_v34 }
 0xf76   :  { %3267 = vmatpush.bf16.msra.mxu3 %v5735_v18 }
 0xf7a   :  { %3268 = vmatpush.bf16.msra.mxu3 %v5747_v45 }
 0xf7e   :  { %3269 = vmatpush.bf16.msra.mxu3 %v5759_v43 }
 0xf82   :  { %3270 = vmatpush.bf16.msra.mxu3 %v5771_v28 }
 0xf86   :  { %3271 = vmatpush.bf16.msra.mxu3 %v6971_v17 }
 0xf8a   :  { %3272 = vmatpush.bf16.msra.mxu3 %v6972_v46 }
 0xfc9   :  { %v6364_v60 = vpop.f32.mrf.mxu0 }
 0xfca   :  { %v6366_v0 = vpop.f32.mrf.mxu1 }
 0xfcf   :  { %v2996_v62 = vpop.f32.mrf.mxu3 }
 0xfd0   :  { %v2997_v3 = vadd.f32 %v6371_v41, %v2996_v62  ;;  %v6374_v39 = vpop.f32.mrf.mxu2 }
 0xfd1   :  { %v3038_v19 = vpop.f32.mrf.mxu0 }
 0xfd2   :  { %v3051_v32 = vpop.f32.mrf.mxu1  ;;  %v3000_v35 = vsel %vm2363_vm12, %v2997_v3, -inf }
 0xfd3   :  { %3001 = vmax.xlane.f32.xlu0 %v3000_v35 }
 0xfd7   :  { %v2998_v10 = vpop.f32.mrf.mxu3 }
 0xfd8   :  { %v3064_v8 = vpop.f32.mrf.mxu2 }
 0xfd9   :  { %v6975_v8 = vld [vmem:[#allocation57_spill] sm:$0xff] }
 0xfdf   :  { %v6377_v15 = vpop.f32.mrf.mxu3 }
 0xfe7   :  { %v3077_v55 = vpop.f32.mrf.mxu3 }
0x1046   :  { %v3002_v24 = vpop.xlane.xlu0 %3001 }
0x1047   :  { %vm3003_vm13 = vcmp.eq.f32.partialorder %v2997_v3, %v3002_v24 }
0x1048   :  { %v3004_v6 = vsel %vm3003_vm13, %v6974_v2, 128 }
0x1049   :  { %v3005_v54 = vsel %vm2363_vm12, %v3004_v6, 2147483647 }
0x104a   :  { %v3007_v29 = vshra.s32 %v3005_v54, 16  ;;  %v3006_v36 = vand.u32 65535, %v3005_v54  ;;  %v6977_v54 = vld [vmem:[#allocation36_spill] sm:$0xff] }
0x104c   :  { %v3009_v11 = vcvt.s32.f32 %v3007_v29  ;;  %v3008_v9 = vcvt.s32.f32 %v3006_v36  ;;  %v6978_v29 = vld [vmem:[#allocation46_spill] sm:$0xff]  ;;  %v6980_v36 = vld [vmem:[#allocation48_spill] sm:$0xff] }
0x104e   :  { %3010 = vmin.xlane.f32.xlu1 %v3009_v11 }
0x10c1   :  { %v3011_v1 = vpop.xlane.xlu1 %3010 }
0x10c2   :  { %vm3012_vm14 = vcmp.eq.f32.partialorder %v3009_v11, %v3011_v1  ;;  %v3017_v62 = vcvt.f32.s32 %v3011_v1  ;;  %v6979_v11 = vld [vmem:[#allocation47_spill] sm:$0xff]  ;;  %v6981_v1 = vld [vmem:[#allocation37_spill] sm:$0xff] }
0x10c3   :  { %v3013_v61 = vsel %vm3012_vm14, %v3008_v9, inf  ;;  %v6982_v9 = vld [vmem:[#allocation50_spill] sm:$0xff] }
0x10c4   :  { %3014 = vmin.xlane.f32.xlu2 %v3013_v61  ;;  %v3018_v32 = vshll.u32 %v3017_v62, 16  ;;  %v6983_v61 = vld [vmem:[#allocation51_spill] sm:$0xff]  ;;  %v6984_v62 = vld [vmem:[#allocation52_spill] sm:$0xff] }
0x1137   :  { %v3015_v19 = vpop.xlane.xlu2 %3014 }
0x1138   :  { %v3016_v35 = vcvt.f32.s32 %v3015_v19  ;;  %v6985_v19 = vld [vmem:[#allocation38_spill] sm:$0xff] }
0x113a   :  { %v3019_v10 = vadd.s32 %v3018_v32, %v3016_v35  ;;  %v6986_v32 = vld [vmem:[#allocation54_spill] sm:$0xff]  ;;  %v6987_v35 = vld [vmem:[#allocation55_spill] sm:$0xff] }
0x113c   :  { %4664 = vpush %v3019_v10  ;;  %v3024_v3 = vcvt.s32.f32 %v3019_v10  ;;  %v6988_v10 = vld [vmem:[#allocation56_spill] sm:$0xff] }
0x113e   :  { %v6383_v55 = vsel %vm3023_vm15, %v3024_v3, %v6975_v8  ;;  %v6989_v3 = vld [vmem:[#allocation39_spill] sm:$0xff]  ;;  %v6990_v8 = vld [vmem:[#allocation58_spill] sm:$0xff] }
0x113f   :  { %6976 = vst [vmem:[#allocation65_spill] sm:$0xff] %v6383_v55 }
0x116d   :  { %s4665_s23 = spop %4664 }
0x116e   :  { %s3021_s24 = scalar_lea.vmem [#allocation4], %s4665_s23 }
0x116f   :  { %v3022_v24 = vld [vmem:[%s3021_s24] sm:$0x1] }
0x1170   :  { %v3026_v6 = vpack.c.bf16 %v3022_v24, %v3022_v24  ;;  %v6991_v24 = vld [vmem:[#allocation59_spill] sm:$0xff] }
0x1172   :  { %3087 = vmatmul.bf16.vlgmr.msrb.gmra.mxu0 %v3026_v6  ;;  %3100 = vmatmul.bf16.vlgmr.msrb.gmra.mxu1 %v3026_v6 }
0x1173   :  { %3113 = vmatmul.bf16.vlgmr.msrb.gmra.mxu2 %v3026_v6  ;;  %3126 = vmatmul.bf16.vlgmr.msrb.gmra.mxu3 %v3026_v6  ;;  %v6992_v6 = vld [vmem:[#allocation60_spill] sm:$0xff] }
0x1174   :  { %3278 = vmatpush.bf16.msrb.mxu0 %v6977_v54  ;;  %3291 = vmatpush.bf16.msrb.mxu1 %v6978_v29  ;;  %v7011_v54 = vld [vmem:[#allocation77_spill] sm:$0xff] }
0x1175   :  { %3304 = vmatpush.bf16.msrb.mxu2 %v6979_v11  ;;  %3317 = vmatpush.bf16.msrb.mxu3 %v6980_v36  ;;  %v7010_v36 = vld [vmem:[#allocation76_spill] sm:$0xff] }
0x1178   :  { %3279 = vmatpush.bf16.msrb.mxu0 %v6981_v1  ;;  %3292 = vmatpush.bf16.msrb.mxu1 %v6982_v9  ;;  %v6993_v9 = vld [vmem:[#allocation40_spill] sm:$0xff]  ;;  %v7009_v1 = vld [vmem:[#allocation75_spill] sm:$0xff] }
0x1179   :  { %3305 = vmatpush.bf16.msrb.mxu2 %v6983_v61  ;;  %3318 = vmatpush.bf16.msrb.mxu3 %v6984_v62  ;;  %v6994_v61 = vld [vmem:[#allocation62_spill] sm:$0xff]  ;;  %v6995_v62 = vld [vmem:[#allocation63_spill] sm:$0xff] }
0x117c   :  { %3280 = vmatpush.bf16.msrb.mxu0 %v6985_v19  ;;  %3293 = vmatpush.bf16.msrb.mxu1 %v6986_v32  ;;  %v6996_v19 = vld [vmem:[#allocation64_spill] sm:$0xff]  ;;  %v6997_v32 = vld [vmem:[#allocation41_spill] sm:$0xff] }
0x117d   :  { %3306 = vmatpush.bf16.msrb.mxu2 %v6987_v35  ;;  %3319 = vmatpush.bf16.msrb.mxu3 %v6988_v10  ;;  %v6998_v35 = vld [vmem:[#allocation66_spill] sm:$0xff]  ;;  %v6999_v10 = vld [vmem:[#allocation67_spill] sm:$0xff] }
0x1180   :  { %3281 = vmatpush.bf16.msrb.mxu0 %v6989_v3  ;;  %3294 = vmatpush.bf16.msrb.mxu1 %v6990_v8  ;;  %v7000_v3 = vld [vmem:[#allocation68_spill] sm:$0xff]  ;;  %v7001_v8 = vld [vmem:[#allocation43_spill] sm:$0xff] }
0x1181   :  { %3307 = vmatpush.bf16.msrb.mxu2 %v6991_v24  ;;  %3320 = vmatpush.bf16.msrb.mxu3 %v6992_v6  ;;  %v7002_v24 = vld [vmem:[#allocation69_spill] sm:$0xff]  ;;  %v7003_v6 = vld [vmem:[#allocation70_spill] sm:$0xff] }
0x1184   :  { %3282 = vmatpush.bf16.msrb.mxu0 %v6993_v9  ;;  %3295 = vmatpush.bf16.msrb.mxu1 %v6994_v61  ;;  %v7004_v9 = vld [vmem:[#allocation71_spill] sm:$0xff]  ;;  %v7005_v61 = vld [vmem:[#allocation45_spill] sm:$0xff] }
0x1185   :  { %3308 = vmatpush.bf16.msrb.mxu2 %v6995_v62  ;;  %3321 = vmatpush.bf16.msrb.mxu3 %v6996_v19  ;;  %v7006_v62 = vld [vmem:[#allocation72_spill] sm:$0xff]  ;;  %v7007_v19 = vld [vmem:[#allocation73_spill] sm:$0xff] }
0x1188   :  { %3283 = vmatpush.bf16.msrb.mxu0 %v6997_v32  ;;  %3296 = vmatpush.bf16.msrb.mxu1 %v6998_v35  ;;  %v7008_v32 = vld [vmem:[#allocation74_spill] sm:$0xff] }
0x1189   :  { %3309 = vmatpush.bf16.msrb.mxu2 %v6999_v10  ;;  %3322 = vmatpush.bf16.msrb.mxu3 %v7000_v3 }
0x118c   :  { %3284 = vmatpush.bf16.msrb.mxu0 %v7001_v8  ;;  %3297 = vmatpush.bf16.msrb.mxu1 %v7002_v24 }
0x118d   :  { %3310 = vmatpush.bf16.msrb.mxu2 %v7003_v6  ;;  %3323 = vmatpush.bf16.msrb.mxu3 %v7004_v9 }
0x1190   :  { %3285 = vmatpush.bf16.msrb.mxu0 %v7005_v61  ;;  %3298 = vmatpush.bf16.msrb.mxu1 %v7006_v62 }
0x1191   :  { %3311 = vmatpush.bf16.msrb.mxu2 %v7007_v19  ;;  %3324 = vmatpush.bf16.msrb.mxu3 %v7008_v32 }
0x11ef   :  { %v3088_v35 = vpop.f32.mrf.mxu0  ;;  %v3101_v10 = vpop.f32.mrf.mxu1 }
0x11f0   :  { %v3089_v3 = vadd.f32 %v3088_v35, %v6364_v60  ;;  %v3102_v8 = vadd.f32 %v3101_v10, %v6366_v0 }
0x11f2   :  { %v3131_v24 = vadd.f32 %v3089_v3, %v7009_v1  ;;  %v3132_v6 = vadd.f32 %v3102_v8, %v7010_v36 }
0x11f4   :  { %v4506_v11 = vmul.f32 -1.442695, %v3131_v24  ;;  %v4507_v9 = vmul.f32 -1.442695, %v3132_v6 }
0x11f6   :  { %4877 = vpow2.f32 %v4506_v11  ;;  %v3114_v61 = vpop.f32.mrf.mxu2  ;;  %v3127_v29 = vpop.f32.mrf.mxu3 }
0x11f7   :  { %4879 = vpow2.f32 %v4507_v9  ;;  %v3128_v19 = vadd.f32 %v3127_v29, %v6377_v15  ;;  %v3090_v62 = vpop.f32.mrf.mxu0  ;;  %v3103_v32 = vpop.f32.mrf.mxu1  ;;  %v3115_v11 = vadd.f32 %v3114_v61, %v6374_v39  ;;  %v7012_v15 = vld [vmem:[#allocation78_spill] sm:$0xff] }
0x11f9   :  { %v3134_v55 = vadd.f32 %v3128_v19, %v7011_v54  ;;  %v3133_v29 = vadd.f32 %v3115_v11, %v7012_v15 }
0x11fb   :  { %v4508_v2 = vmul.f32 -1.442695, %v3134_v55 }
0x11fc   :  { %v4878_v60 = vpop.eup %4877 }
0x11fd   :  { %v4880_v35 = vpop.eup %4879  ;;  %v3138_v0 = vadd.f32 1.0, %v4878_v60  ;;  %4881 = vpow2.f32 %v4508_v2 }
0x11fe   :  { %v3157_v10 = vadd.f32 1.0, %v4880_v35  ;;  %v3116_v3 = vpop.f32.mrf.mxu2  ;;  %v3129_v8 = vpop.f32.mrf.mxu3 }
0x11ff   :  { %4883 = vrcp.f32 %v3138_v0  ;;  %v3150_v60 = vand.u32 2147483648, %v3138_v0  ;;  %v3148_v3 = vand.u32 2147483647, %v3138_v0  ;;  %vm3144_vm2 = vweird.f32 %v3138_v0 }
0x1200   :  { %4885 = vrcp.f32 %v3157_v10  ;;  %v3169_v2 = vand.u32 2147483648, %v3157_v10  ;;  %v3167_v39 = vand.u32 2147483647, %v3157_v10  ;;  %vm3163_vm3 = vweird.f32 %v3157_v10 }
0x1201   :  { %v3151_v11 = vor.u32 1.1754944e-38, %v3150_v60  ;;  %vm3149_vm6 = vcmp.eq.f32.partialorder %v3148_v3, 8.507059e+37 }
0x1202   :  { %vm3168_vm7 = vcmp.eq.f32.partialorder %v3167_v39, 8.507059e+37 }
0x1203   :  { %v4882_v24 = vpop.eup %4881 }
0x1204   :  { %v3177_v9 = vadd.f32 1.0, %v4882_v24 }
0x1205   :  { %v4884_v6 = vpop.eup %4883 }
0x1206   :  { %v4886_v62 = vpop.eup %4885  ;;  %v3140_v32 = vmul.f32 %v4884_v6, %v3138_v0  ;;  %4887 = vrcp.f32 %v3177_v9  ;;  %vm3145_vm0 = vweird.f32 %v4884_v6  ;;  %v3189_v60 = vand.u32 2147483648, %v3177_v9 }
0x1207   :  { %v3159_v55 = vmul.f32 %v4886_v62, %v3157_v10  ;;  %4889 = vtanh.f32 %v3133_v29  ;;  %vm3164_vm1 = vweird.f32 %v4886_v62  ;;  %vm3146_vm4 = vmor %vm3144_vm2, %vm3145_vm0  ;;  %vm3183_vm9 = vweird.f32 %v3177_v9 }
0x1208   :  { %v3141_v19 = vsub.f32 1.0, %v3140_v32  ;;  %vm3165_vm5 = vmor %vm3163_vm3, %vm3164_vm1  ;;  %v3170_v32 = vor.u32 1.1754944e-38, %v3169_v2  ;;  %v3190_v3 = vor.u32 1.1754944e-38, %v3189_v60 }
0x1209   :  { %v3160_v36 = vsub.f32 1.0, %v3159_v55 }
0x120a   :  { %v3142_v35 = vmul.f32 %v4884_v6, %v3141_v19 }
0x120b   :  { %v3161_v8 = vmul.f32 %v4886_v62, %v3160_v36 }
0x120c   :  { %v4888_v61 = vpop.eup %4887  ;;  %v3143_v24 = vadd.f32 %v4884_v6, %v3142_v35 }
0x120d   :  { %v3162_v15 = vadd.f32 %v4886_v62, %v3161_v8  ;;  %v3179_v54 = vmul.f32 %v4888_v61, %v3177_v9  ;;  %v4890_v29 = vpop.eup %4889  ;;  %vm3184_vm8 = vweird.f32 %v4888_v61 }
0x120e   :  { %v3147_v55 = vsel %vm3146_vm4, %v4884_v6, %v3143_v24  ;;  %v3187_v6 = vand.u32 2147483647, %v3177_v9  ;;  %vm3185_vm10 = vmor %vm3183_vm9, %vm3184_vm8  ;;  %v7016_v24 = vld [vmem:[#allocation49_spill] sm:$0xff] }
0x120f   :  { %v3152_v1 = vsel %vm3149_vm6, %v3151_v11, %v3147_v55  ;;  %v3166_v19 = vsel %vm3165_vm5, %v4886_v62, %v3162_v15  ;;  %v3180_v41 = vsub.f32 1.0, %v3179_v54  ;;  %vm3235_vm15 = vcmp.eq.s32.totalorder %v7016_v24, 4 }
0x1210   :  { %v3171_v36 = vsel %vm3168_vm7, %v3170_v32, %v3166_v19  ;;  %v3194_v46 = vmul.f32 %v4890_v29, %v3152_v1  ;;  %vm3188_vm11 = vcmp.eq.f32.partialorder %v3187_v6, 8.507059e+37 }
0x1211   :  { %v3193_v17 = vmul.f32 %v3171_v36, %v6321_v7  ;;  %v3181_v35 = vmul.f32 %v4888_v61, %v3180_v41 }
0x1213   :  { %v6426_v0 = vadd.f32 %v3194_v46, %v3193_v17  ;;  %v3182_v10 = vadd.f32 %v4888_v61, %v3181_v35 }
0x1215   :  { %4891 = vtanh.f32 %v6426_v0  ;;  %v3186_v2 = vsel %vm3185_vm10, %v4888_v61, %v3182_v10 }
0x1216   :  { %v3191_v54 = vsel %vm3188_vm11, %v3190_v3, %v3186_v2 }
0x121b   :  { %v4892_v15 = vpop.eup %4891 }
0x121c   :  { %v3197_v62 = vmul.f32 %v4892_v15, %v3191_v54 }
0x121e   :  { %v3198_v1 = vpack.c.bf16 %v3197_v62, %v3197_v62  ;;  %v7017_v62 = vld [vmem:[#allocation65_spill] sm:$0xff] }
0x1220   :  { %3207 = vmatmul.bf16.vlgmr.msra.gmra.mxu0 %v3198_v1  ;;  %3247 = vmatmul.bf16.vlgmr.msra.gmra.mxu1 %v3198_v1 }
0x1221   :  { %3260 = vmatmul.bf16.vlgmr.msra.gmra.mxu2 %v3198_v1  ;;  %3273 = vmatmul.bf16.vlgmr.msra.gmra.mxu3 %v3198_v1 }
0x1222   :  { %3330 = vmatpush.bf16.msra.mxu0 %v6855_v50  ;;  %3411 = vmatpush.bf16.msra.mxu1 %v6209_v58  ;;  %v7013_v58 = vld [vmem:[#allocation42_spill] sm:$0xff] }
0x1223   :  { %3451 = vmatpush.bf16.msra.mxu2 %v5708_v4  ;;  %3464 = vmatpush.bf16.msra.mxu3 %v5710_v16 }
0x1226   :  { %3331 = vmatpush.bf16.msra.mxu0 %v6856_v14  ;;  %3412 = vmatpush.bf16.msra.mxu1 %v6215_v49  ;;  %v7014_v49 = vld [vmem:[#allocation44_spill] sm:$0xff] }
0x1227   :  { %3452 = vmatpush.bf16.msra.mxu2 %v5719_v48  ;;  %3465 = vmatpush.bf16.msra.mxu3 %v5721_v57 }
0x122a   :  { %3332 = vmatpush.bf16.msra.mxu0 %v6857_v40  ;;  %3413 = vmatpush.bf16.msra.mxu1 %v6221_v51 }
0x122b   :  { %3453 = vmatpush.bf16.msra.mxu2 %v5729_v25  ;;  %3466 = vmatpush.bf16.msra.mxu3 %v5733_v44 }
0x122e   :  { %3333 = vmatpush.bf16.msra.mxu0 %v6858_v38  ;;  %3414 = vmatpush.bf16.msra.mxu1 %v6227_v12 }
0x122f   :  { %3454 = vmatpush.bf16.msra.mxu2 %v5741_v5  ;;  %3467 = vmatpush.bf16.msra.mxu3 %v5745_v37 }
0x1230   :  { %3286 = vmatmul.bf16.vlgmr.msrb.gmra.mxu0 %v3198_v1 }
0x1232   :  { %3334 = vmatpush.bf16.msra.mxu0 %v6859_v59  ;;  %3415 = vmatpush.bf16.msra.mxu1 %v6233_v47  ;;  %v7015_v47 = vld [vmem:[#allocation61_spill] sm:$0xff] }
0x1233   :  { %3455 = vmatpush.bf16.msra.mxu2 %v5753_v63  ;;  %3468 = vmatpush.bf16.msra.mxu3 %v5757_v42 }
0x1236   :  { %3335 = vmatpush.bf16.msra.mxu0 %v5872_v21  ;;  %3416 = vmatpush.bf16.msra.mxu1 %v6239_v23 }
0x1237   :  { %3456 = vmatpush.bf16.msra.mxu2 %v5765_v26  ;;  %3469 = vmatpush.bf16.msra.mxu3 %v5769_v27 }
0x123a   :  { %3336 = vmatpush.bf16.msra.mxu0 %v5884_v33  ;;  %3417 = vmatpush.bf16.msra.mxu1 %v6245_v53 }
0x123b   :  { %3457 = vmatpush.bf16.msra.mxu2 %v5777_v13  ;;  %3470 = vmatpush.bf16.msra.mxu3 %v5783_v30 }
0x123e   :  { %3337 = vmatpush.bf16.msra.mxu0 %v5896_v56  ;;  %3418 = vmatpush.bf16.msra.mxu1 %v6251_v52 }
0x123f   :  { %3458 = vmatpush.bf16.msra.mxu2 %v5791_v31  ;;  %3471 = vmatpush.bf16.msra.mxu3 %v5795_v22 }
0x1242   :  { %3477 = vmatpush.bf16.msrb.mxu0 %v5712_v20 }
0x1246   :  { %3478 = vmatpush.bf16.msrb.mxu0 %v5724_v34 }
0x124a   :  { %3479 = vmatpush.bf16.msrb.mxu0 %v5735_v18 }
0x124e   :  { %3480 = vmatpush.bf16.msrb.mxu0 %v5747_v45 }
0x1252   :  { %3481 = vmatpush.bf16.msrb.mxu0 %v5759_v43 }
0x1256   :  { %3482 = vmatpush.bf16.msrb.mxu0 %v5771_v28 }
0x125a   :  { %3483 = vmatpush.bf16.msrb.mxu0 %v7013_v58 }
0x125e   :  { %3484 = vmatpush.bf16.msrb.mxu0 %v7014_v49 }
0x129d   :  { %v3208_v51 = vpop.f32.mrf.mxu0  ;;  %v6469_v12 = vpop.f32.mrf.mxu1 }
0x129e   :  { %v3209_v23 = vadd.f32 %v7015_v47, %v3208_v51 }
0x12a0   :  { %v3212_v53 = vsel %vm2363_vm12, %v3209_v23, -inf }
0x12a1   :  { %3213 = vmax.xlane.f32.xlu0 %v3212_v53  ;;  %v7018_v53 = vld [vmem:[#allocation36_spill] sm:$0xff] }
0x12a4   :  { %v6473_v52 = vpop.f32.mrf.mxu2  ;;  %v6475_v7 = vpop.f32.mrf.mxu3 }
0x12a5   :  { %v3210_v17 = vpop.f32.mrf.mxu0  ;;  %v3250_v46 = vpop.f32.mrf.mxu1 }
0x12a6   :  { %v7019_v17 = vld [vmem:[#allocation46_spill] sm:$0xff]  ;;  %v7020_v46 = vld [vmem:[#allocation47_spill] sm:$0xff] }
0x12ac   :  { %v3263_v41 = vpop.f32.mrf.mxu2  ;;  %v3276_v9 = vpop.f32.mrf.mxu3 }
0x12ad   :  { %v6477_v8 = vpop.f32.mrf.mxu0  ;;  %v7021_v41 = vld [vmem:[#allocation48_spill] sm:$0xff]  ;;  %v7022_v9 = vld [vmem:[#allocation37_spill] sm:$0xff] }
0x12b5   :  { %v3289_v39 = vpop.f32.mrf.mxu0 }
0x12b6   :  { %v7023_v39 = vld [vmem:[#allocation50_spill] sm:$0xff] }
0x1314   :  { %v3214_v61 = vpop.xlane.xlu0 %3213 }
0x1315   :  { %vm3215_vm13 = vcmp.eq.f32.partialorder %v3209_v23, %v3214_v61  ;;  %v7024_v61 = vld [vmem:[#allocation51_spill] sm:$0xff] }
0x1316   :  { %v3216_v11 = vsel %vm3215_vm13, %v7016_v24, 128 }
0x1317   :  { %v3217_v32 = vsel %vm2363_vm12, %v3216_v11, 2147483647  ;;  %v7025_v11 = vld [vmem:[#allocation52_spill] sm:$0xff] }
0x1318   :  { %v3219_v55 = vshra.s32 %v3217_v32, 16  ;;  %v3218_v19 = vand.u32 65535, %v3217_v32  ;;  %v7026_v32 = vld [vmem:[#allocation38_spill] sm:$0xff] }
0x131a   :  { %v3221_v29 = vcvt.s32.f32 %v3219_v55  ;;  %v3220_v35 = vcvt.s32.f32 %v3218_v19  ;;  %v7027_v55 = vld [vmem:[#allocation54_spill] sm:$0xff]  ;;  %v7029_v19 = vld [vmem:[#allocation56_spill] sm:$0xff] }
0x131c   :  { %3222 = vmin.xlane.f32.xlu1 %v3221_v29 }
0x138f   :  { %v3223_v36 = vpop.xlane.xlu1 %3222 }
0x1390   :  { %vm3224_vm14 = vcmp.eq.f32.partialorder %v3221_v29, %v3223_v36  ;;  %v3229_v60 = vcvt.f32.s32 %v3223_v36  ;;  %v7028_v29 = vld [vmem:[#allocation55_spill] sm:$0xff] }
0x1391   :  { %v3225_v10 = vsel %vm3224_vm14, %v3220_v35, inf  ;;  %v7030_v36 = vld [vmem:[#allocation39_spill] sm:$0xff]  ;;  %v7031_v35 = vld [vmem:[#allocation58_spill] sm:$0xff] }
0x1392   :  { %3226 = vmin.xlane.f32.xlu2 %v3225_v10  ;;  %v3230_v2 = vshll.u32 %v3229_v60, 16  ;;  %v7032_v10 = vld [vmem:[#allocation59_spill] sm:$0xff]  ;;  %v7033_v60 = vld [vmem:[#allocation60_spill] sm:$0xff] }
0x1405   :  { %v3227_v6 = vpop.xlane.xlu2 %3226 }
0x1406   :  { %v3228_v3 = vcvt.f32.s32 %v3227_v6  ;;  %v7034_v6 = vld [vmem:[#allocation40_spill] sm:$0xff] }
0x1408   :  { %v3231_v15 = vadd.s32 %v3230_v2, %v3228_v3  ;;  %v7035_v2 = vld [vmem:[#allocation62_spill] sm:$0xff]  ;;  %v7036_v3 = vld [vmem:[#allocation63_spill] sm:$0xff] }
0x140a   :  { %4666 = vpush %v3231_v15  ;;  %v3236_v54 = vcvt.s32.f32 %v3231_v15  ;;  %v7037_v15 = vld [vmem:[#allocation64_spill] sm:$0xff] }
0x140c   :  { %v6483_v1 = vsel %vm3235_vm15, %v3236_v54, %v7017_v62  ;;  %v7038_v54 = vld [vmem:[#allocation41_spill] sm:$0xff]  ;;  %v7039_v62 = vld [vmem:[#allocation66_spill] sm:$0xff]  ;;  %vm3447_vm15 = vcmp.eq.s32.totalorder %v7016_v24, 5 }
0x143b   :  { %s4667_s25 = spop %4666 }
0x143c   :  { %s3233_s26 = scalar_lea.vmem [#allocation4], %s4667_s25 }
0x143d   :  { %v3234_v51 = vld [vmem:[%s3233_s26] sm:$0x1] }
0x143e   :  { %v3238_v23 = vpack.c.bf16 %v3234_v51, %v3234_v51  ;;  %v7040_v51 = vld [vmem:[#allocation67_spill] sm:$0xff] }
0x1440   :  { %3299 = vmatmul.bf16.vlgmr.msrb.gmra.mxu1 %v3238_v23  ;;  %3312 = vmatmul.bf16.vlgmr.msrb.gmra.mxu2 %v3238_v23 }
0x1441   :  { %3325 = vmatmul.bf16.vlgmr.msrb.gmra.mxu3 %v3238_v23  ;;  %3338 = vmatmul.bf16.vlgmr.msra.gmra.mxu0 %v3238_v23  ;;  %v7041_v23 = vld [vmem:[#allocation68_spill] sm:$0xff] }
0x1442   :  { %3490 = vmatpush.bf16.msrb.mxu1 %v7018_v53  ;;  %3503 = vmatpush.bf16.msrb.mxu2 %v7019_v17 }
0x1443   :  { %3516 = vmatpush.bf16.msrb.mxu3 %v7020_v46  ;;  %3529 = vmatpush.bf16.msra.mxu0 %v7021_v41 }
0x1446   :  { %3491 = vmatpush.bf16.msrb.mxu1 %v7022_v9  ;;  %3504 = vmatpush.bf16.msrb.mxu2 %v7023_v39 }
0x1447   :  { %3517 = vmatpush.bf16.msrb.mxu3 %v7024_v61  ;;  %3530 = vmatpush.bf16.msra.mxu0 %v7025_v11 }
0x144a   :  { %3492 = vmatpush.bf16.msrb.mxu1 %v7026_v32  ;;  %3505 = vmatpush.bf16.msrb.mxu2 %v7027_v55 }
0x144b   :  { %3518 = vmatpush.bf16.msrb.mxu3 %v7028_v29  ;;  %3531 = vmatpush.bf16.msra.mxu0 %v7029_v19  ;;  %v7051_v19 = vld [vmem:[#allocation77_spill] sm:$0xff] }
0x144e   :  { %3493 = vmatpush.bf16.msrb.mxu1 %v7030_v36  ;;  %3506 = vmatpush.bf16.msrb.mxu2 %v7031_v35  ;;  %v7042_v35 = vld [vmem:[#allocation43_spill] sm:$0xff] }
0x144f   :  { %3519 = vmatpush.bf16.msrb.mxu3 %v7032_v10  ;;  %3532 = vmatpush.bf16.msra.mxu0 %v7033_v60  ;;  %v7043_v10 = vld [vmem:[#allocation69_spill] sm:$0xff]  ;;  %v7044_v60 = vld [vmem:[#allocation70_spill] sm:$0xff]  ;;  %v7050_v36 = vld [vmem:[#allocation75_spill] sm:$0xff] }
0x1452   :  { %3494 = vmatpush.bf16.msrb.mxu1 %v7034_v6  ;;  %3507 = vmatpush.bf16.msrb.mxu2 %v7035_v2  ;;  %v7045_v6 = vld [vmem:[#allocation71_spill] sm:$0xff]  ;;  %v7046_v2 = vld [vmem:[#allocation45_spill] sm:$0xff] }
0x1453   :  { %3520 = vmatpush.bf16.msrb.mxu3 %v7036_v3  ;;  %3533 = vmatpush.bf16.msra.mxu0 %v7037_v15  ;;  %v7047_v3 = vld [vmem:[#allocation72_spill] sm:$0xff]  ;;  %v7048_v15 = vld [vmem:[#allocation73_spill] sm:$0xff] }
0x1456   :  { %3495 = vmatpush.bf16.msrb.mxu1 %v7038_v54  ;;  %3508 = vmatpush.bf16.msrb.mxu2 %v7039_v62  ;;  %v7049_v54 = vld [vmem:[#allocation74_spill] sm:$0xff] }
0x1457   :  { %3521 = vmatpush.bf16.msrb.mxu3 %v7040_v51  ;;  %3534 = vmatpush.bf16.msra.mxu0 %v7041_v23 }
0x145a   :  { %3496 = vmatpush.bf16.msrb.mxu1 %v7042_v35  ;;  %3509 = vmatpush.bf16.msrb.mxu2 %v7043_v10 }
0x145b   :  { %3522 = vmatpush.bf16.msrb.mxu3 %v7044_v60  ;;  %3535 = vmatpush.bf16.msra.mxu0 %v7045_v6 }
0x145e   :  { %3497 = vmatpush.bf16.msrb.mxu1 %v7046_v2  ;;  %3510 = vmatpush.bf16.msrb.mxu2 %v7047_v3 }
0x145f   :  { %3523 = vmatpush.bf16.msrb.mxu3 %v7048_v15  ;;  %3536 = vmatpush.bf16.msra.mxu0 %v7049_v54  ;;  %v7052_v54 = vld [vmem:[#allocation76_spill] sm:$0xff] }
0x14bd   :  { %v3300_v62 = vpop.f32.mrf.mxu1 }
0x14be   :  { %v3301_v51 = vadd.f32 %v3300_v62, %v6469_v12  ;;  %v3339_v23 = vpop.f32.mrf.mxu0 }
0x14bf   :  { %v3340_v35 = vadd.f32 %v3339_v23, %v6477_v8 }
0x14c0   :  { %v3343_v10 = vadd.f32 %v3301_v51, %v7050_v36 }
0x14c1   :  { %v3346_v60 = vadd.f32 %v3340_v35, %v7051_v19 }
0x14c2   :  { %v4509_v29 = vmul.f32 -1.442695, %v3343_v10 }
0x14c3   :  { %v4511_v6 = vmul.f32 -1.442695, %v3346_v60  ;;  %v3313_v55 = vpop.f32.mrf.mxu2 }
0x14c4   :  { %4893 = vpow2.f32 %v4509_v29  ;;  %v3314_v3 = vadd.f32 %v3313_v55, %v6473_v52  ;;  %v3326_v2 = vpop.f32.mrf.mxu3 }
0x14c5   :  { %4895 = vpow2.f32 %v4511_v6  ;;  %v3302_v15 = vpop.f32.mrf.mxu1  ;;  %v3327_v55 = vadd.f32 %v3326_v2, %v6475_v7 }
0x14c6   :  { %v3344_v32 = vadd.f32 %v3314_v3, %v7052_v54  ;;  %v3341_v11 = vpop.f32.mrf.mxu0  ;;  %v7053_v15 = vld [vmem:[#allocation78_spill] sm:$0xff] }
0x14c8   :  { %v4510_v12 = vmul.f32 -1.442695, %v3344_v32 }
0x14ca   :  { %v4894_v62 = vpop.eup %4893  ;;  %4897 = vpow2.f32 %v4510_v12  ;;  %v3345_v12 = vadd.f32 %v3327_v55, %v7053_v15 }
0x14cb   :  { %v4896_v8 = vpop.eup %4895  ;;  %v3350_v23 = vadd.f32 1.0, %v4894_v62  ;;  %v3315_v51 = vpop.f32.mrf.mxu2 }
0x14cc   :  { %v3328_v36 = vpop.f32.mrf.mxu3  ;;  %v3389_v35 = vadd.f32 1.0, %v4896_v8 }
0x14cd   :  { %4899 = vrcp.f32 %v3350_v23  ;;  %v3362_v51 = vand.u32 2147483648, %v3350_v23  ;;  %vm3356_vm1 = vweird.f32 %v3350_v23 }
0x14ce   :  { %4901 = vrcp.f32 %v3389_v35  ;;  %vm3395_vm9 = vweird.f32 %v3389_v35 }
0x14d0   :  { %v4898_v10 = vpop.eup %4897 }
0x14d1   :  { %v3369_v60 = vadd.f32 1.0, %v4898_v10  ;;  %v3360_v10 = vand.u32 2147483647, %v3350_v23 }
0x14d3   :  { %v4900_v29 = vpop.eup %4899  ;;  %4903 = vrcp.f32 %v3369_v60  ;;  %v3381_v19 = vand.u32 2147483648, %v3369_v60  ;;  %v3379_v2 = vand.u32 2147483647, %v3369_v60  ;;  %vm3375_vm4 = vweird.f32 %v3369_v60 }
0x14d4   :  { %v3352_v52 = vmul.f32 %v4900_v29, %v3350_v23  ;;  %v4902_v3 = vpop.eup %4901  ;;  %vm3357_vm0 = vweird.f32 %v4900_v29  ;;  %4905 = vtanh.f32 %v3345_v12  ;;  %vm3361_vm5 = vcmp.eq.f32.partialorder %v3360_v10, 8.507059e+37 }
0x14d5   :  { %v3391_v36 = vmul.f32 %v4902_v3, %v3389_v35  ;;  %vm3358_vm2 = vmor %vm3356_vm1, %vm3357_vm0  ;;  %vm3380_vm7 = vcmp.eq.f32.partialorder %v3379_v2, 8.507059e+37  ;;  %vm3396_vm8 = vweird.f32 %v4902_v3 }
0x14d6   :  { %v3353_v6 = vsub.f32 1.0, %v3352_v52  ;;  %vm3397_vm10 = vmor %vm3395_vm9, %vm3396_vm8 }
0x14d7   :  { %v3392_v52 = vsub.f32 1.0, %v3391_v36 }
0x14d8   :  { %v3354_v11 = vmul.f32 %v4900_v29, %v3353_v6  ;;  %v3363_v6 = vor.u32 1.1754944e-38, %v3362_v51 }
0x14d9   :  { %v4904_v32 = vpop.eup %4903  ;;  %v3393_v9 = vmul.f32 %v4902_v3, %v3392_v52 }
0x14da   :  { %v3371_v54 = vmul.f32 %v4904_v32, %v3369_v60  ;;  %v3355_v62 = vadd.f32 %v4900_v29, %v3354_v11  ;;  %vm3376_vm3 = vweird.f32 %v4904_v32  ;;  %v3382_v11 = vor.u32 1.1754944e-38, %v3381_v19 }
0x14db   :  { %vm3377_vm6 = vmor %vm3375_vm4, %vm3376_vm3 }
0x14dc   :  { %v3372_v8 = vsub.f32 1.0, %v3371_v54  ;;  %v3359_v7 = vsel %vm3358_vm2, %v4900_v29, %v3355_v62  ;;  %v4906_v54 = vpop.eup %4905  ;;  %v3394_v29 = vadd.f32 %v4902_v3, %v3393_v9  ;;  %v3401_v62 = vand.u32 2147483648, %v3389_v35  ;;  %v6542_v9 = vld [vmem:[#allocation5 + $0x28] sm:$0xff] }
0x14dd   :  { %v3364_v15 = vsel %vm3361_vm5, %v3363_v6, %v3359_v7 }
0x14de   :  { %v3373_v61 = vmul.f32 %v4904_v32, %v3372_v8  ;;  %v3406_v12 = vmul.f32 %v4906_v54, %v3364_v15  ;;  %v3398_v19 = vsel %vm3397_vm10, %v4902_v3, %v3394_v29  ;;  %v3402_v60 = vor.u32 1.1754944e-38, %v3401_v62  ;;  %v7054_v54 = vld [vmem:[#allocation48_spill] sm:$0xff]  ;;  %v7059_v62 = vld [vmem:[#allocation38_spill] sm:$0xff] }
0x14df   :  { %v7058_v29 = vld [vmem:[#allocation52_spill] sm:$0xff] }
0x14e0   :  { %v3374_v55 = vadd.f32 %v4904_v32, %v3373_v61  ;;  %v3399_v61 = vand.u32 2147483647, %v3389_v35 }
0x14e2   :  { %v3378_v39 = vsel %vm3377_vm6, %v4904_v32, %v3374_v55  ;;  %vm3400_vm11 = vcmp.eq.f32.partialorder %v3399_v61, 8.507059e+37  ;;  %v7060_v61 = vld [vmem:[#allocation54_spill] sm:$0xff] }
0x14e3   :  { %v3383_v23 = vsel %vm3380_vm7, %v3382_v11, %v3378_v39  ;;  %v3403_v36 = vsel %vm3400_vm11, %v3402_v60, %v3398_v19  ;;  %v7061_v19 = vld [vmem:[#allocation55_spill] sm:$0xff] }
0x14e4   :  { %v3405_v41 = vmul.f32 %v3383_v23, %v6426_v0  ;;  %v6530_v0 = vld [vmem:[#allocation5 + $0x38] sm:$0xff]  ;;  %v7055_v23 = vld [vmem:[#allocation37_spill] sm:$0xff]  ;;  %v7065_v60 = vld [vmem:[#allocation59_spill] sm:$0xff] }
0x14e6   :  { %v6526_v8 = vadd.f32 %v3406_v12, %v3405_v41  ;;  %v6536_v41 = vld [vmem:[#allocation5 + $0x30] sm:$0xff] }
0x14e7   :  { %v7057_v12 = vld [vmem:[#allocation51_spill] sm:$0xff] }
0x14e8   :  { %4907 = vtanh.f32 %v6526_v8 }
0x14ee   :  { %v4908_v32 = vpop.eup %4907 }
0x14ef   :  { %v3409_v51 = vmul.f32 %v4908_v32, %v3403_v36  ;;  %v7066_v32 = vld [vmem:[#allocation60_spill] sm:$0xff] }
0x14f0   :  { %v7067_v36 = vld [vmem:[#allocation40_spill] sm:$0xff] }
0x14f1   :  { %v3410_v39 = vpack.c.bf16 %v3409_v51, %v3409_v51  ;;  %v7068_v51 = vld [vmem:[#allocation62_spill] sm:$0xff] }
0x14f3   :  { %3419 = vmatmul.bf16.vlgmr.msra.gmra.mxu1 %v3410_v39  ;;  %3459 = vmatmul.bf16.vlgmr.msra.gmra.mxu2 %v3410_v39 }
0x14f4   :  { %3472 = vmatmul.bf16.vlgmr.msra.gmra.mxu3 %v3410_v39  ;;  %3485 = vmatmul.bf16.vlgmr.msrb.gmra.mxu0 %v3410_v39 }
0x14f5   :  { %3542 = vmatpush.bf16.msra.mxu1 %v6855_v50  ;;  %3623 = vmatpush.bf16.msra.mxu2 %v6530_v0 }
0x14f6   :  { %3663 = vmatpush.bf16.msra.mxu3 %v5708_v4  ;;  %3676 = vmatpush.bf16.msrb.mxu0 %v5710_v16  ;;  %v6548_v4 = vld [vmem:[#allocation5 + $0x20] sm:$0xff]  ;;  %v6554_v16 = vld [vmem:[#allocation5 + $0x18] sm:$0xff] }
0x14f9   :  { %3543 = vmatpush.bf16.msra.mxu1 %v6856_v14  ;;  %3624 = vmatpush.bf16.msra.mxu2 %v6536_v41 }
0x14fa   :  { %3664 = vmatpush.bf16.msra.mxu3 %v5719_v48  ;;  %3677 = vmatpush.bf16.msrb.mxu0 %v5721_v57  ;;  %v6560_v48 = vld [vmem:[#allocation5 + $0x10] sm:$0xff]  ;;  %v6566_v57 = vld [vmem:[#allocation5 + $0x8] sm:$0xff] }
0x14fd   :  { %3544 = vmatpush.bf16.msra.mxu1 %v6857_v40  ;;  %3625 = vmatpush.bf16.msra.mxu2 %v6542_v9 }
0x14fe   :  { %3665 = vmatpush.bf16.msra.mxu3 %v5729_v25  ;;  %3678 = vmatpush.bf16.msrb.mxu0 %v5733_v44  ;;  %v6572_v25 = vld [vmem:[#allocation5] sm:$0xff] }
0x1501   :  { %3545 = vmatpush.bf16.msra.mxu1 %v6858_v38  ;;  %3626 = vmatpush.bf16.msra.mxu2 %v6548_v4 }
0x1502   :  { %3666 = vmatpush.bf16.msra.mxu3 %v5741_v5  ;;  %3679 = vmatpush.bf16.msrb.mxu0 %v5745_v37 }
0x1503   :  { %3498 = vmatmul.bf16.vlgmr.msrb.gmra.mxu1 %v3410_v39  ;;  %v7069_v39 = vld [vmem:[#allocation63_spill] sm:$0xff] }
0x1505   :  { %3546 = vmatpush.bf16.msra.mxu1 %v6859_v59  ;;  %3627 = vmatpush.bf16.msra.mxu2 %v6554_v16 }
0x1506   :  { %3667 = vmatpush.bf16.msra.mxu3 %v5753_v63  ;;  %3680 = vmatpush.bf16.msrb.mxu0 %v5757_v42 }
0x1509   :  { %3547 = vmatpush.bf16.msra.mxu1 %v5872_v21  ;;  %3628 = vmatpush.bf16.msra.mxu2 %v6560_v48 }
0x150a   :  { %3668 = vmatpush.bf16.msra.mxu3 %v5765_v26  ;;  %3681 = vmatpush.bf16.msrb.mxu0 %v5769_v27 }
0x150d   :  { %3548 = vmatpush.bf16.msra.mxu1 %v5884_v33  ;;  %3629 = vmatpush.bf16.msra.mxu2 %v6566_v57 }
0x150e   :  { %3669 = vmatpush.bf16.msra.mxu3 %v5777_v13  ;;  %3682 = vmatpush.bf16.msrb.mxu0 %v5783_v30 }
0x1511   :  { %3549 = vmatpush.bf16.msra.mxu1 %v5896_v56  ;;  %3630 = vmatpush.bf16.msra.mxu2 %v6572_v25 }
0x1512   :  { %3670 = vmatpush.bf16.msra.mxu3 %v5791_v31  ;;  %3683 = vmatpush.bf16.msrb.mxu0 %v5795_v22 }
0x1515   :  { %3689 = vmatpush.bf16.msrb.mxu1 %v5712_v20 }
0x1519   :  { %3690 = vmatpush.bf16.msrb.mxu1 %v5724_v34 }
0x151d   :  { %3691 = vmatpush.bf16.msrb.mxu1 %v5735_v18 }
0x1521   :  { %3692 = vmatpush.bf16.msrb.mxu1 %v5747_v45 }
0x1525   :  { %3693 = vmatpush.bf16.msrb.mxu1 %v5759_v43 }
0x1529   :  { %3694 = vmatpush.bf16.msrb.mxu1 %v5771_v28 }
0x152d   :  { %3695 = vmatpush.bf16.msrb.mxu1 %v7013_v58 }
0x1531   :  { %3696 = vmatpush.bf16.msrb.mxu1 %v7014_v49 }
0x1570   :  { %v3420_v44 = vpop.f32.mrf.mxu1 }
0x1571   :  { %v3421_v20 = vadd.f32 %v7015_v47, %v3420_v44  ;;  %v6586_v5 = vpop.f32.mrf.mxu0  ;;  %v7070_v44 = vld [vmem:[#allocation64_spill] sm:$0xff] }
0x1573   :  { %v3424_v37 = vsel %vm2363_vm12, %v3421_v20, -inf }
0x1574   :  { %3425 = vmax.xlane.f32.xlu0 %v3424_v37  ;;  %v7072_v37 = vld [vmem:[#allocation66_spill] sm:$0xff] }
0x1576   :  { %v6589_v34 = vpop.f32.mrf.mxu2 }
0x1577   :  { %v6591_v18 = vpop.f32.mrf.mxu3 }
0x1578   :  { %v3422_v45 = vpop.f32.mrf.mxu1 }
0x1579   :  { %v3488_v63 = vpop.f32.mrf.mxu0  ;;  %v7073_v45 = vld [vmem:[#allocation67_spill] sm:$0xff] }
0x157a   :  { %v7074_v63 = vld [vmem:[#allocation68_spill] sm:$0xff] }
0x157e   :  { %v3462_v42 = vpop.f32.mrf.mxu2 }
0x157f   :  { %v3475_v43 = vpop.f32.mrf.mxu3  ;;  %v7075_v42 = vld [vmem:[#allocation43_spill] sm:$0xff] }
0x1580   :  { %v6593_v26 = vpop.f32.mrf.mxu1  ;;  %v7076_v43 = vld [vmem:[#allocation69_spill] sm:$0xff] }
0x1588   :  { %v3501_v27 = vpop.f32.mrf.mxu1 }
0x1589   :  { %v7077_v27 = vld [vmem:[#allocation70_spill] sm:$0xff] }
0x15e7   :  { %v3426_v28 = vpop.xlane.xlu0 %3425 }
0x15e8   :  { %vm3427_vm13 = vcmp.eq.f32.partialorder %v3421_v20, %v3426_v28  ;;  %v7071_v20 = vld [vmem:[#allocation41_spill] sm:$0xff]  ;;  %v7078_v28 = vld [vmem:[#allocation71_spill] sm:$0xff] }
0x15e9   :  { %v3428_v13 = vsel %vm3427_vm13, %v7016_v24, 128 }
0x15ea   :  { %v3429_v30 = vsel %vm2363_vm12, %v3428_v13, 2147483647  ;;  %v7079_v13 = vld [vmem:[#allocation45_spill] sm:$0xff] }
0x15eb   :  { %v3431_v31 = vshra.s32 %v3429_v30, 16  ;;  %v3430_v58 = vand.u32 65535, %v3429_v30  ;;  %v7080_v30 = vld [vmem:[#allocation72_spill] sm:$0xff] }
0x15ed   :  { %v3433_v22 = vcvt.s32.f32 %v3431_v31  ;;  %v3432_v47 = vcvt.s32.f32 %v3430_v58  ;;  %v7081_v31 = vld [vmem:[#allocation73_spill] sm:$0xff] }
0x15ef   :  { %3434 = vmin.xlane.f32.xlu1 %v3433_v22 }
0x1662   :  { %v3435_v49 = vpop.xlane.xlu1 %3434 }
0x1663   :  { %vm3436_vm14 = vcmp.eq.f32.partialorder %v3433_v22, %v3435_v49  ;;  %v3441_v3 = vcvt.f32.s32 %v3435_v49  ;;  %v7082_v22 = vld [vmem:[#allocation74_spill] sm:$0xff] }
0x1664   :  { %v3437_v35 = vsel %vm3436_vm14, %v3432_v47, inf }
0x1665   :  { %3438 = vmin.xlane.f32.xlu2 %v3437_v35  ;;  %v3442_v10 = vshll.u32 %v3441_v3, 16  ;;  %v7083_v35 = vld [vmem:[#allocation77_spill] sm:$0xff] }
0x16d8   :  { %v3439_v15 = vpop.xlane.xlu2 %3438 }
0x16d9   :  { %v3440_v7 = vcvt.f32.s32 %v3439_v15 }
0x16db   :  { %v3443_v2 = vadd.s32 %v3442_v10, %v3440_v7 }
0x16dd   :  { %4668 = vpush %v3443_v2  ;;  %v3448_v52 = vcvt.s32.f32 %v3443_v2 }
0x16df   :  { %v6599_v6 = vsel %vm3447_vm15, %v3448_v52, %v6483_v1  ;;  %v7056_v1 = vld [vmem:[#allocation50_spill] sm:$0xff]  ;;  %vm3659_vm15 = vcmp.eq.s32.totalorder %v7016_v24, 6 }
0x170e   :  { %s4669_s27 = spop %4668 }
0x170f   :  { %s3445_s28 = scalar_lea.vmem [#allocation4], %s4669_s27 }
0x1710   :  { %v3446_v55 = vld [vmem:[%s3445_s28] sm:$0x1] }
0x1711   :  { %v3450_v11 = vpack.c.bf16 %v3446_v55, %v3446_v55  ;;  %v7084_v55 = vld [vmem:[#allocation75_spill] sm:$0xff] }
0x1713   :  { %3511 = vmatmul.bf16.vlgmr.msrb.gmra.mxu2 %v3450_v11  ;;  %3524 = vmatmul.bf16.vlgmr.msrb.gmra.mxu3 %v3450_v11 }
0x1714   :  { %3537 = vmatmul.bf16.vlgmr.msra.gmra.mxu0 %v3450_v11  ;;  %3550 = vmatmul.bf16.vlgmr.msra.gmra.mxu1 %v3450_v11 }
0x1715   :  { %3702 = vmatpush.bf16.msrb.mxu2 %v7018_v53  ;;  %3715 = vmatpush.bf16.msrb.mxu3 %v7019_v17  ;;  %v7062_v53 = vld [vmem:[#allocation56_spill] sm:$0xff]  ;;  %v7063_v17 = vld [vmem:[#allocation39_spill] sm:$0xff] }
0x1716   :  { %3728 = vmatpush.bf16.msra.mxu0 %v7020_v46  ;;  %3741 = vmatpush.bf16.msra.mxu1 %v7054_v54  ;;  %v7064_v46 = vld [vmem:[#allocation58_spill] sm:$0xff]  ;;  %v7085_v54 = vld [vmem:[#allocation76_spill] sm:$0xff] }
0x1719   :  { %3703 = vmatpush.bf16.msrb.mxu2 %v7055_v23  ;;  %3716 = vmatpush.bf16.msrb.mxu3 %v7056_v1 }
0x171a   :  { %3729 = vmatpush.bf16.msra.mxu0 %v7057_v12  ;;  %3742 = vmatpush.bf16.msra.mxu1 %v7058_v29 }
0x171d   :  { %3704 = vmatpush.bf16.msrb.mxu2 %v7059_v62  ;;  %3717 = vmatpush.bf16.msrb.mxu3 %v7060_v61 }
0x171e   :  { %3730 = vmatpush.bf16.msra.mxu0 %v7061_v19  ;;  %3743 = vmatpush.bf16.msra.mxu1 %v7062_v53 }
0x1721   :  { %3705 = vmatpush.bf16.msrb.mxu2 %v7063_v17  ;;  %3718 = vmatpush.bf16.msrb.mxu3 %v7064_v46 }
0x1722   :  { %3731 = vmatpush.bf16.msra.mxu0 %v7065_v60  ;;  %3744 = vmatpush.bf16.msra.mxu1 %v7066_v32 }
0x1725   :  { %3706 = vmatpush.bf16.msrb.mxu2 %v7067_v36  ;;  %3719 = vmatpush.bf16.msrb.mxu3 %v7068_v51  ;;  %v7086_v51 = vld [vmem:[#allocation78_spill] sm:$0xff] }
0x1726   :  { %3732 = vmatpush.bf16.msra.mxu0 %v7069_v39  ;;  %3745 = vmatpush.bf16.msra.mxu1 %v7070_v44 }
0x1729   :  { %3707 = vmatpush.bf16.msrb.mxu2 %v7071_v20  ;;  %3720 = vmatpush.bf16.msrb.mxu3 %v7072_v37 }
0x172a   :  { %3733 = vmatpush.bf16.msra.mxu0 %v7073_v45  ;;  %3746 = vmatpush.bf16.msra.mxu1 %v7074_v63 }
0x172d   :  { %3708 = vmatpush.bf16.msrb.mxu2 %v7075_v42  ;;  %3721 = vmatpush.bf16.msrb.mxu3 %v7076_v43 }
0x172e   :  { %3734 = vmatpush.bf16.msra.mxu0 %v7077_v27  ;;  %3747 = vmatpush.bf16.msra.mxu1 %v7078_v28 }
0x1731   :  { %3709 = vmatpush.bf16.msrb.mxu2 %v7079_v13  ;;  %3722 = vmatpush.bf16.msrb.mxu3 %v7080_v30 }
0x1732   :  { %3735 = vmatpush.bf16.msra.mxu0 %v7081_v31  ;;  %3748 = vmatpush.bf16.msra.mxu1 %v7082_v22 }
0x1791   :  { %v3538_v58 = vpop.f32.mrf.mxu0  ;;  %v3551_v49 = vpop.f32.mrf.mxu1 }
0x1792   :  { %v3552_v47 = vadd.f32 %v3551_v49, %v6593_v26  ;;  %v3539_v60 = vadd.f32 %v3538_v58, %v6586_v5 }
0x1794   :  { %v3558_v3 = vadd.f32 %v3552_v47, %v7083_v35  ;;  %v3557_v39 = vadd.f32 %v3539_v60, %v7086_v51 }
0x1796   :  { %v4514_v15 = vmul.f32 -1.442695, %v3558_v3  ;;  %v3512_v10 = vpop.f32.mrf.mxu2  ;;  %v3525_v7 = vpop.f32.mrf.mxu3 }
0x1797   :  { %v3513_v2 = vadd.f32 %v3512_v10, %v6589_v34  ;;  %v3526_v52 = vadd.f32 %v3525_v7, %v6591_v18 }
0x1798   :  { %4909 = vpow2.f32 %v4514_v15 }
0x1799   :  { %v3555_v11 = vadd.f32 %v3513_v2, %v7084_v55  ;;  %v3556_v23 = vadd.f32 %v3526_v52, %v7085_v54  ;;  %v3540_v1 = vpop.f32.mrf.mxu0  ;;  %v3553_v12 = vpop.f32.mrf.mxu1 }
0x179b   :  { %v4512_v29 = vmul.f32 -1.442695, %v3555_v11  ;;  %v4513_v62 = vmul.f32 -1.442695, %v3556_v23 }
0x179d   :  { %4911 = vpow2.f32 %v4512_v29 }
0x179e   :  { %v4910_v26 = vpop.eup %4909  ;;  %4913 = vpow2.f32 %v4513_v62  ;;  %v3514_v61 = vpop.f32.mrf.mxu2 }
0x179f   :  { %v3527_v19 = vpop.f32.mrf.mxu3  ;;  %v3601_v53 = vadd.f32 1.0, %v4910_v26 }
0x17a1   :  { %4915 = vrcp.f32 %v3601_v53  ;;  %v3613_v29 = vand.u32 2147483648, %v3601_v53  ;;  %vm3607_vm9 = vweird.f32 %v3601_v53  ;;  %v3611_v62 = vand.u32 2147483647, %v3601_v53 }
0x17a3   :  { %v4912_v17 = vpop.eup %4911  ;;  %v3614_v61 = vor.u32 1.1754944e-38, %v3613_v29  ;;  %vm3612_vm11 = vcmp.eq.f32.partialorder %v3611_v62, 8.507059e+37 }
0x17a4   :  { %v4914_v46 = vpop.eup %4913  ;;  %v3562_v34 = vadd.f32 1.0, %v4912_v17 }
0x17a5   :  { %v3581_v18 = vadd.f32 1.0, %v4914_v46 }
0x17a6   :  { %4917 = vrcp.f32 %v3562_v34  ;;  %v3574_v42 = vand.u32 2147483648, %v3562_v34  ;;  %v3572_v28 = vand.u32 2147483647, %v3562_v34  ;;  %vm3568_vm2 = vweird.f32 %v3562_v34 }
0x17a7   :  { %4919 = vrcp.f32 %v3581_v18  ;;  %v4916_v32 = vpop.eup %4915  ;;  %v3593_v13 = vand.u32 2147483648, %v3581_v18  ;;  %v3591_v31 = vand.u32 2147483647, %v3581_v18  ;;  %vm3587_vm4 = vweird.f32 %v3581_v18 }
0x17a8   :  { %v3603_v45 = vmul.f32 %v4916_v32, %v3601_v53  ;;  %4921 = vtanh.f32 %v3557_v39  ;;  %v3575_v58 = vor.u32 1.1754944e-38, %v3574_v42  ;;  %vm3573_vm5 = vcmp.eq.f32.partialorder %v3572_v28, 8.507059e+37 }
0x17a9   :  { %v3594_v3 = vor.u32 1.1754944e-38, %v3593_v13  ;;  %vm3592_vm7 = vcmp.eq.f32.partialorder %v3591_v31, 8.507059e+37  ;;  %vm3608_vm8 = vweird.f32 %v4916_v32 }
0x17aa   :  { %v3604_v5 = vsub.f32 1.0, %v3603_v45  ;;  %vm3609_vm10 = vmor %vm3607_vm9, %vm3608_vm8 }
0x17ac   :  { %v4918_v36 = vpop.eup %4917  ;;  %v3605_v2 = vmul.f32 %v4916_v32, %v3604_v5 }
0x17ad   :  { %v4920_v44 = vpop.eup %4919  ;;  %v3564_v20 = vmul.f32 %v4918_v36, %v3562_v34  ;;  %vm3569_vm0 = vweird.f32 %v4918_v36 }
0x17ae   :  { %v3583_v37 = vmul.f32 %v4920_v44, %v3581_v18  ;;  %vm3588_vm1 = vweird.f32 %v4920_v44  ;;  %vm3570_vm3 = vmor %vm3568_vm2, %vm3569_vm0  ;;  %v4922_v15 = vpop.eup %4921  ;;  %v3606_v12 = vadd.f32 %v4916_v32, %v3605_v2 }
0x17af   :  { %v3565_v63 = vsub.f32 1.0, %v3564_v20  ;;  %vm3589_vm6 = vmor %vm3587_vm4, %vm3588_vm1 }
0x17b0   :  { %v3584_v43 = vsub.f32 1.0, %v3583_v37  ;;  %v3610_v26 = vsel %vm3609_vm10, %v4916_v32, %v3606_v12 }
0x17b1   :  { %v3566_v27 = vmul.f32 %v4918_v36, %v3565_v63  ;;  %v3615_v17 = vsel %vm3612_vm11, %v3614_v61, %v3610_v26 }
0x17b2   :  { %v3585_v30 = vmul.f32 %v4920_v44, %v3584_v43 }
0x17b3   :  { %v3567_v22 = vadd.f32 %v4918_v36, %v3566_v27 }
0x17b4   :  { %v3586_v49 = vadd.f32 %v4920_v44, %v3585_v30 }
0x17b5   :  { %v3571_v47 = vsel %vm3570_vm3, %v4918_v36, %v3567_v22 }
0x17b6   :  { %v3576_v10 = vsel %vm3573_vm5, %v3575_v58, %v3571_v47  ;;  %v3590_v7 = vsel %vm3589_vm6, %v4920_v44, %v3586_v49 }
0x17b7   :  { %v3618_v52 = vmul.f32 %v4922_v15, %v3576_v10  ;;  %v3595_v11 = vsel %vm3592_vm7, %v3594_v3, %v3590_v7 }
0x17b8   :  { %v3617_v23 = vmul.f32 %v3595_v11, %v6526_v8 }
0x17ba   :  { %v6642_v1 = vadd.f32 %v3618_v52, %v3617_v23 }
0x17bc   :  { %4923 = vtanh.f32 %v6642_v1 }
0x17c2   :  { %v4924_v19 = vpop.eup %4923 }
0x17c3   :  { %v3621_v46 = vmul.f32 %v4924_v19, %v3615_v17 }
0x17c5   :  { %v3622_v34 = vpack.c.bf16 %v3621_v46, %v3621_v46 }
0x17c7   :  { %3631 = vmatmul.bf16.vlgmr.msra.gmra.mxu2 %v3622_v34  ;;  %3671 = vmatmul.bf16.vlgmr.msra.gmra.mxu3 %v3622_v34 }
0x17c8   :  { %3684 = vmatmul.bf16.vlgmr.msrb.gmra.mxu0 %v3622_v34  ;;  %3697 = vmatmul.bf16.vlgmr.msrb.gmra.mxu1 %v3622_v34 }
0x17c9   :  { %3754 = vmatpush.bf16.msra.mxu2 %v6855_v50  ;;  %3835 = vmatpush.bf16.msra.mxu3 %v6530_v0 }
0x17cd   :  { %3755 = vmatpush.bf16.msra.mxu2 %v6856_v14  ;;  %3836 = vmatpush.bf16.msra.mxu3 %v6536_v41 }
0x17d1   :  { %3756 = vmatpush.bf16.msra.mxu2 %v6857_v40  ;;  %3837 = vmatpush.bf16.msra.mxu3 %v6542_v9 }
0x17d5   :  { %3757 = vmatpush.bf16.msra.mxu2 %v6858_v38  ;;  %3838 = vmatpush.bf16.msra.mxu3 %v6548_v4 }
0x17d7   :  { %3710 = vmatmul.bf16.vlgmr.msrb.gmra.mxu2 %v3622_v34 }
0x17d9   :  { %3758 = vmatpush.bf16.msra.mxu2 %v6859_v59  ;;  %3839 = vmatpush.bf16.msra.mxu3 %v6554_v16  ;;  %v6666_v59 = vld [vmem:[%s6701_s10] sm:$0x1] }
0x17dd   :  { %3759 = vmatpush.bf16.msra.mxu2 %v5872_v21  ;;  %3840 = vmatpush.bf16.msra.mxu3 %v6560_v48 }
0x17e1   :  { %3760 = vmatpush.bf16.msra.mxu2 %v5884_v33  ;;  %3841 = vmatpush.bf16.msra.mxu3 %v6566_v57 }
0x17e5   :  { %3761 = vmatpush.bf16.msra.mxu2 %v5896_v56  ;;  %3842 = vmatpush.bf16.msra.mxu3 %v6572_v25 }
0x1845   :  { %v3685_v50 = vpop.f32.mrf.mxu0  ;;  %v6661_v14 = vpop.f32.mrf.mxu1 }
0x184a   :  { %v3632_v40 = vpop.f32.mrf.mxu2  ;;  %v3672_v38 = vpop.f32.mrf.mxu3 }
0x184b   :  { %v3633_v21 = vadd.f32 %v6666_v59, %v3632_v40 }
0x184d   :  { %v3687_v8 = vpop.f32.mrf.mxu0  ;;  %v3700_v33 = vpop.f32.mrf.mxu1  ;;  %v3636_v0 = vsel %vm2363_vm12, %v3633_v21, -inf }
0x184e   :  { %3637 = vmax.xlane.f32.xlu0 %v3636_v0 }
0x1852   :  { %v3634_v56 = vpop.f32.mrf.mxu2  ;;  %v3674_v41 = vpop.f32.mrf.mxu3 }
0x185a   :  { %v3711_v9 = vpop.f32.mrf.mxu2 }
0x1862   :  { %v3713_v4 = vpop.f32.mrf.mxu2 }
0x18c1   :  { %v3638_v16 = vpop.xlane.xlu0 %3637 }
0x18c2   :  { %vm3639_vm13 = vcmp.eq.f32.partialorder %v3633_v21, %v3638_v16 }
0x18c3   :  { %v3640_v48 = vsel %vm3639_vm13, %v7016_v24, 128 }
0x18c4   :  { %v3641_v57 = vsel %vm2363_vm12, %v3640_v48, 2147483647 }
0x18c5   :  { %v3643_v25 = vshra.s32 %v3641_v57, 16  ;;  %v3642_v18 = vand.u32 65535, %v3641_v57 }
0x18c7   :  { %v3645_v53 = vcvt.s32.f32 %v3643_v25  ;;  %v3644_v32 = vcvt.s32.f32 %v3642_v18 }
0x18c9   :  { %3646 = vmin.xlane.f32.xlu1 %v3645_v53 }
0x193c   :  { %v3647_v60 = vpop.xlane.xlu1 %3646 }
0x193d   :  { %vm3648_vm14 = vcmp.eq.f32.partialorder %v3645_v53, %v3647_v60  ;;  %v3653_v39 = vcvt.f32.s32 %v3647_v60 }
0x193e   :  { %v3649_v36 = vsel %vm3648_vm14, %v3644_v32, inf }
0x193f   :  { %3650 = vmin.xlane.f32.xlu2 %v3649_v36  ;;  %v3654_v20 = vshll.u32 %v3653_v39, 16 }
0x19b2   :  { %v3651_v44 = vpop.xlane.xlu2 %3650 }
0x19b3   :  { %v3652_v37 = vcvt.f32.s32 %v3651_v44 }
0x19b5   :  { %v3655_v45 = vadd.s32 %v3654_v20, %v3652_v37 }
0x19b7   :  { %4670 = vpush %v3655_v45  ;;  %v3660_v63 = vcvt.s32.f32 %v3655_v45 }
0x19b9   :  { %v6674_v42 = vsel %vm3659_vm15, %v3660_v63, %v6599_v6  ;;  %vm3871_vm15 = vcmask 57344  }
0x19e8   :  { %s4671_s10 = spop %4670 }
0x19e9   :  { %s3657_s30 = scalar_lea.vmem [#allocation4], %s4671_s10 }
0x19ea   :  { %v3658_v43 = vld [vmem:[%s3657_s30] sm:$0x1] }
0x19eb   :  { %v3662_v27 = vpack.c.bf16 %v3658_v43, %v3658_v43 }
0x19ed   :  { %3723 = vmatmul.bf16.vlgmr.msrb.gmra.mxu3 %v3662_v27  ;;  %3736 = vmatmul.bf16.vlgmr.msra.gmra.mxu0 %v3662_v27 }
0x19ee   :  { %3749 = vmatmul.bf16.vlgmr.msra.gmra.mxu1 %v3662_v27  ;;  %3762 = vmatmul.bf16.vlgmr.msra.gmra.mxu2 %v3662_v27 }
0x1a6a   :  { %v3737_v28 = vpop.f32.mrf.mxu0 }
0x1a6b   :  { %v3738_v13 = vadd.f32 %v3737_v28, %v3685_v50  ;;  %v3750_v30 = vpop.f32.mrf.mxu1 }
0x1a6d   :  { %v3768_v31 = vadd.f32 %v3738_v13, %v7085_v54 }
0x1a6f   :  { %v4516_v5 = vmul.f32 -1.442695, %v3768_v31 }
0x1a70   :  { %v3724_v22 = vpop.f32.mrf.mxu3 }
0x1a71   :  { %4925 = vpow2.f32 %v4516_v5  ;;  %v3725_v58 = vadd.f32 %v3724_v22, %v3672_v38  ;;  %v3763_v49 = vpop.f32.mrf.mxu2 }
0x1a72   :  { %v3764_v6 = vadd.f32 %v3763_v49, %v3711_v9  ;;  %v3739_v47 = vpop.f32.mrf.mxu0 }
0x1a73   :  { %v3767_v3 = vadd.f32 %v3725_v58, %v7084_v55  ;;  %v3752_v15 = vpop.f32.mrf.mxu1  ;;  %v3751_v55 = vadd.f32 %v3750_v30, %v6661_v14 }
0x1a74   :  { %v3770_v10 = vadd.f32 %v3764_v6, %v7083_v35 }
0x1a75   :  { %v4515_v7 = vmul.f32 -1.442695, %v3767_v3  ;;  %v3769_v34 = vadd.f32 %v3751_v55, %v7086_v51 }
0x1a76   :  { %v4517_v2 = vmul.f32 -1.442695, %v3770_v10 }
0x1a77   :  { %v4926_v52 = vpop.eup %4925  ;;  %4927 = vpow2.f32 %v4515_v7 }
0x1a78   :  { %v3793_v11 = vadd.f32 1.0, %v4926_v52  ;;  %4929 = vpow2.f32 %v4517_v2  ;;  %v3726_v23 = vpop.f32.mrf.mxu3 }
0x1a79   :  { %v3765_v54 = vpop.f32.mrf.mxu2 }
0x1a7a   :  { %4931 = vrcp.f32 %v3793_v11  ;;  %v3805_v21 = vand.u32 2147483648, %v3793_v11  ;;  %vm3799_vm1 = vweird.f32 %v3793_v11  ;;  %v3803_v33 = vand.u32 2147483647, %v3793_v11 }
0x1a7c   :  { %v3806_v4 = vor.u32 1.1754944e-38, %v3805_v21  ;;  %vm3804_vm4 = vcmp.eq.f32.partialorder %v3803_v33, 8.507059e+37 }
0x1a7d   :  { %v4928_v12 = vpop.eup %4927 }
0x1a7e   :  { %v4930_v29 = vpop.eup %4929  ;;  %v3774_v62 = vadd.f32 1.0, %v4928_v12 }
0x1a7f   :  { %v3813_v26 = vadd.f32 1.0, %v4930_v29 }
0x1a80   :  { %v4932_v61 = vpop.eup %4931  ;;  %4933 = vrcp.f32 %v3774_v62  ;;  %v3786_v56 = vand.u32 2147483648, %v3774_v62  ;;  %v3784_v14 = vand.u32 2147483647, %v3774_v62  ;;  %vm3780_vm5 = vweird.f32 %v3774_v62 }
0x1a81   :  { %v3795_v19 = vmul.f32 %v4932_v61, %v3793_v11  ;;  %4935 = vrcp.f32 %v3813_v26  ;;  %vm3800_vm0 = vweird.f32 %v4932_v61  ;;  %v3825_v20 = vand.u32 2147483648, %v3813_v26 }
0x1a82   :  { %vm3801_vm2 = vmor %vm3799_vm1, %vm3800_vm0  ;;  %4937 = vtanh.f32 %v3769_v34  ;;  %v3787_v57 = vor.u32 1.1754944e-38, %v3786_v56  ;;  %vm3785_vm7 = vcmp.eq.f32.partialorder %v3784_v14, 8.507059e+37  ;;  %vm3819_vm9 = vweird.f32 %v3813_v26 }
0x1a83   :  { %v3796_v35 = vsub.f32 1.0, %v3795_v19  ;;  %v3823_v37 = vand.u32 2147483647, %v3813_v26  ;;  %v3826_v63 = vor.u32 1.1754944e-38, %v3825_v20 }
0x1a85   :  { %v3797_v17 = vmul.f32 %v4932_v61, %v3796_v35  ;;  %vm3824_vm11 = vcmp.eq.f32.partialorder %v3823_v37, 8.507059e+37 }
0x1a86   :  { %v4934_v46 = vpop.eup %4933 }
0x1a87   :  { %v4936_v50 = vpop.eup %4935  ;;  %v3798_v40 = vadd.f32 %v4932_v61, %v3797_v17  ;;  %v3776_v38 = vmul.f32 %v4934_v46, %v3774_v62  ;;  %vm3781_vm3 = vweird.f32 %v4934_v46 }
0x1a88   :  { %v3815_v8 = vmul.f32 %v4936_v50, %v3813_v26  ;;  %vm3782_vm6 = vmor %vm3780_vm5, %vm3781_vm3  ;;  %v4938_v53 = vpop.eup %4937  ;;  %vm3820_vm8 = vweird.f32 %v4936_v50 }
0x1a89   :  { %v3777_v0 = vsub.f32 1.0, %v3776_v38  ;;  %v3802_v41 = vsel %vm3801_vm2, %v4932_v61, %v3798_v40  ;;  %vm3821_vm10 = vmor %vm3819_vm9, %vm3820_vm8 }
0x1a8a   :  { %v3816_v16 = vsub.f32 1.0, %v3815_v8  ;;  %v3807_v48 = vsel %vm3804_vm4, %v3806_v4, %v3802_v41 }
0x1a8b   :  { %v3778_v9 = vmul.f32 %v4934_v46, %v3777_v0  ;;  %v3829_v32 = vmul.f32 %v3807_v48, %v6642_v1 }
0x1a8c   :  { %v3817_v60 = vmul.f32 %v4936_v50, %v3816_v16 }
0x1a8d   :  { %v3779_v51 = vadd.f32 %v4934_v46, %v3778_v9 }
0x1a8e   :  { %v3818_v44 = vadd.f32 %v4936_v50, %v3817_v60 }
0x1a8f   :  { %v3783_v25 = vsel %vm3782_vm6, %v4934_v46, %v3779_v51 }
0x1a90   :  { %v3788_v18 = vsel %vm3785_vm7, %v3787_v57, %v3783_v25  ;;  %v3822_v45 = vsel %vm3821_vm10, %v4936_v50, %v3818_v44 }
0x1a91   :  { %v3830_v36 = vmul.f32 %v4938_v53, %v3788_v18  ;;  %v3827_v27 = vsel %vm3824_vm11, %v3826_v63, %v3822_v45 }
0x1a93   :  { %v3831_v39 = vadd.f32 %v3830_v36, %v3829_v32 }
0x1a95   :  { %4939 = vtanh.f32 %v3831_v39 }
0x1a9b   :  { %v4940_v43 = vpop.eup %4939 }
0x1a9c   :  { %v3833_v28 = vmul.f32 %v4940_v43, %v3827_v27 }
0x1a9e   :  { %v3834_v13 = vpack.c.bf16 %v3833_v28, %v3833_v28 }
0x1aa0   :  { %3843 = vmatmul.bf16.vlgmr.msra.gmra.mxu3 %v3834_v13 }
0x1b23   :  { %v3844_v30 = vpop.f32.mrf.mxu3 }
0x1b24   :  { %v3845_v1 = vadd.f32 %v6666_v59, %v3844_v30 }
0x1b26   :  { %v3848_v31 = vsel %vm2363_vm12, %v3845_v1, -inf }
0x1b27   :  { %3849 = vmax.xlane.f32.xlu0 %v3848_v31 }
0x1b2b   :  { %v3846_v5 = vpop.f32.mrf.mxu3 }
0x1b9a   :  { %v3850_v22 = vpop.xlane.xlu0 %3849 }
0x1b9b   :  { %vm3851_vm13 = vcmp.eq.f32.partialorder %v3845_v1, %v3850_v22 }
0x1b9c   :  { %v3852_v58 = vsel %vm3851_vm13, %v7016_v24, 128 }
0x1b9d   :  { %v3853_v49 = vsel %vm2363_vm12, %v3852_v58, 2147483647  ;;  %vm3868_vm12 = vcmp.eq.s32.totalorder %v7016_v24, 7 }
0x1b9e   :  { %v3855_v6 = vshra.s32 %v3853_v49, 16  ;;  %v3854_v3 = vand.u32 65535, %v3853_v49 }
0x1ba0   :  { %v3857_v47 = vcvt.s32.f32 %v3855_v6  ;;  %v3856_v10 = vcvt.s32.f32 %v3854_v3 }
0x1ba2   :  { %3858 = vmin.xlane.f32.xlu1 %v3857_v47 }
0x1c15   :  { %v3859_v15 = vpop.xlane.xlu1 %3858 }
0x1c16   :  { %vm3860_vm14 = vcmp.eq.f32.partialorder %v3857_v47, %v3859_v15  ;;  %v3865_v59 = vcvt.f32.s32 %v3859_v15 }
0x1c17   :  { %v3861_v7 = vsel %vm3860_vm14, %v3856_v10, inf }
0x1c18   :  { %3862 = vmin.xlane.f32.xlu2 %v3861_v7  ;;  %v3866_v52 = vshll.u32 %v3865_v59, 16 }
0x1c8b   :  { %v3863_v2 = vpop.xlane.xlu2 %3862 }
0x1c8c   :  { %v3864_v11 = vcvt.f32.s32 %v3863_v2 }
0x1c8e   :  { %v3867_v23 = vadd.s32 %v3866_v52, %v3864_v11 }
0x1c90   :  { %v3869_v54 = vcvt.s32.f32 %v3867_v23 }
0x1c92   :  { %v3870_v12 = vsel %vm3868_vm12, %v3869_v54, %v6674_v42 }
0x1c93   :  { %3872 = vst.msk [vmem:[#allocation16] sm:$0x1] %vm3871_vm15, %v3870_v12 }
0x1c94   :  { %3883 = dma.vmem_to_hbm [thread:$0]  %s3879_s5, 16, %s3881_s15, [#allocation9]  }
0x1c95   :  { %5213 = dma.done.wait [#allocation9], 16  }
0x1c96   :  { %5214 = vsyncadd [#allocation9], 4294967280 }
0x1c97   :  { %3888 = vsyncpa [#allocation8], 1 }
0x1c98   :  { %3889 = vsyncpa [#allocation11], 1 }
0x1c99   :  { %3890 = vsyncpa [#allocation14], 1 }
0x1c9a   :  { %3891 = vsyncpa [#allocation9], 1 }
0x1c9b   :  { %3892 = vsyncmov [#allocation6] }
0x1c9e   :  { %s3893_s16 = vpop.sfrf %3892 }
0x1c9f   :  { %p4518_p0 = scmp.ne.s32.totalorder %s3893_s16, 0 }
0x1ca1   :  { %3897 = shalt.err (%p4518_p0)  }
0x1ca2   :  { %3899 = vsyncmov [#allocation6 + $0x1] }
0x1ca5   :  { %s3900_s11 = vpop.sfrf %3899 }
0x1ca6   :  { %p4519_p1 = scmp.ne.s32.totalorder %s3900_s11, 0 }
0x1ca8   :  { %3904 = shalt.err (%p4519_p1)  }
0x1ca9   :  { %3906 = vsyncmov [#allocation6 + $0x2] }
0x1cac   :  { %s3907_s6 = vpop.sfrf %3906 }
0x1cad   :  { %p4520_p2 = scmp.ne.s32.totalorder %s3907_s6, 0 }
0x1caf   :  { %3911 = shalt.err (%p4520_p2)  }
0x1cb0   :  { %3913 = vsyncmov [#allocation6 + $0x3] }
0x1cb3   :  { %s3914_s3 = vpop.sfrf %3913 }
0x1cb4   :  { %p4521_p3 = scmp.ne.s32.totalorder %s3914_s3, 0 }
0x1cb6   :  { %3918 = shalt.err (%p4521_p3)  }

</bundles_post_ra>
